<compile_context>
chip_gen: v6e
topology: v6e:2x2x1
jax: 0.10.0
libtpu: 0.0.40
codegen_flags: <defaults>
</compile_context>

<pallas_src>
import numpy as np
import jax
import jax.numpy as jnp
from jax.experimental import pallas as pl
from jax.experimental.pallas import tpu as pltpu

# Geometry fixed by the module: 28x28 -> conv1(pad=1) 28x28 -> pool 14x14
#                               -> conv2 12x12 -> pool 6x6 -> fc(2304)
H1, P1, H2, P2 = 28, 14, 12, 6
C1, C2 = 32, 64
FC1_IN = C2 * P2 * P2                 # 2304
FC1_OUT, FC1_PAD = 600, 640
FC2_OUT, FC2_PAD = 120, 128
FC3_OUT, OUT_PAD = 10, 128
CONV2_SPAN = (H2 - 1) * P1 + H2       # 166 rows cover all 12 conv2 output rows


def _pool_permutation():
    """Permutation of conv1 im2col rows so that the in-kernel 2x2/2 max-pool
    becomes two max-of-contiguous-halves:
      new_row = (w%2)*392 + (h%2)*196 + (h//2)*14 + (w//2)."""
    perm = np.zeros(H1 * H1, np.int32)
    for h in range(H1):
        for w in range(H1):
            new = (w % 2) * 392 + (h % 2) * 196 + (h // 2) * P1 + (w // 2)
            perm[new] = h * H1 + w
    return perm


_PERM = _pool_permutation()


# ----------------------------------------------------------------------------
# Fused kernel: conv1+pool -> conv2+pool -> fc1 -> fc2 -> fc3   (one image/step)
# ----------------------------------------------------------------------------
def _fused_kernel(p1_ref, w1_ref, s1_ref, w2_ref, s2_ref,
                  wf1_ref, bf1_ref, wf2_ref, bf2_ref, wf3_ref, bf3_ref,
                  o_ref, flat_ref):
    f32 = jnp.float32
    bf16 = jnp.bfloat16

    # ---- layer1: conv(1->32, pad=1) as one matmul (BN scale folded in weight)
    y1 = jnp.dot(p1_ref[0], w1_ref[...], preferred_element_type=f32)   # (784, 32)
    # 2x2/2 max-pool = two maxima of contiguous halves (host row permutation)
    a = jnp.maximum(y1[0:392, :], y1[392:784, :])                      # (392, 32)
    pm = jnp.maximum(a[0:196, :], a[196:392, :])                       # (196, 32)
    p = jnp.maximum(pm + s1_ref[...], 0.0)          # BN shift + ReLU, row = y*14+x

    # ---- layer2: conv(32->64, no pad) as 9 shifted matmuls over resident map.
    # Tap (kh, kw): one contiguous 166-row slice covers all output rows; result
    # row i*14+j is output pixel (i, j) for j < 12 (j in {12,13} ignored).
    y2 = None
    for t in range(9):
        kh, kw = divmod(t, 3)
        start = kh * P1 + kw
        lhs = p[start:start + CONV2_SPAN, :].astype(bf16)              # (166, 32)
        d = jnp.dot(lhs, w2_ref[t], preferred_element_type=f32)        # (166, 64)
        y2 = d if y2 is None else y2 + d
    s2 = s2_ref[...]

    # ---- BN shift + ReLU + 2x2/2 max-pool, flattened into fc1 lane order
    # (lane = (ii*6 + jj)*64 + c, matching the re-ordered fc1 weight rows).
    for ii in range(P2):
        r0 = y2[(2 * ii) * P1:(2 * ii) * P1 + H2, :]                   # (12, 64)
        r1 = y2[(2 * ii + 1) * P1:(2 * ii + 1) * P1 + H2, :]
        m = jnp.maximum(jnp.maximum(r0, r1) + s2, 0.0)                 # (12, 64)
        for jj in range(P2):
            v = jnp.maximum(m[2 * jj:2 * jj + 1, :],
                            m[2 * jj + 1:2 * jj + 2, :])               # (1, 64)
            col = (ii * P2 + jj) * C2
            flat_ref[:, col:col + C2] = v

    # ---- fc1 -> dropout(identity) -> fc2 -> fc3 (bf16 operands, f32 accum)
    # TODO(synk): nn.Dropout2d(0.25) is identity in inference mode; the
    # training-mode channel dropout is not implemented here.
    flat = flat_ref[...].astype(bf16)                                  # (1, 2304)
    h1 = jnp.dot(flat, wf1_ref[...], preferred_element_type=f32) + bf1_ref[...]
    h2 = jnp.dot(h1.astype(bf16), wf2_ref[...],
                 preferred_element_type=f32) + bf2_ref[...]
    h3 = jnp.dot(h2.astype(bf16), wf3_ref[...],
                 preferred_element_type=f32) + bf3_ref[...]            # (1, 128)
    o_ref[0] = h3


def fused_forward_call(patches1, w1, s1, w2, s2, wf1, b1, wf2, b2, wf3, b3):
    B = patches1.shape[0]
    return pl.pallas_call(
        _fused_kernel,
        out_shape=jax.ShapeDtypeStruct((B, 1, OUT_PAD), jnp.float32),
        grid=(B,),
        in_specs=[
            pl.BlockSpec((1, H1 * H1, 9), lambda b: (b, 0, 0)),
            pl.BlockSpec((9, C1), lambda b: (0, 0)),
            pl.BlockSpec((1, C1), lambda b: (0, 0)),
            pl.BlockSpec((9, C1, C2), lambda b: (0, 0, 0)),
            pl.BlockSpec((1, C2), lambda b: (0, 0)),
            pl.BlockSpec((FC1_IN, FC1_PAD), lambda b: (0, 0)),
            pl.BlockSpec((1, FC1_PAD), lambda b: (0, 0)),
            pl.BlockSpec((FC1_PAD, FC2_PAD), lambda b: (0, 0)),
            pl.BlockSpec((1, FC2_PAD), lambda b: (0, 0)),
            pl.BlockSpec((FC2_PAD, OUT_PAD), lambda b: (0, 0)),
            pl.BlockSpec((1, OUT_PAD), lambda b: (0, 0)),
        ],
        out_specs=pl.BlockSpec((1, 1, OUT_PAD), lambda b: (b, 0, 0)),
        scratch_shapes=[pltpu.VMEM((1, FC1_IN), jnp.float32)],
        compiler_params=pltpu.CompilerParams(
            dimension_semantics=("parallel",),
            vmem_limit_bytes=32 * 1024 * 1024),
    )(patches1, w1, s1, w2, s2, wf1, b1, wf2, b2, wf3, b3)


# ----------------------------------------------------------------------------
# Host-side glue: im2col(+permutation), BN folding, weight re-layout / padding
# ----------------------------------------------------------------------------
def im2col_conv1(x):
    """x: (B, 1, 28, 28) -> (B, 784, 9); tap order (kh, kw); rows permuted so the
    in-kernel max-pool is two maxima of contiguous halves."""
    B = x.shape[0]
    xp = jnp.pad(x[:, 0], ((0, 0), (1, 1), (1, 1)))                     # (B, 30, 30)
    taps = [xp[:, dy:dy + H1, dx:dx + H1] for dy in range(3) for dx in range(3)]
    patches = jnp.stack(taps, axis=-1).reshape(B, H1 * H1, 9)
    return patches[:, _PERM, :]


def fold_bn(conv_bias, gamma, beta, mean, var, eps=1e-5):
    scale = gamma / jnp.sqrt(var + eps)
    shift = beta + (conv_bias - mean) * scale
    return scale, shift


def prepare_weights(p):
    bf16 = jnp.bfloat16
    s1, t1 = fold_bn(p["b_conv1"], p["bn1_gamma"], p["bn1_beta"],
                     p["bn1_mean"], p["bn1_var"])
    s2, t2 = fold_bn(p["b_conv2"], p["bn2_gamma"], p["bn2_beta"],
                     p["bn2_mean"], p["bn2_var"])
    # conv1 weight (9, 32) with BN scale folded into the output channels
    w1 = (p["w_conv1"].reshape(C1, 9).T * s1[None, :]).astype(bf16)
    # conv2 weight (9, 32, 64): tap-major (kh, kw), BN scale folded
    w2 = (jnp.transpose(p["w_conv2"], (2, 3, 1, 0)).reshape(9, C1, C2)
          * s2[None, None, :]).astype(bf16)
    # fc1: reorder rows from PyTorch's (c*36 + m) to the kernel's (m*64 + c),
    # then zero-pad outputs 600 -> 640
    wf1 = jnp.transpose(p["w_fc1"].reshape(FC1_OUT, C2, P2 * P2), (2, 1, 0))
    wf1 = jnp.pad(wf1.reshape(FC1_IN, FC1_OUT),
                  ((0, 0), (0, FC1_PAD - FC1_OUT))).astype(bf16)
    b1 = jnp.pad(p["b_fc1"], (0, FC1_PAD - FC1_OUT)).reshape(1, FC1_PAD)
    # fc2 / fc3: transpose + zero-pad to lane-dense widths
    wf2 = jnp.pad(p["w_fc2"].T, ((0, FC1_PAD - FC1_OUT),
                                 (0, FC2_PAD - FC2_OUT))).astype(bf16)
    b2 = jnp.pad(p["b_fc2"], (0, FC2_PAD - FC2_OUT)).reshape(1, FC2_PAD)
    wf3 = jnp.pad(p["w_fc3"].T, ((0, FC2_PAD - FC2_OUT),
                                 (0, OUT_PAD - FC3_OUT))).astype(bf16)
    b3 = jnp.pad(p["b_fc3"], (0, OUT_PAD - FC3_OUT)).reshape(1, OUT_PAD)
    return (w1, t1.reshape(1, C1), w2, t2.reshape(1, C2),
            wf1, b1, wf2, b2, wf3, b3)


def forward(params, x):
    patches1 = im2col_conv1(x).astype(jnp.bfloat16)       # (B, 784, 9)
    args = prepare_weights(params)
    out = fused_forward_call(patches1, *args)             # (B, 1, 128)
    return out[:, 0, :FC3_OUT]                            # (B, 10)


# ----------------------------------------------------------------------------
# Parameter initialization (PyTorch-like shapes/conventions)
# ----------------------------------------------------------------------------
def init_params(key):
    ks = jax.random.split(key, 20)

    def unif(k, shape, fan_in):
        bound = 1.0 / np.sqrt(fan_in)
        return jax.random.uniform(k, shape, jnp.float32, -bound, bound)

    p = {}
    p["w_conv1"] = unif(ks[0], (C1, 1, 3, 3), 9)
    p["b_conv1"] = unif(ks[1], (C1,), 9)
    p["bn1_gamma"] = jax.random.uniform(ks[2], (C1,), jnp.float32, 0.5, 1.5)
    p["bn1_beta"] = 0.1 * jax.random.normal(ks[3], (C1,), jnp.float32)
    p["bn1_mean"] = 0.1 * jax.random.normal(ks[4], (C1,), jnp.float32)
    p["bn1_var"] = jax.random.uniform(ks[5], (C1,), jnp.float32, 0.5, 1.5)
    p["w_conv2"] = unif(ks[6], (C2, C1, 3, 3), C1 * 9)
    p["b_conv2"] = unif(ks[7], (C2,), C1 * 9)
    p["bn2_gamma"] = jax.random.uniform(ks[8], (C2,), jnp.float32, 0.5, 1.5)
    p["bn2_beta"] = 0.1 * jax.random.normal(ks[9], (C2,), jnp.float32)
    p["bn2_mean"] = 0.1 * jax.random.normal(ks[10], (C2,), jnp.float32)
    p["bn2_var"] = jax.random.uniform(ks[11], (C2,), jnp.float32, 0.5, 1.5)
    p["w_fc1"] = unif(ks[12], (FC1_OUT, FC1_IN), FC1_IN)
    p["b_fc1"] = unif(ks[13], (FC1_OUT,), FC1_IN)
    p["w_fc2"] = unif(ks[14], (FC2_OUT, FC1_OUT), FC1_OUT)
    p["b_fc2"] = unif(ks[15], (FC2_OUT,), FC1_OUT)
    p["w_fc3"] = unif(ks[16], (FC3_OUT, FC2_OUT), FC2_OUT)
    p["b_fc3"] = unif(ks[17], (FC3_OUT,), FC2_OUT)
    return p


if __name__ == "__main__":
    key = jax.random.PRNGKey(0)
    k_x, k_p = jax.random.split(key)
    # Spatial size fixed by the module (fc1 expects 64*6*6 -> 28x28 input).
    x = jax.random.normal(k_x, (2, 1, 28, 28), jnp.float32)
    params = init_params(k_p)

    out = jax.jit(forward)(params, x)
    out = jax.block_until_ready(out)
    assert out.shape == (2, 10) and out.dtype == jnp.float32
    assert bool(jnp.all(jnp.isfinite(out)))
    print("KERNEL_OK")
</pallas_src>

<mosaic_0001>
module attributes {stable_mosaic.version = 11 : i64} {
  func.func @_fused_kernel(%arg0: i32, %arg1: memref<1x784x9xbf16, #tpu.memory_space<vmem>>, %arg2: memref<9x32xbf16, #tpu.memory_space<vmem>>, %arg3: memref<1x32xf32, #tpu.memory_space<vmem>>, %arg4: memref<9x32x64xbf16, #tpu.memory_space<vmem>>, %arg5: memref<1x64xf32, #tpu.memory_space<vmem>>, %arg6: memref<2304x640xbf16, #tpu.memory_space<vmem>>, %arg7: memref<1x640xf32, #tpu.memory_space<vmem>>, %arg8: memref<640x128xbf16, #tpu.memory_space<vmem>>, %arg9: memref<1x128xf32, #tpu.memory_space<vmem>>, %arg10: memref<128x128xbf16, #tpu.memory_space<vmem>>, %arg11: memref<1x128xf32, #tpu.memory_space<vmem>>, %arg12: memref<1x1x128xf32, #tpu.memory_space<vmem>>, %arg13: memref<1x2304xf32, #tpu.memory_space<vmem>>) attributes {dimension_semantics = [#tpu.dimension_semantics<parallel>], iteration_bounds = array<i64: 2>, scalar_prefetch = 0 : i64, scratch_operands = 1 : i64, tpu.core_type = #tpu.core_type<tc>, window_params = [{transform_indices = @transform_0, window_bounds = array<i64: 1, 784, 9>}, {pipeline_mode = #tpu.pipeline_mode<synchronous>, transform_indices = @transform_1, window_bounds = array<i64: 9, 32>}, {pipeline_mode = #tpu.pipeline_mode<synchronous>, transform_indices = @transform_2, window_bounds = array<i64: 1, 32>}, {pipeline_mode = #tpu.pipeline_mode<synchronous>, transform_indices = @transform_3, window_bounds = array<i64: 9, 32, 64>}, {pipeline_mode = #tpu.pipeline_mode<synchronous>, transform_indices = @transform_4, window_bounds = array<i64: 1, 64>}, {pipeline_mode = #tpu.pipeline_mode<synchronous>, transform_indices = @transform_5, window_bounds = array<i64: 2304, 640>}, {pipeline_mode = #tpu.pipeline_mode<synchronous>, transform_indices = @transform_6, window_bounds = array<i64: 1, 640>}, {pipeline_mode = #tpu.pipeline_mode<synchronous>, transform_indices = @transform_7, window_bounds = array<i64: 640, 128>}, {pipeline_mode = #tpu.pipeline_mode<synchronous>, transform_indices = @transform_8, window_bounds = array<i64: 1, 128>}, {pipeline_mode = #tpu.pipeline_mode<synchronous>, transform_indices = @transform_9, window_bounds = array<i64: 128, 128>}, {pipeline_mode = #tpu.pipeline_mode<synchronous>, transform_indices = @transform_10, window_bounds = array<i64: 1, 128>}, {transform_indices = @transform_11, window_bounds = array<i64: 1, 1, 128>}]} {
    %c0 = arith.constant 0 : index
    %c0_0 = arith.constant 0 : index
    %c0_1 = arith.constant 0 : index
    %0 = vector.load %arg1[%c0, %c0_0, %c0_1] : memref<1x784x9xbf16, #tpu.memory_space<vmem>>, vector<1x784x9xbf16>
    %1 = vector.shape_cast %0 : vector<1x784x9xbf16> to vector<784x9xbf16>
    %c0_2 = arith.constant 0 : index
    %c0_3 = arith.constant 0 : index
    %2 = vector.load %arg2[%c0_2, %c0_3] : memref<9x32xbf16, #tpu.memory_space<vmem>>, vector<9x32xbf16>
    %cst = arith.constant dense<0.000000e+00> : vector<784x32xf32>
    %3 = tpu.matmul %1, %2, %cst {dimension_numbers = #tpu.dot_dimension_numbers<[1], [0], [0], [1], [0, 0, 1, 1], [], []>} : vector<784x9xbf16>, vector<9x32xbf16>, vector<784x32xf32> -> vector<784x32xf32>
    %4 = vector.extract_strided_slice %3 {offsets = [0, 0], sizes = [392, 32], strides = [1, 1]} : vector<784x32xf32> to vector<392x32xf32>
    %5 = vector.extract_strided_slice %3 {offsets = [392, 0], sizes = [392, 32], strides = [1, 1]} : vector<784x32xf32> to vector<392x32xf32>
    %6 = arith.maximumf %4, %5 : vector<392x32xf32>
    %7 = vector.extract_strided_slice %6 {offsets = [0, 0], sizes = [196, 32], strides = [1, 1]} : vector<392x32xf32> to vector<196x32xf32>
    %8 = vector.extract_strided_slice %6 {offsets = [196, 0], sizes = [196, 32], strides = [1, 1]} : vector<392x32xf32> to vector<196x32xf32>
    %9 = arith.maximumf %7, %8 : vector<196x32xf32>
    %c0_4 = arith.constant 0 : index
    %c0_5 = arith.constant 0 : index
    %10 = vector.load %arg3[%c0_4, %c0_5] : memref<1x32xf32, #tpu.memory_space<vmem>>, vector<1x32xf32>
    %11 = vector.broadcast %10 : vector<1x32xf32> to vector<196x32xf32>
    %12 = arith.addf %9, %11 : vector<196x32xf32>
    %cst_6 = arith.constant 0.000000e+00 : f32
    %13 = vector.broadcast %cst_6 : f32 to vector<196x32xf32>
    %14 = arith.maximumf %12, %13 : vector<196x32xf32>
    %15 = vector.extract_strided_slice %14 {offsets = [0, 0], sizes = [166, 32], strides = [1, 1]} : vector<196x32xf32> to vector<166x32xf32>
    %16 = arith.truncf %15 : vector<166x32xf32> to vector<166x32xbf16>
    %c0_7 = arith.constant 0 : index
    %c0_8 = arith.constant 0 : index
    %c0_9 = arith.constant 0 : index
    %17 = vector.load %arg4[%c0_7, %c0_8, %c0_9] : memref<9x32x64xbf16, #tpu.memory_space<vmem>>, vector<1x32x64xbf16>
    %18 = vector.shape_cast %17 : vector<1x32x64xbf16> to vector<32x64xbf16>
    %cst_10 = arith.constant dense<0.000000e+00> : vector<166x64xf32>
    %19 = tpu.matmul %16, %18, %cst_10 {dimension_numbers = #tpu.dot_dimension_numbers<[1], [0], [0], [1], [0, 0, 1, 1], [], []>} : vector<166x32xbf16>, vector<32x64xbf16>, vector<166x64xf32> -> vector<166x64xf32>
    %20 = vector.extract_strided_slice %14 {offsets = [1, 0], sizes = [166, 32], strides = [1, 1]} : vector<196x32xf32> to vector<166x32xf32>
    %21 = arith.truncf %20 : vector<166x32xf32> to vector<166x32xbf16>
    %c1 = arith.constant 1 : index
    %c0_11 = arith.constant 0 : index
    %c0_12 = arith.constant 0 : index
    %22 = vector.load %arg4[%c1, %c0_11, %c0_12] : memref<9x32x64xbf16, #tpu.memory_space<vmem>>, vector<1x32x64xbf16>
    %23 = vector.shape_cast %22 : vector<1x32x64xbf16> to vector<32x64xbf16>
    %cst_13 = arith.constant dense<0.000000e+00> : vector<166x64xf32>
    %24 = tpu.matmul %21, %23, %cst_13 {dimension_numbers = #tpu.dot_dimension_numbers<[1], [0], [0], [1], [0, 0, 1, 1], [], []>} : vector<166x32xbf16>, vector<32x64xbf16>, vector<166x64xf32> -> vector<166x64xf32>
    %25 = arith.addf %19, %24 : vector<166x64xf32>
    %26 = vector.extract_strided_slice %14 {offsets = [2, 0], sizes = [166, 32], strides = [1, 1]} : vector<196x32xf32> to vector<166x32xf32>
    %27 = arith.truncf %26 : vector<166x32xf32> to vector<166x32xbf16>
    %c2 = arith.constant 2 : index
    %c0_14 = arith.constant 0 : index
    %c0_15 = arith.constant 0 : index
    %28 = vector.load %arg4[%c2, %c0_14, %c0_15] : memref<9x32x64xbf16, #tpu.memory_space<vmem>>, vector<1x32x64xbf16>
    %29 = vector.shape_cast %28 : vector<1x32x64xbf16> to vector<32x64xbf16>
    %cst_16 = arith.constant dense<0.000000e+00> : vector<166x64xf32>
    %30 = tpu.matmul %27, %29, %cst_16 {dimension_numbers = #tpu.dot_dimension_numbers<[1], [0], [0], [1], [0, 0, 1, 1], [], []>} : vector<166x32xbf16>, vector<32x64xbf16>, vector<166x64xf32> -> vector<166x64xf32>
    %31 = arith.addf %25, %30 : vector<166x64xf32>
    %32 = vector.extract_strided_slice %14 {offsets = [14, 0], sizes = [166, 32], strides = [1, 1]} : vector<196x32xf32> to vector<166x32xf32>
    %33 = arith.truncf %32 : vector<166x32xf32> to vector<166x32xbf16>
    %c3 = arith.constant 3 : index
    %c0_17 = arith.constant 0 : index
    %c0_18 = arith.constant 0 : index
    %34 = vector.load %arg4[%c3, %c0_17, %c0_18] : memref<9x32x64xbf16, #tpu.memory_space<vmem>>, vector<1x32x64xbf16>
    %35 = vector.shape_cast %34 : vector<1x32x64xbf16> to vector<32x64xbf16>
    %cst_19 = arith.constant dense<0.000000e+00> : vector<166x64xf32>
    %36 = tpu.matmul %33, %35, %cst_19 {dimension_numbers = #tpu.dot_dimension_numbers<[1], [0], [0], [1], [0, 0, 1, 1], [], []>} : vector<166x32xbf16>, vector<32x64xbf16>, vector<166x64xf32> -> vector<166x64xf32>
    %37 = arith.addf %31, %36 : vector<166x64xf32>
    %38 = vector.extract_strided_slice %14 {offsets = [15, 0], sizes = [166, 32], strides = [1, 1]} : vector<196x32xf32> to vector<166x32xf32>
    %39 = arith.truncf %38 : vector<166x32xf32> to vector<166x32xbf16>
    %c4 = arith.constant 4 : index
    %c0_20 = arith.constant 0 : index
    %c0_21 = arith.constant 0 : index
    %40 = vector.load %arg4[%c4, %c0_20, %c0_21] : memref<9x32x64xbf16, #tpu.memory_space<vmem>>, vector<1x32x64xbf16>
    %41 = vector.shape_cast %40 : vector<1x32x64xbf16> to vector<32x64xbf16>
    %cst_22 = arith.constant dense<0.000000e+00> : vector<166x64xf32>
    %42 = tpu.matmul %39, %41, %cst_22 {dimension_numbers = #tpu.dot_dimension_numbers<[1], [0], [0], [1], [0, 0, 1, 1], [], []>} : vector<166x32xbf16>, vector<32x64xbf16>, vector<166x64xf32> -> vector<166x64xf32>
    %43 = arith.addf %37, %42 : vector<166x64xf32>
    %44 = vector.extract_strided_slice %14 {offsets = [16, 0], sizes = [166, 32], strides = [1, 1]} : vector<196x32xf32> to vector<166x32xf32>
    %45 = arith.truncf %44 : vector<166x32xf32> to vector<166x32xbf16>
    %c5 = arith.constant 5 : index
    %c0_23 = arith.constant 0 : index
    %c0_24 = arith.constant 0 : index
    %46 = vector.load %arg4[%c5, %c0_23, %c0_24] : memref<9x32x64xbf16, #tpu.memory_space<vmem>>, vector<1x32x64xbf16>
    %47 = vector.shape_cast %46 : vector<1x32x64xbf16> to vector<32x64xbf16>
    %cst_25 = arith.constant dense<0.000000e+00> : vector<166x64xf32>
    %48 = tpu.matmul %45, %47, %cst_25 {dimension_numbers = #tpu.dot_dimension_numbers<[1], [0], [0], [1], [0, 0, 1, 1], [], []>} : vector<166x32xbf16>, vector<32x64xbf16>, vector<166x64xf32> -> vector<166x64xf32>
    %49 = arith.addf %43, %48 : vector<166x64xf32>
    %50 = vector.extract_strided_slice %14 {offsets = [28, 0], sizes = [166, 32], strides = [1, 1]} : vector<196x32xf32> to vector<166x32xf32>
    %51 = arith.truncf %50 : vector<166x32xf32> to vector<166x32xbf16>
    %c6 = arith.constant 6 : index
    %c0_26 = arith.constant 0 : index
    %c0_27 = arith.constant 0 : index
    %52 = vector.load %arg4[%c6, %c0_26, %c0_27] : memref<9x32x64xbf16, #tpu.memory_space<vmem>>, vector<1x32x64xbf16>
    %53 = vector.shape_cast %52 : vector<1x32x64xbf16> to vector<32x64xbf16>
    %cst_28 = arith.constant dense<0.000000e+00> : vector<166x64xf32>
    %54 = tpu.matmul %51, %53, %cst_28 {dimension_numbers = #tpu.dot_dimension_numbers<[1], [0], [0], [1], [0, 0, 1, 1], [], []>} : vector<166x32xbf16>, vector<32x64xbf16>, vector<166x64xf32> -> vector<166x64xf32>
    %55 = arith.addf %49, %54 : vector<166x64xf32>
    %56 = vector.extract_strided_slice %14 {offsets = [29, 0], sizes = [166, 32], strides = [1, 1]} : vector<196x32xf32> to vector<166x32xf32>
    %57 = arith.truncf %56 : vector<166x32xf32> to vector<166x32xbf16>
    %c7 = arith.constant 7 : index
    %c0_29 = arith.constant 0 : index
    %c0_30 = arith.constant 0 : index
    %58 = vector.load %arg4[%c7, %c0_29, %c0_30] : memref<9x32x64xbf16, #tpu.memory_space<vmem>>, vector<1x32x64xbf16>
    %59 = vector.shape_cast %58 : vector<1x32x64xbf16> to vector<32x64xbf16>
    %cst_31 = arith.constant dense<0.000000e+00> : vector<166x64xf32>
    %60 = tpu.matmul %57, %59, %cst_31 {dimension_numbers = #tpu.dot_dimension_numbers<[1], [0], [0], [1], [0, 0, 1, 1], [], []>} : vector<166x32xbf16>, vector<32x64xbf16>, vector<166x64xf32> -> vector<166x64xf32>
    %61 = arith.addf %55, %60 : vector<166x64xf32>
    %62 = vector.extract_strided_slice %14 {offsets = [30, 0], sizes = [166, 32], strides = [1, 1]} : vector<196x32xf32> to vector<166x32xf32>
    %63 = arith.truncf %62 : vector<166x32xf32> to vector<166x32xbf16>
    %c8 = arith.constant 8 : index
    %c0_32 = arith.constant 0 : index
    %c0_33 = arith.constant 0 : index
    %64 = vector.load %arg4[%c8, %c0_32, %c0_33] : memref<9x32x64xbf16, #tpu.memory_space<vmem>>, vector<1x32x64xbf16>
    %65 = vector.shape_cast %64 : vector<1x32x64xbf16> to vector<32x64xbf16>
    %cst_34 = arith.constant dense<0.000000e+00> : vector<166x64xf32>
    %66 = tpu.matmul %63, %65, %cst_34 {dimension_numbers = #tpu.dot_dimension_numbers<[1], [0], [0], [1], [0, 0, 1, 1], [], []>} : vector<166x32xbf16>, vector<32x64xbf16>, vector<166x64xf32> -> vector<166x64xf32>
    %67 = arith.addf %61, %66 : vector<166x64xf32>
    %c0_35 = arith.constant 0 : index
    %c0_36 = arith.constant 0 : index
    %68 = vector.load %arg5[%c0_35, %c0_36] : memref<1x64xf32, #tpu.memory_space<vmem>>, vector<1x64xf32>
    %69 = vector.extract_strided_slice %67 {offsets = [0, 0], sizes = [12, 64], strides = [1, 1]} : vector<166x64xf32> to vector<12x64xf32>
    %70 = vector.extract_strided_slice %67 {offsets = [14, 0], sizes = [12, 64], strides = [1, 1]} : vector<166x64xf32> to vector<12x64xf32>
    %71 = arith.maximumf %69, %70 : vector<12x64xf32>
    %72 = vector.broadcast %68 : vector<1x64xf32> to vector<12x64xf32>
    %73 = arith.addf %71, %72 : vector<12x64xf32>
    %cst_37 = arith.constant 0.000000e+00 : f32
    %74 = vector.broadcast %cst_37 : f32 to vector<12x64xf32>
    %75 = arith.maximumf %73, %74 : vector<12x64xf32>
    %76 = vector.extract_strided_slice %75 {offsets = [0, 0], sizes = [1, 64], strides = [1, 1]} : vector<12x64xf32> to vector<1x64xf32>
    %77 = vector.extract_strided_slice %75 {offsets = [1, 0], sizes = [1, 64], strides = [1, 1]} : vector<12x64xf32> to vector<1x64xf32>
    %78 = arith.maximumf %76, %77 : vector<1x64xf32>
    %c0_38 = arith.constant 0 : index
    %c0_39 = arith.constant 0 : index
    %79 = vector.load %arg13[%c0_38, %c0_39] : memref<1x2304xf32, #tpu.memory_space<vmem>>, vector<1x64xf32>
    tpu.vector_store %arg13[%c0_38, %c0_39], %78 {strides = array<i32>} : memref<1x2304xf32, #tpu.memory_space<vmem>>, vector<1x64xf32>,
    %80 = vector.extract_strided_slice %75 {offsets = [2, 0], sizes = [1, 64], strides = [1, 1]} : vector<12x64xf32> to vector<1x64xf32>
    %81 = vector.extract_strided_slice %75 {offsets = [3, 0], sizes = [1, 64], strides = [1, 1]} : vector<12x64xf32> to vector<1x64xf32>
    %82 = arith.maximumf %80, %81 : vector<1x64xf32>
    %c0_40 = arith.constant 0 : index
    %c64 = arith.constant 64 : index
    %83 = vector.load %arg13[%c0_40, %c64] : memref<1x2304xf32, #tpu.memory_space<vmem>>, vector<1x64xf32>
    tpu.vector_store %arg13[%c0_40, %c64], %82 {strides = array<i32>} : memref<1x2304xf32, #tpu.memory_space<vmem>>, vector<1x64xf32>,
    %84 = vector.extract_strided_slice %75 {offsets = [4, 0], sizes = [1, 64], strides = [1, 1]} : vector<12x64xf32> to vector<1x64xf32>
    %85 = vector.extract_strided_slice %75 {offsets = [5, 0], sizes = [1, 64], strides = [1, 1]} : vector<12x64xf32> to vector<1x64xf32>
    %86 = arith.maximumf %84, %85 : vector<1x64xf32>
    %c0_41 = arith.constant 0 : index
    %c128 = arith.constant 128 : index
    %87 = vector.load %arg13[%c0_41, %c128] : memref<1x2304xf32, #tpu.memory_space<vmem>>, vector<1x64xf32>
    tpu.vector_store %arg13[%c0_41, %c128], %86 {strides = array<i32>} : memref<1x2304xf32, #tpu.memory_space<vmem>>, vector<1x64xf32>,
    %88 = vector.extract_strided_slice %75 {offsets = [6, 0], sizes = [1, 64], strides = [1, 1]} : vector<12x64xf32> to vector<1x64xf32>
    %89 = vector.extract_strided_slice %75 {offsets = [7, 0], sizes = [1, 64], strides = [1, 1]} : vector<12x64xf32> to vector<1x64xf32>
    %90 = arith.maximumf %88, %89 : vector<1x64xf32>
    %c0_42 = arith.constant 0 : index
    %c192 = arith.constant 192 : index
    %91 = vector.load %arg13[%c0_42, %c192] : memref<1x2304xf32, #tpu.memory_space<vmem>>, vector<1x64xf32>
    tpu.vector_store %arg13[%c0_42, %c192], %90 {strides = array<i32>} : memref<1x2304xf32, #tpu.memory_space<vmem>>, vector<1x64xf32>,
    %92 = vector.extract_strided_slice %75 {offsets = [8, 0], sizes = [1, 64], strides = [1, 1]} : vector<12x64xf32> to vector<1x64xf32>
    %93 = vector.extract_strided_slice %75 {offsets = [9, 0], sizes = [1, 64], strides = [1, 1]} : vector<12x64xf32> to vector<1x64xf32>
    %94 = arith.maximumf %92, %93 : vector<1x64xf32>
    %c0_43 = arith.constant 0 : index
    %c256 = arith.constant 256 : index
    %95 = vector.load %arg13[%c0_43, %c256] : memref<1x2304xf32, #tpu.memory_space<vmem>>, vector<1x64xf32>
    tpu.vector_store %arg13[%c0_43, %c256], %94 {strides = array<i32>} : memref<1x2304xf32, #tpu.memory_space<vmem>>, vector<1x64xf32>,
    %96 = vector.extract_strided_slice %75 {offsets = [10, 0], sizes = [1, 64], strides = [1, 1]} : vector<12x64xf32> to vector<1x64xf32>
    %97 = vector.extract_strided_slice %75 {offsets = [11, 0], sizes = [1, 64], strides = [1, 1]} : vector<12x64xf32> to vector<1x64xf32>
    %98 = arith.maximumf %96, %97 : vector<1x64xf32>
    %c0_44 = arith.constant 0 : index
    %c320 = arith.constant 320 : index
    %99 = vector.load %arg13[%c0_44, %c320] : memref<1x2304xf32, #tpu.memory_space<vmem>>, vector<1x64xf32>
    tpu.vector_store %arg13[%c0_44, %c320], %98 {strides = array<i32>} : memref<1x2304xf32, #tpu.memory_space<vmem>>, vector<1x64xf32>,
    %100 = vector.extract_strided_slice %67 {offsets = [28, 0], sizes = [12, 64], strides = [1, 1]} : vector<166x64xf32> to vector<12x64xf32>
    %101 = vector.extract_strided_slice %67 {offsets = [42, 0], sizes = [12, 64], strides = [1, 1]} : vector<166x64xf32> to vector<12x64xf32>
    %102 = arith.maximumf %100, %101 : vector<12x64xf32>
    %103 = vector.broadcast %68 : vector<1x64xf32> to vector<12x64xf32>
    %104 = arith.addf %102, %103 : vector<12x64xf32>
    %cst_45 = arith.constant 0.000000e+00 : f32
    %105 = vector.broadcast %cst_45 : f32 to vector<12x64xf32>
    %106 = arith.maximumf %104, %105 : vector<12x64xf32>
    %107 = vector.extract_strided_slice %106 {offsets = [0, 0], sizes = [1, 64], strides = [1, 1]} : vector<12x64xf32> to vector<1x64xf32>
    %108 = vector.extract_strided_slice %106 {offsets = [1, 0], sizes = [1, 64], strides = [1, 1]} : vector<12x64xf32> to vector<1x64xf32>
    %109 = arith.maximumf %107, %108 : vector<1x64xf32>
    %c0_46 = arith.constant 0 : index
    %c384 = arith.constant 384 : index
    %110 = vector.load %arg13[%c0_46, %c384] : memref<1x2304xf32, #tpu.memory_space<vmem>>, vector<1x64xf32>
    tpu.vector_store %arg13[%c0_46, %c384], %109 {strides = array<i32>} : memref<1x2304xf32, #tpu.memory_space<vmem>>, vector<1x64xf32>,
    %111 = vector.extract_strided_slice %106 {offsets = [2, 0], sizes = [1, 64], strides = [1, 1]} : vector<12x64xf32> to vector<1x64xf32>
    %112 = vector.extract_strided_slice %106 {offsets = [3, 0], sizes = [1, 64], strides = [1, 1]} : vector<12x64xf32> to vector<1x64xf32>
    %113 = arith.maximumf %111, %112 : vector<1x64xf32>
    %c0_47 = arith.constant 0 : index
    %c448 = arith.constant 448 : index
    %114 = vector.load %arg13[%c0_47, %c448] : memref<1x2304xf32, #tpu.memory_space<vmem>>, vector<1x64xf32>
    tpu.vector_store %arg13[%c0_47, %c448], %113 {strides = array<i32>} : memref<1x2304xf32, #tpu.memory_space<vmem>>, vector<1x64xf32>,
    %115 = vector.extract_strided_slice %106 {offsets = [4, 0], sizes = [1, 64], strides = [1, 1]} : vector<12x64xf32> to vector<1x64xf32>
    %116 = vector.extract_strided_slice %106 {offsets = [5, 0], sizes = [1, 64], strides = [1, 1]} : vector<12x64xf32> to vector<1x64xf32>
    %117 = arith.maximumf %115, %116 : vector<1x64xf32>
    %c0_48 = arith.constant 0 : index
    %c512 = arith.constant 512 : index
    %118 = vector.load %arg13[%c0_48, %c512] : memref<1x2304xf32, #tpu.memory_space<vmem>>, vector<1x64xf32>
    tpu.vector_store %arg13[%c0_48, %c512], %117 {strides = array<i32>} : memref<1x2304xf32, #tpu.memory_space<vmem>>, vector<1x64xf32>,
    %119 = vector.extract_strided_slice %106 {offsets = [6, 0], sizes = [1, 64], strides = [1, 1]} : vector<12x64xf32> to vector<1x64xf32>
    %120 = vector.extract_strided_slice %106 {offsets = [7, 0], sizes = [1, 64], strides = [1, 1]} : vector<12x64xf32> to vector<1x64xf32>
    %121 = arith.maximumf %119, %120 : vector<1x64xf32>
    %c0_49 = arith.constant 0 : index
    %c576 = arith.constant 576 : index
    %122 = vector.load %arg13[%c0_49, %c576] : memref<1x2304xf32, #tpu.memory_space<vmem>>, vector<1x64xf32>
    tpu.vector_store %arg13[%c0_49, %c576], %121 {strides = array<i32>} : memref<1x2304xf32, #tpu.memory_space<vmem>>, vector<1x64xf32>,
    %123 = vector.extract_strided_slice %106 {offsets = [8, 0], sizes = [1, 64], strides = [1, 1]} : vector<12x64xf32> to vector<1x64xf32>
    %124 = vector.extract_strided_slice %106 {offsets = [9, 0], sizes = [1, 64], strides = [1, 1]} : vector<12x64xf32> to vector<1x64xf32>
    %125 = arith.maximumf %123, %124 : vector<1x64xf32>
    %c0_50 = arith.constant 0 : index
    %c640 = arith.constant 640 : index
    %126 = vector.load %arg13[%c0_50, %c640] : memref<1x2304xf32, #tpu.memory_space<vmem>>, vector<1x64xf32>
    tpu.vector_store %arg13[%c0_50, %c640], %125 {strides = array<i32>} : memref<1x2304xf32, #tpu.memory_space<vmem>>, vector<1x64xf32>,
    %127 = vector.extract_strided_slice %106 {offsets = [10, 0], sizes = [1, 64], strides = [1, 1]} : vector<12x64xf32> to vector<1x64xf32>
    %128 = vector.extract_strided_slice %106 {offsets = [11, 0], sizes = [1, 64], strides = [1, 1]} : vector<12x64xf32> to vector<1x64xf32>
    %129 = arith.maximumf %127, %128 : vector<1x64xf32>
    %c0_51 = arith.constant 0 : index
    %c704 = arith.constant 704 : index
    %130 = vector.load %arg13[%c0_51, %c704] : memref<1x2304xf32, #tpu.memory_space<vmem>>, vector<1x64xf32>
    tpu.vector_store %arg13[%c0_51, %c704], %129 {strides = array<i32>} : memref<1x2304xf32, #tpu.memory_space<vmem>>, vector<1x64xf32>,
    %131 = vector.extract_strided_slice %67 {offsets = [56, 0], sizes = [12, 64], strides = [1, 1]} : vector<166x64xf32> to vector<12x64xf32>
    %132 = vector.extract_strided_slice %67 {offsets = [70, 0], sizes = [12, 64], strides = [1, 1]} : vector<166x64xf32> to vector<12x64xf32>
    %133 = arith.maximumf %131, %132 : vector<12x64xf32>
    %134 = vector.broadcast %68 : vector<1x64xf32> to vector<12x64xf32>
    %135 = arith.addf %133, %134 : vector<12x64xf32>
    %cst_52 = arith.constant 0.000000e+00 : f32
    %136 = vector.broadcast %cst_52 : f32 to vector<12x64xf32>
    %137 = arith.maximumf %135, %136 : vector<12x64xf32>
    %138 = vector.extract_strided_slice %137 {offsets = [0, 0], sizes = [1, 64], strides = [1, 1]} : vector<12x64xf32> to vector<1x64xf32>
    %139 = vector.extract_strided_slice %137 {offsets = [1, 0], sizes = [1, 64], strides = [1, 1]} : vector<12x64xf32> to vector<1x64xf32>
    %140 = arith.maximumf %138, %139 : vector<1x64xf32>
    %c0_53 = arith.constant 0 : index
    %c768 = arith.constant 768 : index
    %141 = vector.load %arg13[%c0_53, %c768] : memref<1x2304xf32, #tpu.memory_space<vmem>>, vector<1x64xf32>
    tpu.vector_store %arg13[%c0_53, %c768], %140 {strides = array<i32>} : memref<1x2304xf32, #tpu.memory_space<vmem>>, vector<1x64xf32>,
    %142 = vector.extract_strided_slice %137 {offsets = [2, 0], sizes = [1, 64], strides = [1, 1]} : vector<12x64xf32> to vector<1x64xf32>
    %143 = vector.extract_strided_slice %137 {offsets = [3, 0], sizes = [1, 64], strides = [1, 1]} : vector<12x64xf32> to vector<1x64xf32>
    %144 = arith.maximumf %142, %143 : vector<1x64xf32>
    %c0_54 = arith.constant 0 : index
    %c832 = arith.constant 832 : index
    %145 = vector.load %arg13[%c0_54, %c832] : memref<1x2304xf32, #tpu.memory_space<vmem>>, vector<1x64xf32>
    tpu.vector_store %arg13[%c0_54, %c832], %144 {strides = array<i32>} : memref<1x2304xf32, #tpu.memory_space<vmem>>, vector<1x64xf32>,
    %146 = vector.extract_strided_slice %137 {offsets = [4, 0], sizes = [1, 64], strides = [1, 1]} : vector<12x64xf32> to vector<1x64xf32>
    %147 = vector.extract_strided_slice %137 {offsets = [5, 0], sizes = [1, 64], strides = [1, 1]} : vector<12x64xf32> to vector<1x64xf32>
    %148 = arith.maximumf %146, %147 : vector<1x64xf32>
    %c0_55 = arith.constant 0 : index
    %c896 = arith.constant 896 : index
    %149 = vector.load %arg13[%c0_55, %c896] : memref<1x2304xf32, #tpu.memory_space<vmem>>, vector<1x64xf32>
    tpu.vector_store %arg13[%c0_55, %c896], %148 {strides = array<i32>} : memref<1x2304xf32, #tpu.memory_space<vmem>>, vector<1x64xf32>,
    %150 = vector.extract_strided_slice %137 {offsets = [6, 0], sizes = [1, 64], strides = [1, 1]} : vector<12x64xf32> to vector<1x64xf32>
    %151 = vector.extract_strided_slice %137 {offsets = [7, 0], sizes = [1, 64], strides = [1, 1]} : vector<12x64xf32> to vector<1x64xf32>
    %152 = arith.maximumf %150, %151 : vector<1x64xf32>
    %c0_56 = arith.constant 0 : index
    %c960 = arith.constant 960 : index
    %153 = vector.load %arg13[%c0_56, %c960] : memref<1x2304xf32, #tpu.memory_space<vmem>>, vector<1x64xf32>
    tpu.vector_store %arg13[%c0_56, %c960], %152 {strides = array<i32>} : memref<1x2304xf32, #tpu.memory_space<vmem>>, vector<1x64xf32>,
    %154 = vector.extract_strided_slice %137 {offsets = [8, 0], sizes = [1, 64], strides = [1, 1]} : vector<12x64xf32> to vector<1x64xf32>
    %155 = vector.extract_strided_slice %137 {offsets = [9, 0], sizes = [1, 64], strides = [1, 1]} : vector<12x64xf32> to vector<1x64xf32>
    %156 = arith.maximumf %154, %155 : vector<1x64xf32>
    %c0_57 = arith.constant 0 : index
    %c1024 = arith.constant 1024 : index
    %157 = vector.load %arg13[%c0_57, %c1024] : memref<1x2304xf32, #tpu.memory_space<vmem>>, vector<1x64xf32>
    tpu.vector_store %arg13[%c0_57, %c1024], %156 {strides = array<i32>} : memref<1x2304xf32, #tpu.memory_space<vmem>>, vector<1x64xf32>,
    %158 = vector.extract_strided_slice %137 {offsets = [10, 0], sizes = [1, 64], strides = [1, 1]} : vector<12x64xf32> to vector<1x64xf32>
    %159 = vector.extract_strided_slice %137 {offsets = [11, 0], sizes = [1, 64], strides = [1, 1]} : vector<12x64xf32> to vector<1x64xf32>
    %160 = arith.maximumf %158, %159 : vector<1x64xf32>
    %c0_58 = arith.constant 0 : index
    %c1088 = arith.constant 1088 : index
    %161 = vector.load %arg13[%c0_58, %c1088] : memref<1x2304xf32, #tpu.memory_space<vmem>>, vector<1x64xf32>
    tpu.vector_store %arg13[%c0_58, %c1088], %160 {strides = array<i32>} : memref<1x2304xf32, #tpu.memory_space<vmem>>, vector<1x64xf32>,
    %162 = vector.extract_strided_slice %67 {offsets = [84, 0], sizes = [12, 64], strides = [1, 1]} : vector<166x64xf32> to vector<12x64xf32>
    %163 = vector.extract_strided_slice %67 {offsets = [98, 0], sizes = [12, 64], strides = [1, 1]} : vector<166x64xf32> to vector<12x64xf32>
    %164 = arith.maximumf %162, %163 : vector<12x64xf32>
    %165 = vector.broadcast %68 : vector<1x64xf32> to vector<12x64xf32>
    %166 = arith.addf %164, %165 : vector<12x64xf32>
    %cst_59 = arith.constant 0.000000e+00 : f32
    %167 = vector.broadcast %cst_59 : f32 to vector<12x64xf32>
    %168 = arith.maximumf %166, %167 : vector<12x64xf32>
    %169 = vector.extract_strided_slice %168 {offsets = [0, 0], sizes = [1, 64], strides = [1, 1]} : vector<12x64xf32> to vector<1x64xf32>
    %170 = vector.extract_strided_slice %168 {offsets = [1, 0], sizes = [1, 64], strides = [1, 1]} : vector<12x64xf32> to vector<1x64xf32>
    %171 = arith.maximumf %169, %170 : vector<1x64xf32>
    %c0_60 = arith.constant 0 : index
    %c1152 = arith.constant 1152 : index
    %172 = vector.load %arg13[%c0_60, %c1152] : memref<1x2304xf32, #tpu.memory_space<vmem>>, vector<1x64xf32>
    tpu.vector_store %arg13[%c0_60, %c1152], %171 {strides = array<i32>} : memref<1x2304xf32, #tpu.memory_space<vmem>>, vector<1x64xf32>,
    %173 = vector.extract_strided_slice %168 {offsets = [2, 0], sizes = [1, 64], strides = [1, 1]} : vector<12x64xf32> to vector<1x64xf32>
    %174 = vector.extract_strided_slice %168 {offsets = [3, 0], sizes = [1, 64], strides = [1, 1]} : vector<12x64xf32> to vector<1x64xf32>
    %175 = arith.maximumf %173, %174 : vector<1x64xf32>
    %c0_61 = arith.constant 0 : index
    %c1216 = arith.constant 1216 : index
    %176 = vector.load %arg13[%c0_61, %c1216] : memref<1x2304xf32, #tpu.memory_space<vmem>>, vector<1x64xf32>
    tpu.vector_store %arg13[%c0_61, %c1216], %175 {strides = array<i32>} : memref<1x2304xf32, #tpu.memory_space<vmem>>, vector<1x64xf32>,
    %177 = vector.extract_strided_slice %168 {offsets = [4, 0], sizes = [1, 64], strides = [1, 1]} : vector<12x64xf32> to vector<1x64xf32>
    %178 = vector.extract_strided_slice %168 {offsets = [5, 0], sizes = [1, 64], strides = [1, 1]} : vector<12x64xf32> to vector<1x64xf32>
    %179 = arith.maximumf %177, %178 : vector<1x64xf32>
    %c0_62 = arith.constant 0 : index
    %c1280 = arith.constant 1280 : index
    %180 = vector.load %arg13[%c0_62, %c1280] : memref<1x2304xf32, #tpu.memory_space<vmem>>, vector<1x64xf32>
    tpu.vector_store %arg13[%c0_62, %c1280], %179 {strides = array<i32>} : memref<1x2304xf32, #tpu.memory_space<vmem>>, vector<1x64xf32>,
    %181 = vector.extract_strided_slice %168 {offsets = [6, 0], sizes = [1, 64], strides = [1, 1]} : vector<12x64xf32> to vector<1x64xf32>
    %182 = vector.extract_strided_slice %168 {offsets = [7, 0], sizes = [1, 64], strides = [1, 1]} : vector<12x64xf32> to vector<1x64xf32>
    %183 = arith.maximumf %181, %182 : vector<1x64xf32>
    %c0_63 = arith.constant 0 : index
    %c1344 = arith.constant 1344 : index
    %184 = vector.load %arg13[%c0_63, %c1344] : memref<1x2304xf32, #tpu.memory_space<vmem>>, vector<1x64xf32>
    tpu.vector_store %arg13[%c0_63, %c1344], %183 {strides = array<i32>} : memref<1x2304xf32, #tpu.memory_space<vmem>>, vector<1x64xf32>,
    %185 = vector.extract_strided_slice %168 {offsets = [8, 0], sizes = [1, 64], strides = [1, 1]} : vector<12x64xf32> to vector<1x64xf32>
    %186 = vector.extract_strided_slice %168 {offsets = [9, 0], sizes = [1, 64], strides = [1, 1]} : vector<12x64xf32> to vector<1x64xf32>
    %187 = arith.maximumf %185, %186 : vector<1x64xf32>
    %c0_64 = arith.constant 0 : index
    %c1408 = arith.constant 1408 : index
    %188 = vector.load %arg13[%c0_64, %c1408] : memref<1x2304xf32, #tpu.memory_space<vmem>>, vector<1x64xf32>
    tpu.vector_store %arg13[%c0_64, %c1408], %187 {strides = array<i32>} : memref<1x2304xf32, #tpu.memory_space<vmem>>, vector<1x64xf32>,
    %189 = vector.extract_strided_slice %168 {offsets = [10, 0], sizes = [1, 64], strides = [1, 1]} : vector<12x64xf32> to vector<1x64xf32>
    %190 = vector.extract_strided_slice %168 {offsets = [11, 0], sizes = [1, 64], strides = [1, 1]} : vector<12x64xf32> to vector<1x64xf32>
    %191 = arith.maximumf %189, %190 : vector<1x64xf32>
    %c0_65 = arith.constant 0 : index
    %c1472 = arith.constant 1472 : index
    %192 = vector.load %arg13[%c0_65, %c1472] : memref<1x2304xf32, #tpu.memory_space<vmem>>, vector<1x64xf32>
    tpu.vector_store %arg13[%c0_65, %c1472], %191 {strides = array<i32>} : memref<1x2304xf32, #tpu.memory_space<vmem>>, vector<1x64xf32>,
    %193 = vector.extract_strided_slice %67 {offsets = [112, 0], sizes = [12, 64], strides = [1, 1]} : vector<166x64xf32> to vector<12x64xf32>
    %194 = vector.extract_strided_slice %67 {offsets = [126, 0], sizes = [12, 64], strides = [1, 1]} : vector<166x64xf32> to vector<12x64xf32>
    %195 = arith.maximumf %193, %194 : vector<12x64xf32>
    %196 = vector.broadcast %68 : vector<1x64xf32> to vector<12x64xf32>
    %197 = arith.addf %195, %196 : vector<12x64xf32>
    %cst_66 = arith.constant 0.000000e+00 : f32
    %198 = vector.broadcast %cst_66 : f32 to vector<12x64xf32>
    %199 = arith.maximumf %197, %198 : vector<12x64xf32>
    %200 = vector.extract_strided_slice %199 {offsets = [0, 0], sizes = [1, 64], strides = [1, 1]} : vector<12x64xf32> to vector<1x64xf32>
    %201 = vector.extract_strided_slice %199 {offsets = [1, 0], sizes = [1, 64], strides = [1, 1]} : vector<12x64xf32> to vector<1x64xf32>
    %202 = arith.maximumf %200, %201 : vector<1x64xf32>
    %c0_67 = arith.constant 0 : index
    %c1536 = arith.constant 1536 : index
    %203 = vector.load %arg13[%c0_67, %c1536] : memref<1x2304xf32, #tpu.memory_space<vmem>>, vector<1x64xf32>
    tpu.vector_store %arg13[%c0_67, %c1536], %202 {strides = array<i32>} : memref<1x2304xf32, #tpu.memory_space<vmem>>, vector<1x64xf32>,
    %204 = vector.extract_strided_slice %199 {offsets = [2, 0], sizes = [1, 64], strides = [1, 1]} : vector<12x64xf32> to vector<1x64xf32>
    %205 = vector.extract_strided_slice %199 {offsets = [3, 0], sizes = [1, 64], strides = [1, 1]} : vector<12x64xf32> to vector<1x64xf32>
    %206 = arith.maximumf %204, %205 : vector<1x64xf32>
    %c0_68 = arith.constant 0 : index
    %c1600 = arith.constant 1600 : index
    %207 = vector.load %arg13[%c0_68, %c1600] : memref<1x2304xf32, #tpu.memory_space<vmem>>, vector<1x64xf32>
    tpu.vector_store %arg13[%c0_68, %c1600], %206 {strides = array<i32>} : memref<1x2304xf32, #tpu.memory_space<vmem>>, vector<1x64xf32>,
    %208 = vector.extract_strided_slice %199 {offsets = [4, 0], sizes = [1, 64], strides = [1, 1]} : vector<12x64xf32> to vector<1x64xf32>
    %209 = vector.extract_strided_slice %199 {offsets = [5, 0], sizes = [1, 64], strides = [1, 1]} : vector<12x64xf32> to vector<1x64xf32>
    %210 = arith.maximumf %208, %209 : vector<1x64xf32>
    %c0_69 = arith.constant 0 : index
    %c1664 = arith.constant 1664 : index
    %211 = vector.load %arg13[%c0_69, %c1664] : memref<1x2304xf32, #tpu.memory_space<vmem>>, vector<1x64xf32>
    tpu.vector_store %arg13[%c0_69, %c1664], %210 {strides = array<i32>} : memref<1x2304xf32, #tpu.memory_space<vmem>>, vector<1x64xf32>,
    %212 = vector.extract_strided_slice %199 {offsets = [6, 0], sizes = [1, 64], strides = [1, 1]} : vector<12x64xf32> to vector<1x64xf32>
    %213 = vector.extract_strided_slice %199 {offsets = [7, 0], sizes = [1, 64], strides = [1, 1]} : vector<12x64xf32> to vector<1x64xf32>
    %214 = arith.maximumf %212, %213 : vector<1x64xf32>
    %c0_70 = arith.constant 0 : index
    %c1728 = arith.constant 1728 : index
    %215 = vector.load %arg13[%c0_70, %c1728] : memref<1x2304xf32, #tpu.memory_space<vmem>>, vector<1x64xf32>
    tpu.vector_store %arg13[%c0_70, %c1728], %214 {strides = array<i32>} : memref<1x2304xf32, #tpu.memory_space<vmem>>, vector<1x64xf32>,
    %216 = vector.extract_strided_slice %199 {offsets = [8, 0], sizes = [1, 64], strides = [1, 1]} : vector<12x64xf32> to vector<1x64xf32>
    %217 = vector.extract_strided_slice %199 {offsets = [9, 0], sizes = [1, 64], strides = [1, 1]} : vector<12x64xf32> to vector<1x64xf32>
    %218 = arith.maximumf %216, %217 : vector<1x64xf32>
    %c0_71 = arith.constant 0 : index
    %c1792 = arith.constant 1792 : index
    %219 = vector.load %arg13[%c0_71, %c1792] : memref<1x2304xf32, #tpu.memory_space<vmem>>, vector<1x64xf32>
    tpu.vector_store %arg13[%c0_71, %c1792], %218 {strides = array<i32>} : memref<1x2304xf32, #tpu.memory_space<vmem>>, vector<1x64xf32>,
    %220 = vector.extract_strided_slice %199 {offsets = [10, 0], sizes = [1, 64], strides = [1, 1]} : vector<12x64xf32> to vector<1x64xf32>
    %221 = vector.extract_strided_slice %199 {offsets = [11, 0], sizes = [1, 64], strides = [1, 1]} : vector<12x64xf32> to vector<1x64xf32>
    %222 = arith.maximumf %220, %221 : vector<1x64xf32>
    %c0_72 = arith.constant 0 : index
    %c1856 = arith.constant 1856 : index
    %223 = vector.load %arg13[%c0_72, %c1856] : memref<1x2304xf32, #tpu.memory_space<vmem>>, vector<1x64xf32>
    tpu.vector_store %arg13[%c0_72, %c1856], %222 {strides = array<i32>} : memref<1x2304xf32, #tpu.memory_space<vmem>>, vector<1x64xf32>,
    %224 = vector.extract_strided_slice %67 {offsets = [140, 0], sizes = [12, 64], strides = [1, 1]} : vector<166x64xf32> to vector<12x64xf32>
    %225 = vector.extract_strided_slice %67 {offsets = [154, 0], sizes = [12, 64], strides = [1, 1]} : vector<166x64xf32> to vector<12x64xf32>
    %226 = arith.maximumf %224, %225 : vector<12x64xf32>
    %227 = vector.broadcast %68 : vector<1x64xf32> to vector<12x64xf32>
    %228 = arith.addf %226, %227 : vector<12x64xf32>
    %cst_73 = arith.constant 0.000000e+00 : f32
    %229 = vector.broadcast %cst_73 : f32 to vector<12x64xf32>
    %230 = arith.maximumf %228, %229 : vector<12x64xf32>
    %231 = vector.extract_strided_slice %230 {offsets = [0, 0], sizes = [1, 64], strides = [1, 1]} : vector<12x64xf32> to vector<1x64xf32>
    %232 = vector.extract_strided_slice %230 {offsets = [1, 0], sizes = [1, 64], strides = [1, 1]} : vector<12x64xf32> to vector<1x64xf32>
    %233 = arith.maximumf %231, %232 : vector<1x64xf32>
    %c0_74 = arith.constant 0 : index
    %c1920 = arith.constant 1920 : index
    %234 = vector.load %arg13[%c0_74, %c1920] : memref<1x2304xf32, #tpu.memory_space<vmem>>, vector<1x64xf32>
    tpu.vector_store %arg13[%c0_74, %c1920], %233 {strides = array<i32>} : memref<1x2304xf32, #tpu.memory_space<vmem>>, vector<1x64xf32>,
    %235 = vector.extract_strided_slice %230 {offsets = [2, 0], sizes = [1, 64], strides = [1, 1]} : vector<12x64xf32> to vector<1x64xf32>
    %236 = vector.extract_strided_slice %230 {offsets = [3, 0], sizes = [1, 64], strides = [1, 1]} : vector<12x64xf32> to vector<1x64xf32>
    %237 = arith.maximumf %235, %236 : vector<1x64xf32>
    %c0_75 = arith.constant 0 : index
    %c1984 = arith.constant 1984 : index
    %238 = vector.load %arg13[%c0_75, %c1984] : memref<1x2304xf32, #tpu.memory_space<vmem>>, vector<1x64xf32>
    tpu.vector_store %arg13[%c0_75, %c1984], %237 {strides = array<i32>} : memref<1x2304xf32, #tpu.memory_space<vmem>>, vector<1x64xf32>,
    %239 = vector.extract_strided_slice %230 {offsets = [4, 0], sizes = [1, 64], strides = [1, 1]} : vector<12x64xf32> to vector<1x64xf32>
    %240 = vector.extract_strided_slice %230 {offsets = [5, 0], sizes = [1, 64], strides = [1, 1]} : vector<12x64xf32> to vector<1x64xf32>
    %241 = arith.maximumf %239, %240 : vector<1x64xf32>
    %c0_76 = arith.constant 0 : index
    %c2048 = arith.constant 2048 : index
    %242 = vector.load %arg13[%c0_76, %c2048] : memref<1x2304xf32, #tpu.memory_space<vmem>>, vector<1x64xf32>
    tpu.vector_store %arg13[%c0_76, %c2048], %241 {strides = array<i32>} : memref<1x2304xf32, #tpu.memory_space<vmem>>, vector<1x64xf32>,
    %243 = vector.extract_strided_slice %230 {offsets = [6, 0], sizes = [1, 64], strides = [1, 1]} : vector<12x64xf32> to vector<1x64xf32>
    %244 = vector.extract_strided_slice %230 {offsets = [7, 0], sizes = [1, 64], strides = [1, 1]} : vector<12x64xf32> to vector<1x64xf32>
    %245 = arith.maximumf %243, %244 : vector<1x64xf32>
    %c0_77 = arith.constant 0 : index
    %c2112 = arith.constant 2112 : index
    %246 = vector.load %arg13[%c0_77, %c2112] : memref<1x2304xf32, #tpu.memory_space<vmem>>, vector<1x64xf32>
    tpu.vector_store %arg13[%c0_77, %c2112], %245 {strides = array<i32>} : memref<1x2304xf32, #tpu.memory_space<vmem>>, vector<1x64xf32>,
    %247 = vector.extract_strided_slice %230 {offsets = [8, 0], sizes = [1, 64], strides = [1, 1]} : vector<12x64xf32> to vector<1x64xf32>
    %248 = vector.extract_strided_slice %230 {offsets = [9, 0], sizes = [1, 64], strides = [1, 1]} : vector<12x64xf32> to vector<1x64xf32>
    %249 = arith.maximumf %247, %248 : vector<1x64xf32>
    %c0_78 = arith.constant 0 : index
    %c2176 = arith.constant 2176 : index
    %250 = vector.load %arg13[%c0_78, %c2176] : memref<1x2304xf32, #tpu.memory_space<vmem>>, vector<1x64xf32>
    tpu.vector_store %arg13[%c0_78, %c2176], %249 {strides = array<i32>} : memref<1x2304xf32, #tpu.memory_space<vmem>>, vector<1x64xf32>,
    %251 = vector.extract_strided_slice %230 {offsets = [10, 0], sizes = [1, 64], strides = [1, 1]} : vector<12x64xf32> to vector<1x64xf32>
    %252 = vector.extract_strided_slice %230 {offsets = [11, 0], sizes = [1, 64], strides = [1, 1]} : vector<12x64xf32> to vector<1x64xf32>
    %253 = arith.maximumf %251, %252 : vector<1x64xf32>
    %c0_79 = arith.constant 0 : index
    %c2240 = arith.constant 2240 : index
    %254 = vector.load %arg13[%c0_79, %c2240] : memref<1x2304xf32, #tpu.memory_space<vmem>>, vector<1x64xf32>
    tpu.vector_store %arg13[%c0_79, %c2240], %253 {strides = array<i32>} : memref<1x2304xf32, #tpu.memory_space<vmem>>, vector<1x64xf32>,
    %c0_80 = arith.constant 0 : index
    %c0_81 = arith.constant 0 : index
    %255 = vector.load %arg13[%c0_80, %c0_81] : memref<1x2304xf32, #tpu.memory_space<vmem>>, vector<1x2304xf32>
    %256 = arith.truncf %255 : vector<1x2304xf32> to vector<1x2304xbf16>
    %c0_82 = arith.constant 0 : index
    %c0_83 = arith.constant 0 : index
    %257 = vector.load %arg6[%c0_82, %c0_83] : memref<2304x640xbf16, #tpu.memory_space<vmem>>, vector<2304x640xbf16>
    %cst_84 = arith.constant dense<0.000000e+00> : vector<1x640xf32>
    %258 = tpu.matmul %256, %257, %cst_84 {dimension_numbers = #tpu.dot_dimension_numbers<[1], [0], [0], [1], [0, 0, 1, 1], [], []>} : vector<1x2304xbf16>, vector<2304x640xbf16>, vector<1x640xf32> -> vector<1x640xf32>
    %c0_85 = arith.constant 0 : index
    %c0_86 = arith.constant 0 : index
    %259 = vector.load %arg7[%c0_85, %c0_86] : memref<1x640xf32, #tpu.memory_space<vmem>>, vector<1x640xf32>
    %260 = arith.addf %258, %259 : vector<1x640xf32>
    %261 = arith.truncf %260 : vector<1x640xf32> to vector<1x640xbf16>
    %c0_87 = arith.constant 0 : index
    %c0_88 = arith.constant 0 : index
    %262 = vector.load %arg8[%c0_87, %c0_88] : memref<640x128xbf16, #tpu.memory_space<vmem>>, vector<640x128xbf16>
    %cst_89 = arith.constant dense<0.000000e+00> : vector<1x128xf32>
    %263 = tpu.matmul %261, %262, %cst_89 {dimension_numbers = #tpu.dot_dimension_numbers<[1], [0], [0], [1], [0, 0, 1, 1], [], []>} : vector<1x640xbf16>, vector<640x128xbf16>, vector<1x128xf32> -> vector<1x128xf32>
    %c0_90 = arith.constant 0 : index
    %c0_91 = arith.constant 0 : index
    %264 = vector.load %arg9[%c0_90, %c0_91] : memref<1x128xf32, #tpu.memory_space<vmem>>, vector<1x128xf32>
    %265 = arith.addf %263, %264 : vector<1x128xf32>
    %266 = arith.truncf %265 : vector<1x128xf32> to vector<1x128xbf16>
    %c0_92 = arith.constant 0 : index
    %c0_93 = arith.constant 0 : index
    %267 = vector.load %arg10[%c0_92, %c0_93] : memref<128x128xbf16, #tpu.memory_space<vmem>>, vector<128x128xbf16>
    %cst_94 = arith.constant dense<0.000000e+00> : vector<1x128xf32>
    %268 = tpu.matmul %266, %267, %cst_94 {dimension_numbers = #tpu.dot_dimension_numbers<[1], [0], [0], [1], [0, 0, 1, 1], [], []>} : vector<1x128xbf16>, vector<128x128xbf16>, vector<1x128xf32> -> vector<1x128xf32>
    %c0_95 = arith.constant 0 : index
    %c0_96 = arith.constant 0 : index
    %269 = vector.load %arg11[%c0_95, %c0_96] : memref<1x128xf32, #tpu.memory_space<vmem>>, vector<1x128xf32>
    %270 = arith.addf %268, %269 : vector<1x128xf32>
    %c0_97 = arith.constant 0 : index
    %c0_98 = arith.constant 0 : index
    %c0_99 = arith.constant 0 : index
    %271 = vector.load %arg12[%c0_97, %c0_98, %c0_99] : memref<1x1x128xf32, #tpu.memory_space<vmem>>, vector<1x1x128xf32>
    %272 = vector.shape_cast %271 : vector<1x1x128xf32> to vector<1x128xf32>
    %273 = vector.shape_cast %270 : vector<1x128xf32> to vector<1x1x128xf32>
    tpu.vector_store %arg12[%c0_97, %c0_98, %c0_99], %273 {strides = array<i32>} : memref<1x1x128xf32, #tpu.memory_space<vmem>>, vector<1x1x128xf32>,
    return
  }
  func.func @transform_0(%arg0: i32) -> (i32, i32, i32) {
    %c0_i32 = arith.constant 0 : i32
    %c0_i32_0 = arith.constant 0 : i32
    %c0_i32_1 = arith.constant 0 : i32
    return %arg0, %c0_i32, %c0_i32_0 : i32, i32, i32
  }
  func.func @transform_1(%arg0: i32) -> (i32, i32) {
    %c0_i32 = arith.constant 0 : i32
    %c0_i32_0 = arith.constant 0 : i32
    %c0_i32_1 = arith.constant 0 : i32
    return %c0_i32, %c0_i32_0 : i32, i32
  }
  func.func @transform_2(%arg0: i32) -> (i32, i32) {
    %c0_i32 = arith.constant 0 : i32
    %c0_i32_0 = arith.constant 0 : i32
    %c0_i32_1 = arith.constant 0 : i32
    return %c0_i32, %c0_i32_0 : i32, i32
  }
  func.func @transform_3(%arg0: i32) -> (i32, i32, i32) {
    %c0_i32 = arith.constant 0 : i32
    %c0_i32_0 = arith.constant 0 : i32
    %c0_i32_1 = arith.constant 0 : i32
    %c0_i32_2 = arith.constant 0 : i32
    return %c0_i32, %c0_i32_0, %c0_i32_1 : i32, i32, i32
  }
  func.func @transform_4(%arg0: i32) -> (i32, i32) {
    %c0_i32 = arith.constant 0 : i32
    %c0_i32_0 = arith.constant 0 : i32
    %c0_i32_1 = arith.constant 0 : i32
    return %c0_i32, %c0_i32_0 : i32, i32
  }
  func.func @transform_5(%arg0: i32) -> (i32, i32) {
    %c0_i32 = arith.constant 0 : i32
    %c0_i32_0 = arith.constant 0 : i32
    %c0_i32_1 = arith.constant 0 : i32
    return %c0_i32, %c0_i32_0 : i32, i32
  }
  func.func @transform_6(%arg0: i32) -> (i32, i32) {
    %c0_i32 = arith.constant 0 : i32
    %c0_i32_0 = arith.constant 0 : i32
    %c0_i32_1 = arith.constant 0 : i32
    return %c0_i32, %c0_i32_0 : i32, i32
  }
  func.func @transform_7(%arg0: i32) -> (i32, i32) {
    %c0_i32 = arith.constant 0 : i32
    %c0_i32_0 = arith.constant 0 : i32
    %c0_i32_1 = arith.constant 0 : i32
    return %c0_i32, %c0_i32_0 : i32, i32
  }
  func.func @transform_8(%arg0: i32) -> (i32, i32) {
    %c0_i32 = arith.constant 0 : i32
    %c0_i32_0 = arith.constant 0 : i32
    %c0_i32_1 = arith.constant 0 : i32
    return %c0_i32, %c0_i32_0 : i32, i32
  }
  func.func @transform_9(%arg0: i32) -> (i32, i32) {
    %c0_i32 = arith.constant 0 : i32
    %c0_i32_0 = arith.constant 0 : i32
    %c0_i32_1 = arith.constant 0 : i32
    return %c0_i32, %c0_i32_0 : i32, i32
  }
  func.func @transform_10(%arg0: i32) -> (i32, i32) {
    %c0_i32 = arith.constant 0 : i32
    %c0_i32_0 = arith.constant 0 : i32
    %c0_i32_1 = arith.constant 0 : i32
    return %c0_i32, %c0_i32_0 : i32, i32
  }
  func.func @transform_11(%arg0: i32) -> (i32, i32, i32) {
    %c0_i32 = arith.constant 0 : i32
    %c0_i32_0 = arith.constant 0 : i32
    %c0_i32_1 = arith.constant 0 : i32
    return %arg0, %c0_i32, %c0_i32_0 : i32, i32, i32
  }
}

</mosaic_0001>

<bundles_post_ra>
// kernel: forward.1
= control target key start
LH: loop header
LB: loop body
LE: loop exit
PB: predicated region body
PF: predicated region fallthrough
CT: control target
= control target key end

     0   :  { %s18601_s0 = inlined_call_operand.vmem [shape: bf16[2,784,9], index: 0, kind: input, shape index: {}]   ;;  %s18602_s1 = inlined_call_operand.vmem [shape: bf16[9,32], index: 1, kind: input, shape index: {}]   ;;  %s18603_s2 = inlined_call_operand.vmem [shape: f32[1,32], index: 2, kind: input, shape index: {}]   ;;  %s18604_s3 = inlined_call_operand.vmem [shape: bf16[9,32,64], index: 3, kind: input, shape index: {}]   ;;  %s18605_s4 = inlined_call_operand.vmem [shape: f32[1,64], index: 4, kind: input, shape index: {}]   ;;  %s18606_s5 = inlined_call_operand.vmem [shape: bf16[2304,640], index: 5, kind: input, shape index: {}]   ;;  %s18607_s6 = inlined_call_operand.vmem [shape: f32[1,640], index: 6, kind: input, shape index: {}]   ;;  %s18608_s7 = inlined_call_operand.vmem [shape: bf16[640,128], index: 7, kind: input, shape index: {}]   ;;  %s18609_s8 = inlined_call_operand.vmem [shape: f32[1,128], index: 8, kind: input, shape index: {}]   ;;  %s18610_s9 = inlined_call_operand.vmem [shape: bf16[128,128], index: 9, kind: input, shape index: {}]   ;;  %s18611_s10 = inlined_call_operand.vmem [shape: f32[1,128], index: 10, kind: input, shape index: {}]   ;;  %s18612_s11 = inlined_call_operand.hbm [shape: f32[2,1,128], index: 11, kind: output, shape index: {}]  }
   0x1   :  { %18638 = sst [smem:[#allocation68_spill]] %s18601_s0 }
   0x2   :  { %16 = vsyncpa [#allocation4], 0 }
   0x3   :  { %18 = vsyncpa [#allocation4 + $0x1], 0  ;;  %s13942_s17 = smov 0   ;;  %s13944_s18 = smov 0  }
   0x4   :  { %s13946_s19 = smov 0   ;;  %s13948_s20 = smov 0  }
   0x5 LB: > { %s13963_s21 = sadd.s32 4294967295, %s13874_s20   ;;  %s10517_s22 = sadd.s32 4294967294, %s13874_s20   ;;  %s13874_s20 = sphi %s13948_s20, %s18842_s20   ;;  %s13870_s19 = sphi %s13946_s19, %s18841_s19   ;;  %s13866_s18 = sphi %s13944_s18, %s18840_s18   ;;  %s13862_s17 = sphi %s13942_s17, %s18839_s17  }
   0x6   : > { %s13967_s23 = sadd.s32 1, %s13874_s20   ;;  %s267_s24 = sadd.s32 1, %s13870_s19 }
   0x7   : > { %s264_s25 = ssub.s32 %s13874_s20, %s13967_s23  ;;  %p277_p0 = scmp.ne.s32.totalorder %s13870_s19, %s13866_s18 }
   0x8   : > { %p265_p1 = scmp.eq.s32.totalorder %s264_s25, 0  ;;  %p278_p2 = scmp.eq.s32.totalorder %s13963_s21, 1 }
   0x9   : > { %p283_p3 = scmp.ne.s32.totalorder %s13866_s18, %s13862_s17  ;;  %p284_p4 = scmp.eq.s32.totalorder %s10517_s22, 1 }
   0xa   : > { %s13978_s26 = scalar_select %p265_p1, %s13870_s19, %s267_s24  }
   0xb   : > { %p13980_p5 = por %p278_p2, %p277_p0  ;;  %p13984_p6 = por %p284_p4, %p283_p3 }
   0xc   : > { %p10520_p7 = scmp.ge.s32.totalorder %s13874_s20, 1  ;;  %p340_p8 = scmp.lt.s32.totalorder %s13874_s20, 3 }
   0xe   : > { %p341_p9 = pnand %p10520_p7, %p340_p8 }
  0x10   : > { %344 = sbr.rel (%p341_p9) target bundleno = 2739 (0xab3), region = 64 }
  0x15   : > { %vm883_vm0 = vcmask 1043456   ;;  %v18613_v0 = vmov 0.0   ;;  %v12689_v1 = vld [vmem:[%s18602_s1] sm:$0x1f]   ;;  %vm884_vm1 = vcmask 1044480   ;;  %p379_p10 = scmp.lt.s32.totalorder %s13963_s21, 1 }
  0x16   : > { %11970 = vmatprep.subr.bf16.mxu0 %v18613_v0  ;;  %12640 = vmatprep.subr.bf16.mxu1 %v18613_v0  ;;  %v13877_v2 = vmov 65535   ;;  %vm13878_vm2 = vmmov 0   ;;  %vm735_vm3 = vcmask 72704   ;;  %s18641_s0 = sld [smem:[#allocation68_spill]]  ;;  %vm1565_vm4 = vsmask.f32 7424 }
  0x17   : > { %v885_v3 = vsel %vm883_vm0, 4294967295, %v13877_v2  ;;  %11972 = vmatprep.mubr.msk.bf16.mxu0 %vm13878_vm2, %v18613_v0  ;;  %12176 = vmatprep.mubr.msk.bf16.mxu1 %vm13878_vm2, %v18613_v0  ;;  %s380_s12 = scalar_select %p379_p10, %s13963_s21, 1  ;;  %vm1665_vm5 = vcmask 261120   ;;  %vm2437_vm6 = vsmask.f32 4352  ;;  %vm2895_vm8 = vcmask 1045504  }
  0x18   : > { %v886_v4 = vsel %vm884_vm1, %v885_v3, 0  ;;  %vm3108_vm7 = vsmask.f32 5376  ;;  %vm1989_vm9 = vcmask 1046528   ;;  %vm3513_vm10 = vcmask 1041408   ;;  %s13880_s22 = smov 64  }
  0x19   : > { %v888_v5 = vand.u32 %v12689_v1, %v886_v4  ;;  %s12644_s13 = smul.u32 392, %s380_s12  ;;  %s11540_s24 = sshll.u32 %s13963_s21, 4 }
  0x1a   : > { %s13881_s21 = smov [#allocation3]  }
  0x1b   : > { %11971 = vmatpush3.bf16.msra.mxu0 %v888_v5 }
  0x1c   : > { %s14006_s16 = scalar_lea.vmem %s18641_s0, %s12644_s13  ;;  %12168 = vmatprep.subr.bf16.mxu0 %v18613_v0  ;;  %s18560_s13 = scalar_lea.hbm %s18612_s11, %s11540_s24 }
  0x1d   : > { %v12690_v6 = vld [vmem:[%s14006_s16] sm:$0xff]   ;;  %v12691_v7 = vld [vmem:[%s14006_s16 + $0x8] sm:$0xff]   ;;  %v12692_v8 = vld [vmem:[%s14006_s16 + $0x10] sm:$0xff]  }
  0x1e   : > { %11973 = vmatmul.mubr.msk.bf16.vlgmr.msra.gmra.mxu0 %vm735_vm3, %v12690_v6  ;;  %v12693_v9 = vld [vmem:[%s14006_s16 + $0x18] sm:$0xff]   ;;  %v12694_v10 = vld [vmem:[%s14006_s16 + $0x20] sm:$0xff]   ;;  %v12695_v11 = vld [vmem:[%s14006_s16 + $0x28] sm:$0xff]  }
  0x1f   : > { %11976 = vmatprep.mubr.msk.bf16.mxu0 %vm13878_vm2, %v18613_v0  ;;  %v12696_v12 = vld [vmem:[%s14006_s16 + $0x30] sm:$0xff]   ;;  %v12697_v13 = vld [vmem:[%s14006_s16 + $0x38] sm:$0xff]   ;;  %v12698_v14 = vld [vmem:[%s14006_s16 + $0x40] sm:$0xff]  }
  0x20   : > { %v12699_v15 = vld [vmem:[%s14006_s16 + $0x48] sm:$0xff]   ;;  %v12700_v16 = vld [vmem:[%s14006_s16 + $0x50] sm:$0xff]   ;;  %v12701_v17 = vld [vmem:[%s14006_s16 + $0x58] sm:$0xff]  }
  0x21   : > { %v12702_v18 = vld [vmem:[%s14006_s16 + $0x60] sm:$0xff]   ;;  %v12703_v19 = vld [vmem:[%s14006_s16 + $0x68] sm:$0xff]   ;;  %v12704_v20 = vld [vmem:[%s14006_s16 + $0x70] sm:$0xff]  }
  0x22   : > { %v12705_v21 = vld [vmem:[%s14006_s16 + $0x78] sm:$0xff]   ;;  %v12706_v22 = vld [vmem:[%s14006_s16 + $0x80] sm:$0xff]   ;;  %v12707_v23 = vld [vmem:[%s14006_s16 + $0x88] sm:$0xff]  }
  0x23   : > { %v12708_v24 = vld [vmem:[%s14006_s16 + $0x90] sm:$0xff]   ;;  %v12709_v25 = vld [vmem:[%s14006_s16 + $0x98] sm:$0xff]   ;;  %v12710_v26 = vld [vmem:[%s14006_s16 + $0xa0] sm:$0xff]  }
  0x24   : > { %v12711_v27 = vld [vmem:[%s14006_s16 + $0xa8] sm:$0xff]   ;;  %v12712_v28 = vld [vmem:[%s14006_s16 + $0xb0] sm:$0xff]   ;;  %v12713_v29 = vld [vmem:[%s14006_s16 + $0xb8] sm:$0xff]  }
  0x25   : > { %v12714_v30 = vld [vmem:[%s14006_s16 + $0xc0] sm:$0xff]   ;;  %v12715_v33 = vld [vmem:[%s14006_s16 + $0xc8] sm:$0xff]   ;;  %v12716_v38 = vld [vmem:[%s14006_s16 + $0xd0] sm:$0xff]  }
  0x26   : > { %11977 = vmatmul.mubr.msk.bf16.gmra.mxu0 %vm735_vm3, %v12691_v7  ;;  %v12717_v43 = vld [vmem:[%s14006_s16 + $0xd8] sm:$0xff]   ;;  %v12718_v48 = vld [vmem:[%s14006_s16 + $0xe0] sm:$0xff]   ;;  %v12719_v53 = vld [vmem:[%s14006_s16 + $0xe8] sm:$0xff]  }
  0x27   : > { %11980 = vmatprep.mubr.msk.bf16.mxu0 %vm13878_vm2, %v18613_v0  ;;  %v12720_v58 = vld [vmem:[%s14006_s16 + $0xf0] sm:$0xff]   ;;  %v12721_v63 = vld [vmem:[%s14006_s16 + $0xf8] sm:$0xff]   ;;  %v12722_v5 = vld [vmem:[%s14006_s16 + $0x100] sm:$0xff]  }
  0x2e   : > { %11981 = vmatmul.mubr.msk.bf16.gmra.mxu0 %vm735_vm3, %v12692_v8 }
  0x2f   : > { %11984 = vmatprep.mubr.msk.bf16.mxu0 %vm13878_vm2, %v18613_v0 }
  0x36   : > { %11985 = vmatmul.mubr.msk.bf16.gmra.mxu0 %vm735_vm3, %v12693_v9 }
  0x37   : > { %11988 = vmatprep.mubr.msk.bf16.mxu0 %vm13878_vm2, %v18613_v0 }
  0x3e   : > { %11989 = vmatmul.mubr.msk.bf16.gmra.mxu0 %vm735_vm3, %v12694_v10  ;;  %v12723_v10 = vld [vmem:[%s14006_s16 + $0x108] sm:$0xff]  }
  0x3f   : > { %11992 = vmatprep.mubr.msk.bf16.mxu0 %vm13878_vm2, %v18613_v0 }
  0x46   : > { %11993 = vmatmul.mubr.msk.bf16.gmra.mxu0 %vm735_vm3, %v12695_v11 }
  0x47   : > { %11996 = vmatprep.mubr.msk.bf16.mxu0 %vm13878_vm2, %v18613_v0 }
  0x4e   : > { %11997 = vmatmul.mubr.msk.bf16.gmra.mxu0 %vm735_vm3, %v12696_v12 }
  0x4f   : > { %12000 = vmatprep.mubr.msk.bf16.mxu0 %vm13878_vm2, %v18613_v0 }
  0x56   : > { %12001 = vmatmul.mubr.msk.bf16.gmra.mxu0 %vm735_vm3, %v12697_v13 }
  0x57   : > { %12004 = vmatprep.mubr.msk.bf16.mxu0 %vm13878_vm2, %v18613_v0 }
  0x5e   : > { %12005 = vmatmul.mubr.msk.bf16.gmra.mxu0 %vm735_vm3, %v12698_v14 }
  0x5f   : > { %12008 = vmatprep.mubr.msk.bf16.mxu0 %vm13878_vm2, %v18613_v0 }
  0x66   : > { %12009 = vmatmul.mubr.msk.bf16.gmra.mxu0 %vm735_vm3, %v12699_v15  ;;  %v12724_v15 = vld [vmem:[%s14006_s16 + $0x110] sm:$0xff]  }
  0x67   : > { %12012 = vmatprep.mubr.msk.bf16.mxu0 %vm13878_vm2, %v18613_v0 }
  0x6e   : > { %12013 = vmatmul.mubr.msk.bf16.gmra.mxu0 %vm735_vm3, %v12700_v16 }
  0x6f   : > { %12016 = vmatprep.mubr.msk.bf16.mxu0 %vm13878_vm2, %v18613_v0 }
  0x76   : > { %12017 = vmatmul.mubr.msk.bf16.gmra.mxu0 %vm735_vm3, %v12701_v17 }
  0x77   : > { %12020 = vmatprep.mubr.msk.bf16.mxu0 %vm13878_vm2, %v18613_v0 }
  0x7e   : > { %12021 = vmatmul.mubr.msk.bf16.gmra.mxu0 %vm735_vm3, %v12702_v18 }
  0x7f   : > { %12024 = vmatprep.mubr.msk.bf16.mxu0 %vm13878_vm2, %v18613_v0 }
  0x86   : > { %12025 = vmatmul.mubr.msk.bf16.gmra.mxu0 %vm735_vm3, %v12703_v19 }
  0x87   : > { %12028 = vmatprep.mubr.msk.bf16.mxu0 %vm13878_vm2, %v18613_v0 }
  0x8e   : > { %12029 = vmatmul.mubr.msk.bf16.gmra.mxu0 %vm735_vm3, %v12704_v20  ;;  %v12725_v20 = vld [vmem:[%s14006_s16 + $0x118] sm:$0xff]  }
  0x8f   : > { %12032 = vmatprep.mubr.msk.bf16.mxu0 %vm13878_vm2, %v18613_v0 }
  0x96   : > { %12033 = vmatmul.mubr.msk.bf16.gmra.mxu0 %vm735_vm3, %v12705_v21 }
  0x97   : > { %12036 = vmatprep.mubr.msk.bf16.mxu0 %vm13878_vm2, %v18613_v0 }
  0x9e   : > { %12037 = vmatmul.mubr.msk.bf16.gmra.mxu0 %vm735_vm3, %v12706_v22 }
  0x9f   : > { %12040 = vmatprep.mubr.msk.bf16.mxu0 %vm13878_vm2, %v18613_v0 }
  0xa6   : > { %12041 = vmatmul.mubr.msk.bf16.gmra.mxu0 %vm735_vm3, %v12707_v23 }
  0xa7   : > { %12044 = vmatprep.mubr.msk.bf16.mxu0 %vm13878_vm2, %v18613_v0 }
  0xae   : > { %12045 = vmatmul.mubr.msk.bf16.gmra.mxu0 %vm735_vm3, %v12708_v24 }
  0xaf   : > { %12048 = vmatprep.mubr.msk.bf16.mxu0 %vm13878_vm2, %v18613_v0 }
  0xb6   : > { %12049 = vmatmul.mubr.msk.bf16.gmra.mxu0 %vm735_vm3, %v12709_v25  ;;  %v12726_v25 = vld [vmem:[%s14006_s16 + $0x120] sm:$0xff]  }
  0xb7   : > { %12052 = vmatprep.mubr.msk.bf16.mxu0 %vm13878_vm2, %v18613_v0 }
  0xbe   : > { %12053 = vmatmul.mubr.msk.bf16.gmra.mxu0 %vm735_vm3, %v12710_v26 }
  0xbf   : > { %12056 = vmatprep.mubr.msk.bf16.mxu0 %vm13878_vm2, %v18613_v0 }
  0xc6   : > { %12057 = vmatmul.mubr.msk.bf16.gmra.mxu0 %vm735_vm3, %v12711_v27 }
  0xc7   : > { %12060 = vmatprep.mubr.msk.bf16.mxu0 %vm13878_vm2, %v18613_v0 }
  0xce   : > { %12061 = vmatmul.mubr.msk.bf16.gmra.mxu0 %vm735_vm3, %v12712_v28 }
  0xcf   : > { %12064 = vmatprep.mubr.msk.bf16.mxu0 %vm13878_vm2, %v18613_v0 }
  0xd6   : > { %12065 = vmatmul.mubr.msk.bf16.gmra.mxu0 %vm735_vm3, %v12713_v29 }
  0xd7   : > { %12068 = vmatprep.mubr.msk.bf16.mxu0 %vm13878_vm2, %v18613_v0 }
  0xde   : > { %v14106_v31 = vpop.f32.mrf.mxu0  ;;  %12069 = vmatmul.mubr.msk.bf16.gmra.mxu0 %vm735_vm3, %v12714_v30  ;;  %v12727_v30 = vld [vmem:[%s14006_s16 + $0x128] sm:$0xff]  }
  0xdf   : > { %12072 = vmatprep.mubr.msk.bf16.mxu0 %vm13878_vm2, %v18613_v0 }
  0xe0   : > { %v11974_v32 = vpop.f32.mrf.mxu0 }
  0xe2   : > { %v14112_v34 = vpop.f32.mrf.mxu0 }
  0xe4   : > { %v11975_v35 = vpop.f32.mrf.mxu0 }
  0xe6   : > { %v14114_v36 = vpop.f32.mrf.mxu0  ;;  %12073 = vmatmul.mubr.msk.bf16.gmra.mxu0 %vm735_vm3, %v12715_v33 }
  0xe7   : > { %12076 = vmatprep.mubr.msk.bf16.mxu0 %vm13878_vm2, %v18613_v0 }
  0xe8   : > { %v11978_v37 = vpop.f32.mrf.mxu0 }
  0xea   : > { %v14120_v39 = vpop.f32.mrf.mxu0 }
  0xec   : > { %v11979_v40 = vpop.f32.mrf.mxu0 }
  0xee   : > { %v14122_v41 = vpop.f32.mrf.mxu0  ;;  %12077 = vmatmul.mubr.msk.bf16.gmra.mxu0 %vm735_vm3, %v12716_v38  ;;  %v12728_v38 = vld [vmem:[%s14006_s16 + $0x130] sm:$0xff]  }
  0xef   : > { %12080 = vmatprep.mubr.msk.bf16.mxu0 %vm13878_vm2, %v18613_v0 }
  0xf0   : > { %v11982_v42 = vpop.f32.mrf.mxu0 }
  0xf2   : > { %v14128_v44 = vpop.f32.mrf.mxu0 }
  0xf4   : > { %v11983_v45 = vpop.f32.mrf.mxu0 }
  0xf6   : > { %v14130_v46 = vpop.f32.mrf.mxu0  ;;  %12081 = vmatmul.mubr.msk.bf16.gmra.mxu0 %vm735_vm3, %v12717_v43 }
  0xf7   : > { %12084 = vmatprep.mubr.msk.bf16.mxu0 %vm13878_vm2, %v18613_v0 }
  0xf8   : > { %v11986_v47 = vpop.f32.mrf.mxu0 }
  0xf9   : > { %v12729_v47 = vld [vmem:[%s14006_s16 + $0x138] sm:$0xff]  }
  0xfa   : > { %v14136_v49 = vpop.f32.mrf.mxu0 }
  0xfc   : > { %v11987_v50 = vpop.f32.mrf.mxu0 }
  0xfe   : > { %v14138_v51 = vpop.f32.mrf.mxu0  ;;  %12085 = vmatmul.mubr.msk.bf16.gmra.mxu0 %vm735_vm3, %v12718_v48 }
  0xff   : > { %12088 = vmatprep.mubr.msk.bf16.mxu0 %vm13878_vm2, %v18613_v0 }
 0x100   : > { %v11990_v52 = vpop.f32.mrf.mxu0 }
 0x102   : > { %v14144_v54 = vpop.f32.mrf.mxu0 }
 0x104   : > { %v11991_v55 = vpop.f32.mrf.mxu0 }
 0x105   : > { %v12730_v55 = vld [vmem:[%s14006_s16 + $0x140] sm:$0xff]  }
 0x106   : > { %v14146_v56 = vpop.f32.mrf.mxu0  ;;  %12089 = vmatmul.mubr.msk.bf16.gmra.mxu0 %vm735_vm3, %v12719_v53 }
 0x107   : > { %12092 = vmatprep.mubr.msk.bf16.mxu0 %vm13878_vm2, %v18613_v0 }
 0x108   : > { %v11994_v57 = vpop.f32.mrf.mxu0 }
 0x10a   : > { %v14152_v59 = vpop.f32.mrf.mxu0 }
 0x10c   : > { %v11995_v60 = vpop.f32.mrf.mxu0 }
 0x10e   : > { %v14154_v61 = vpop.f32.mrf.mxu0  ;;  %12093 = vmatmul.mubr.msk.bf16.gmra.mxu0 %vm735_vm3, %v12720_v58 }
 0x10f   : > { %12096 = vmatprep.mubr.msk.bf16.mxu0 %vm13878_vm2, %v18613_v0 }
 0x110   : > { %v11998_v62 = vpop.f32.mrf.mxu0 }
 0x112   : > { %v14160_v1 = vpop.f32.mrf.mxu0 }
 0x114   : > { %v11999_v2 = vpop.f32.mrf.mxu0 }
 0x116   : > { %v14162_v3 = vpop.f32.mrf.mxu0  ;;  %12097 = vmatmul.mubr.msk.bf16.gmra.mxu0 %vm735_vm3, %v12721_v63  ;;  %v12731_v63 = vld [vmem:[%s14006_s16 + $0x148] sm:$0xff]  }
 0x117   : > { %12100 = vmatprep.mubr.msk.bf16.mxu0 %vm13878_vm2, %v18613_v0 }
 0x118   : > { %v12002_v4 = vpop.f32.mrf.mxu0 }
 0x11a   : > { %v14168_v6 = vpop.f32.mrf.mxu0 }
 0x11c   : > { %v12003_v7 = vpop.f32.mrf.mxu0 }
 0x11e   : > { %v14170_v8 = vpop.f32.mrf.mxu0  ;;  %12101 = vmatmul.mubr.msk.bf16.gmra.mxu0 %vm735_vm3, %v12722_v5 }
 0x11f   : > { %18642 = vst [vmem:[#allocation6_spill] sm:$0xff] %v14170_v8  ;;  %12104 = vmatprep.mubr.msk.bf16.mxu0 %vm13878_vm2, %v18613_v0 }
 0x120   : > { %v12006_v9 = vpop.f32.mrf.mxu0 }
 0x121   : > { %v12732_v9 = vld [vmem:[%s14006_s16 + $0x150] sm:$0xff]  }
 0x122   : > { %v14176_v11 = vpop.f32.mrf.mxu0 }
 0x123   : > { %18643 = vst [vmem:[#allocation7_spill] sm:$0xff] %v14176_v11 }
 0x124   : > { %v12007_v12 = vpop.f32.mrf.mxu0 }
 0x126   : > { %v14178_v13 = vpop.f32.mrf.mxu0  ;;  %12105 = vmatmul.mubr.msk.bf16.gmra.mxu0 %vm735_vm3, %v12723_v10 }
 0x127   : > { %18644 = vst [vmem:[#allocation8_spill] sm:$0xff] %v14178_v13  ;;  %12108 = vmatprep.mubr.msk.bf16.mxu0 %vm13878_vm2, %v18613_v0 }
 0x128   : > { %v12010_v14 = vpop.f32.mrf.mxu0 }
 0x12a   : > { %v14184_v16 = vpop.f32.mrf.mxu0 }
 0x12b   : > { %18645 = vst [vmem:[#allocation9_spill] sm:$0xff] %v14184_v16 }
 0x12c   : > { %v12011_v17 = vpop.f32.mrf.mxu0 }
 0x12d   : > { %v12733_v17 = vld [vmem:[%s14006_s16 + $0x158] sm:$0xff]  }
 0x12e   : > { %v14186_v18 = vpop.f32.mrf.mxu0  ;;  %12109 = vmatmul.mubr.msk.bf16.gmra.mxu0 %vm735_vm3, %v12724_v15 }
 0x12f   : > { %18646 = vst [vmem:[#allocation10_spill] sm:$0xff] %v14186_v18  ;;  %12112 = vmatprep.mubr.msk.bf16.mxu0 %vm13878_vm2, %v18613_v0 }
 0x130   : > { %v12014_v19 = vpop.f32.mrf.mxu0 }
 0x132   : > { %v14192_v21 = vpop.f32.mrf.mxu0 }
 0x133   : > { %18647 = vst [vmem:[#allocation11_spill] sm:$0xff] %v14192_v21 }
 0x134   : > { %v12015_v22 = vpop.f32.mrf.mxu0 }
 0x136   : > { %v14194_v23 = vpop.f32.mrf.mxu0  ;;  %12113 = vmatmul.mubr.msk.bf16.gmra.mxu0 %vm735_vm3, %v12725_v20 }
 0x137   : > { %18648 = vst [vmem:[#allocation12_spill] sm:$0xff] %v14194_v23  ;;  %12116 = vmatprep.mubr.msk.bf16.mxu0 %vm13878_vm2, %v18613_v0 }
 0x138   : > { %v12018_v24 = vpop.f32.mrf.mxu0 }
 0x13a   : > { %v14200_v26 = vpop.f32.mrf.mxu0 }
 0x13b   : > { %18649 = vst [vmem:[#allocation13_spill] sm:$0xff] %v14200_v26 }
 0x13c   : > { %v12019_v27 = vpop.f32.mrf.mxu0 }
 0x13e   : > { %v14202_v28 = vpop.f32.mrf.mxu0  ;;  %12117 = vmatmul.mubr.msk.bf16.gmra.mxu0 %vm735_vm3, %v12726_v25  ;;  %v12734_v25 = vld [vmem:[%s14006_s16 + $0x160] sm:$0xff]  }
 0x13f   : > { %12120 = vmatprep.mubr.msk.bf16.mxu0 %vm13878_vm2, %v18613_v0 }
 0x140   : > { %v12022_v29 = vpop.f32.mrf.mxu0 }
 0x142   : > { %v14208_v32 = vpop.f32.mrf.mxu0 }
 0x144   : > { %v12023_v33 = vpop.f32.mrf.mxu0 }
 0x146   : > { %v14210_v35 = vpop.f32.mrf.mxu0  ;;  %12121 = vmatmul.mubr.msk.bf16.gmra.mxu0 %vm735_vm3, %v12727_v30 }
 0x147   : > { %12124 = vmatprep.mubr.msk.bf16.mxu0 %vm13878_vm2, %v18613_v0 }
 0x148   : > { %v12026_v37 = vpop.f32.mrf.mxu0 }
 0x149   : > { %v12735_v37 = vld [vmem:[%s14006_s16 + $0x168] sm:$0xff]  }
 0x14a   : > { %v14216_v40 = vpop.f32.mrf.mxu0 }
 0x14c   : > { %v12027_v42 = vpop.f32.mrf.mxu0 }
 0x14e   : > { %v14218_v43 = vpop.f32.mrf.mxu0  ;;  %12125 = vmatmul.mubr.msk.bf16.gmra.mxu0 %vm735_vm3, %v12728_v38 }
 0x14f   : > { %12128 = vmatprep.mubr.msk.bf16.mxu0 %vm13878_vm2, %v18613_v0 }
 0x150   : > { %v12030_v45 = vpop.f32.mrf.mxu0 }
 0x152   : > { %v14224_v48 = vpop.f32.mrf.mxu0 }
 0x154   : > { %v12031_v50 = vpop.f32.mrf.mxu0 }
 0x155   : > { %v12736_v50 = vld [vmem:[%s14006_s16 + $0x170] sm:$0xff]  }
 0x156   : > { %v14226_v52 = vpop.f32.mrf.mxu0  ;;  %12129 = vmatmul.mubr.msk.bf16.gmra.mxu0 %vm735_vm3, %v12729_v47 }
 0x157   : > { %12132 = vmatprep.mubr.msk.bf16.mxu0 %vm13878_vm2, %v18613_v0 }
 0x158   : > { %v12034_v53 = vpop.f32.mrf.mxu0 }
 0x15a   : > { %v14232_v57 = vpop.f32.mrf.mxu0 }
 0x15c   : > { %v12035_v58 = vpop.f32.mrf.mxu0 }
 0x15e   : > { %v14234_v60 = vpop.f32.mrf.mxu0  ;;  %12133 = vmatmul.mubr.msk.bf16.gmra.mxu0 %vm735_vm3, %v12730_v55 }
 0x15f   : > { %12136 = vmatprep.mubr.msk.bf16.mxu0 %vm13878_vm2, %v18613_v0 }
 0x160   : > { %v12038_v62 = vpop.f32.mrf.mxu0 }
 0x162   : > { %v14240_v2 = vpop.f32.mrf.mxu0 }
 0x164   : > { %v12039_v4 = vpop.f32.mrf.mxu0 }
 0x166   : > { %v14242_v5 = vpop.f32.mrf.mxu0  ;;  %12137 = vmatmul.mubr.msk.bf16.gmra.mxu0 %vm735_vm3, %v12731_v63  ;;  %v12737_v63 = vld [vmem:[%s14006_s16 + $0x178] sm:$0xff]  }
 0x167   : > { %12140 = vmatprep.mubr.msk.bf16.mxu0 %vm13878_vm2, %v18613_v0 }
 0x168   : > { %v12042_v7 = vpop.f32.mrf.mxu0 }
 0x16a   : > { %v14248_v10 = vpop.f32.mrf.mxu0 }
 0x16c   : > { %v12043_v12 = vpop.f32.mrf.mxu0 }
 0x16e   : > { %v14250_v14 = vpop.f32.mrf.mxu0  ;;  %12141 = vmatmul.mubr.msk.bf16.gmra.mxu0 %vm735_vm3, %v12732_v9 }
 0x16f   : > { %12144 = vmatprep.mubr.msk.bf16.mxu0 %vm13878_vm2, %v18613_v0 }
 0x170   : > { %v12046_v15 = vpop.f32.mrf.mxu0 }
 0x172   : > { %v14256_v19 = vpop.f32.mrf.mxu0 }
 0x174   : > { %v12047_v20 = vpop.f32.mrf.mxu0 }
 0x176   : > { %v14258_v22 = vpop.f32.mrf.mxu0  ;;  %12145 = vmatmul.mubr.msk.bf16.gmra.mxu0 %vm735_vm3, %v12733_v17  ;;  %v12738_v17 = vld [vmem:[%s14006_s16 + $0x180] sm:$0xff]   ;;  %s13818_s16 = sshll.u32 %s13881_s21, 4  ;;  %s13819_s16 = int_to_ptr.vmem [resolvable:$false] %s13818_s16 }
 0x177   : > { %12148 = vmatprep.mubr.msk.bf16.mxu0 %vm13878_vm2, %v18613_v0  ;;  %s13820_s30 = scalar_lea.vmem %s13819_s16, 32 }
 0x178   : > { %v12050_v24 = vpop.f32.mrf.mxu0 }
 0x179   : > { %v12739_v24 = vld [vmem:[%s18604_s3 + $0x18] sm:$0xff]  }
 0x17a   : > { %v14264_v27 = vpop.f32.mrf.mxu0  ;;  %12169 = vmatpush3.bf16.msra.mxu0 %v12739_v24  ;;  %12642 = vmatpush3.bf16.msra.mxu1 %v12739_v24 }
 0x17b   : > { %12170 = vmatprep.subr.bf16.mxu0 %v18613_v0  ;;  %12641 = vmatprep.subr.bf16.mxu1 %v18613_v0 }
 0x17c   : > { %v12051_v29 = vpop.f32.mrf.mxu0 }
 0x17e   : > { %v14266_v30 = vpop.f32.mrf.mxu0  ;;  %12149 = vmatmul.mubr.msk.bf16.gmra.mxu0 %vm735_vm3, %v12734_v25 }
 0x17f   : > { %12152 = vmatprep.mubr.msk.bf16.mxu0 %vm13878_vm2, %v18613_v0 }
 0x180   : > { %v12054_v33 = vpop.f32.mrf.mxu0 }
 0x181   : > { %v12740_v33 = vld [vmem:[%s18604_s3 + $0x10] sm:$0xff]  }
 0x182   : > { %v14272_v38 = vpop.f32.mrf.mxu0  ;;  %12171 = vmatpush3.bf16.msra.mxu0 %v12740_v33  ;;  %12643 = vmatpush3.bf16.msra.mxu1 %v12740_v33 }
 0x183   : > { %18650 = vst [vmem:[#allocation14_spill] sm:$0xff] %v14272_v38  ;;  %12408 = vmatprep.subr.bf16.mxu0 %v18613_v0  ;;  %12216 = vmatprep.subr.bf16.mxu1 %v18613_v0 }
 0x184   : > { %v12055_v42 = vpop.f32.mrf.mxu0 }
 0x186   : > { %v14274_v45 = vpop.f32.mrf.mxu0  ;;  %12153 = vmatmul.mubr.msk.bf16.gmra.mxu0 %vm735_vm3, %v12735_v37 }
 0x187   : > { %18651 = vst [vmem:[#allocation15_spill] sm:$0xff] %v14274_v45  ;;  %12156 = vmatprep.mubr.msk.bf16.mxu0 %vm13878_vm2, %v18613_v0 }
 0x188   : > { %v12058_v47 = vpop.f32.mrf.mxu0 }
 0x18a   : > { %v14280_v53 = vpop.f32.mrf.mxu0 }
 0x18b   : > { %18652 = vst [vmem:[#allocation16_spill] sm:$0xff] %v14280_v53 }
 0x18c   : > { %v12059_v55 = vpop.f32.mrf.mxu0 }
 0x18e   : > { %v14282_v58 = vpop.f32.mrf.mxu0  ;;  %12157 = vmatmul.mubr.msk.bf16.gmra.mxu0 %vm735_vm3, %v12736_v50 }
 0x18f   : > { %18653 = vst [vmem:[#allocation17_spill] sm:$0xff] %v14282_v58  ;;  %12160 = vmatprep.mubr.msk.bf16.mxu0 %vm13878_vm2, %v18613_v0 }
 0x190   : > { %v12062_v62 = vpop.f32.mrf.mxu0 }
 0x192   : > { %v14288_v4 = vpop.f32.mrf.mxu0 }
 0x193   : > { %18654 = vst [vmem:[#allocation18_spill] sm:$0xff] %v14288_v4 }
 0x194   : > { %v12063_v7 = vpop.f32.mrf.mxu0 }
 0x196   : > { %v14290_v9 = vpop.f32.mrf.mxu0  ;;  %12161 = vmatmul.mubr.msk.bf16.gmra.mxu0 %vm735_vm3, %v12737_v63 }
 0x197   : > { %18655 = vst [vmem:[#allocation19_spill] sm:$0xff] %v14290_v9  ;;  %12164 = vmatprep.mubr.msk.bf16.mxu0 %vm13878_vm2, %v18613_v0 }
 0x198   : > { %v12066_v12 = vpop.f32.mrf.mxu0 }
 0x19a   : > { %v14295_v15 = vpop.f32.mrf.mxu0 }
 0x19b   : > { %18656 = vst [vmem:[#allocation20_spill] sm:$0xff] %v14295_v15 }
 0x19c   : > { %v12067_v20 = vpop.f32.mrf.mxu0 }
 0x19e   : > { %v14301_v25 = vpop.f32.mrf.mxu0  ;;  %12165 = vmatmul.mubr.msk.bf16.gmra.mxu0 %vm735_vm3, %v12738_v17 }
 0x19f   : > { %18657 = vst [vmem:[#allocation21_spill] sm:$0xff] %v14301_v25  ;;  %12172 = vmatprep.mubr.msk.bf16.mxu0 %vm13878_vm2, %v18613_v0 }
 0x1a0   : > { %v12070_v29 = vpop.f32.mrf.mxu0 }
 0x1a2   : > { %v14311_v37 = vpop.f32.mrf.mxu0 }
 0x1a4   : > { %v12071_v42 = vpop.f32.mrf.mxu0 }
 0x1a6   : > { %v14315_v47 = vpop.f32.mrf.mxu0 }
 0x1a8   : > { %v12074_v50 = vpop.f32.mrf.mxu0 }
 0x1aa   : > { %v14317_v55 = vpop.f32.mrf.mxu0 }
 0x1ac   : > { %v12075_v62 = vpop.f32.mrf.mxu0 }
 0x1ae   : > { %v14319_v63 = vpop.f32.mrf.mxu0 }
 0x1b0   : > { %v12078_v7 = vpop.f32.mrf.mxu0 }
 0x1b2   : > { %v14321_v12 = vpop.f32.mrf.mxu0 }
 0x1b4   : > { %v12079_v17 = vpop.f32.mrf.mxu0 }
 0x1b6   : > { %v14323_v20 = vpop.f32.mrf.mxu0 }
 0x1b8   : > { %v12082_v24 = vpop.f32.mrf.mxu0 }
 0x1ba   : > { %v14325_v29 = vpop.f32.mrf.mxu0 }
 0x1bc   : > { %v12083_v33 = vpop.f32.mrf.mxu0 }
 0x1be   : > { %v14327_v42 = vpop.f32.mrf.mxu0 }
 0x1c0   : > { %v12086_v0 = vpop.f32.mrf.mxu0 }
 0x1c2   : > { %v14329_v26 = vpop.f32.mrf.mxu0 }
 0x1c4   : > { %v12087_v50 = vpop.f32.mrf.mxu0 }
 0x1c6   : > { %v14331_v25 = vpop.f32.mrf.mxu0 }
 0x1c8   : > { %v12090_v62 = vpop.f32.mrf.mxu0 }
 0x1ca   : > { %v14333_v23 = vpop.f32.mrf.mxu0 }
 0x1cc   : > { %v12091_v7 = vpop.f32.mrf.mxu0 }
 0x1ce   : > { %v14335_v15 = vpop.f32.mrf.mxu0 }
 0x1d0   : > { %v12094_v17 = vpop.f32.mrf.mxu0 }
 0x1d2   : > { %v14337_v21 = vpop.f32.mrf.mxu0 }
 0x1d4   : > { %v12095_v24 = vpop.f32.mrf.mxu0 }
 0x1d6   : > { %v14339_v9 = vpop.f32.mrf.mxu0 }
 0x1d8   : > { %v12098_v33 = vpop.f32.mrf.mxu0 }
 0x1da   : > { %v14341_v18 = vpop.f32.mrf.mxu0 }
 0x1dc   : > { %v12099_v0 = vpop.f32.mrf.mxu0 }
 0x1de   : > { %v14343_v4 = vpop.f32.mrf.mxu0 }
 0x1e0   : > { %v12102_v50 = vpop.f32.mrf.mxu0 }
 0x1e2   : > { %v14345_v58 = vpop.f32.mrf.mxu0 }
 0x1e4   : > { %v12103_v62 = vpop.f32.mrf.mxu0 }
 0x1e6   : > { %v14347_v16 = vpop.f32.mrf.mxu0 }
 0x1e7   : > { %18658 = vst [vmem:[#allocation22_spill] sm:$0xff] %v14347_v16 }
 0x1e8   : > { %v12106_v7 = vpop.f32.mrf.mxu0 }
 0x1ea   : > { %v14349_v53 = vpop.f32.mrf.mxu0 }
 0x1eb   : > { %18659 = vst [vmem:[#allocation23_spill] sm:$0xff] %v14349_v53 }
 0x1ec   : > { %v12107_v17 = vpop.f32.mrf.mxu0 }
 0x1ee   : > { %v14351_v45 = vpop.f32.mrf.mxu0 }
 0x1ef   : > { %18660 = vst [vmem:[#allocation24_spill] sm:$0xff] %v14351_v45 }
 0x1f0   : > { %v12110_v24 = vpop.f32.mrf.mxu0 }
 0x1f2   : > { %v14353_v13 = vpop.f32.mrf.mxu0 }
 0x1f3   : > { %18661 = vst [vmem:[#allocation25_spill] sm:$0xff] %v14353_v13 }
 0x1f4   : > { %v12111_v33 = vpop.f32.mrf.mxu0 }
 0x1f6   : > { %v14355_v11 = vpop.f32.mrf.mxu0 }
 0x1f8   : > { %v12114_v0 = vpop.f32.mrf.mxu0 }
 0x1f9   : > { %v1315_v0 = vmax.f32 %v14106_v31, %v14311_v37 }
 0x1fa   : > { %v14357_v38 = vpop.f32.mrf.mxu0 }
 0x1fb   : > { %18662 = vst [vmem:[#allocation26_spill] sm:$0xff] %v14357_v38 }
 0x1fc   : > { %v12115_v50 = vpop.f32.mrf.mxu0 }
 0x1fe   : > { %v14359_v8 = vpop.f32.mrf.mxu0 }
 0x1ff   : > { %18663 = vst [vmem:[#allocation27_spill] sm:$0xff] %v14359_v8 }
 0x200   : > { %v12118_v62 = vpop.f32.mrf.mxu0 }
 0x202   : > { %v1215_v16 = vpop.f32.mrf.mxu0 }
 0x203   : > { %v14362_v53 = vmax.f32 %v14202_v28, %v1215_v16  ;;  %v14373_v16 = vld [vmem:[%s18603_s2] ss:$0 sm:$0xff] }
 0x204   : > { %v12119_v7 = vpop.f32.mrf.mxu0 }
 0x205   : > { %18664 = vst [vmem:[#allocation28_spill] sm:$0xff] %v14362_v53  ;;  %v1389_v33 = vrot.slane %v14362_v53, 4 }
 0x206   : > { %v1220_v17 = vpop.f32.mrf.mxu0 }
 0x207   : > { %v1340_v24 = vmax.f32 %v14208_v32, %v1220_v17  ;;  %v1316_v32 = vmax.f32 %v14112_v34, %v14315_v47 }
 0x208   : > { %v12122_v45 = vpop.f32.mrf.mxu0 }
 0x209   : > { %v1390_v13 = vrot.slane %v1340_v24, 4 }
 0x20a   : > { %v1223_v38 = vpop.f32.mrf.mxu0 }
 0x20b   : > { %v1391_v50 = vsel %vm883_vm0, %v1389_v33, %v1390_v13  ;;  %v1341_v62 = vmax.f32 %v14210_v35, %v1223_v38  ;;  %v1317_v33 = vmax.f32 %v14114_v36, %v14317_v55 }
 0x20c   : > { %v1463_v8 = vmax.f32 %v1315_v0, %v1391_v50  ;;  %v12123_v7 = vpop.f32.mrf.mxu0 }
 0x20d   : > { %v1392_v28 = vrot.slane %v1341_v62, 4 }
 0x20e   : > { %v1228_v45 = vpop.f32.mrf.mxu0  ;;  %v1495_v37 = vadd.f32 %v14373_v16, %v1463_v8  ;;  %v1318_v8 = vmax.f32 %v14120_v39, %v14319_v63  ;;  %v1319_v63 = vmax.f32 %v14122_v41, %v14321_v12  ;;  %v1321_v41 = vmax.f32 %v14130_v46, %v14325_v29 }
 0x20f   : > { %v1393_v17 = vsel %vm883_vm0, %v1390_v13, %v1392_v28  ;;  %v1342_v31 = vmax.f32 %v14216_v40, %v1228_v45 }
 0x210   : > { %v1464_v24 = vmax.f32 %v1316_v32, %v1393_v17  ;;  %v12126_v35 = vpop.f32.mrf.mxu0  ;;  %v1520_v47 = vmax.f32 %v1495_v37, 0.0 }
 0x211   : > { %v1394_v38 = vrot.slane %v1342_v31, 4 }
 0x212   : > { %v1496_v0 = vadd.f32 %v14373_v16, %v1464_v24  ;;  %v1231_v50 = vpop.f32.mrf.mxu0 }
 0x213   : > { %v1395_v62 = vsel %vm883_vm0, %v1392_v28, %v1394_v38  ;;  %v1343_v34 = vmax.f32 %v14218_v43, %v1231_v50 }
 0x214   : > { %v1521_v7 = vmax.f32 %v1496_v0, 0.0  ;;  %v1465_v13 = vmax.f32 %v1317_v33, %v1395_v62  ;;  %v12127_v53 = vpop.f32.mrf.mxu0 }
 0x215   : > { %v1396_v40 = vrot.slane %v1343_v34, 4  ;;  %v1320_v34 = vmax.f32 %v14128_v44, %v14323_v20 }
 0x216   : > { %v14387_v32 = vpack.c.bf16 %v1521_v7, %v1520_v47  ;;  %v1497_v45 = vadd.f32 %v14373_v16, %v1465_v13  ;;  %v1236_v36 = vpop.f32.mrf.mxu0 }
 0x217   : > { %v1397_v55 = vsel %vm883_vm0, %v1394_v38, %v1396_v40  ;;  %v1344_v17 = vmax.f32 %v14224_v48, %v1236_v36 }
 0x218   : > { %v1522_v28 = vmax.f32 %v1497_v45, 0.0  ;;  %v1466_v31 = vmax.f32 %v1318_v8, %v1397_v55  ;;  %v12130_v43 = vpop.f32.mrf.mxu0  ;;  %v1569_v39 = vshll.u32 %v14387_v32, 16  ;;  %v1322_v8 = vmax.f32 %v14136_v49, %v14327_v42  ;;  %v12741_v42 = vld [vmem:[%s18604_s3 + $0x58] sm:$0xff]  }
 0x219   : > { %v1398_v37 = vrot.slane %v1344_v17, 4  ;;  %v1567_v44 = vshrl.u32 %v14387_v32, 16 }
 0x21a   : > { %v14392_v24 = vpack.c.bf16 %v1522_v28, %v1521_v7  ;;  %v1498_v53 = vadd.f32 %v14373_v16, %v1466_v31  ;;  %v1239_v35 = vpop.f32.mrf.mxu0  ;;  %v1571_v13 = vrot.slane %v1569_v39, 1 }
 0x21b   : > { %v1399_v33 = vsel %vm883_vm0, %v1396_v40, %v1398_v37  ;;  %v1345_v38 = vmax.f32 %v14226_v52, %v1239_v35 }
 0x21c   : > { %v1523_v0 = vmax.f32 %v1498_v53, 0.0  ;;  %v12131_v48 = vpop.f32.mrf.mxu0  ;;  %v1467_v50 = vmax.f32 %v1319_v63, %v1399_v33  ;;  %v2439_v55 = vshrl.u32 %v14392_v24, 16  ;;  %v2442_v17 = vshll.u32 %v14392_v24, 16 }
 0x21d   : > { %v1400_v62 = vrot.slane %v1345_v38, 4  ;;  %v1572_v43 = vor.u32 %v1571_v13, %v1567_v44  ;;  %v1326_v44 = vmax.f32 %v14152_v59, %v14335_v15  ;;  %v1328_v59 = vmax.f32 %v14160_v1, %v14339_v9 }
 0x21e   : > { %v14402_v47 = vpack.c.bf16 %v1523_v0, %v1522_v28  ;;  %v1244_v7 = vpop.f32.mrf.mxu0  ;;  %v1499_v12 = vadd.f32 %v14373_v16, %v1467_v50  ;;  %v1323_v28 = vmax.f32 %v14138_v51, %v14329_v26  ;;  %v1325_v51 = vmax.f32 %v14146_v56, %v14333_v23 }
 0x21f   : > { %v1401_v52 = vsel %vm883_vm0, %v1398_v37, %v1400_v62  ;;  %v1346_v40 = vmax.f32 %v14232_v57, %v1244_v7  ;;  %v1324_v37 = vmax.f32 %v14144_v54, %v14331_v25  ;;  %v14430_v48 = vrot.slane %v2439_v55, 3 }
 0x220   : > { %v1468_v45 = vmax.f32 %v1320_v34, %v1401_v52  ;;  %v12134_v36 = vpop.f32.mrf.mxu0  ;;  %v1574_v20 = vshll.u32 %v14402_v47, 16  ;;  %v1524_v46 = vmax.f32 %v1499_v12, 0.0  ;;  %v14432_v50 = vrot.slane %v2442_v17, 4  ;;  %v12742_v12 = vld [vmem:[%s18604_s3 + $0x50] sm:$0xff]  }
 0x221   : > { %v1402_v29 = vrot.slane %v1346_v40, 4  ;;  %v18665_v52 = vmov 0.0   ;;  %v1578_v36 = vshrl.u32 %v14402_v47, 16 }
 0x222   : > { %v1500_v57 = vadd.f32 %v14373_v16, %v1468_v45  ;;  %v1247_v31 = vpop.f32.mrf.mxu0  ;;  %v1576_v49 = vrot.slane %v1574_v20, 1  ;;  %v14423_v53 = vpack.c.bf16 %v1524_v46, %v1523_v0 }
 0x223   : > { %v1403_v35 = vsel %vm883_vm0, %v1400_v62, %v1402_v29  ;;  %v1347_v39 = vmax.f32 %v14234_v60, %v1247_v31  ;;  %v2225_v62 = vrot.slane %v14392_v24, 3 }
 0x224   : > { %v1525_v26 = vmax.f32 %v1500_v57, 0.0  ;;  %v1469_v63 = vmax.f32 %v1321_v41, %v1403_v35  ;;  %v12135_v33 = vpop.f32.mrf.mxu0  ;;  %v1577_v38 = vsel %vm1565_vm4, %v1572_v43, %v1576_v49  ;;  %v2226_v0 = vrot.slane %v14423_v53, 3 }
 0x225   : > { %v1404_v34 = vrot.slane %v1347_v39, 4  ;;  %12173 = vmatmul.mubr.msk.bf16.vlgmr.msra.gmra.mxu0 %vm1665_vm5, %v1577_v38  ;;  %v2447_v60 = vshrl.u32 %v14423_v53, 16  ;;  %v2450_v40 = vshll.u32 %v14423_v53, 16  ;;  %v1580_v31 = vor.u32 %v1578_v36, %v1576_v49  ;;  %v12743_v49 = vld [vmem:[%s18604_s3 + $0x8] sm:$0xff]  }
 0x226   : > { %v14438_v7 = vpack.c.bf16 %v1525_v26, %v1524_v46  ;;  %v1501_v13 = vadd.f32 %v14373_v16, %v1469_v63  ;;  %v1252_v41 = vpop.f32.mrf.mxu0  ;;  %12409 = vmatpush3.bf16.msra.mxu0 %v12741_v42  ;;  %12412 = vmatprep.mubr.msk.bf16.mxu0 %vm13878_vm2, %v18665_v52  ;;  %v14455_v43 = vsel %vm884_vm1, %v2225_v62, %v2226_v0 }
 0x227   : > { %v1405_v45 = vsel %vm883_vm0, %v1402_v29, %v1404_v34  ;;  %v1348_v24 = vmax.f32 %v14240_v2, %v1252_v41  ;;  %12410 = vmatprep.subr.bf16.mxu0 %v18665_v52  ;;  %v2445_v2 = vor.u32 %v14432_v50, %v14430_v48  ;;  %v3109_v63 = vrot.slane %v2447_v60, 2 }
 0x228   : > { %v1526_v20 = vmax.f32 %v1501_v13, 0.0  ;;  %v1470_v55 = vmax.f32 %v1322_v8, %v1405_v45  ;;  %v12138_v17 = vpop.f32.mrf.mxu0  ;;  %v1582_v46 = vshll.u32 %v14438_v7, 16  ;;  %v3110_v38 = vrot.slane %v2450_v40, 3 }
 0x229   : > { %v1406_v57 = vrot.slane %v1348_v24, 4  ;;  %v1327_v48 = vmax.f32 %v14154_v61, %v14337_v21 }
 0x22a   : > { %v14459_v29 = vpack.c.bf16 %v1526_v20, %v1525_v26  ;;  %v1502_v42 = vadd.f32 %v14373_v16, %v1470_v55  ;;  %v1255_v35 = vpop.f32.mrf.mxu0  ;;  %12411 = vmatpush3.bf16.msra.mxu0 %v12742_v12  ;;  %v1584_v39 = vrot.slane %v1582_v46, 1  ;;  %v2449_v26 = vrot.slane %v2447_v60, 3 }
 0x22b   : > { %v1407_v8 = vsel %vm883_vm0, %v1404_v34, %v1406_v57  ;;  %v1349_v33 = vmax.f32 %v14242_v5, %v1255_v35  ;;  %12504 = vmatprep.subr.bf16.mxu0 %v18665_v52  ;;  %v12746_v5 = vld [vmem:[%s18604_s3 + $0x78] sm:$0xff]   ;;  %v2452_v60 = vrot.slane %v2450_v40, 4  ;;  %v12744_v40 = vld [vmem:[%s18604_s3] sm:$0xff]  }
 0x22c   : > { %v2456_v62 = vshrl.u32 %v14459_v29, 16  ;;  %v2459_v13 = vshll.u32 %v14459_v29, 16  ;;  %v1527_v41 = vmax.f32 %v1502_v42, 0.0  ;;  %v1471_v12 = vmax.f32 %v1323_v28, %v1407_v8  ;;  %v12139_v45 = vpop.f32.mrf.mxu0 }
 0x22d   : > { %v1408_v34 = vrot.slane %v1349_v33, 4  ;;  %v1585_v24 = vsel %vm1565_vm4, %v1580_v31, %v1584_v39  ;;  %12413 = vmatmul.mubr.msk.bf16.vlgmr.msra.gmra.mxu0 %vm1665_vm5, %v14402_v47  ;;  %v18616_v36 = vrot.slane %v14459_v29, 3 }
 0x22e   : > { %v14477_v55 = vpack.c.bf16 %v1527_v41, %v1526_v20  ;;  %v1503_v17 = vadd.f32 %v14373_v16, %v1471_v12  ;;  %12177 = vmatmul.mubr.msk.bf16.vlgmr.msra.gmra.mxu1 %vm1665_vm5, %v1585_v24  ;;  %v1260_v28 = vpop.f32.mrf.mxu0  ;;  %12416 = vmatprep.mubr.msk.bf16.mxu0 %vm13878_vm2, %v18665_v52  ;;  %v3112_v46 = vrot.slane %v2456_v62, 2  ;;  %v3113_v31 = vrot.slane %v2459_v13, 3  ;;  %v12747_v12 = vld [vmem:[%s18604_s3 + $0x70] sm:$0xff]  }
 0x22f   : > { %v1409_v42 = vsel %vm883_vm0, %v1406_v57, %v1408_v34  ;;  %12217 = vmatpush3.bf16.msra.mxu1 %v12743_v49  ;;  %v1350_v35 = vmax.f32 %v14248_v10, %v1260_v28  ;;  %12180 = vmatprep.mubr.msk.bf16.mxu1 %vm13878_vm2, %v18665_v52  ;;  %v14495_v20 = vsel %vm884_vm1, %v2226_v0, %v18616_v36  ;;  %v1586_v10 = vshrl.u32 %v14438_v7, 16 }
 0x230   : > { %18666 = vst [vmem:[#allocation29_spill] sm:$0xff] %v14495_v20  ;;  %v1528_v8 = vmax.f32 %v1503_v17, 0.0  ;;  %v1472_v57 = vmax.f32 %v1324_v37, %v1409_v42  ;;  %v12142_v33 = vpop.f32.mrf.mxu0  ;;  %v1590_v49 = vshll.u32 %v14477_v55, 16  ;;  %12218 = vmatprep.subr.bf16.mxu1 %v18665_v52  ;;  %12505 = vmatpush3.bf16.msra.mxu0 %v12746_v5  ;;  %v3111_v0 = vor.u32 %v3110_v38, %v3109_v63 }
 0x231   : > { %v1410_v45 = vrot.slane %v1350_v35, 4  ;;  %12506 = vmatprep.subr.bf16.mxu0 %v18665_v52  ;;  %v3114_v24 = vor.u32 %v3113_v31, %v3112_v46  ;;  %v14507_v17 = vor.u32 %v2452_v60, %v2449_v26  ;;  %v1588_v28 = vor.u32 %v1586_v10, %v1584_v39 }
 0x232   : > { %v14509_v54 = vpack.c.bf16 %v1528_v8, %v1527_v41  ;;  %v1504_v25 = vadd.f32 %v14373_v16, %v1472_v57  ;;  %v1263_v37 = vpop.f32.mrf.mxu0  ;;  %v1592_v42 = vrot.slane %v1590_v49, 1  ;;  %v2458_v36 = vrot.slane %v2456_v62, 3 }
 0x233   : > { %v1411_v5 = vsel %vm883_vm0, %v1408_v34, %v1410_v45  ;;  %v1351_v33 = vmax.f32 %v14250_v14, %v1263_v37  ;;  %12219 = vmatpush3.bf16.msra.mxu1 %v12744_v40  ;;  %v14515_v35 = vsel %vm3108_vm7, %v3111_v0, %v3114_v24  ;;  %v1594_v39 = vshrl.u32 %v14477_v55, 16 }
 0x234   : > { %v1529_v63 = vmax.f32 %v1504_v25, 0.0  ;;  %v1473_v38 = vmax.f32 %v1325_v51, %v1411_v5  ;;  %v12143_v26 = vpop.f32.mrf.mxu0  ;;  %v1593_v41 = vsel %vm1565_vm4, %v1588_v28, %v1592_v42  ;;  %12264 = vmatprep.subr.bf16.mxu1 %v18665_v52  ;;  %12507 = vmatpush3.bf16.msra.mxu0 %v12747_v12  ;;  %v2465_v14 = vshrl.u32 %v14509_v54, 16 }
 0x235   : > { %v1412_v34 = vrot.slane %v1351_v33, 4  ;;  %12417 = vmatmul.mubr.msk.bf16.gmra.mxu0 %vm1665_vm5, %v14438_v7  ;;  %v2468_v62 = vshll.u32 %v14509_v54, 16  ;;  %v2230_v60 = vrot.slane %v14509_v54, 3  ;;  %v14539_v46 = vsel %vm2437_vm6, %v2445_v2, %v14507_v17 }
 0x236   : > { %v14528_v56 = vpack.c.bf16 %v1529_v63, %v1528_v8  ;;  %v1505_v23 = vadd.f32 %v14373_v16, %v1473_v38  ;;  %12181 = vmatmul.mubr.msk.bf16.gmra.mxu1 %vm1665_vm5, %v1593_v41  ;;  %v1268_v51 = vpop.f32.mrf.mxu0  ;;  %12420 = vmatprep.mubr.msk.bf16.mxu0 %vm13878_vm2, %v18665_v52  ;;  %18667 = vst [vmem:[#allocation30_spill] sm:$0xff] %v14539_v46  ;;  %v2461_v31 = vrot.slane %v2459_v13, 4  ;;  %v3116_v57 = vrot.slane %v2465_v14, 2 }
 0x237   : > { %v1413_v40 = vsel %vm883_vm0, %v1410_v45, %v1412_v34  ;;  %v1352_v8 = vmax.f32 %v14256_v19, %v1268_v51  ;;  %12184 = vmatprep.mubr.msk.bf16.mxu1 %vm13878_vm2, %v18665_v52  ;;  %v3117_v10 = vrot.slane %v2468_v62, 3  ;;  %v1596_v12 = vor.u32 %v1594_v39, %v1592_v42 }
 0x238   : > { %v1530_v50 = vmax.f32 %v1505_v23, 0.0  ;;  %v1474_v2 = vmax.f32 %v1326_v44, %v1413_v40  ;;  %v12146_v13 = vpop.f32.mrf.mxu0  ;;  %v1598_v19 = vshll.u32 %v14528_v56, 16  ;;  %v18668_v0 = vrot.slane %v14459_v29, 3 }
 0x239   : > { %v1414_v49 = vrot.slane %v1352_v8, 4  ;;  %v3118_v45 = vor.u32 %v3117_v10, %v3116_v57  ;;  %v14565_v5 = vor.u32 %v2461_v31, %v2458_v36  ;;  %v1329_v33 = vmax.f32 %v14162_v3, %v14341_v18 }
 0x23a   : > { %v14560_v25 = vsel %vm884_vm1, %v18668_v0, %v2230_v60  ;;  %v14562_v37 = vpack.c.bf16 %v1530_v50, %v1529_v63  ;;  %v1506_v61 = vadd.f32 %v14373_v16, %v1474_v2  ;;  %v1271_v21 = vpop.f32.mrf.mxu0  ;;  %v1600_v28 = vrot.slane %v1598_v19, 1 }
 0x23b   : > { %18669 = vst [vmem:[#allocation31_spill] sm:$0xff] %v14560_v25  ;;  %v1415_v15 = vsel %vm883_vm0, %v1412_v34, %v1414_v49  ;;  %v1353_v44 = vmax.f32 %v14258_v22, %v1271_v21  ;;  %v14572_v42 = vsel %vm3108_vm7, %v3114_v24, %v3118_v45  ;;  %v1602_v18 = vshrl.u32 %v14528_v56, 16 }
 0x23c   : > { %v1531_v63 = vmax.f32 %v1506_v61, 0.0  ;;  %v1475_v38 = vmax.f32 %v1327_v48, %v1415_v15  ;;  %v12147_v26 = vpop.f32.mrf.mxu0  ;;  %v1601_v41 = vsel %vm1565_vm4, %v1596_v12, %v1600_v28  ;;  %v2474_v1 = vshrl.u32 %v14562_v37, 16 }
 0x23d   : > { %v1416_v36 = vrot.slane %v1353_v44, 4  ;;  %12421 = vmatmul.mubr.msk.bf16.gmra.mxu0 %vm1665_vm5, %v14477_v55  ;;  %v2477_v9 = vshll.u32 %v14562_v37, 16  ;;  %v2232_v22 = vrot.slane %v14562_v37, 3  ;;  %v14592_v34 = vsel %vm2437_vm6, %v14507_v17, %v14565_v5 }
 0x23e   : > { %v14582_v24 = vpack.c.bf16 %v1531_v63, %v1530_v50  ;;  %v1507_v39 = vadd.f32 %v14373_v16, %v1475_v38  ;;  %12185 = vmatmul.mubr.msk.bf16.gmra.mxu1 %vm1665_vm5, %v1601_v41  ;;  %v1276_v3 = vpop.f32.mrf.mxu0  ;;  %12424 = vmatprep.mubr.msk.bf16.mxu0 %vm13878_vm2, %v18665_v52  ;;  %18670 = vst [vmem:[#allocation32_spill] sm:$0xff] %v14592_v34  ;;  %v3120_v31 = vrot.slane %v2474_v1, 2  ;;  %v2470_v61 = vrot.slane %v2468_v62, 4 }
 0x23f   : > { %v1417_v23 = vsel %vm883_vm0, %v1414_v49, %v1416_v36  ;;  %v1354_v51 = vmax.f32 %v14264_v27, %v1276_v3  ;;  %12188 = vmatprep.mubr.msk.bf16.mxu1 %vm13878_vm2, %v18665_v52  ;;  %v3121_v40 = vrot.slane %v2477_v9, 3  ;;  %v1604_v48 = vor.u32 %v1602_v18, %v1600_v28  ;;  %v18673_v3 = vld [vmem:[#allocation14_spill] sm:$0xff] }
 0x240   : > { %v1532_v8 = vmax.f32 %v1507_v39, 0.0  ;;  %v1476_v57 = vmax.f32 %v1328_v59, %v1417_v23  ;;  %v12150_v10 = vpop.f32.mrf.mxu0  ;;  %v1606_v17 = vshll.u32 %v14582_v24, 16  ;;  %v14604_v13 = vsel %vm884_vm1, %v2230_v60, %v2232_v22 }
 0x241   : > { %v1418_v50 = vrot.slane %v1354_v51, 4  ;;  %v3122_v2 = vor.u32 %v3121_v40, %v3120_v31  ;;  %18671 = vst [vmem:[#allocation33_spill] sm:$0xff] %v14604_v13  ;;  %v2467_v27 = vrot.slane %v2465_v14, 3  ;;  %v1330_v21 = vmax.f32 %v14168_v6, %v14343_v4  ;;  %v18672_v14 = vld [vmem:[#allocation6_spill] sm:$0xff]  ;;  %v18675_v40 = vld [vmem:[#allocation7_spill] sm:$0xff] }
 0x242   : > { %v14608_v19 = vpack.c.bf16 %v1532_v8, %v1531_v63  ;;  %v1508_v49 = vadd.f32 %v14373_v16, %v1476_v57  ;;  %v1279_v12 = vpop.f32.mrf.mxu0  ;;  %v1608_v0 = vrot.slane %v1606_v17, 1  ;;  %v1331_v15 = vmax.f32 %v18672_v14, %v14345_v58  ;;  %v18674_v31 = vld [vmem:[#allocation22_spill] sm:$0xff] }
 0x243   : > { %v1419_v28 = vsel %vm883_vm0, %v1416_v36, %v1418_v50  ;;  %v1355_v60 = vmax.f32 %v14266_v30, %v1279_v12  ;;  %v14618_v59 = vsel %vm3108_vm7, %v3118_v45, %v3122_v2  ;;  %v14635_v36 = vor.u32 %v2470_v61, %v2467_v27 }
 0x244   : > { %v1533_v44 = vmax.f32 %v1508_v49, 0.0  ;;  %v1477_v63 = vmax.f32 %v1329_v33, %v1419_v28  ;;  %v12151_v38 = vpop.f32.mrf.mxu0  ;;  %v1609_v26 = vsel %vm1565_vm4, %v1604_v48, %v1608_v0  ;;  %v2483_v6 = vshrl.u32 %v14608_v19, 16 }
 0x245   : > { %v1420_v41 = vrot.slane %v1355_v60, 4  ;;  %12425 = vmatmul.mubr.msk.bf16.gmra.mxu0 %vm1665_vm5, %v14528_v56  ;;  %v2486_v4 = vshll.u32 %v14608_v19, 16  ;;  %v2234_v30 = vrot.slane %v14608_v19, 3  ;;  %v1610_v33 = vshrl.u32 %v14582_v24, 16  ;;  %v18679_v38 = vld [vmem:[#allocation8_spill] sm:$0xff] }
 0x246   : > { %v14628_v62 = vpack.c.bf16 %v1533_v44, %v1532_v8  ;;  %v1509_v45 = vadd.f32 %v14373_v16, %v1477_v63  ;;  %12189 = vmatmul.mubr.msk.bf16.gmra.mxu1 %vm1665_vm5, %v1609_v26  ;;  %v1284_v58 = vpop.f32.mrf.mxu0  ;;  %12428 = vmatprep.mubr.msk.bf16.mxu0 %vm13878_vm2, %v18665_v52  ;;  %v3124_v23 = vrot.slane %v2483_v6, 2  ;;  %v1332_v8 = vmax.f32 %v18675_v40, %v18674_v31 }
 0x247   : > { %v1421_v39 = vsel %vm883_vm0, %v1418_v50, %v1420_v41  ;;  %v1356_v18 = vmax.f32 %v18673_v3, %v1284_v58  ;;  %12192 = vmatprep.mubr.msk.bf16.mxu1 %vm13878_vm2, %v18665_v52  ;;  %v3125_v51 = vrot.slane %v2486_v4, 3  ;;  %v1612_v27 = vor.u32 %v1610_v33, %v1608_v0 }
 0x248   : > { %v1534_v57 = vmax.f32 %v1509_v45, 0.0  ;;  %v1478_v10 = vmax.f32 %v1330_v21, %v1421_v39  ;;  %v12154_v48 = vpop.f32.mrf.mxu0  ;;  %v1614_v17 = vshll.u32 %v14628_v62, 16  ;;  %v14649_v12 = vsel %vm884_vm1, %v2232_v22, %v2234_v30  ;;  %v18678_v21 = vld [vmem:[#allocation23_spill] sm:$0xff] }
 0x249   : > { %v1422_v50 = vrot.slane %v1356_v18, 4  ;;  %v3126_v49 = vor.u32 %v3125_v51, %v3124_v23  ;;  %18676 = vst [vmem:[#allocation6_spill] sm:$0xff] %v14649_v12  ;;  %v14657_v63 = vsel %vm2437_vm6, %v14565_v5, %v14635_v36  ;;  %v1333_v26 = vmax.f32 %v18679_v38, %v18678_v21  ;;  %v18680_v45 = vld [vmem:[#allocation15_spill] sm:$0xff]  ;;  %v18681_v48 = vld [vmem:[#allocation16_spill] sm:$0xff] }
 0x24a   : > { %v14651_v61 = vpack.c.bf16 %v1534_v57, %v1533_v44  ;;  %v1510_v28 = vadd.f32 %v14373_v16, %v1478_v10  ;;  %v1287_v60 = vpop.f32.mrf.mxu0  ;;  %v1616_v14 = vrot.slane %v1614_v17, 1  ;;  %18677 = vst [vmem:[#allocation14_spill] sm:$0xff] %v14657_v63  ;;  %v2476_v18 = vrot.slane %v2474_v1, 3 }
 0x24b   : > { %v1423_v0 = vsel %vm883_vm0, %v1420_v41, %v1422_v50  ;;  %v1357_v58 = vmax.f32 %v18680_v45, %v1287_v60  ;;  %v14664_v22 = vsel %vm3108_vm7, %v3122_v2, %v3126_v49  ;;  %v1618_v1 = vshrl.u32 %v14628_v62, 16  ;;  %v18683_v60 = vld [vmem:[#allocation9_spill] sm:$0xff] }
 0x24c   : > { %v1535_v44 = vmax.f32 %v1510_v28, 0.0  ;;  %v1479_v33 = vmax.f32 %v1331_v15, %v1423_v0  ;;  %v12155_v39 = vpop.f32.mrf.mxu0  ;;  %v1617_v3 = vsel %vm1565_vm4, %v1612_v27, %v1616_v14  ;;  %v18618_v23 = vshrl.u32 %v14651_v61, 16  ;;  %v18682_v28 = vld [vmem:[#allocation24_spill] sm:$0xff] }
 0x24d   : > { %v1424_v5 = vrot.slane %v1357_v58, 4  ;;  %12429 = vmatmul.mubr.msk.bf16.gmra.mxu0 %vm1665_vm5, %v14582_v24  ;;  %v18617_v41 = vshll.u32 %v14651_v61, 16  ;;  %v2236_v51 = vrot.slane %v14651_v61, 3  ;;  %v2479_v40 = vrot.slane %v2477_v9, 4 }
 0x24e   : > { %v14674_v2 = vpack.c.bf16 %v1535_v44, %v1534_v57  ;;  %v1511_v15 = vadd.f32 %v14373_v16, %v1479_v33  ;;  %12193 = vmatmul.mubr.msk.bf16.gmra.mxu1 %vm1665_vm5, %v1617_v3  ;;  %v1292_v31 = vpop.f32.mrf.mxu0  ;;  %12432 = vmatprep.mubr.msk.bf16.mxu0 %vm13878_vm2, %v18665_v52  ;;  %v3128_v57 = vrot.slane %v18618_v23, 2  ;;  %v1334_v21 = vmax.f32 %v18683_v60, %v18682_v28 }
 0x24f   : > { %v1425_v10 = vsel %vm883_vm0, %v1422_v50, %v1424_v5  ;;  %v1358_v17 = vmax.f32 %v18681_v48, %v1292_v31  ;;  %12196 = vmatprep.mubr.msk.bf16.mxu1 %vm13878_vm2, %v18665_v52  ;;  %v3129_v27 = vrot.slane %v18617_v41, 3  ;;  %v1620_v58 = vor.u32 %v1618_v1, %v1616_v14 }
 0x250   : > { %v1536_v38 = vmax.f32 %v1511_v15, 0.0  ;;  %v1480_v0 = vmax.f32 %v1332_v8, %v1425_v10  ;;  %v12158_v45 = vpop.f32.mrf.mxu0  ;;  %v1622_v9 = vshll.u32 %v14674_v2, 16  ;;  %v14695_v39 = vsel %vm884_vm1, %v2234_v30, %v2236_v51  ;;  %v18685_v15 = vld [vmem:[#allocation17_spill] sm:$0xff] }
 0x251   : > { %v1426_v50 = vrot.slane %v1358_v17, 4  ;;  %v3130_v33 = vor.u32 %v3129_v27, %v3128_v57  ;;  %18684 = vst [vmem:[#allocation22_spill] sm:$0xff] %v14695_v39  ;;  %v2480_v23 = vor.u32 %v2479_v40, %v2476_v18  ;;  %v2485_v14 = vrot.slane %v2483_v6, 3 }
 0x252   : > { %v14697_v3 = vpack.c.bf16 %v1536_v38, %v1535_v44  ;;  %v1512_v31 = vadd.f32 %v14373_v16, %v1480_v0  ;;  %v1295_v48 = vpop.f32.mrf.mxu0  ;;  %v1624_v41 = vrot.slane %v1622_v9, 1  ;;  %v1626_v57 = vshrl.u32 %v14674_v2, 16  ;;  %v18687_v9 = vld [vmem:[#allocation18_spill] sm:$0xff] }
 0x253   : > { %v1427_v28 = vsel %vm883_vm0, %v1424_v5, %v1426_v50  ;;  %v1359_v8 = vmax.f32 %v18685_v15, %v1295_v48  ;;  %v14703_v10 = vsel %vm3108_vm7, %v3126_v49, %v3130_v33  ;;  %v14722_v60 = vsel %vm2437_vm6, %v14635_v36, %v2480_v23  ;;  %v18688_v48 = vld [vmem:[#allocation25_spill] sm:$0xff] }
 0x254   : > { %v1537_v1 = vmax.f32 %v1512_v31, 0.0  ;;  %v1481_v30 = vmax.f32 %v1333_v26, %v1427_v28  ;;  %v12159_v17 = vpop.f32.mrf.mxu0  ;;  %v1625_v44 = vsel %vm1565_vm4, %v1620_v58, %v1624_v41  ;;  %v18619_v18 = vshrl.u32 %v14697_v3, 16  ;;  %18686 = vst [vmem:[#allocation7_spill] sm:$0xff] %v14722_v60  ;;  %v18689_v28 = vld [vmem:[#allocation10_spill] sm:$0xff] }
 0x255   : > { %v1428_v27 = vrot.slane %v1359_v8, 4  ;;  %12433 = vmatmul.mubr.msk.bf16.gmra.mxu0 %vm1665_vm5, %v14628_v62  ;;  %v18620_v5 = vshll.u32 %v14697_v3, 16  ;;  %v2238_v49 = vrot.slane %v14697_v3, 3  ;;  %v2488_v0 = vrot.slane %v2486_v4, 4 }
 0x256   : > { %v14714_v40 = vpack.c.bf16 %v1537_v1, %v1536_v38  ;;  %v1513_v6 = vadd.f32 %v14373_v16, %v1481_v30  ;;  %12197 = vmatmul.mubr.msk.bf16.gmra.mxu1 %vm1665_vm5, %v1625_v44  ;;  %v1300_v26 = vpop.f32.mrf.mxu0  ;;  %12436 = vmatprep.mubr.msk.bf16.mxu0 %vm13878_vm2, %v18665_v52  ;;  %v3132_v58 = vrot.slane %v18619_v18, 2  ;;  %v1335_v36 = vmax.f32 %v18689_v28, %v18688_v48 }
 0x257   : > { %v1429_v45 = vsel %vm883_vm0, %v1426_v50, %v1428_v27  ;;  %v1360_v38 = vmax.f32 %v18687_v9, %v1300_v26  ;;  %12200 = vmatprep.mubr.msk.bf16.mxu1 %vm13878_vm2, %v18665_v52  ;;  %v3133_v31 = vrot.slane %v18620_v5, 3  ;;  %v1628_v17 = vor.u32 %v1626_v57, %v1624_v41  ;;  %v18692_v41 = vld [vmem:[#allocation11_spill] sm:$0xff] }
 0x258   : > { %v1538_v15 = vmax.f32 %v1513_v6, 0.0  ;;  %v1482_v8 = vmax.f32 %v1334_v21, %v1429_v45  ;;  %v12162_v30 = vpop.f32.mrf.mxu0  ;;  %v1630_v4 = vshll.u32 %v14714_v40, 16  ;;  %v14738_v26 = vsel %vm884_vm1, %v2236_v51, %v2238_v49  ;;  %v18691_v21 = vld [vmem:[#allocation19_spill] sm:$0xff] }
 0x259   : > { %v1430_v50 = vrot.slane %v1360_v38, 4  ;;  %v3134_v44 = vor.u32 %v3133_v31, %v3132_v58  ;;  %18690 = vst [vmem:[#allocation23_spill] sm:$0xff] %v14738_v26  ;;  %v14743_v63 = vor.u32 %v2488_v0, %v2485_v14  ;;  %v1336_v57 = vmax.f32 %v18692_v41, %v14355_v11 }
 0x25a   : > { %v14740_v9 = vpack.c.bf16 %v1538_v15, %v1537_v1  ;;  %v1514_v18 = vadd.f32 %v14373_v16, %v1482_v8  ;;  %v1303_v60 = vpop.f32.mrf.mxu0  ;;  %v1632_v5 = vrot.slane %v1630_v4, 1  ;;  %v18694_v8 = vld [vmem:[#allocation20_spill] sm:$0xff] }
 0x25b   : > { %v1431_v6 = vsel %vm883_vm0, %v1428_v27, %v1430_v50  ;;  %v1361_v45 = vmax.f32 %v18691_v21, %v1303_v60  ;;  %v14748_v48 = vsel %vm3108_vm7, %v3130_v33, %v3134_v44  ;;  %v14767_v28 = vsel %vm2437_vm6, %v2480_v23, %v14743_v63 }
 0x25c   : > { %v1539_v51 = vmax.f32 %v1514_v18, 0.0  ;;  %v1483_v38 = vmax.f32 %v1335_v36, %v1431_v6  ;;  %v12163_v1 = vpop.f32.mrf.mxu0  ;;  %v1633_v58 = vsel %vm1565_vm4, %v1628_v17, %v1632_v5  ;;  %v18621_v14 = vshrl.u32 %v14740_v9, 16  ;;  %18693 = vst [vmem:[#allocation8_spill] sm:$0xff] %v14767_v28  ;;  %v18695_v17 = vld [vmem:[#allocation26_spill] sm:$0xff]  ;;  %v18696_v6 = vld [vmem:[#allocation12_spill] sm:$0xff] }
 0x25d   : > { %v1432_v31 = vrot.slane %v1361_v45, 4  ;;  %12437 = vmatmul.mubr.msk.bf16.gmra.mxu0 %vm1665_vm5, %v14674_v2  ;;  %v18622_v27 = vshll.u32 %v14740_v9, 16  ;;  %v18623_v60 = vrot.slane %v14740_v9, 3  ;;  %v1634_v18 = vshrl.u32 %v14714_v40, 16 }
 0x25e   : > { %v14758_v33 = vpack.c.bf16 %v1539_v51, %v1538_v15  ;;  %v1515_v0 = vadd.f32 %v14373_v16, %v1483_v38  ;;  %12201 = vmatmul.mubr.msk.bf16.gmra.mxu1 %vm1665_vm5, %v1633_v58  ;;  %v1308_v11 = vpop.f32.mrf.mxu0  ;;  %12440 = vmatprep.mubr.msk.bf16.mxu0 %vm13878_vm2, %v18665_v52  ;;  %v3136_v15 = vrot.slane %v18621_v14, 2  ;;  %v1337_v21 = vmax.f32 %v18696_v6, %v18695_v17 }
 0x25f   : > { %v1433_v36 = vsel %vm883_vm0, %v1430_v50, %v1432_v31  ;;  %v1362_v30 = vmax.f32 %v18694_v8, %v1308_v11  ;;  %12204 = vmatprep.mubr.msk.bf16.mxu1 %vm13878_vm2, %v18665_v52  ;;  %v3137_v4 = vrot.slane %v18622_v27, 3  ;;  %v1636_v1 = vor.u32 %v1634_v18, %v1632_v5  ;;  %v18699_v18 = vld [vmem:[#allocation27_spill] sm:$0xff] }
 0x260   : > { %v1540_v45 = vmax.f32 %v1515_v0, 0.0  ;;  %v1484_v41 = vmax.f32 %v1336_v57, %v1433_v36  ;;  %v12166_v23 = vpop.f32.mrf.mxu0  ;;  %v1638_v38 = vshll.u32 %v14758_v33, 16  ;;  %v14783_v11 = vsel %vm884_vm1, %v2238_v49, %v18623_v60  ;;  %v18698_v36 = vld [vmem:[#allocation21_spill] sm:$0xff] }
 0x261   : > { %v1434_v50 = vrot.slane %v1362_v30, 4  ;;  %v3138_v58 = vor.u32 %v3137_v4, %v3136_v15  ;;  %18697 = vst [vmem:[#allocation15_spill] sm:$0xff] %v14783_v11  ;;  %v18700_v30 = vld [vmem:[#allocation13_spill] sm:$0xff] }
 0x262   : > { %v14785_v8 = vpack.c.bf16 %v1540_v45, %v1540_v45  ;;  %v14787_v14 = vpack.c.bf16 %v1540_v45, %v1539_v51  ;;  %v1516_v27 = vadd.f32 %v14373_v16, %v1484_v41  ;;  %v1311_v17 = vpop.f32.mrf.mxu0  ;;  %v1640_v0 = vrot.slane %v1638_v38, 1 }
 0x263   : > { %v1435_v57 = vsel %vm883_vm0, %v1432_v31, %v1434_v50  ;;  %v1363_v6 = vmax.f32 %v18698_v36, %v1311_v17  ;;  %v14793_v5 = vsel %vm3108_vm7, %v3134_v44, %v3138_v58  ;;  %v1338_v15 = vmax.f32 %v18700_v30, %v18699_v18 }
 0x264   : > { %v1541_v49 = vmax.f32 %v1516_v27, 0.0  ;;  %v1485_v4 = vmax.f32 %v1337_v21, %v1435_v57  ;;  %v1641_v23 = vsel %vm1565_vm4, %v1636_v1, %v1640_v0  ;;  %v12167_v51 = vpop.f32.mrf.mxu0  ;;  %v1646_v41 = vshll.u32 %v14785_v8, 16  ;;  %v18701_v57 = vld [vmem:[#allocation28_spill] sm:$0xff] }
 0x265   : > { %v1436_v60 = vrot.slane %v1363_v6, 4  ;;  %12441 = vmatmul.mubr.msk.bf16.gmra.mxu0 %vm1665_vm5, %v14714_v40  ;;  %v2519_v31 = vshrl.u32 %v14787_v14, 16  ;;  %v2522_v27 = vshll.u32 %v14787_v14, 16 }
 0x266   : > { %v14803_v44 = vpack.c.bf16 %v1541_v49, %v1540_v45  ;;  %v1517_v17 = vadd.f32 %v14373_v16, %v1485_v4  ;;  %12205 = vmatmul.mubr.msk.bf16.gmra.mxu1 %vm1665_vm5, %v1641_v23  ;;  %12444 = vmatprep.mubr.msk.bf16.mxu0 %vm13878_vm2, %v18665_v52  ;;  %v1642_v45 = vshrl.u32 %v14758_v33, 16  ;;  %v18702_v23 = vshrl.u32 %v14651_v61, 16 }
 0x267   : > { %v1437_v1 = vsel %vm883_vm0, %v1434_v50, %v1436_v60  ;;  %v1487_v36 = vmax.f32 %v18701_v57, %v1436_v60  ;;  %12208 = vmatprep.mubr.msk.bf16.mxu1 %vm13878_vm2, %v18665_v52  ;;  %v3140_v6 = vrot.slane %v2519_v31, 2  ;;  %v3141_v4 = vrot.slane %v2522_v27, 3 }
 0x268   : > { %v14816_v18 = vmax.f32 %v1517_v17, 0.0  ;;  %v1486_v30 = vmax.f32 %v1338_v15, %v1437_v1  ;;  %v2494_v51 = vrot.slane %v18702_v23, 3  ;;  %v1644_v21 = vor.u32 %v1642_v45, %v1640_v0 }
 0x269   : > { %v1519_v38 = vadd.f32 %v14373_v16, %v1487_v36  ;;  %v1648_v50 = vrot.slane %v1646_v41, 1  ;;  %v18624_v60 = vrot.slane %v14787_v14, 3  ;;  %v1650_v17 = vshrl.u32 %v14785_v8, 16 }
 0x26a   : > { %v14823_v57 = vpack.c.bf16 %v14816_v18, %v1541_v49  ;;  %v1518_v28 = vadd.f32 %v14373_v16, %v1486_v30  ;;  %v3142_v34 = vor.u32 %v3141_v4, %v3140_v6  ;;  %v18703_v1 = vrot.slane %v14740_v9, 3 }
 0x26b   : > { %v1544_v15 = vmax.f32 %v1519_v38, 0.0  ;;  %v18705_v0 = vshll.u32 %v14651_v61, 16  ;;  %v18706_v36 = vshrl.u32 %v14697_v3, 16  ;;  %v1649_v30 = vsel %vm1565_vm4, %v1644_v21, %v1648_v50 }
 0x26c   : > { %v14832_v23 = vsel %vm884_vm1, %v18703_v1, %v18624_v60  ;;  %v1543_v45 = vmax.f32 %v1518_v28, 0.0  ;;  %v14839_v16 = vsel %vm3108_vm7, %v3138_v58, %v3142_v34  ;;  %v2528_v6 = vshrl.u32 %v14823_v57, 16 }
 0x26d   : > { %18704 = vst [vmem:[#allocation16_spill] sm:$0xff] %v14832_v23  ;;  %v2497_v41 = vrot.slane %v18705_v0, 4  ;;  %v2503_v49 = vrot.slane %v18706_v36, 3  ;;  %v2531_v38 = vshll.u32 %v14823_v57, 16  ;;  %12445 = vmatmul.mubr.msk.bf16.gmra.mxu0 %vm1665_vm5, %v14758_v33  ;;  %v18707_v1 = vshll.u32 %v14697_v3, 16 }
 0x26e   : > { %v18708_v60 = vshrl.u32 %v14740_v9, 16  ;;  %v14850_v28 = vpack.c.bf16 %v1544_v15, %v1543_v45  ;;  %12209 = vmatmul.mubr.msk.bf16.gmra.mxu1 %vm1665_vm5, %v1649_v30  ;;  %12448 = vmatprep.mubr.msk.bf16.mxu0 %vm13878_vm2, %v18665_v52  ;;  %v3144_v58 = vrot.slane %v2528_v6, 2  ;;  %v18710_v21 = vshll.u32 %v14740_v9, 16 }
 0x26f   : > { %v2498_v4 = vor.u32 %v2497_v41, %v2494_v51  ;;  %v2506_v0 = vrot.slane %v18707_v1, 4  ;;  %v3145_v46 = vrot.slane %v2531_v38, 3  ;;  %12212 = vmatprep.mubr.msk.bf16.mxu1 %vm13878_vm2, %v18665_v52  ;;  %v1652_v51 = vor.u32 %v1650_v17, %v1648_v50 }
 0x270   : > { %v2512_v36 = vrot.slane %v18708_v60, 3  ;;  %18709 = vst [vmem:[#allocation24_spill] sm:$0xff] %v14850_v28  ;;  %v2515_v23 = vrot.slane %v18710_v21, 4  ;;  %v2521_v15 = vrot.slane %v2519_v31, 3  ;;  %v3149_v30 = vshrl.u32 %v14850_v28, 16 }
 0x271   : > { %v14861_v41 = vsel %vm2437_vm6, %v14743_v63, %v2498_v4  ;;  %v2507_v60 = vor.u32 %v2506_v0, %v2503_v49  ;;  %v3146_v45 = vor.u32 %v3145_v46, %v3144_v58  ;;  %v3152_v1 = vshll.u32 %v14850_v28, 16 }
 0x272   : > { %v2516_v11 = vor.u32 %v2515_v23, %v2512_v36  ;;  %v2524_v21 = vrot.slane %v2522_v27, 4  ;;  %v2530_v39 = vrot.slane %v2528_v6, 3  ;;  %v2533_v12 = vrot.slane %v2531_v38, 4 }
 0x273   : > { %v14866_v26 = vsel %vm2437_vm6, %v2498_v4, %v2507_v60  ;;  %v14869_v50 = vsel %vm3108_vm7, %v3142_v34, %v3146_v45  ;;  %v3151_v17 = vrot.slane %v3149_v30, 2  ;;  %v3154_v63 = vrot.slane %v3152_v1, 3 }
 0x274   : > { %v14872_v49 = vsel %vm2437_vm6, %v2507_v60, %v2516_v11  ;;  %v2525_v46 = vor.u32 %v2524_v21, %v2521_v15  ;;  %v14874_v31 = vor.u32 %v2533_v12, %v2530_v39  ;;  %v18711_v0 = vrot.slane %v14459_v29, 2  ;;  %v12745_v21 = vld [vmem:[%s18604_s3 + $0x28] sm:$0xff]  }
 0x275   : > { %v18712_v23 = vrot.slane %v14423_v53, 2  ;;  %v2899_v27 = vrot.slane %v14509_v54, 2  ;;  %v14884_v6 = vor.u32 %v3154_v63, %v3151_v17  ;;  %v2901_v34 = vrot.slane %v14562_v37, 2  ;;  %12449 = vmatmul.mubr.msk.bf16.gmra.mxu0 %vm1665_vm5, %v14803_v44 }
 0x276   : > { %v2903_v38 = vrot.slane %v14608_v19, 2  ;;  %v2905_v36 = vrot.slane %v14651_v61, 2  ;;  %v14892_v12 = vsel %vm2437_vm6, %v2516_v11, %v2525_v46  ;;  %v14896_v53 = vsel %vm2437_vm6, %v2525_v46, %v14874_v31  ;;  %12213 = vmatmul.mubr.msk.bf16.gmra.mxu1 %vm1665_vm5, %v1652_v51  ;;  %12452 = vmatprep.mubr.msk.bf16.mxu0 %vm13878_vm2, %v18665_v52 }
 0x277   : > { %v14881_v4 = vsel %vm2895_vm8, %v18712_v23, %v18711_v0  ;;  %v18713_v54 = vmov %v18711_v0  ;;  %v2907_v37 = vrot.slane %v14697_v3, 2  ;;  %v3156_v19 = vsel %vm3108_vm7, %v3146_v45, %v14884_v6  ;;  %12220 = vmatprep.mubr.msk.bf16.mxu1 %vm13878_vm2, %v18665_v52 }
 0x278   : > { %v14901_v39 = vsel %vm2895_vm8, %v18713_v54, %v2899_v27  ;;  %v14910_v61 = vsel %vm2895_vm8, %v2899_v27, %v2901_v34  ;;  %v14913_v11 = vsel %vm2895_vm8, %v2901_v34, %v2903_v38  ;;  %v2909_v29 = vrot.slane %v14740_v9, 2 }
 0x279   : > { %v14919_v3 = vsel %vm2895_vm8, %v2903_v38, %v2905_v36  ;;  %v14922_v44 = vsel %vm2895_vm8, %v2905_v36, %v2907_v37  ;;  %v2911_v58 = vrot.slane %v14787_v14, 2  ;;  %v2913_v51 = vrot.slane %v14823_v57, 2 }
 0x27a   : > { %18714 = vst [vmem:[#allocation9_spill] sm:$0xff] %v14919_v3  ;;  %18715 = vst [vmem:[#allocation17_spill] sm:$0xff] %v14922_v44  ;;  %v14927_v60 = vsel %vm2895_vm8, %v2907_v37, %v2909_v29  ;;  %v18630_v15 = vrot.slane %v14850_v28, 2  ;;  %v2723_v1 = vpack.c.bf16 %v14816_v18, %v14816_v18  ;;  %v12748_v18 = vld [vmem:[%s18604_s3 + $0x20] sm:$0xff]   ;;  %v1997_v17 = vrot.slane %v14528_v56, 1  ;;  %v18772_v3 = vld [vmem:[#allocation14_spill] sm:$0xff] }
 0x27b   : > { %18716 = vst [vmem:[#allocation18_spill] sm:$0xff] %v14927_v60  ;;  %v14931_v9 = vsel %vm2895_vm8, %v2909_v29, %v2911_v58  ;;  %v14934_v45 = vsel %vm2895_vm8, %v2911_v58, %v2913_v51  ;;  %v1999_v34 = vrot.slane %v14582_v24, 1 }
 0x27c   : > { %18717 = vst [vmem:[#allocation25_spill] sm:$0xff] %v14931_v9  ;;  %18718 = vst [vmem:[#allocation10_spill] sm:$0xff] %v14934_v45  ;;  %v14939_v30 = vsel %vm2895_vm8, %v2913_v51, %v18630_v15 }
 0x27d   : > { %18719 = vst [vmem:[#allocation19_spill] sm:$0xff] %v14939_v30  ;;  %12453 = vmatmul.mubr.msk.bf16.gmra.mxu0 %vm1665_vm5, %v2723_v1  ;;  %v2000_v54 = vsel %vm1989_vm9, %v1997_v17, %v1999_v34 }
 0x27e   : > { %12221 = vmatmul.mubr.msk.bf16.vlgmr.msra.gmra.mxu1 %vm1665_vm5, %v14387_v32  ;;  %12508 = vmatprep.mubr.msk.bf16.mxu0 %vm13878_vm2, %v18665_v52 }
 0x27f   : > { %12265 = vmatpush3.bf16.msra.mxu1 %v12745_v21  ;;  %12224 = vmatprep.mubr.msk.bf16.mxu1 %vm13878_vm2, %v18665_v52 }
 0x280   : > { %12266 = vmatprep.subr.bf16.mxu1 %v18665_v52 }
 0x283   : > { %12267 = vmatpush3.bf16.msra.mxu1 %v12748_v18 }
 0x284   : > { %12312 = vmatprep.subr.bf16.mxu1 %v18665_v52 }
 0x285   : > { %12509 = vmatmul.mubr.msk.bf16.vlgmr.msra.gmra.mxu0 %vm1665_vm5, %v14515_v35  ;;  %v1991_v35 = vrot.slane %v14402_v47, 1 }
 0x286   : > { %12225 = vmatmul.mubr.msk.bf16.gmra.mxu1 %vm1665_vm5, %v14402_v47  ;;  %12512 = vmatprep.mubr.msk.bf16.mxu0 %vm13878_vm2, %v18665_v52  ;;  %v12750_v47 = vld [vmem:[%s18604_s3 + $0x30] sm:$0xff]  }
 0x287   : > { %12228 = vmatprep.mubr.msk.bf16.mxu1 %vm13878_vm2, %v18665_v52 }
 0x28d   : > { %12513 = vmatmul.mubr.msk.bf16.gmra.mxu0 %vm1665_vm5, %v14572_v42  ;;  %v1990_v42 = vrot.slane %v14387_v32, 1  ;;  %v1993_v32 = vrot.slane %v14438_v7, 1 }
 0x28e   : > { %12229 = vmatmul.mubr.msk.bf16.gmra.mxu1 %vm1665_vm5, %v14438_v7  ;;  %12516 = vmatprep.mubr.msk.bf16.mxu0 %vm13878_vm2, %v18665_v52 }
 0x28f   : > { %12232 = vmatprep.mubr.msk.bf16.mxu1 %vm13878_vm2, %v18665_v52 }
 0x295   : > { %12517 = vmatmul.mubr.msk.bf16.gmra.mxu0 %vm1665_vm5, %v14618_v59  ;;  %v12749_v59 = vld [vmem:[%s18604_s3 + $0x38] sm:$0xff]  }
 0x296   : > { %12233 = vmatmul.mubr.msk.bf16.gmra.mxu1 %vm1665_vm5, %v14477_v55  ;;  %12520 = vmatprep.mubr.msk.bf16.mxu0 %vm13878_vm2, %v18665_v52 }
 0x297   : > { %12236 = vmatprep.mubr.msk.bf16.mxu1 %vm13878_vm2, %v18665_v52 }
 0x29d   : > { %12521 = vmatmul.mubr.msk.bf16.gmra.mxu0 %vm1665_vm5, %v14664_v22  ;;  %v1992_v22 = vsel %vm1989_vm9, %v1990_v42, %v1991_v35 }
 0x29e   : > { %12237 = vmatmul.mubr.msk.bf16.gmra.mxu1 %vm1665_vm5, %v14528_v56  ;;  %12524 = vmatprep.mubr.msk.bf16.mxu0 %vm13878_vm2, %v18665_v52 }
 0x29f   : > { %12240 = vmatprep.mubr.msk.bf16.mxu1 %vm13878_vm2, %v18665_v52 }
 0x2a5   : > { %12525 = vmatmul.mubr.msk.bf16.gmra.mxu0 %vm1665_vm5, %v14703_v10  ;;  %v1994_v10 = vsel %vm1989_vm9, %v1991_v35, %v1993_v32 }
 0x2a6   : > { %12241 = vmatmul.mubr.msk.bf16.gmra.mxu1 %vm1665_vm5, %v14582_v24  ;;  %12528 = vmatprep.mubr.msk.bf16.mxu0 %vm13878_vm2, %v18665_v52  ;;  %v2001_v24 = vrot.slane %v14628_v62, 1 }
 0x2a7   : > { %12244 = vmatprep.mubr.msk.bf16.mxu1 %vm13878_vm2, %v18665_v52 }
 0x2a8   : > { %v2002_v35 = vsel %vm1989_vm9, %v1999_v34, %v2001_v24 }
 0x2ad   : > { %12529 = vmatmul.mubr.msk.bf16.gmra.mxu0 %vm1665_vm5, %v14748_v48  ;;  %v1995_v48 = vrot.slane %v14477_v55, 1 }
 0x2ae   : > { %12245 = vmatmul.mubr.msk.bf16.gmra.mxu1 %vm1665_vm5, %v14628_v62  ;;  %12532 = vmatprep.mubr.msk.bf16.mxu0 %vm13878_vm2, %v18665_v52  ;;  %v2003_v62 = vrot.slane %v14674_v2, 1 }
 0x2af   : > { %12248 = vmatprep.mubr.msk.bf16.mxu1 %vm13878_vm2, %v18665_v52  ;;  %v1998_v46 = vsel %vm1989_vm9, %v1995_v48, %v1997_v17 }
 0x2b5   : > { %12533 = vmatmul.mubr.msk.bf16.gmra.mxu0 %vm1665_vm5, %v14793_v5 }
 0x2b6   : > { %12249 = vmatmul.mubr.msk.bf16.gmra.mxu1 %vm1665_vm5, %v14674_v2  ;;  %12536 = vmatprep.mubr.msk.bf16.mxu0 %vm13878_vm2, %v18665_v52  ;;  %v2005_v2 = vrot.slane %v14714_v40, 1 }
 0x2b7   : > { %12252 = vmatprep.mubr.msk.bf16.mxu1 %vm13878_vm2, %v18665_v52 }
 0x2bd   : > { %12537 = vmatmul.mubr.msk.bf16.gmra.mxu0 %vm1665_vm5, %v14839_v16  ;;  %v1996_v16 = vsel %vm1989_vm9, %v1993_v32, %v1995_v48 }
 0x2be   : > { %12253 = vmatmul.mubr.msk.bf16.gmra.mxu1 %vm1665_vm5, %v14714_v40  ;;  %12540 = vmatprep.mubr.msk.bf16.mxu0 %vm13878_vm2, %v18665_v52  ;;  %v2007_v40 = vrot.slane %v14758_v33, 1 }
 0x2bf   : > { %12256 = vmatprep.mubr.msk.bf16.mxu1 %vm13878_vm2, %v18665_v52 }
 0x2c5   : > { %12541 = vmatmul.mubr.msk.bf16.gmra.mxu0 %vm1665_vm5, %v14869_v50 }
 0x2c6   : > { %12257 = vmatmul.mubr.msk.bf16.gmra.mxu1 %vm1665_vm5, %v14758_v33  ;;  %12544 = vmatprep.mubr.msk.bf16.mxu0 %vm13878_vm2, %v18665_v52  ;;  %v2009_v33 = vrot.slane %v14785_v8, 1 }
 0x2c7   : > { %12260 = vmatprep.mubr.msk.bf16.mxu1 %vm13878_vm2, %v18665_v52 }
 0x2cd   : > { %12545 = vmatmul.mubr.msk.bf16.gmra.mxu0 %vm1665_vm5, %v3156_v19 }
 0x2ce   : > { %12261 = vmatmul.mubr.msk.bf16.gmra.mxu1 %vm1665_vm5, %v14785_v8  ;;  %12548 = vmatprep.mubr.msk.bf16.mxu0 %vm13878_vm2, %v18665_v52 }
 0x2cf   : > { %12268 = vmatprep.mubr.msk.bf16.mxu1 %vm13878_vm2, %v18665_v52 }
 0x2d5   : > { %12549 = vmatmul.mubr.msk.bf16.gmra.mxu0 %vm1665_vm5, %v14884_v6 }
 0x2d6   : > { %12269 = vmatmul.mubr.msk.bf16.vlgmr.msra.gmra.mxu1 %vm1665_vm5, %v1992_v22 }
 0x2d7   : > { %12313 = vmatpush3.bf16.msra.mxu1 %v12749_v59  ;;  %12272 = vmatprep.mubr.msk.bf16.mxu1 %vm13878_vm2, %v18665_v52 }
 0x2d8   : > { %12314 = vmatprep.subr.bf16.mxu1 %v18665_v52 }
 0x2db   : > { %12315 = vmatpush3.bf16.msra.mxu1 %v12750_v47 }
 0x2dc   : > { %12360 = vmatprep.subr.bf16.mxu1 %v18665_v52 }
 0x2de   : > { %12273 = vmatmul.mubr.msk.bf16.gmra.mxu1 %vm1665_vm5, %v1994_v10 }
 0x2df   : > { %12276 = vmatprep.mubr.msk.bf16.mxu1 %vm13878_vm2, %v18665_v52 }
 0x2e5   : > { %v15059_v5 = vpop.f32.mrf.mxu0 }
 0x2e6   : > { %12277 = vmatmul.mubr.msk.bf16.gmra.mxu1 %vm1665_vm5, %v1996_v16 }
 0x2e7   : > { %v12174_v50 = vpop.f32.mrf.mxu0  ;;  %12280 = vmatprep.mubr.msk.bf16.mxu1 %vm13878_vm2, %v18665_v52 }
 0x2e8   : > { %v2004_v50 = vsel %vm1989_vm9, %v2001_v24, %v2003_v62 }
 0x2e9   : > { %v15065_v7 = vpop.f32.mrf.mxu0 }
 0x2eb   : > { %v12175_v63 = vpop.f32.mrf.mxu0 }
 0x2ed   : > { %v15069_v0 = vpop.f32.mrf.mxu0 }
 0x2ee   : > { %18720 = vst [vmem:[#allocation11_spill] sm:$0xff] %v15069_v0  ;;  %v15071_v55 = vpop.f32.mrf.mxu1  ;;  %12281 = vmatmul.mubr.msk.bf16.gmra.mxu1 %vm1665_vm5, %v1998_v46 }
 0x2ef   : > { %v12414_v23 = vpop.f32.mrf.mxu0  ;;  %12284 = vmatprep.mubr.msk.bf16.mxu1 %vm13878_vm2, %v18665_v52 }
 0x2f0   : > { %v12178_v27 = vpop.f32.mrf.mxu1 }
 0x2f1   : > { %v15076_v6 = vpop.f32.mrf.mxu0 }
 0x2f2   : > { %18721 = vst [vmem:[#allocation20_spill] sm:$0xff] %v15076_v6  ;;  %v15079_v38 = vpop.f32.mrf.mxu1 }
 0x2f3   : > { %v12415_v56 = vpop.f32.mrf.mxu0 }
 0x2f4   : > { %v12179_v36 = vpop.f32.mrf.mxu1 }
 0x2f5   : > { %v15082_v37 = vpop.f32.mrf.mxu0 }
 0x2f6   : > { %18722 = vst [vmem:[#allocation26_spill] sm:$0xff] %v15082_v37  ;;  %v15084_v19 = vpop.f32.mrf.mxu1  ;;  %12285 = vmatmul.mubr.msk.bf16.gmra.mxu1 %vm1665_vm5, %v2000_v54  ;;  %v2006_v54 = vsel %vm1989_vm9, %v2003_v62, %v2005_v2  ;;  %v2008_v62 = vsel %vm1989_vm9, %v2005_v2, %v2007_v40  ;;  %v2010_v2 = vsel %vm1989_vm9, %v2007_v40, %v2009_v33 }
 0x2f7   : > { %v12418_v29 = vpop.f32.mrf.mxu0  ;;  %12288 = vmatprep.mubr.msk.bf16.mxu1 %vm13878_vm2, %v18665_v52 }
 0x2f8   : > { %v12182_v58 = vpop.f32.mrf.mxu1 }
 0x2f9   : > { %v15089_v51 = vpop.f32.mrf.mxu0 }
 0x2fa   : > { %18723 = vst [vmem:[#allocation12_spill] sm:$0xff] %v15089_v51  ;;  %v15092_v1 = vpop.f32.mrf.mxu1 }
 0x2fb   : > { %v12419_v21 = vpop.f32.mrf.mxu0 }
 0x2fc   : > { %v12183_v18 = vpop.f32.mrf.mxu1 }
 0x2fd   : > { %v15095_v42 = vpop.f32.mrf.mxu0 }
 0x2fe   : > { %18724 = vst [vmem:[#allocation21_spill] sm:$0xff] %v15095_v42  ;;  %v15097_v59 = vpop.f32.mrf.mxu1  ;;  %12289 = vmatmul.mubr.msk.bf16.gmra.mxu1 %vm1665_vm5, %v2002_v35 }
 0x2ff   : > { %v12422_v22 = vpop.f32.mrf.mxu0  ;;  %12292 = vmatprep.mubr.msk.bf16.mxu1 %vm13878_vm2, %v18665_v52 }
 0x300   : > { %v12186_v47 = vpop.f32.mrf.mxu1 }
 0x301   : > { %v15102_v32 = vpop.f32.mrf.mxu0 }
 0x302   : > { %18725 = vst [vmem:[#allocation27_spill] sm:$0xff] %v15102_v32  ;;  %v15105_v10 = vpop.f32.mrf.mxu1 }
 0x303   : > { %v12423_v48 = vpop.f32.mrf.mxu0 }
 0x304   : > { %v12187_v16 = vpop.f32.mrf.mxu1 }
 0x305   : > { %v15108_v17 = vpop.f32.mrf.mxu0 }
 0x306   : > { %18726 = vst [vmem:[#allocation13_spill] sm:$0xff] %v15108_v17  ;;  %v15110_v63 = vpop.f32.mrf.mxu1  ;;  %12293 = vmatmul.mubr.msk.bf16.gmra.mxu1 %vm1665_vm5, %v2004_v50 }
 0x307   : > { %v12426_v46 = vpop.f32.mrf.mxu0  ;;  %12296 = vmatprep.mubr.msk.bf16.mxu1 %vm13878_vm2, %v18665_v52 }
 0x308   : > { %v12190_v23 = vpop.f32.mrf.mxu1 }
 0x309   : > { %v15115_v27 = vpop.f32.mrf.mxu0 }
 0x30a   : > { %18727 = vst [vmem:[#allocation28_spill] sm:$0xff] %v15115_v27  ;;  %v15118_v34 = vpop.f32.mrf.mxu1 }
 0x30b   : > { %v12427_v56 = vpop.f32.mrf.mxu0 }
 0x30c   : > { %v12191_v36 = vpop.f32.mrf.mxu1 }
 0x30d   : > { %v15121_v29 = vpop.f32.mrf.mxu0 }
 0x30e   : > { %18728 = vst [vmem:[#allocation34_spill] sm:$0xff] %v15121_v29  ;;  %v15123_v58 = vpop.f32.mrf.mxu1  ;;  %12297 = vmatmul.mubr.msk.bf16.gmra.mxu1 %vm1665_vm5, %v2006_v54 }
 0x30f   : > { %v12430_v24 = vpop.f32.mrf.mxu0  ;;  %12300 = vmatprep.mubr.msk.bf16.mxu1 %vm13878_vm2, %v18665_v52 }
 0x310   : > { %v12194_v21 = vpop.f32.mrf.mxu1 }
 0x311   : > { %v15128_v18 = vpop.f32.mrf.mxu0 }
 0x312   : > { %18729 = vst [vmem:[#allocation35_spill] sm:$0xff] %v15128_v18  ;;  %v15131_v35 = vpop.f32.mrf.mxu1 }
 0x313   : > { %v12431_v22 = vpop.f32.mrf.mxu0 }
 0x314   : > { %v12195_v47 = vpop.f32.mrf.mxu1 }
 0x315   : > { %v15134_v48 = vpop.f32.mrf.mxu0 }
 0x316   : > { %18730 = vst [vmem:[#allocation36_spill] sm:$0xff] %v15134_v48  ;;  %v15136_v16 = vpop.f32.mrf.mxu1  ;;  %12301 = vmatmul.mubr.msk.bf16.gmra.mxu1 %vm1665_vm5, %v2008_v62 }
 0x317   : > { %v12434_v50 = vpop.f32.mrf.mxu0  ;;  %12304 = vmatprep.mubr.msk.bf16.mxu1 %vm13878_vm2, %v18665_v52 }
 0x318   : > { %v12198_v46 = vpop.f32.mrf.mxu1 }
 0x319   : > { %v15141_v23 = vpop.f32.mrf.mxu0 }
 0x31a   : > { %18731 = vst [vmem:[#allocation37_spill] sm:$0xff] %v15141_v23  ;;  %v15144_v56 = vpop.f32.mrf.mxu1 }
 0x31b   : > { %v12435_v36 = vpop.f32.mrf.mxu0 }
 0x31c   : > { %v12199_v54 = vpop.f32.mrf.mxu1 }
 0x31d   : > { %v15147_v24 = vpop.f32.mrf.mxu0 }
 0x31e   : > { %18732 = vst [vmem:[#allocation38_spill] sm:$0xff] %v15147_v24  ;;  %v15149_v21 = vpop.f32.mrf.mxu1  ;;  %12305 = vmatmul.mubr.msk.bf16.gmra.mxu1 %vm1665_vm5, %v2010_v2 }
 0x31f   : > { %v12438_v22 = vpop.f32.mrf.mxu0  ;;  %12308 = vmatprep.mubr.msk.bf16.mxu1 %vm13878_vm2, %v18665_v52 }
 0x320   : > { %v12202_v47 = vpop.f32.mrf.mxu1 }
 0x321   : > { %v15154_v62 = vpop.f32.mrf.mxu0 }
 0x322   : > { %18733 = vst [vmem:[#allocation39_spill] sm:$0xff] %v15154_v62  ;;  %v15156_v8 = vpop.f32.mrf.mxu1 }
 0x323   : > { %v12439_v50 = vpop.f32.mrf.mxu0 }
 0x324   : > { %v12203_v46 = vpop.f32.mrf.mxu1  ;;  %v12751_v50 = vld [vmem:[%s18604_s3 + $0x48] sm:$0xff]  }
 0x325   : > { %v15158_v36 = vpop.f32.mrf.mxu0 }
 0x326   : > { %18734 = vst [vmem:[#allocation40_spill] sm:$0xff] %v15158_v36  ;;  %v15160_v40 = vpop.f32.mrf.mxu1  ;;  %12309 = vmatmul.mubr.msk.bf16.gmra.mxu1 %vm1665_vm5, %v2009_v33 }
 0x327   : > { %v12442_v54 = vpop.f32.mrf.mxu0  ;;  %12316 = vmatprep.mubr.msk.bf16.mxu1 %vm13878_vm2, %v18665_v52 }
 0x328   : > { %v12206_v2 = vpop.f32.mrf.mxu1 }
 0x329   : > { %v15165_v22 = vpop.f32.mrf.mxu0 }
 0x32a   : > { %18735 = vst [vmem:[#allocation41_spill] sm:$0xff] %v15165_v22  ;;  %v15167_v47 = vpop.f32.mrf.mxu1 }
 0x32b   : > { %v12443_v15 = vpop.f32.mrf.mxu0 }
 0x32c   : > { %v12207_v46 = vpop.f32.mrf.mxu1  ;;  %v12752_v15 = vld [vmem:[%s18604_s3 + $0x40] sm:$0xff]  }
 0x32d   : > { %v15172_v36 = vpop.f32.mrf.mxu0 }
 0x32e   : > { %18736 = vst [vmem:[#allocation42_spill] sm:$0xff] %v15172_v36  ;;  %v15174_v62 = vpop.f32.mrf.mxu1  ;;  %12317 = vmatmul.mubr.msk.bf16.vlgmr.msra.gmra.mxu1 %vm1665_vm5, %v14455_v43 }
 0x32f   : > { %12361 = vmatpush3.bf16.msra.mxu1 %v12751_v50  ;;  %v12446_v33 = vpop.f32.mrf.mxu0  ;;  %12320 = vmatprep.mubr.msk.bf16.mxu1 %vm13878_vm2, %v18665_v52 }
 0x330   : > { %v12210_v54 = vpop.f32.mrf.mxu1  ;;  %12362 = vmatprep.subr.bf16.mxu1 %v18665_v52 }
 0x331   : > { %v15184_v2 = vpop.f32.mrf.mxu0 }
 0x332   : > { %18737 = vst [vmem:[#allocation43_spill] sm:$0xff] %v15184_v2  ;;  %v15186_v46 = vpop.f32.mrf.mxu1 }
 0x333   : > { %v12447_v36 = vpop.f32.mrf.mxu0  ;;  %12363 = vmatpush3.bf16.msra.mxu1 %v12752_v15 }
 0x334   : > { %v12211_v22 = vpop.f32.mrf.mxu1  ;;  %12456 = vmatprep.subr.bf16.mxu1 %v18665_v52 }
 0x335   : > { %v15189_v43 = vpop.f32.mrf.mxu0 }
 0x336   : > { %18738 = vst [vmem:[#allocation44_spill] sm:$0xff] %v15189_v43  ;;  %v15191_v50 = vpop.f32.mrf.mxu1  ;;  %12321 = vmatmul.mubr.msk.bf16.gmra.mxu1 %vm1665_vm5, %v14495_v20 }
 0x337   : > { %v12450_v33 = vpop.f32.mrf.mxu0  ;;  %12324 = vmatprep.mubr.msk.bf16.mxu1 %vm13878_vm2, %v18665_v52 }
 0x338   : > { %v12214_v54 = vpop.f32.mrf.mxu1 }
 0x339   : > { %v15197_v2 = vpop.f32.mrf.mxu0 }
 0x33a   : > { %18739 = vst [vmem:[#allocation45_spill] sm:$0xff] %v15197_v2  ;;  %v1816_v24 = vpop.f32.mrf.mxu1 }
 0x33b   : > { %v12451_v36 = vpop.f32.mrf.mxu0 }
 0x33c   : > { %v12215_v15 = vpop.f32.mrf.mxu1 }
 0x33d   : > { %v15199_v22 = vpop.f32.mrf.mxu0 }
 0x33e   : > { %18740 = vst [vmem:[#allocation46_spill] sm:$0xff] %v15199_v22  ;;  %v15201_v23 = vpop.f32.mrf.mxu1  ;;  %12325 = vmatmul.mubr.msk.bf16.gmra.mxu1 %vm1665_vm5, %v14560_v25 }
 0x33f   : > { %v12454_v43 = vpop.f32.mrf.mxu0  ;;  %12328 = vmatprep.mubr.msk.bf16.mxu1 %vm13878_vm2, %v18665_v52 }
 0x340   : > { %v12222_v33 = vpop.f32.mrf.mxu1 }
 0x341   : > { %v2864_v48 = vpop.f32.mrf.mxu0 }
 0x342   : > { %v15207_v18 = vpop.f32.mrf.mxu1 }
 0x343   : > { %v12455_v54 = vpop.f32.mrf.mxu0 }
 0x344   : > { %v12223_v2 = vpop.f32.mrf.mxu1 }
 0x345   : > { %v15209_v24 = vpop.f32.mrf.mxu0 }
 0x346   : > { %18741 = vst [vmem:[#allocation47_spill] sm:$0xff] %v15209_v24  ;;  %v15211_v36 = vpop.f32.mrf.mxu1  ;;  %12329 = vmatmul.mubr.msk.bf16.gmra.mxu1 %vm1665_vm5, %v14604_v13  ;;  %v18744_v24 = vld [vmem:[#allocation6_spill] sm:$0xff] }
 0x347   : > { %v12510_v15 = vpop.f32.mrf.mxu0  ;;  %12332 = vmatprep.mubr.msk.bf16.mxu1 %vm13878_vm2, %v18665_v52 }
 0x348   : > { %v12226_v43 = vpop.f32.mrf.mxu1 }
 0x349   : > { %v15217_v22 = vpop.f32.mrf.mxu0 }
 0x34a   : > { %18742 = vst [vmem:[#allocation48_spill] sm:$0xff] %v15217_v22  ;;  %v15219_v33 = vpop.f32.mrf.mxu1 }
 0x34b   : > { %v12511_v48 = vpop.f32.mrf.mxu0 }
 0x34c   : > { %v12227_v29 = vpop.f32.mrf.mxu1 }
 0x34d   : > { %v15221_v54 = vpop.f32.mrf.mxu0 }
 0x34e   : > { %18743 = vst [vmem:[#allocation49_spill] sm:$0xff] %v15221_v54  ;;  %v15223_v2 = vpop.f32.mrf.mxu1  ;;  %12333 = vmatmul.mubr.msk.bf16.gmra.mxu1 %vm1665_vm5, %v18744_v24  ;;  %v18747_v54 = vld [vmem:[#allocation22_spill] sm:$0xff] }
 0x34f   : > { %v12514_v27 = vpop.f32.mrf.mxu0  ;;  %12336 = vmatprep.mubr.msk.bf16.mxu1 %vm13878_vm2, %v18665_v52 }
 0x350   : > { %v12230_v15 = vpop.f32.mrf.mxu1 }
 0x351   : > { %v15229_v17 = vpop.f32.mrf.mxu0 }
 0x352   : > { %18745 = vst [vmem:[#allocation50_spill] sm:$0xff] %v15229_v17  ;;  %v15231_v43 = vpop.f32.mrf.mxu1 }
 0x353   : > { %v12515_v22 = vpop.f32.mrf.mxu0 }
 0x354   : > { %v12231_v32 = vpop.f32.mrf.mxu1 }
 0x355   : > { %v15233_v48 = vpop.f32.mrf.mxu0 }
 0x356   : > { %18746 = vst [vmem:[#allocation51_spill] sm:$0xff] %v15233_v48  ;;  %v15235_v29 = vpop.f32.mrf.mxu1  ;;  %12337 = vmatmul.mubr.msk.bf16.gmra.mxu1 %vm1665_vm5, %v18747_v54  ;;  %v18750_v48 = vld [vmem:[#allocation23_spill] sm:$0xff] }
 0x357   : > { %v12518_v42 = vpop.f32.mrf.mxu0  ;;  %12340 = vmatprep.mubr.msk.bf16.mxu1 %vm13878_vm2, %v18665_v52 }
 0x358   : > { %v12234_v27 = vpop.f32.mrf.mxu1 }
 0x359   : > { %v15241_v51 = vpop.f32.mrf.mxu0 }
 0x35a   : > { %18748 = vst [vmem:[#allocation52_spill] sm:$0xff] %v15241_v51  ;;  %v15243_v15 = vpop.f32.mrf.mxu1 }
 0x35b   : > { %v12519_v17 = vpop.f32.mrf.mxu0 }
 0x35c   : > { %v12235_v37 = vpop.f32.mrf.mxu1 }
 0x35d   : > { %v15245_v22 = vpop.f32.mrf.mxu0 }
 0x35e   : > { %18749 = vst [vmem:[#allocation53_spill] sm:$0xff] %v15245_v22  ;;  %v15247_v32 = vpop.f32.mrf.mxu1  ;;  %12341 = vmatmul.mubr.msk.bf16.gmra.mxu1 %vm1665_vm5, %v18750_v48  ;;  %v18753_v22 = vld [vmem:[#allocation15_spill] sm:$0xff] }
 0x35f   : > { %v12522_v6 = vpop.f32.mrf.mxu0  ;;  %12344 = vmatprep.mubr.msk.bf16.mxu1 %vm13878_vm2, %v18665_v52 }
 0x360   : > { %v12238_v42 = vpop.f32.mrf.mxu1 }
 0x361   : > { %v15253_v0 = vpop.f32.mrf.mxu0 }
 0x362   : > { %18751 = vst [vmem:[#allocation54_spill] sm:$0xff] %v15253_v0  ;;  %v15255_v27 = vpop.f32.mrf.mxu1 }
 0x363   : > { %v12523_v51 = vpop.f32.mrf.mxu0 }
 0x364   : > { %v12239_v54 = vpop.f32.mrf.mxu1 }
 0x365   : > { %v15257_v17 = vpop.f32.mrf.mxu0 }
 0x366   : > { %18752 = vst [vmem:[#allocation55_spill] sm:$0xff] %v15257_v17  ;;  %v15259_v37 = vpop.f32.mrf.mxu1  ;;  %12345 = vmatmul.mubr.msk.bf16.gmra.mxu1 %vm1665_vm5, %v18753_v22  ;;  %v18756_v17 = vld [vmem:[#allocation16_spill] sm:$0xff] }
 0x367   : > { %v12526_v24 = vpop.f32.mrf.mxu0  ;;  %12348 = vmatprep.mubr.msk.bf16.mxu1 %vm13878_vm2, %v18665_v52 }
 0x368   : > { %v12242_v6 = vpop.f32.mrf.mxu1 }
 0x369   : > { %v15265_v48 = vpop.f32.mrf.mxu0  ;;  %v15280_v6 = vrot.slane %v14823_v57, 3 }
 0x36a   : > { %18754 = vst [vmem:[#allocation56_spill] sm:$0xff] %v15265_v48  ;;  %v15267_v42 = vpop.f32.mrf.mxu1 }
 0x36b   : > { %v12527_v0 = vpop.f32.mrf.mxu0  ;;  %18758 = vst [vmem:[#allocation59_spill] sm:$0xff] %v15280_v6 }
 0x36c   : > { %v12243_v13 = vpop.f32.mrf.mxu1 }
 0x36d   : > { %v15269_v51 = vpop.f32.mrf.mxu0 }
 0x36e   : > { %18755 = vst [vmem:[#allocation57_spill] sm:$0xff] %v15269_v51  ;;  %v15271_v54 = vpop.f32.mrf.mxu1  ;;  %12349 = vmatmul.mubr.msk.bf16.gmra.mxu1 %vm1665_vm5, %v18756_v17  ;;  %v18759_v51 = vrot.slane %v14787_v14, 3 }
 0x36f   : > { %v12530_v25 = vpop.f32.mrf.mxu0  ;;  %12352 = vmatprep.mubr.msk.bf16.mxu1 %vm13878_vm2, %v18665_v52 }
 0x370   : > { %v12246_v24 = vpop.f32.mrf.mxu1  ;;  %v15288_v20 = vsel %vm884_vm1, %v18759_v51, %v15280_v6 }
 0x371   : > { %v15277_v22 = vpop.f32.mrf.mxu0  ;;  %18760 = vst [vmem:[#allocation60_spill] sm:$0xff] %v15288_v20 }
 0x372   : > { %18757 = vst [vmem:[#allocation58_spill] sm:$0xff] %v15277_v22  ;;  %v15282_v48 = vpop.f32.mrf.mxu1 }
 0x373   : > { %v12531_v13 = vpop.f32.mrf.mxu0 }
 0x374   : > { %v12247_v0 = vpop.f32.mrf.mxu1 }
 0x375   : > { %v15290_v25 = vpop.f32.mrf.mxu0 }
 0x376   : > { %18761 = vst [vmem:[#allocation61_spill] sm:$0xff] %v15290_v25  ;;  %v15292_v17 = vpop.f32.mrf.mxu1  ;;  %12353 = vmatmul.mubr.msk.bf16.gmra.mxu1 %vm1665_vm5, %v15288_v20 }
 0x377   : > { %v12534_v24 = vpop.f32.mrf.mxu0  ;;  %12356 = vmatprep.mubr.msk.bf16.mxu1 %vm13878_vm2, %v18665_v52 }
 0x378   : > { %v12250_v57 = vpop.f32.mrf.mxu1 }
 0x379   : > { %v15298_v13 = vpop.f32.mrf.mxu0 }
 0x37a   : > { %18762 = vst [vmem:[#allocation62_spill] sm:$0xff] %v15298_v13  ;;  %v15300_v0 = vpop.f32.mrf.mxu1 }
 0x37b   : > { %v12535_v14 = vpop.f32.mrf.mxu0 }
 0x37c   : > { %v12251_v22 = vpop.f32.mrf.mxu1 }
 0x37d   : > { %v15302_v51 = vpop.f32.mrf.mxu0  ;;  %v12753_v22 = vld [vmem:[%s18604_s3 + $0x68] sm:$0xff]  }
 0x37e   : > { %18763 = vst [vmem:[#allocation63_spill] sm:$0xff] %v15302_v51  ;;  %v15304_v28 = vpop.f32.mrf.mxu1  ;;  %12357 = vmatmul.mubr.msk.bf16.gmra.mxu1 %vm1665_vm5, %v15280_v6  ;;  %v18766_v6 = vld [vmem:[#allocation30_spill] sm:$0xff] }
 0x37f   : > { %v12538_v25 = vpop.f32.mrf.mxu0  ;;  %12364 = vmatprep.mubr.msk.bf16.mxu1 %vm13878_vm2, %v18665_v52 }
 0x380   : > { %v12254_v24 = vpop.f32.mrf.mxu1 }
 0x381   : > { %v15310_v20 = vpop.f32.mrf.mxu0 }
 0x382   : > { %18764 = vst [vmem:[#allocation64_spill] sm:$0xff] %v15310_v20  ;;  %v15312_v57 = vpop.f32.mrf.mxu1 }
 0x383   : > { %v12539_v13 = vpop.f32.mrf.mxu0 }
 0x384   : > { %v12255_v14 = vpop.f32.mrf.mxu1  ;;  %v12754_v13 = vld [vmem:[%s18604_s3 + $0x60] sm:$0xff]  }
 0x385   : > { %v15317_v51 = vpop.f32.mrf.mxu0 }
 0x386   : > { %18765 = vst [vmem:[#allocation65_spill] sm:$0xff] %v15317_v51  ;;  %v15319_v30 = vpop.f32.mrf.mxu1  ;;  %12365 = vmatmul.mubr.msk.bf16.vlgmr.msra.gmra.mxu1 %vm1665_vm5, %v18766_v6 }
 0x387   : > { %12457 = vmatpush3.bf16.msra.mxu1 %v12753_v22  ;;  %v12542_v25 = vpop.f32.mrf.mxu0  ;;  %12368 = vmatprep.mubr.msk.bf16.mxu1 %vm13878_vm2, %v18665_v52 }
 0x388   : > { %v12258_v24 = vpop.f32.mrf.mxu1  ;;  %12458 = vmatprep.subr.bf16.mxu1 %v18665_v52  ;;  %v18769_v25 = vld [vmem:[#allocation32_spill] sm:$0xff] }
 0x389   : > { %v15329_v14 = vpop.f32.mrf.mxu0 }
 0x38a   : > { %18767 = vst [vmem:[#allocation30_spill] sm:$0xff] %v15329_v14  ;;  %v15331_v51 = vpop.f32.mrf.mxu1 }
 0x38b   : > { %v12543_v20 = vpop.f32.mrf.mxu0  ;;  %12459 = vmatpush3.bf16.msra.mxu1 %v12754_v13 }
 0x38c   : > { %v12259_v45 = vpop.f32.mrf.mxu1  ;;  %12552 = vmatprep.subr.bf16.mxu1 %v18665_v52 }
 0x38d   : > { %v15334_v6 = vpop.f32.mrf.mxu0  ;;  %v1888_v45 = vadd.f32 %v15201_v23, %v15059_v5 }
 0x38e   : > { %18768 = vst [vmem:[#allocation66_spill] sm:$0xff] %v15334_v6  ;;  %v15336_v22 = vpop.f32.mrf.mxu1  ;;  %12369 = vmatmul.mubr.msk.bf16.gmra.mxu1 %vm1665_vm5, %v18769_v25 }
 0x38f   : > { %v12546_v9 = vpop.f32.mrf.mxu0  ;;  %12372 = vmatprep.mubr.msk.bf16.mxu1 %vm13878_vm2, %v18665_v52 }
 0x390   : > { %v12262_v24 = vpop.f32.mrf.mxu1 }
 0x391   : > { %v15342_v14 = vpop.f32.mrf.mxu0 }
 0x392   : > { %18770 = vst [vmem:[#allocation32_spill] sm:$0xff] %v15342_v14  ;;  %v1970_v60 = vpop.f32.mrf.mxu1 }
 0x393   : > { %v12547_v20 = vpop.f32.mrf.mxu0  ;;  %v1891_v60 = vadd.f32 %v15207_v18, %v15065_v7  ;;  %v1899_v7 = vadd.f32 %v15219_v33, %v15079_v38  ;;  %v1907_v38 = vadd.f32 %v15231_v43, %v15092_v1  ;;  %v1915_v1 = vadd.f32 %v15243_v15, %v15105_v10 }
 0x394   : > { %v12263_v13 = vpop.f32.mrf.mxu1  ;;  %v1923_v10 = vadd.f32 %v15255_v27, %v15118_v34  ;;  %v1931_v34 = vadd.f32 %v15267_v42, %v15131_v35  ;;  %v1939_v35 = vadd.f32 %v15282_v48, %v15144_v56  ;;  %v1947_v56 = vadd.f32 %v15300_v0, %v15156_v8 }
 0x395   : > { %v15346_v44 = vpop.f32.mrf.mxu0  ;;  %v1955_v8 = vadd.f32 %v15312_v57, %v15167_v47  ;;  %v12756_v47 = vld [vmem:[%s18604_s3 + $0x80] sm:$0xff]  }
 0x396   : > { %18771 = vst [vmem:[#allocation67_spill] sm:$0xff] %v15346_v44  ;;  %v2090_v6 = vpop.f32.mrf.mxu1  ;;  %12373 = vmatmul.mubr.msk.bf16.gmra.mxu1 %vm1665_vm5, %v18772_v3  ;;  %v1896_v44 = vadd.f32 %v15211_v36, %v15071_v55  ;;  %v1904_v55 = vadd.f32 %v15223_v2, %v15084_v19  ;;  %v1912_v19 = vadd.f32 %v15235_v29, %v15097_v59 }
 0x397   : > { %v15350_v25 = vadd.f32 %v2090_v6, %v1888_v45  ;;  %v12550_v9 = vpop.f32.mrf.mxu0  ;;  %12376 = vmatprep.mubr.msk.bf16.mxu1 %vm13878_vm2, %v18665_v52  ;;  %v18773_v6 = vld [vmem:[#allocation7_spill] sm:$0xff]  ;;  %v1920_v59 = vadd.f32 %v15247_v32, %v15110_v63  ;;  %v1928_v63 = vadd.f32 %v15259_v37, %v15123_v58  ;;  %v1936_v58 = vadd.f32 %v15271_v54, %v15136_v16 }
 0x398   : > { %v12270_v24 = vpop.f32.mrf.mxu1  ;;  %v1944_v16 = vadd.f32 %v15292_v17, %v15149_v21  ;;  %v1952_v21 = vadd.f32 %v15304_v28, %v15160_v40  ;;  %v12755_v28 = vld [vmem:[%s18604_s3 + $0x88] sm:$0xff]  }
 0x399   : > { %v3319_v20 = vpop.f32.mrf.mxu0 }
 0x39a   : > { %v2093_v13 = vpop.f32.mrf.mxu1  ;;  %v18774_v20 = vld [vmem:[#allocation8_spill] sm:$0xff] }
 0x39b   : > { %v15356_v14 = vadd.f32 %v2093_v13, %v1891_v60  ;;  %v12551_v5 = vpop.f32.mrf.mxu0 }
 0x39c   : > { %v12271_v23 = vpop.f32.mrf.mxu1 }
 0x39e   : > { %v2098_v3 = vpop.f32.mrf.mxu1  ;;  %12377 = vmatmul.mubr.msk.bf16.gmra.mxu1 %vm1665_vm5, %v18773_v6 }
 0x39f   : > { %v15362_v45 = vadd.f32 %v2098_v3, %v1896_v44  ;;  %12380 = vmatprep.mubr.msk.bf16.mxu1 %vm13878_vm2, %v18665_v52 }
 0x3a0   : > { %v12274_v9 = vpop.f32.mrf.mxu1 }
 0x3a2   : > { %v2101_v18 = vpop.f32.mrf.mxu1 }
 0x3a3   : > { %v15368_v24 = vadd.f32 %v2101_v18, %v1899_v7 }
 0x3a4   : > { %v12275_v60 = vpop.f32.mrf.mxu1 }
 0x3a6   : > { %v2106_v36 = vpop.f32.mrf.mxu1  ;;  %12381 = vmatmul.mubr.msk.bf16.gmra.mxu1 %vm1665_vm5, %v18774_v20 }
 0x3a7   : > { %v15374_v44 = vadd.f32 %v2106_v36, %v1904_v55  ;;  %12384 = vmatprep.mubr.msk.bf16.mxu1 %vm13878_vm2, %v18665_v52 }
 0x3a8   : > { %v12278_v13 = vpop.f32.mrf.mxu1 }
 0x3aa   : > { %v2109_v33 = vpop.f32.mrf.mxu1 }
 0x3ab   : > { %v15380_v5 = vadd.f32 %v2109_v33, %v1907_v38 }
 0x3ac   : > { %v12279_v23 = vpop.f32.mrf.mxu1 }
 0x3ae   : > { %v2114_v2 = vpop.f32.mrf.mxu1  ;;  %12385 = vmatmul.mubr.msk.bf16.gmra.mxu1 %vm1665_vm5, %v14861_v41 }
 0x3af   : > { %v15386_v3 = vadd.f32 %v2114_v2, %v1912_v19  ;;  %12388 = vmatprep.mubr.msk.bf16.mxu1 %vm13878_vm2, %v18665_v52 }
 0x3b0   : > { %v12282_v6 = vpop.f32.mrf.mxu1 }
 0x3b2   : > { %v2117_v43 = vpop.f32.mrf.mxu1 }
 0x3b3   : > { %v15392_v9 = vadd.f32 %v2117_v43, %v1915_v1 }
 0x3b4   : > { %v12283_v7 = vpop.f32.mrf.mxu1 }
 0x3b6   : > { %v2122_v29 = vpop.f32.mrf.mxu1  ;;  %12389 = vmatmul.mubr.msk.bf16.gmra.mxu1 %vm1665_vm5, %v14866_v26 }
 0x3b7   : > { %v15398_v41 = vadd.f32 %v2122_v29, %v1920_v59  ;;  %12392 = vmatprep.mubr.msk.bf16.mxu1 %vm13878_vm2, %v18665_v52 }
 0x3b8   : > { %v12286_v18 = vpop.f32.mrf.mxu1 }
 0x3b9   : > { %v1968_v18 = vadd.f32 %v15336_v22, %v15191_v50 }
 0x3ba   : > { %v2125_v15 = vpop.f32.mrf.mxu1 }
 0x3bb   : > { %v15404_v60 = vadd.f32 %v2125_v15, %v1923_v10 }
 0x3bc   : > { %v12287_v55 = vpop.f32.mrf.mxu1 }
 0x3be   : > { %v2130_v32 = vpop.f32.mrf.mxu1  ;;  %12393 = vmatmul.mubr.msk.bf16.gmra.mxu1 %vm1665_vm5, %v14872_v49 }
 0x3bf   : > { %v15410_v26 = vadd.f32 %v2130_v32, %v1928_v63  ;;  %12396 = vmatprep.mubr.msk.bf16.mxu1 %vm13878_vm2, %v18665_v52 }
 0x3c0   : > { %v12290_v36 = vpop.f32.mrf.mxu1 }
 0x3c2   : > { %v2133_v27 = vpop.f32.mrf.mxu1 }
 0x3c3   : > { %v15416_v20 = vadd.f32 %v2133_v27, %v1931_v34 }
 0x3c4   : > { %v12291_v13 = vpop.f32.mrf.mxu1 }
 0x3c6   : > { %v2138_v37 = vpop.f32.mrf.mxu1  ;;  %12397 = vmatmul.mubr.msk.bf16.gmra.mxu1 %vm1665_vm5, %v14892_v12 }
 0x3c7   : > { %v15422_v49 = vadd.f32 %v2138_v37, %v1936_v58  ;;  %12400 = vmatprep.mubr.msk.bf16.mxu1 %vm13878_vm2, %v18665_v52 }
 0x3c8   : > { %v12294_v38 = vpop.f32.mrf.mxu1 }
 0x3ca   : > { %v2141_v42 = vpop.f32.mrf.mxu1 }
 0x3cb   : > { %v15428_v33 = vadd.f32 %v2141_v42, %v1939_v35 }
 0x3cc   : > { %v12295_v23 = vpop.f32.mrf.mxu1 }
 0x3ce   : > { %v2146_v54 = vpop.f32.mrf.mxu1  ;;  %12401 = vmatmul.mubr.msk.bf16.gmra.mxu1 %vm1665_vm5, %v14896_v53 }
 0x3cf   : > { %v15434_v12 = vadd.f32 %v2146_v54, %v1944_v16  ;;  %12404 = vmatprep.mubr.msk.bf16.mxu1 %vm13878_vm2, %v18665_v52 }
 0x3d0   : > { %v12298_v19 = vpop.f32.mrf.mxu1 }
 0x3d2   : > { %v2149_v48 = vpop.f32.mrf.mxu1 }
 0x3d3   : > { %v15440_v2 = vadd.f32 %v2149_v48, %v1947_v56 }
 0x3d4   : > { %v12299_v6 = vpop.f32.mrf.mxu1 }
 0x3d6   : > { %v2154_v17 = vpop.f32.mrf.mxu1  ;;  %12405 = vmatmul.mubr.msk.bf16.gmra.mxu1 %vm1665_vm5, %v14874_v31  ;;  %v1960_v31 = vadd.f32 %v15319_v30, %v15174_v62  ;;  %v1963_v30 = vadd.f32 %v15331_v51, %v15186_v46 }
 0x3d7   : > { %v15446_v53 = vadd.f32 %v2154_v17, %v1952_v21  ;;  %12460 = vmatprep.mubr.msk.bf16.mxu1 %vm13878_vm2, %v18665_v52 }
 0x3d8   : > { %v12302_v1 = vpop.f32.mrf.mxu1 }
 0x3da   : > { %v2157_v0 = vpop.f32.mrf.mxu1 }
 0x3db   : > { %v15452_v43 = vadd.f32 %v2157_v0, %v1955_v8 }
 0x3dc   : > { %v12303_v40 = vpop.f32.mrf.mxu1 }
 0x3de   : > { %v2162_v7 = vpop.f32.mrf.mxu1  ;;  %12461 = vmatmul.mubr.msk.bf16.vlgmr.msra.gmra.mxu1 %vm1665_vm5, %v14881_v4 }
 0x3df   : > { %v15461_v59 = vadd.f32 %v2162_v7, %v1960_v31  ;;  %12553 = vmatpush3.bf16.msra.mxu1 %v12755_v28  ;;  %12464 = vmatprep.mubr.msk.bf16.mxu1 %vm13878_vm2, %v18665_v52 }
 0x3e0   : > { %v12306_v57 = vpop.f32.mrf.mxu1  ;;  %12554 = vmatprep.subr.bf16.mxu1 %v18665_v52 }
 0x3e2   : > { %v2165_v62 = vpop.f32.mrf.mxu1 }
 0x3e3   : > { %v15471_v29 = vadd.f32 %v2165_v62, %v1963_v30  ;;  %12555 = vmatpush3.bf16.msra.mxu1 %v12756_v47 }
 0x3e4   : > { %v12307_v4 = vpop.f32.mrf.mxu1 }
 0x3e6   : > { %v2170_v10 = vpop.f32.mrf.mxu1  ;;  %12465 = vmatmul.mubr.msk.bf16.gmra.mxu1 %vm1665_vm5, %v14901_v39 }
 0x3e7   : > { %v15477_v15 = vadd.f32 %v2170_v10, %v1968_v18  ;;  %12468 = vmatprep.mubr.msk.bf16.mxu1 %vm13878_vm2, %v18665_v52 }
 0x3e8   : > { %v12310_v55 = vpop.f32.mrf.mxu1 }
 0x3ea   : > { %v2173_v63 = vpop.f32.mrf.mxu1 }
 0x3ec   : > { %v12311_v46 = vpop.f32.mrf.mxu1 }
 0x3ee   : > { %v2325_v51 = vpop.f32.mrf.mxu1  ;;  %12469 = vmatmul.mubr.msk.bf16.gmra.mxu1 %vm1665_vm5, %v14910_v61 }
 0x3ef   : > { %v15484_v32 = vadd.f32 %v2325_v51, %v15350_v25  ;;  %12472 = vmatprep.mubr.msk.bf16.mxu1 %vm13878_vm2, %v18665_v52 }
 0x3f0   : > { %v12318_v50 = vpop.f32.mrf.mxu1 }
 0x3f2   : > { %v2328_v39 = vpop.f32.mrf.mxu1 }
 0x3f3   : > { %v15489_v22 = vadd.f32 %v2328_v39, %v15356_v14  ;;  %v18775_v14 = vld [vmem:[#allocation9_spill] sm:$0xff] }
 0x3f4   : > { %v12319_v36 = vpop.f32.mrf.mxu1 }
 0x3f6   : > { %v2333_v34 = vpop.f32.mrf.mxu1  ;;  %12473 = vmatmul.mubr.msk.bf16.gmra.mxu1 %vm1665_vm5, %v14913_v11 }
 0x3f7   : > { %v15494_v27 = vadd.f32 %v2333_v34, %v15362_v45  ;;  %12476 = vmatprep.mubr.msk.bf16.mxu1 %vm13878_vm2, %v18665_v52 }
 0x3f8   : > { %v12322_v61 = vpop.f32.mrf.mxu1 }
 0x3f9   : > { %v18783_v61 = vld [vmem:[#allocation29_spill] sm:$0xff] }
 0x3fa   : > { %v2336_v25 = vpop.f32.mrf.mxu1 }
 0x3fb   : > { %v15499_v13 = vadd.f32 %v2336_v25, %v15368_v24  ;;  %v18776_v24 = vld [vmem:[#allocation17_spill] sm:$0xff] }
 0x3fc   : > { %v12323_v58 = vpop.f32.mrf.mxu1 }
 0x3fe   : > { %v2341_v37 = vpop.f32.mrf.mxu1  ;;  %12477 = vmatmul.mubr.msk.bf16.gmra.mxu1 %vm1665_vm5, %v18775_v14 }
 0x3ff   : > { %v15504_v38 = vadd.f32 %v2341_v37, %v15374_v44  ;;  %12480 = vmatprep.mubr.msk.bf16.mxu1 %vm13878_vm2, %v18665_v52 }
 0x400   : > { %v12326_v11 = vpop.f32.mrf.mxu1 }
 0x402   : > { %v2344_v45 = vpop.f32.mrf.mxu1 }
 0x403   : > { %v15509_v35 = vadd.f32 %v2344_v45, %v15380_v5  ;;  %v18777_v5 = vld [vmem:[#allocation18_spill] sm:$0xff] }
 0x404   : > { %v12327_v42 = vpop.f32.mrf.mxu1 }
 0x406   : > { %v2349_v23 = vpop.f32.mrf.mxu1  ;;  %12481 = vmatmul.mubr.msk.bf16.gmra.mxu1 %vm1665_vm5, %v18776_v24 }
 0x407   : > { %v15514_v16 = vadd.f32 %v2349_v23, %v15386_v3  ;;  %12484 = vmatprep.mubr.msk.bf16.mxu1 %vm13878_vm2, %v18665_v52 }
 0x408   : > { %v12330_v44 = vpop.f32.mrf.mxu1 }
 0x409   : > { %v18785_v44 = vld [vmem:[#allocation33_spill] sm:$0xff] }
 0x40a   : > { %v2352_v54 = vpop.f32.mrf.mxu1 }
 0x40b   : > { %v15519_v19 = vadd.f32 %v2352_v54, %v15392_v9  ;;  %v18778_v9 = vld [vmem:[#allocation25_spill] sm:$0xff] }
 0x40c   : > { %v12331_v56 = vpop.f32.mrf.mxu1 }
 0x40e   : > { %v2357_v48 = vpop.f32.mrf.mxu1  ;;  %12485 = vmatmul.mubr.msk.bf16.gmra.mxu1 %vm1665_vm5, %v18777_v5 }
 0x40f   : > { %v15524_v6 = vadd.f32 %v2357_v48, %v15398_v41  ;;  %12488 = vmatprep.mubr.msk.bf16.mxu1 %vm13878_vm2, %v18665_v52 }
 0x410   : > { %v12334_v3 = vpop.f32.mrf.mxu1 }
 0x411   : > { %v18786_v3 = vld [vmem:[#allocation6_spill] sm:$0xff] }
 0x412   : > { %v2360_v21 = vpop.f32.mrf.mxu1 }
 0x413   : > { %v15529_v17 = vadd.f32 %v2360_v21, %v15404_v60  ;;  %v18779_v60 = vld [vmem:[#allocation10_spill] sm:$0xff] }
 0x414   : > { %v12335_v1 = vpop.f32.mrf.mxu1 }
 0x416   : > { %v2365_v8 = vpop.f32.mrf.mxu1  ;;  %12489 = vmatmul.mubr.msk.bf16.gmra.mxu1 %vm1665_vm5, %v18778_v9 }
 0x417   : > { %v15534_v0 = vadd.f32 %v2365_v8, %v15410_v26  ;;  %12492 = vmatprep.mubr.msk.bf16.mxu1 %vm13878_vm2, %v18665_v52 }
 0x418   : > { %v12338_v41 = vpop.f32.mrf.mxu1 }
 0x41a   : > { %v2368_v28 = vpop.f32.mrf.mxu1 }
 0x41b   : > { %v15539_v40 = vadd.f32 %v2368_v28, %v15416_v20  ;;  %v18780_v20 = vld [vmem:[#allocation19_spill] sm:$0xff] }
 0x41c   : > { %v12339_v31 = vpop.f32.mrf.mxu1 }
 0x41e   : > { %v2373_v7 = vpop.f32.mrf.mxu1  ;;  %12493 = vmatmul.mubr.msk.bf16.gmra.mxu1 %vm1665_vm5, %v18779_v60 }
 0x41f   : > { %v15544_v47 = vadd.f32 %v2373_v7, %v15422_v49  ;;  %12496 = vmatprep.mubr.msk.bf16.mxu1 %vm13878_vm2, %v18665_v52 }
 0x420   : > { %v12342_v26 = vpop.f32.mrf.mxu1 }
 0x422   : > { %v2376_v57 = vpop.f32.mrf.mxu1 }
 0x423   : > { %v15549_v30 = vadd.f32 %v2376_v57, %v15428_v33  ;;  %v18781_v33 = vld [vmem:[#allocation24_spill] sm:$0xff] }
 0x424   : > { %v12343_v62 = vpop.f32.mrf.mxu1  ;;  %v18782_v51 = vrot.slane %v18781_v33, 2 }
 0x426   : > { %v2381_v4 = vpop.f32.mrf.mxu1  ;;  %12497 = vmatmul.mubr.msk.bf16.gmra.mxu1 %vm1665_vm5, %v18780_v20 }
 0x427   : > { %v15554_v18 = vadd.f32 %v2381_v4, %v15434_v12  ;;  %12500 = vmatprep.mubr.msk.bf16.mxu1 %vm13878_vm2, %v18665_v52 }
 0x428   : > { %v12346_v49 = vpop.f32.mrf.mxu1 }
 0x42a   : > { %v2384_v10 = vpop.f32.mrf.mxu1 }
 0x42b   : > { %v15559_v55 = vadd.f32 %v2384_v10, %v15440_v2 }
 0x42c   : > { %v12347_v63 = vpop.f32.mrf.mxu1 }
 0x42e   : > { %v2389_v46 = vpop.f32.mrf.mxu1  ;;  %12501 = vmatmul.mubr.msk.bf16.gmra.mxu1 %vm1665_vm5, %v18782_v51 }
 0x42f   : > { %v15565_v50 = vadd.f32 %v2389_v46, %v15446_v53  ;;  %12556 = vmatprep.mubr.msk.bf16.mxu1 %vm13878_vm2, %v18665_v52 }
 0x430   : > { %v12350_v12 = vpop.f32.mrf.mxu1 }
 0x432   : > { %v2392_v39 = vpop.f32.mrf.mxu1 }
 0x433   : > { %v15570_v36 = vadd.f32 %v2392_v39, %v15452_v43  ;;  %v18784_v43 = vld [vmem:[#allocation31_spill] sm:$0xff] }
 0x434   : > { %v12351_v34 = vpop.f32.mrf.mxu1 }
 0x436   : > { %v2397_v2 = vpop.f32.mrf.mxu1  ;;  %12557 = vmatmul.mubr.msk.bf16.vlgmr.msra.gmra.mxu1 %vm1665_vm5, %v18783_v61 }
 0x437   : > { %v15575_v25 = vadd.f32 %v2397_v2, %v15461_v59  ;;  %12560 = vmatprep.mubr.msk.bf16.mxu1 %vm13878_vm2, %v18665_v52 }
 0x438   : > { %v12354_v53 = vpop.f32.mrf.mxu1 }
 0x43a   : > { %v2400_v58 = vpop.f32.mrf.mxu1 }
 0x43b   : > { %v15580_v37 = vadd.f32 %v2400_v58, %v15471_v29 }
 0x43c   : > { %v12355_v14 = vpop.f32.mrf.mxu1 }
 0x43d   : > { %v3348_v14 = vrot.slane %v18781_v33, 3 }
 0x43e   : > { %v2405_v11 = vpop.f32.mrf.mxu1  ;;  %12561 = vmatmul.mubr.msk.bf16.gmra.mxu1 %vm1665_vm5, %v18784_v43 }
 0x43f   : > { %v15585_v45 = vadd.f32 %v2405_v11, %v15477_v15  ;;  %12564 = vmatprep.mubr.msk.bf16.mxu1 %vm13878_vm2, %v18665_v52 }
 0x440   : > { %v12358_v59 = vpop.f32.mrf.mxu1 }
 0x441   : > { %v18792_v59 = vld [vmem:[#allocation59_spill] sm:$0xff] }
 0x442   : > { %v2408_v42 = vpop.f32.mrf.mxu1 }
 0x443   : > { %v3349_v42 = vsel %vm884_vm1, %v18792_v59, %v3348_v14 }
 0x444   : > { %v12359_v23 = vpop.f32.mrf.mxu1 }
 0x446   : > { %v2615_v24 = vpop.f32.mrf.mxu1  ;;  %12565 = vmatmul.mubr.msk.bf16.gmra.mxu1 %vm1665_vm5, %v18785_v44 }
 0x447   : > { %v15592_v29 = vadd.f32 %v2615_v24, %v15484_v32  ;;  %12568 = vmatprep.mubr.msk.bf16.mxu1 %vm13878_vm2, %v18665_v52 }
 0x448   : > { %v12366_v54 = vpop.f32.mrf.mxu1 }
 0x44a   : > { %v2618_v56 = vpop.f32.mrf.mxu1 }
 0x44b   : > { %v15597_v15 = vadd.f32 %v2618_v56, %v15489_v22  ;;  %v18787_v22 = vld [vmem:[#allocation22_spill] sm:$0xff] }
 0x44c   : > { %v12367_v48 = vpop.f32.mrf.mxu1 }
 0x44e   : > { %v2623_v5 = vpop.f32.mrf.mxu1  ;;  %12569 = vmatmul.mubr.msk.bf16.gmra.mxu1 %vm1665_vm5, %v18786_v3 }
 0x44f   : > { %v15602_v21 = vadd.f32 %v2623_v5, %v15494_v27  ;;  %12572 = vmatprep.mubr.msk.bf16.mxu1 %vm13878_vm2, %v18665_v52 }
 0x450   : > { %v12370_v32 = vpop.f32.mrf.mxu1 }
 0x452   : > { %v2626_v1 = vpop.f32.mrf.mxu1 }
 0x453   : > { %v15607_v8 = vadd.f32 %v2626_v1, %v15499_v13  ;;  %v18788_v13 = vld [vmem:[#allocation23_spill] sm:$0xff] }
 0x454   : > { %v12371_v9 = vpop.f32.mrf.mxu1 }
 0x456   : > { %v2631_v41 = vpop.f32.mrf.mxu1  ;;  %12573 = vmatmul.mubr.msk.bf16.gmra.mxu1 %vm1665_vm5, %v18787_v22 }
 0x457   : > { %v15612_v28 = vadd.f32 %v2631_v41, %v15504_v38  ;;  %12576 = vmatprep.mubr.msk.bf16.mxu1 %vm13878_vm2, %v18665_v52 }
 0x458   : > { %v12374_v27 = vpop.f32.mrf.mxu1 }
 0x45a   : > { %v2634_v31 = vpop.f32.mrf.mxu1 }
 0x45b   : > { %v15617_v7 = vadd.f32 %v2634_v31, %v15509_v35  ;;  %v18789_v35 = vld [vmem:[#allocation15_spill] sm:$0xff] }
 0x45c   : > { %v12375_v60 = vpop.f32.mrf.mxu1 }
 0x45e   : > { %v2639_v26 = vpop.f32.mrf.mxu1  ;;  %12577 = vmatmul.mubr.msk.bf16.gmra.mxu1 %vm1665_vm5, %v18788_v13 }
 0x45f   : > { %v15622_v57 = vadd.f32 %v2639_v26, %v15514_v16  ;;  %12580 = vmatprep.mubr.msk.bf16.mxu1 %vm13878_vm2, %v18665_v52 }
 0x460   : > { %v12378_v38 = vpop.f32.mrf.mxu1 }
 0x462   : > { %v2642_v62 = vpop.f32.mrf.mxu1 }
 0x463   : > { %v15627_v4 = vadd.f32 %v2642_v62, %v15519_v19  ;;  %v18790_v19 = vld [vmem:[#allocation16_spill] sm:$0xff] }
 0x464   : > { %v12379_v20 = vpop.f32.mrf.mxu1 }
 0x465   : > { %v18794_v20 = vld [vmem:[#allocation20_spill] sm:$0xff] }
 0x466   : > { %v2647_v49 = vpop.f32.mrf.mxu1  ;;  %12581 = vmatmul.mubr.msk.bf16.gmra.mxu1 %vm1665_vm5, %v18789_v35 }
 0x467   : > { %v15632_v10 = vadd.f32 %v2647_v49, %v15524_v6  ;;  %12584 = vmatprep.mubr.msk.bf16.mxu1 %vm13878_vm2, %v18665_v52  ;;  %v2868_v49 = vadd.f32 %v18794_v20, %v15597_v15  ;;  %v18797_v15 = vld [vmem:[#allocation21_spill] sm:$0xff] }
 0x468   : > { %v12382_v16 = vpop.f32.mrf.mxu1 }
 0x46a   : > { %v2650_v63 = vpop.f32.mrf.mxu1 }
 0x46b   : > { %v15637_v46 = vadd.f32 %v2650_v63, %v15529_v17  ;;  %v18791_v17 = vld [vmem:[#allocation60_spill] sm:$0xff] }
 0x46c   : > { %v12383_v51 = vpop.f32.mrf.mxu1 }
 0x46e   : > { %v2655_v12 = vpop.f32.mrf.mxu1  ;;  %12585 = vmatmul.mubr.msk.bf16.gmra.mxu1 %vm1665_vm5, %v18790_v19 }
 0x46f   : > { %v15642_v39 = vadd.f32 %v2655_v12, %v15534_v0  ;;  %12588 = vmatprep.mubr.msk.bf16.mxu1 %vm13878_vm2, %v18665_v52 }
 0x470   : > { %v12386_v6 = vpop.f32.mrf.mxu1 }
 0x472   : > { %v2658_v34 = vpop.f32.mrf.mxu1 }
 0x473   : > { %v15647_v2 = vadd.f32 %v2658_v34, %v15539_v40 }
 0x474   : > { %v12387_v61 = vpop.f32.mrf.mxu1 }
 0x476   : > { %v2663_v53 = vpop.f32.mrf.mxu1  ;;  %12589 = vmatmul.mubr.msk.bf16.gmra.mxu1 %vm1665_vm5, %v18791_v17  ;;  %v2871_v17 = vadd.f32 %v18797_v15, %v15612_v28  ;;  %v18800_v28 = vld [vmem:[#allocation28_spill] sm:$0xff] }
 0x477   : > { %v15652_v58 = vadd.f32 %v2663_v53, %v15544_v47  ;;  %12592 = vmatprep.mubr.msk.bf16.mxu1 %vm13878_vm2, %v18665_v52 }
 0x478   : > { %v12390_v0 = vpop.f32.mrf.mxu1 }
 0x47a   : > { %v2666_v11 = vpop.f32.mrf.mxu1 }
 0x47b   : > { %v15658_v43 = vadd.f32 %v2666_v11, %v15549_v30 }
 0x47c   : > { %v12391_v40 = vpop.f32.mrf.mxu1 }
 0x47e   : > { %v2671_v23 = vpop.f32.mrf.mxu1  ;;  %12593 = vmatmul.mubr.msk.bf16.gmra.mxu1 %vm1665_vm5, %v3349_v42 }
 0x47f   : > { %v15664_v47 = vadd.f32 %v2671_v23, %v15554_v18  ;;  %12596 = vmatprep.mubr.msk.bf16.mxu1 %vm13878_vm2, %v18665_v52 }
 0x480   : > { %v12394_v24 = vpop.f32.mrf.mxu1 }
 0x482   : > { %v2674_v44 = vpop.f32.mrf.mxu1 }
 0x483   : > { %v15669_v33 = vadd.f32 %v2674_v44, %v15559_v55 }
 0x484   : > { %v12395_v30 = vpop.f32.mrf.mxu1 }
 0x486   : > { %v2679_v54 = vpop.f32.mrf.mxu1  ;;  %12597 = vmatmul.mubr.msk.bf16.gmra.mxu1 %vm1665_vm5, %v3348_v14 }
 0x487   : > { %v15673_v56 = vadd.f32 %v2679_v54, %v15565_v50 }
 0x488   : > { %v12398_v48 = vpop.f32.mrf.mxu1 }
 0x489   : > { %v2874_v48 = vadd.f32 %v18800_v28, %v15627_v4  ;;  %v18803_v4 = vld [vmem:[#allocation36_spill] sm:$0xff] }
 0x48a   : > { %v2682_v5 = vpop.f32.mrf.mxu1 }
 0x48b   : > { %v15676_v18 = vadd.f32 %v2682_v5, %v15570_v36  ;;  %v18793_v36 = vld [vmem:[#allocation11_spill] sm:$0xff] }
 0x48c   : > { %v12399_v3 = vpop.f32.mrf.mxu1  ;;  %v2867_v13 = vadd.f32 %v18793_v36, %v15592_v29  ;;  %v18796_v29 = vld [vmem:[#allocation12_spill] sm:$0xff] }
 0x48d   : > { %v2870_v6 = vadd.f32 %v18796_v29, %v15607_v8  ;;  %v18799_v8 = vld [vmem:[#allocation13_spill] sm:$0xff] }
 0x48e   : > { %v2687_v32 = vpop.f32.mrf.mxu1  ;;  %v2873_v24 = vadd.f32 %v18799_v8, %v15622_v57  ;;  %v18802_v57 = vld [vmem:[#allocation35_spill] sm:$0xff] }
 0x48f   : > { %v15679_v1 = vadd.f32 %v2687_v32, %v15575_v25 }
 0x490   : > { %v12402_v9 = vpop.f32.mrf.mxu1 }
 0x492   : > { %v2690_v55 = vpop.f32.mrf.mxu1 }
 0x493   : > { %v15682_v41 = vadd.f32 %v2690_v55, %v15580_v37 }
 0x494   : > { %v12403_v22 = vpop.f32.mrf.mxu1 }
 0x496   : > { %v2695_v27 = vpop.f32.mrf.mxu1 }
 0x497   : > { %v15685_v50 = vadd.f32 %v2695_v27, %v15585_v45  ;;  %v18795_v45 = vld [vmem:[#allocation26_spill] sm:$0xff] }
 0x498   : > { %v12406_v31 = vpop.f32.mrf.mxu1  ;;  %v2869_v63 = vadd.f32 %v18795_v45, %v15602_v21  ;;  %v18798_v21 = vld [vmem:[#allocation27_spill] sm:$0xff] }
 0x499   : > { %v2872_v40 = vadd.f32 %v18798_v21, %v15617_v7  ;;  %v18801_v7 = vld [vmem:[#allocation34_spill] sm:$0xff]  ;;  %v2876_v31 = vadd.f32 %v18802_v57, %v15637_v46 }
 0x49a   : > { %v2698_v60 = vpop.f32.mrf.mxu1  ;;  %v2875_v9 = vadd.f32 %v18801_v7, %v15632_v10  ;;  %v18804_v10 = vld [vmem:[#allocation37_spill] sm:$0xff]  ;;  %v18805_v46 = vld [vmem:[#allocation38_spill] sm:$0xff]  ;;  %v18810_v7 = vld [vmem:[#allocation43_spill] sm:$0xff] }
 0x49c   : > { %v12407_v26 = vpop.f32.mrf.mxu1 }
 0x49e   : > { %v2996_v38 = vpop.f32.mrf.mxu1 }
 0x49f   : > { %v15689_v62 = vadd.f32 %v2996_v38, %v2867_v13  ;;  %v2877_v13 = vadd.f32 %v18803_v4, %v15642_v39  ;;  %v18806_v39 = vld [vmem:[#allocation39_spill] sm:$0xff]  ;;  %v12778_v4 = vld [vmem:[%s18606_s5 + $0x370] ss:$20 sps:$4 sm:$0xff]  }
 0x4a0   : > { %v12462_v25 = vpop.f32.mrf.mxu1 }
 0x4a2   : > { %v2999_v37 = vpop.f32.mrf.mxu1 }
 0x4a3   : > { %v15693_v35 = vadd.f32 %v2999_v37, %v2868_v49  ;;  %v2878_v49 = vadd.f32 %v18804_v10, %v15647_v2  ;;  %v12759_v2 = vld [vmem:[%s18606_s5 + $0x11c] ss:$20 sps:$4 sm:$0xff]   ;;  %v12783_v10 = vld [vmem:[%s18606_s5 + $0x34c] ss:$20 sps:$4 sm:$0xff]  }
 0x4a4   : > { %v12463_v16 = vpop.f32.mrf.mxu1  ;;  %8798 = vmatprep.subr.bf16.mxu0 %v12759_v2 }
 0x4a6   : > { %v3004_v51 = vpop.f32.mrf.mxu1 }
 0x4a7   : > { %v15697_v12 = vadd.f32 %v3004_v51, %v2869_v63  ;;  %v2879_v63 = vadd.f32 %v18805_v46, %v15652_v58  ;;  %v18807_v58 = vld [vmem:[#allocation40_spill] sm:$0xff] }
 0x4a8   : > { %v12466_v19 = vpop.f32.mrf.mxu1 }
 0x4aa   : > { %v3007_v34 = vpop.f32.mrf.mxu1 }
 0x4ab   : > { %v15701_v61 = vadd.f32 %v3007_v34, %v2870_v6  ;;  %v2880_v6 = vadd.f32 %v18806_v39, %v15658_v43  ;;  %v12789_v39 = vld [vmem:[%s18606_s5 + $0x324] ss:$20 sps:$4 sm:$0xff]  }
 0x4ac   : > { %v12467_v53 = vpop.f32.mrf.mxu1 }
 0x4ad   : > { %v12757_v53 = vld [vmem:[%s18606_s5 + $0x118] ss:$20 sps:$4 sm:$0xff]  }
 0x4ae   : > { %v3012_v0 = vpop.f32.mrf.mxu1  ;;  %8799 = vmatpush1.bf16.msra.mxu0 %v12757_v53 }
 0x4af   : > { %v15705_v14 = vadd.f32 %v3012_v0, %v2871_v17  ;;  %v2881_v0 = vadd.f32 %v18807_v58, %v15664_v47  ;;  %v12760_v47 = vld [vmem:[%s18606_s5 + $0xf0] ss:$20 sps:$4 sm:$0xff]  }
 0x4b0   : > { %v12470_v11 = vpop.f32.mrf.mxu1 }
 0x4b2   : > { %v3015_v59 = vpop.f32.mrf.mxu1 }
 0x4b3   : > { %v15709_v42 = vadd.f32 %v3015_v59, %v2872_v40  ;;  %v18808_v40 = vld [vmem:[#allocation41_spill] sm:$0xff] }
 0x4b4   : > { %v12471_v23 = vpop.f32.mrf.mxu1  ;;  %v2882_v59 = vadd.f32 %v18808_v40, %v15669_v33  ;;  %v12765_v33 = vld [vmem:[%s18606_s5 + $0xcc] ss:$20 sps:$4 sm:$0xff]  }
 0x4b5   : > { %v12786_v40 = vld [vmem:[%s18606_s5 + $0x2c] ss:$20 sps:$4 sm:$0xff]  }
 0x4b6   : > { %v3020_v44 = vpop.f32.mrf.mxu1 }
 0x4b7   : > { %v15713_v30 = vadd.f32 %v3020_v44, %v2873_v24  ;;  %v18809_v44 = vld [vmem:[#allocation42_spill] sm:$0xff] }
 0x4b8   : > { %v12474_v54 = vpop.f32.mrf.mxu1 }
 0x4b9   : > { %v2883_v54 = vadd.f32 %v18809_v44, %v15673_v56  ;;  %v12772_v56 = vld [vmem:[%s18606_s5 + $0x398] ss:$20 sps:$4 sm:$0xff]   ;;  %v12801_v44 = vld [vmem:[%s18606_s5 + $0x2d4] ss:$20 sps:$4 sm:$0xff]  }
 0x4ba   : > { %v3023_v5 = vpop.f32.mrf.mxu1 }
 0x4bb   : > { %v15717_v3 = vadd.f32 %v3023_v5, %v2874_v48  ;;  %v12762_v48 = vld [vmem:[%s18606_s5 + $0xf4] ss:$20 sps:$4 sm:$0xff]  }
 0x4bc   : > { %v12475_v32 = vpop.f32.mrf.mxu1  ;;  %8800 = vmatprep.subr.bf16.mxu0 %v12762_v48  ;;  %v12799_v48 = vld [vmem:[%s18606_s5 + $0x2d0] ss:$20 sps:$4 sm:$0xff]  }
 0x4bd   : > { %8801 = vmatpush1.bf16.msra.mxu0 %v12760_v47 }
 0x4be   : > { %v3028_v55 = vpop.f32.mrf.mxu1  ;;  %8802 = vmatprep.subr.bf16.mxu0 %v12765_v33  ;;  %v12790_v33 = vld [vmem:[%s18606_s5] ss:$20 sps:$4 sm:$0xff]  }
 0x4bf   : > { %v15721_v22 = vadd.f32 %v3028_v55, %v2875_v9  ;;  %v2884_v9 = vadd.f32 %v18810_v7, %v15676_v18  ;;  %v12763_v55 = vld [vmem:[%s18606_s5 + $0xc8] ss:$20 sps:$4 sm:$0xff]  }
 0x4c0   : > { %v12478_v27 = vpop.f32.mrf.mxu1 }
 0x4c1   : > { %v12774_v27 = vld [vmem:[%s18606_s5 + $0x39c] ss:$20 sps:$4 sm:$0xff]   ;;  %8803 = vmatpush1.bf16.msra.mxu0 %v12763_v55 }
 0x4c2   : > { %v3031_v60 = vpop.f32.mrf.mxu1  ;;  %8839 = vmatprep.subr.bf16.mxu1 %v12774_v27  ;;  %v18814_v27 = vld [vmem:[#allocation48_spill] sm:$0xff] }
 0x4c3   : > { %v15725_v26 = vadd.f32 %v3031_v60, %v2876_v31  ;;  %v12768_v31 = vld [vmem:[%s18606_s5 + $0xa4] ss:$20 sps:$4 sm:$0xff]   ;;  %v12780_v60 = vld [vmem:[%s18606_s5 + $0x374] ss:$20 sps:$4 sm:$0xff]   ;;  %8840 = vmatpush1.bf16.msra.mxu1 %v12772_v56  ;;  %v12798_v56 = vld [vmem:[%s18606_s5 + $0x25c] ss:$20 sps:$4 sm:$0xff]  }
 0x4c4   : > { %v12479_v36 = vpop.f32.mrf.mxu1  ;;  %8841 = vmatprep.subr.bf16.mxu1 %v12780_v60  ;;  %8804 = vmatprep.subr.bf16.mxu0 %v12768_v31 }
 0x4c6   : > { %v3036_v38 = vpop.f32.mrf.mxu1 }
 0x4c7   : > { %v15729_v25 = vadd.f32 %v3036_v38, %v2877_v13  ;;  %v18811_v13 = vld [vmem:[#allocation44_spill] sm:$0xff]  ;;  %8842 = vmatpush1.bf16.msra.mxu1 %v12778_v4 }
 0x4c8   : > { %v12482_v20 = vpop.f32.mrf.mxu1  ;;  %v2885_v38 = vadd.f32 %v18811_v13, %v15679_v1  ;;  %v12781_v1 = vld [vmem:[%s18606_s5 + $0x348] ss:$20 sps:$4 sm:$0xff]   ;;  %8843 = vmatprep.subr.bf16.mxu1 %v12783_v10 }
 0x4c9   : > { %v12766_v20 = vld [vmem:[%s18606_s5 + $0xa0] ss:$20 sps:$4 sm:$0xff]  }
 0x4ca   : > { %v3039_v37 = vpop.f32.mrf.mxu1  ;;  %8805 = vmatpush1.bf16.msra.mxu0 %v12766_v20  ;;  %v18816_v20 = vld [vmem:[#allocation47_spill] sm:$0xff] }
 0x4cb   : > { %v15733_v16 = vadd.f32 %v3039_v37, %v2878_v49  ;;  %v12771_v37 = vld [vmem:[%s18606_s5 + $0x7c] ss:$20 sps:$4 sm:$0xff]   ;;  %8844 = vmatpush1.bf16.msra.mxu1 %v12781_v1  ;;  %v3322_v10 = vadd.f32 %v18816_v20, %v15689_v62  ;;  %v18817_v1 = vld [vmem:[#allocation50_spill] sm:$0xff] }
 0x4cc   : > { %v12483_v45 = vpop.f32.mrf.mxu1  ;;  %8806 = vmatprep.subr.bf16.mxu0 %v12771_v37  ;;  %8845 = vmatprep.subr.bf16.mxu1 %v12789_v39  ;;  %v13879_v39 = vmov 1966171168  }
 0x4ce   : > { %v3044_v51 = vpop.f32.mrf.mxu1 }
 0x4cf   : > { %v15737_v19 = vadd.f32 %v3044_v51, %v2879_v63  ;;  %v18812_v63 = vld [vmem:[#allocation45_spill] sm:$0xff] }
 0x4d0   : > { %v12486_v29 = vpop.f32.mrf.mxu1  ;;  %v2886_v51 = vadd.f32 %v18812_v63, %v15682_v41  ;;  %v12787_v41 = vld [vmem:[%s18606_s5 + $0x320] ss:$20 sps:$4 sm:$0xff]   ;;  %v3325_v63 = vadd.f32 %v18817_v1, %v15701_v61 }
 0x4d1   : > { %v12769_v29 = vld [vmem:[%s18606_s5 + $0x78] ss:$20 sps:$4 sm:$0xff]   ;;  %8846 = vmatpush1.bf16.msra.mxu1 %v12787_v41 }
 0x4d2   : > { %v3047_v34 = vpop.f32.mrf.mxu1  ;;  %8807 = vmatpush1.bf16.msra.mxu0 %v12769_v29  ;;  %v3537_v29 = vlaneseq }
 0x4d3   : > { %v15747_v15 = vadd.f32 %v3047_v34, %v2880_v6  ;;  %v12777_v34 = vld [vmem:[%s18606_s5 + $0x54] ss:$20 sps:$4 sm:$0xff]  }
 0x4d4   : > { %v12487_v17 = vpop.f32.mrf.mxu1  ;;  %8808 = vmatprep.subr.bf16.mxu0 %v12777_v34  ;;  %vm15893_vm11 = vcmp.lt.s32.totalorder %v3537_v29, 64  ;;  %vm3561_vm12 = vcmp.ge.s32.totalorder %v3537_v29, 64  ;;  %vm3562_vm13 = vcmp.lt.s32.totalorder %v3537_v29, 128 }
 0x4d5   : > { %v18813_v17 = vld [vmem:[#allocation46_spill] sm:$0xff]  ;;  %vm16144_vm14 = vmand %vm3561_vm12, %vm3562_vm13 }
 0x4d6   : > { %v3052_v11 = vpop.f32.mrf.mxu1  ;;  %v2887_v58 = vadd.f32 %v18813_v17, %v15685_v50  ;;  %v12793_v50 = vld [vmem:[%s18606_s5 + $0x2f8] ss:$20 sps:$4 sm:$0xff]  }
 0x4d7   : > { %v15751_v21 = vadd.f32 %v3052_v11, %v2881_v0  ;;  %v12775_v0 = vld [vmem:[%s18606_s5 + $0x50] ss:$20 sps:$4 sm:$0xff]  }
 0x4d8   : > { %v12490_v43 = vpop.f32.mrf.mxu1  ;;  %v12795_v11 = vld [vmem:[%s18606_s5 + $0x2fc] ss:$20 sps:$4 sm:$0xff]   ;;  %8809 = vmatpush1.bf16.msra.mxu0 %v12775_v0 }
 0x4d9   : > { %8847 = vmatprep.subr.bf16.mxu1 %v12795_v11  ;;  %8810 = vmatprep.subr.bf16.mxu0 %v12786_v40  ;;  %v15877_v11 = vshrl.u32 %v3537_v29, 7  ;;  %v12802_v40 = vld [vmem:[%s18606_s5 + $0x2a8] ss:$20 sps:$4 sm:$0xff]  }
 0x4da   : > { %v3055_v23 = vpop.f32.mrf.mxu1  ;;  %8848 = vmatpush1.bf16.msra.mxu1 %v12793_v50 }
 0x4db   : > { %v15755_v8 = vadd.f32 %v3055_v23, %v2882_v59  ;;  %8849 = vmatprep.subr.bf16.mxu1 %v12801_v44 }
 0x4dc   : > { %v12491_v24 = vpop.f32.mrf.mxu1 }
 0x4dd   : > { %v12784_v24 = vld [vmem:[%s18606_s5 + $0x28] ss:$20 sps:$4 sm:$0xff]  }
 0x4de   : > { %v3060_v28 = vpop.f32.mrf.mxu1  ;;  %8811 = vmatpush1.bf16.msra.mxu0 %v12784_v24  ;;  %8850 = vmatpush1.bf16.msra.mxu1 %v12799_v48 }
 0x4df   : > { %v15765_v5 = vadd.f32 %v3060_v28, %v2883_v54  ;;  %v12792_v28 = vld [vmem:[%s18606_s5 + $0x4] ss:$20 sps:$4 sm:$0xff]  }
 0x4e0   : > { %v12494_v32 = vpop.f32.mrf.mxu1  ;;  %8812 = vmatprep.subr.bf16.mxu0 %v12792_v28 }
 0x4e2   : > { %v3063_v57 = vpop.f32.mrf.mxu1  ;;  %8813 = vmatpush1.bf16.msra.mxu0 %v12790_v33 }
 0x4e3   : > { %v15787_v18 = vadd.f32 %v3063_v57, %v2884_v9  ;;  %v12796_v9 = vld [vmem:[%s18606_s5 + $0x258] ss:$20 sps:$4 sm:$0xff]   ;;  %8814 = vmatprep.subr.bf16.mxu0 %v12798_v56  ;;  %v3323_v57 = vadd.f32 %v18814_v27, %v15693_v35 }
 0x4e4   : > { %v12495_v36 = vpop.f32.mrf.mxu1 }
 0x4e5   : > { %v18815_v36 = vld [vmem:[#allocation49_spill] sm:$0xff] }
 0x4e6   : > { %v3068_v49 = vpop.f32.mrf.mxu1  ;;  %v3324_v4 = vadd.f32 %v18815_v36, %v15697_v12  ;;  %8815 = vmatpush2.bf16.msra.mxu0 %v12796_v9  ;;  %v15872_v12 = vld [vmem:[%s18605_s4] ss:$0 sm:$0xff]  ;;  %v12805_v9 = vld [vmem:[%s18606_s5 + $0x230] ss:$20 sps:$4 sm:$0xff]  }
 0x4e7   : > { %v15803_v45 = vadd.f32 %v3068_v49, %v2885_v38 }
 0x4e8   : > { %v12498_v46 = vpop.f32.mrf.mxu1 }
 0x4ea   : > { %v3071_v6 = vpop.f32.mrf.mxu1 }
 0x4eb   : > { %v15819_v53 = vadd.f32 %v3071_v6, %v2886_v51  ;;  %v3544_v6 = vunpack.c.l.s4 %v13879_v39 }
 0x4ec   : > { %v12499_v2 = vpop.f32.mrf.mxu1 }
 0x4ed   : > { %v3545_v61 = vunpack.c.0.s8 %v3544_v6 }
 0x4ee   : > { %v3076_v43 = vpop.f32.mrf.mxu1 }
 0x4ef   : > { %v15835_v59 = vadd.f32 %v3076_v43, %v2887_v58  ;;  %v15889_v33 = vsub.s32 %v3545_v61, %v15877_v11 }
 0x4f0   : > { %v12502_v23 = vpop.f32.mrf.mxu1 }
 0x4f1   : > { %v12804_v23 = vld [vmem:[%s18606_s5 + $0x2ac] ss:$20 sps:$4 sm:$0xff]  }
 0x4f2   : > { %v3079_v54 = vpop.f32.mrf.mxu1  ;;  %8851 = vmatprep.subr.bf16.mxu1 %v12804_v23 }
 0x4f3   : > { %v18818_v54 = vld [vmem:[#allocation52_spill] sm:$0xff]  ;;  %8852 = vmatpush1.bf16.msra.mxu1 %v12802_v40 }
 0x4f4   : > { %v12503_v47 = vpop.f32.mrf.mxu1  ;;  %v3327_v28 = vadd.f32 %v18818_v54, %v15709_v42  ;;  %v12807_v42 = vld [vmem:[%s18606_s5 + $0x234] ss:$20 sps:$4 sm:$0xff]   ;;  %v12817_v54 = vld [vmem:[%s18606_s5 + $0x4b0] ss:$20 sps:$4 sm:$0xff]  }
 0x4f5   : > { %8816 = vmatprep.subr.bf16.mxu0 %v12807_v42 }
 0x4f6   : > { %v3402_v32 = vpop.f32.mrf.mxu1  ;;  %8817 = vmatpush2.bf16.msra.mxu0 %v12805_v9 }
 0x4f7   : > { %v3488_v51 = vadd.f32 %v3402_v32, %v3322_v10 }
 0x4f8   : > { %v12558_v7 = vpop.f32.mrf.mxu1 }
 0x4fa   : > { %v3405_v55 = vpop.f32.mrf.mxu1 }
 0x4fb   : > { %v3489_v60 = vadd.f32 %v3405_v55, %v3323_v57  ;;  %v12808_v55 = vld [vmem:[%s18606_s5 + $0x280] ss:$20 sps:$4 sm:$0xff]  }
 0x4fc   : > { %v12559_v31 = vpop.f32.mrf.mxu1 }
 0x4fd   : > { %v3514_v37 = vrot.slane %v3489_v60, 6 }
 0x4fe   : > { %v3410_v13 = vpop.f32.mrf.mxu1 }
 0x4ff   : > { %v3490_v38 = vadd.f32 %v3410_v13, %v3324_v4  ;;  %v18821_v4 = vld [vmem:[#allocation53_spill] sm:$0xff] }
 0x500   : > { %v12562_v49 = vpop.f32.mrf.mxu1  ;;  %v3328_v13 = vadd.f32 %v18821_v4, %v15713_v30  ;;  %v12816_v30 = vld [vmem:[%s18606_s5 + $0x4dc] ss:$20 sps:$4 sm:$0xff]  }
 0x501   : > { %v3515_v46 = vrot.slane %v3490_v38, 6  ;;  %v12813_v38 = vld [vmem:[%s18606_s5 + $0x20c] ss:$20 sps:$4 sm:$0xff]  }
 0x502   : > { %v3413_v35 = vpop.f32.mrf.mxu1  ;;  %8818 = vmatprep.subr.bf16.mxu0 %v12813_v38  ;;  %v18824_v38 = vld [vmem:[#allocation56_spill] sm:$0xff] }
 0x503   : > { %v3516_v34 = vsel %vm3513_vm10, %v3514_v37, %v3515_v46  ;;  %v3491_v62 = vadd.f32 %v3413_v35, %v3325_v63  ;;  %v18822_v35 = vld [vmem:[#allocation51_spill] sm:$0xff] }
 0x504   : > { %v3521_v2 = vmax.f32 %v3488_v51, %v3516_v34  ;;  %v12563_v41 = vpop.f32.mrf.mxu1  ;;  %v12814_v51 = vld [vmem:[%s18606_s5 + $0x4d8] ss:$20 sps:$4 sm:$0xff]   ;;  %v3326_v39 = vadd.f32 %v18822_v35, %v15705_v14 }
 0x505   : > { %v3517_v17 = vrot.slane %v3491_v62, 6 }
 0x506   : > { %v3529_v58 = vadd.f32 %v15872_v12, %v3521_v2  ;;  %v3418_v0 = vpop.f32.mrf.mxu1 }
 0x507   : > { %v3518_v43 = vsel %vm3513_vm10, %v3515_v46, %v3517_v17  ;;  %v12811_v46 = vld [vmem:[%s18606_s5 + $0x208] ss:$20 sps:$4 sm:$0xff]  }
 0x508   : > { %v3531_v50 = vmax.f32 %v3529_v58, 0.0  ;;  %v3522_v24 = vmax.f32 %v3489_v60, %v3518_v43  ;;  %v12566_v44 = vpop.f32.mrf.mxu1  ;;  %v12810_v60 = vld [vmem:[%s18606_s5 + $0x284] ss:$20 sps:$4 sm:$0xff]   ;;  %v3492_v58 = vadd.f32 %v3418_v0, %v3326_v39  ;;  %8819 = vmatpush2.bf16.msra.mxu0 %v12811_v46 }
 0x509   : > { %8853 = vmatprep.subr.bf16.mxu1 %v12810_v60  ;;  %v12826_v46 = vld [vmem:[%s18606_s5 + $0x1b8] ss:$20 sps:$4 sm:$0xff]  }
 0x50a   : > { %v3421_v47 = vpop.f32.mrf.mxu1  ;;  %v3534_v48 = vrot.slane %v3531_v50, 1  ;;  %v3530_v32 = vadd.f32 %v15872_v12, %v3522_v24  ;;  %8854 = vmatpush1.bf16.msra.mxu1 %v12808_v55 }
 0x50b   : > { %v3493_v7 = vadd.f32 %v3421_v47, %v3327_v28  ;;  %8855 = vmatprep.subr.bf16.mxu1 %v12816_v30  ;;  %v12819_v28 = vld [vmem:[%s18606_s5 + $0x4b4] ss:$20 sps:$4 sm:$0xff]   ;;  %v12828_v30 = vld [vmem:[%s18606_s5 + $0x1bc] ss:$20 sps:$4 sm:$0xff]  }
 0x50c   : > { %v12567_v27 = vpop.f32.mrf.mxu1  ;;  %v3536_v57 = vmax.f32 %v3531_v50, %v3534_v48  ;;  %v3532_v31 = vmax.f32 %v3530_v32, 0.0  ;;  %v12820_v48 = vld [vmem:[%s18606_s5 + $0x1e0] ss:$20 sps:$4 sm:$0xff]   ;;  %v12822_v32 = vld [vmem:[%s18606_s5 + $0x1e4] ss:$20 sps:$4 sm:$0xff]  }
 0x50d   : > { %v3614_v36 = vrot.slane %v3493_v7, 6  ;;  %8820 = vmatprep.subr.bf16.mxu0 %v12822_v32 }
 0x50e   : > { %v3426_v20 = vpop.f32.mrf.mxu1  ;;  %v3549_v10 = vrot.slane %v3536_v57, %v15889_v33  ;;  %v3565_v49 = vcombine.high %v3536_v57, %v3536_v57  ;;  %v3588_v37 = vrot.slane %v3532_v31, 1  ;;  %3541 = vst.msk [vmem:[#allocation2] sm:$0x1] %vm15893_vm11, %v3536_v57  ;;  %8856 = vmatpush2.bf16.msra.mxu1 %v12814_v51  ;;  %v18823_v57 = vld [vmem:[#allocation55_spill] sm:$0xff]  ;;  %8821 = vmatpush2.bf16.msra.mxu0 %v12820_v48  ;;  %v18825_v51 = vld [vmem:[#allocation54_spill] sm:$0xff] }
 0x50f   : > { %v3619_v1 = vmax.f32 %v3491_v62, %v3614_v36  ;;  %v3494_v63 = vadd.f32 %v3426_v20, %v3328_v13  ;;  %8857 = vmatprep.subr.bf16.mxu1 %v12819_v28  ;;  %v3331_v20 = vadd.f32 %v18824_v38, %v15725_v26  ;;  %v3329_v35 = vadd.f32 %v18825_v51, %v15717_v3  ;;  %v12835_v48 = vld [vmem:[%s18606_s5 + $0x438] ss:$20 sps:$4 sm:$0xff]   ;;  %v12844_v51 = vld [vmem:[%s18606_s5 + $0x3e8] ss:$20 sps:$4 sm:$0xff]  }
 0x510   : > { %v12570_v6 = vpop.f32.mrf.mxu1  ;;  %v3556_v34 = vrot.slane %v3549_v10, %v15889_v33  ;;  %v3572_v2 = vrot.slane %v3565_v49, %v15889_v33  ;;  %v3590_v41 = vmax.f32 %v3532_v31, %v3588_v37  ;;  %v3330_v31 = vadd.f32 %v18823_v57, %v15721_v22  ;;  %v12823_v10 = vld [vmem:[%s18606_s5 + $0x488] ss:$20 sps:$4 sm:$0xff]   ;;  %v12825_v22 = vld [vmem:[%s18606_s5 + $0x48c] ss:$20 sps:$4 sm:$0xff]   ;;  %8822 = vmatprep.subr.bf16.mxu0 %v12828_v30 }
 0x511   : > { %v3621_v17 = vadd.f32 %v15872_v12, %v3619_v1  ;;  %v3615_v62 = vrot.slane %v3494_v63, 6  ;;  %v12831_v63 = vld [vmem:[%s18606_s5 + $0x464] ss:$20 sps:$4 sm:$0xff]   ;;  %v12846_v30 = vld [vmem:[%s18606_s5 + $0x3ec] ss:$20 sps:$4 sm:$0xff]  }
 0x512   : > { %v3429_v61 = vpop.f32.mrf.mxu1  ;;  %v3557_v43 = vcombine.high %v3556_v34, %v3556_v34  ;;  %v3579_v40 = vrot.slane %v3572_v2, %v15889_v33  ;;  %v3599_v23 = vrot.slane %v3590_v41, %v15889_v33  ;;  %3591 = vst.msk [vmem:[#allocation2 + $0x2] sm:$0x1] %vm15893_vm11, %v3590_v41  ;;  %8858 = vmatpush2.bf16.msra.mxu1 %v12817_v54  ;;  %v12829_v34 = vld [vmem:[%s18606_s5 + $0x460] ss:$20 sps:$4 sm:$0xff]  }
 0x513   : > { %v3623_v14 = vmax.f32 %v3621_v17, 0.0  ;;  %v3616_v50 = vsel %vm3513_vm10, %v3614_v36, %v3615_v62  ;;  %8859 = vmatprep.subr.bf16.mxu1 %v12825_v22  ;;  %v12834_v2 = vld [vmem:[%s18606_s5 + $0x194] ss:$20 sps:$4 sm:$0xff]   ;;  %v18826_v62 = vld [vmem:[#allocation57_spill] sm:$0xff]  ;;  %8823 = vmatpush2.bf16.msra.mxu0 %v12826_v46 }
 0x514   : > { %v3620_v24 = vmax.f32 %v3492_v58, %v3616_v50  ;;  %v12571_v44 = vpop.f32.mrf.mxu1  ;;  %3558 = vrot.lane.b32.xlu0 %v3557_v43, %s13880_s22  ;;  %v3606_v0 = vrot.slane %v3599_v23, %v15889_v33  ;;  %3581 = vst.msk [vmem:[#allocation2 + $0x1] sm:$0x1] %vm15893_vm11, %v3579_v40  ;;  %v3582_v42 = vcombine.high %v3579_v40, %v3579_v40  ;;  %v12837_v43 = vld [vmem:[%s18606_s5 + $0x43c] ss:$20 sps:$4 sm:$0xff]  }
 0x515   : > { %v3626_v47 = vrot.slane %v3623_v14, 1  ;;  %v3332_v58 = vadd.f32 %v18826_v62, %v15729_v25  ;;  %v3495_v40 = vadd.f32 %v3429_v61, %v3329_v35  ;;  %v12832_v25 = vld [vmem:[%s18606_s5 + $0x190] ss:$20 sps:$4 sm:$0xff]   ;;  %8824 = vmatprep.subr.bf16.mxu0 %v12834_v2  ;;  %v12847_v2 = vld [vmem:[%s18606_s5 + $0x140] ss:$20 sps:$4 sm:$0xff]  }
 0x516   : > { %v3622_v7 = vadd.f32 %v15872_v12, %v3620_v24  ;;  %v3434_v9 = vpop.f32.mrf.mxu1  ;;  %v3607_v55 = vcombine.high %v3606_v0, %v3606_v0  ;;  %8860 = vmatpush2.bf16.msra.mxu1 %v12823_v10  ;;  %v12840_v10 = vld [vmem:[%s18606_s5 + $0x414] ss:$20 sps:$4 sm:$0xff]   ;;  %v12849_v35 = vld [vmem:[%s18606_s5 + $0x144] ss:$20 sps:$4 sm:$0xff]  }
 0x517   : > { %v3628_v27 = vmax.f32 %v3623_v14, %v3626_v47  ;;  %v15957_v13 = vadd.f32 %v3434_v9, %v3330_v31  ;;  %8861 = vmatprep.subr.bf16.mxu1 %v12831_v63  ;;  %8825 = vmatpush2.bf16.msra.mxu0 %v12832_v25 }
 0x518   : > { %v3624_v60 = vmax.f32 %v3622_v7, 0.0  ;;  %v12574_v36 = vpop.f32.mrf.mxu1  ;;  %3583 = vrot.lane.b32.xlu0 %v3582_v42, %s13880_s22  ;;  %3608 = vrot.lane.b32.xlu1 %v3607_v55, %s13880_s22 }
 0x519   : > { %v3630_v4 = vcombine.high %v3628_v27, %v3628_v27  ;;  %v3702_v41 = vrot.slane %v15957_v13, 6 }
 0x51a   : > { %v3653_v49 = vrot.slane %v3624_v60, 1  ;;  %v3437_v37 = vpop.f32.mrf.mxu1  ;;  %8862 = vmatpush2.bf16.msra.mxu1 %v12829_v34 }
 0x51b   : > { %v3497_v26 = vadd.f32 %v3437_v37, %v3331_v20  ;;  %v3637_v1 = vrot.slane %v3630_v4, %v15889_v33  ;;  %8863 = vmatprep.subr.bf16.mxu1 %v12837_v43  ;;  %v18827_v4 = vld [vmem:[#allocation61_spill] sm:$0xff] }
 0x51c   : > { %v12575_v39 = vpop.f32.mrf.mxu1  ;;  %v3655_v6 = vmax.f32 %v3624_v60, %v3653_v49  ;;  %v3334_v38 = vadd.f32 %v18827_v4, %v15737_v19  ;;  %v12838_v20 = vld [vmem:[%s18606_s5 + $0x410] ss:$20 sps:$4 sm:$0xff]   ;;  %v12843_v19 = vld [vmem:[%s18606_s5 + $0x16c] ss:$20 sps:$4 sm:$0xff]  }
 0x51d   : > { %v3703_v17 = vrot.slane %v3497_v26, 6  ;;  %v3644_v3 = vrot.slane %v3637_v1, %v15889_v33  ;;  %8826 = vmatprep.subr.bf16.mxu0 %v12843_v19 }
 0x51e   : > { %v3442_v23 = vpop.f32.mrf.mxu1  ;;  %v3664_v14 = vrot.slane %v3655_v6, %v15889_v33  ;;  %v3677_v50 = vcombine.high %v3655_v6, %v3655_v6  ;;  %3656 = vst.msk [vmem:[#allocation2 + $0x4] sm:$0x1] %vm15893_vm11, %v3655_v6  ;;  %8864 = vmatpush2.bf16.msra.mxu1 %v12835_v48  ;;  %v18828_v6 = vld [vmem:[#allocation62_spill] sm:$0xff] }
 0x51f   : > { %v3704_v24 = vsel %vm3513_vm10, %v3702_v41, %v3703_v17  ;;  %v3498_v44 = vadd.f32 %v3442_v23, %v3332_v58  ;;  %v3647_v0 = vcombine.high %v3644_v3, %v3644_v3  ;;  %3646 = vst.msk [vmem:[#allocation2 + $0x3] sm:$0x1] %vm15893_vm11, %v3644_v3  ;;  %8865 = vmatprep.subr.bf16.mxu1 %v12840_v10  ;;  %v12852_v41 = vld [vmem:[%s18606_s5 + $0x3c4] ss:$20 sps:$4 sm:$0xff]  }
 0x520   : > { %v3709_v61 = vmax.f32 %v3495_v40, %v3704_v24  ;;  %v12578_v54 = vpop.f32.mrf.mxu1  ;;  %v3671_v28 = vrot.slane %v3664_v14, %v15889_v33  ;;  %v3684_v47 = vrot.slane %v3677_v50, %v15889_v33  ;;  %v3335_v34 = vadd.f32 %v18828_v6, %v15747_v15  ;;  %v18829_v40 = vld [vmem:[#allocation58_spill] sm:$0xff]  ;;  %v18830_v10 = vld [vmem:[#allocation64_spill] sm:$0xff] }
 0x521   : > { %v3705_v32 = vrot.slane %v3498_v44, 6  ;;  %3648 = vrot.lane.b32.xlu1 %v3647_v0, %s13880_s22  ;;  %v3333_v23 = vadd.f32 %v18829_v40, %v15733_v16  ;;  %v12850_v0 = vld [vmem:[%s18606_s5 + $0x3c0] ss:$20 sps:$4 sm:$0xff]  }
 0x522   : > { %v3711_v7 = vadd.f32 %v15872_v12, %v3709_v61  ;;  %v3445_v9 = vpop.f32.mrf.mxu1  ;;  %v3672_v42 = vcombine.high %v3671_v28, %v3671_v28  ;;  %v3691_v55 = vrot.slane %v3684_v47, %v15889_v33  ;;  %8866 = vmatpush2.bf16.msra.mxu1 %v12838_v20 }
 0x523   : > { %v3706_v27 = vsel %vm3513_vm10, %v3703_v17, %v3705_v32  ;;  %8867 = vmatprep.subr.bf16.mxu1 %v12846_v30 }
 0x524   : > { %v3713_v57 = vmax.f32 %v3711_v7, 0.0  ;;  %v3710_v31 = vmax.f32 %v15957_v13, %v3706_v27  ;;  %v12579_v60 = vpop.f32.mrf.mxu1  ;;  %3673 = vrot.lane.b32.xlu0 %v3672_v42, %s13880_s22  ;;  %v3694_v36 = vcombine.high %v3691_v55, %v3691_v55  ;;  %3693 = vst.msk [vmem:[#allocation2 + $0x5] sm:$0x1] %vm15893_vm11, %v3691_v55  ;;  %v12841_v13 = vld [vmem:[%s18606_s5 + $0x168] ss:$20 sps:$4 sm:$0xff]  }
 0x525   : > { %8827 = vmatpush2.bf16.msra.mxu0 %v12841_v13  ;;  %v3337_v13 = vadd.f32 %v18830_v10, %v15755_v8 }
 0x526   : > { %v3716_v22 = vrot.slane %v3713_v57, 1  ;;  %v3712_v49 = vadd.f32 %v15872_v12, %v3710_v31  ;;  %v3450_v37 = vpop.f32.mrf.mxu1  ;;  %3695 = vrot.lane.b32.xlu1 %v3694_v36, %s13880_s22  ;;  %8828 = vmatprep.subr.bf16.mxu0 %v12849_v35  ;;  %v12855_v31 = vld [vmem:[%s18606_s5 + $0x61c] ss:$20 sps:$4 sm:$0xff]  }
 0x527   : > { %v3500_v46 = vadd.f32 %v3450_v37, %v3334_v38  ;;  %8868 = vmatpush2.bf16.msra.mxu1 %v12844_v51  ;;  %v12858_v38 = vld [vmem:[%s18606_s5 + $0x89c] ss:$20 sps:$4 sm:$0xff]  }
 0x528   : > { %v12582_v26 = vpop.f32.mrf.mxu1  ;;  %v3718_v1 = vmax.f32 %v3713_v57, %v3716_v22  ;;  %v3714_v63 = vmax.f32 %v3712_v49, 0.0  ;;  %8869 = vmatprep.subr.bf16.mxu1 %v12852_v41  ;;  %v18832_v35 = vld [vmem:[#allocation63_spill] sm:$0xff]  ;;  %v18833_v41 = vld [vmem:[#allocation30_spill] sm:$0xff] }
 0x529   : > { %v3789_v39 = vrot.slane %v3500_v46, 6  ;;  %8829 = vmatpush2.bf16.msra.mxu0 %v12847_v2  ;;  %v18831_v46 = vld [vmem:[#allocation65_spill] sm:$0xff] }
 0x52a   : > { %v3453_v17 = vpop.f32.mrf.mxu1  ;;  %v3727_v62 = vrot.slane %v3718_v1, %v15889_v33  ;;  %v3740_v58 = vcombine.high %v3718_v1, %v3718_v1  ;;  %v3763_v3 = vrot.slane %v3714_v63, 1  ;;  %3719 = vst.msk [vmem:[#allocation2 + $0x6] sm:$0x1] %vm15893_vm11, %v3718_v1  ;;  %8880 = vmatprep.subr.bf16.mxu0 %v12855_v31  ;;  %v3338_v30 = vadd.f32 %v18831_v46, %v15765_v5 }
 0x52b   : > { %v3794_v15 = vmax.f32 %v3498_v44, %v3789_v39  ;;  %v3501_v43 = vadd.f32 %v3453_v17, %v3335_v34  ;;  %v3499_v44 = vadd.f32 %v3445_v9, %v3333_v23  ;;  %8870 = vmatpush2.bf16.msra.mxu1 %v12850_v0  ;;  %v3339_v17 = vadd.f32 %v18833_v41, %v15787_v18 }
 0x52c   : > { %v12583_v14 = vpop.f32.mrf.mxu1  ;;  %v3734_v50 = vrot.slane %v3727_v62, %v15889_v33  ;;  %v3747_v25 = vrot.slane %v3740_v58, %v15889_v33  ;;  %v3765_v24 = vmax.f32 %v3714_v63, %v3763_v3  ;;  %8921 = vmatprep.subr.bf16.mxu1 %v12858_v38 }
 0x52d   : > { %v3796_v61 = vadd.f32 %v15872_v12, %v3794_v15  ;;  %v3790_v54 = vrot.slane %v3501_v43, 6 }
 0x52e   : > { %v3458_v28 = vpop.f32.mrf.mxu1  ;;  %v3735_v47 = vcombine.high %v3734_v50, %v3734_v50  ;;  %v3754_v16 = vrot.slane %v3747_v25, %v15889_v33  ;;  %v3774_v48 = vrot.slane %v3765_v24, %v15889_v33  ;;  %3766 = vst.msk [vmem:[#allocation2 + $0x8] sm:$0x1] %vm15893_vm11, %v3765_v24 }
 0x52f   : > { %v3798_v32 = vmax.f32 %v3796_v61, 0.0  ;;  %v3791_v7 = vsel %vm3513_vm10, %v3789_v39, %v3790_v54  ;;  %v3336_v39 = vadd.f32 %v18832_v35, %v15751_v21 }
 0x530   : > { %v3795_v42 = vmax.f32 %v3499_v44, %v3791_v7  ;;  %v12586_v55 = vpop.f32.mrf.mxu1  ;;  %3736 = vrot.lane.b32.xlu0 %v3735_v47, %s13880_s22  ;;  %v3757_v27 = vcombine.high %v3754_v16, %v3754_v16  ;;  %v3781_v57 = vrot.slane %v3774_v48, %v15889_v33  ;;  %3756 = vst.msk [vmem:[#allocation2 + $0x7] sm:$0x1] %vm15893_vm11, %v3754_v16 }
 0x531   : > { %v3801_v9 = vrot.slane %v3798_v32, 1  ;;  %v3502_v58 = vadd.f32 %v3458_v28, %v3336_v39 }
 0x532   : > { %v3797_v60 = vadd.f32 %v15872_v12, %v3795_v42  ;;  %v3461_v36 = vpop.f32.mrf.mxu1  ;;  %3758 = vrot.lane.b32.xlu1 %v3757_v27, %s13880_s22  ;;  %v3782_v4 = vcombine.high %v3781_v57, %v3781_v57 }
 0x533   : > { %v3803_v20 = vmax.f32 %v3798_v32, %v3801_v9  ;;  %v3503_v19 = vadd.f32 %v3461_v36, %v3337_v13  ;;  %v18834_v32 = vld [vmem:[#allocation32_spill] sm:$0xff] }
 0x534   : > { %v3799_v22 = vmax.f32 %v3797_v60, 0.0  ;;  %v12587_v49 = vpop.f32.mrf.mxu1  ;;  %3783 = vrot.lane.b32.xlu0 %v3782_v4, %s13880_s22  ;;  %v3341_v7 = vadd.f32 %v18834_v32, %v15819_v53  ;;  %v18835_v4 = vld [vmem:[#allocation67_spill] sm:$0xff] }
 0x535   : > { %v3805_v37 = vcombine.high %v3803_v20, %v3803_v20  ;;  %v3877_v34 = vrot.slane %v3503_v19, 6  ;;  %v3342_v38 = vadd.f32 %v18835_v4, %v15835_v59 }
 0x536   : > { %v3828_v26 = vrot.slane %v3799_v22, 1  ;;  %v3466_v1 = vpop.f32.mrf.mxu1 }
 0x537   : > { %v3504_v63 = vadd.f32 %v3466_v1, %v3338_v30  ;;  %v3812_v51 = vrot.slane %v3805_v37, %v15889_v33  ;;  %v18836_v37 = vld [vmem:[#allocation66_spill] sm:$0xff] }
 0x538   : > { %v12590_v8 = vpop.f32.mrf.mxu1  ;;  %v3830_v6 = vmax.f32 %v3799_v22, %v3828_v26 }
 0x539   : > { %v3878_v2 = vrot.slane %v3504_v63, 6  ;;  %v3819_v62 = vrot.slane %v3812_v51, %v15889_v33 }
 0x53a   : > { %v3469_v3 = vpop.f32.mrf.mxu1  ;;  %v3839_v5 = vrot.slane %v3830_v6, %v15889_v33  ;;  %v3852_v15 = vcombine.high %v3830_v6, %v3830_v6  ;;  %3831 = vst.msk [vmem:[#allocation2 + $0xa] sm:$0x1] %vm15893_vm11, %v3830_v6 }
 0x53b   : > { %v3879_v43 = vsel %vm3513_vm10, %v3877_v34, %v3878_v2  ;;  %v3505_v21 = vadd.f32 %v3469_v3, %v3339_v17  ;;  %v3822_v40 = vcombine.high %v3819_v62, %v3819_v62  ;;  %3821 = vst.msk [vmem:[#allocation2 + $0x9] sm:$0x1] %vm15893_vm11, %v3819_v62 }
 0x53c   : > { %v3884_v23 = vmax.f32 %v3502_v58, %v3879_v43  ;;  %v12591_v14 = vpop.f32.mrf.mxu1  ;;  %v3846_v18 = vrot.slane %v3839_v5, %v15889_v33  ;;  %v3859_v50 = vrot.slane %v3852_v15, %v15889_v33 }
 0x53d   : > { %v3880_v25 = vrot.slane %v3505_v21, 6  ;;  %3823 = vrot.lane.b32.xlu1 %v3822_v40, %s13880_s22 }
 0x53e   : > { %v3886_v24 = vadd.f32 %v15872_v12, %v3884_v23  ;;  %v3474_v0 = vpop.f32.mrf.mxu1  ;;  %v3847_v61 = vcombine.high %v3846_v18, %v3846_v18  ;;  %v3866_v54 = vrot.slane %v3859_v50, %v15889_v33 }
 0x53f   : > { %v3881_v44 = vsel %vm3513_vm10, %v3878_v2, %v3880_v25 }
 0x540   : > { %v3888_v28 = vmax.f32 %v3886_v24, 0.0  ;;  %v3885_v47 = vmax.f32 %v3503_v19, %v3881_v44  ;;  %v12594_v16 = vpop.f32.mrf.mxu1  ;;  %3848 = vrot.lane.b32.xlu0 %v3847_v61, %s13880_s22  ;;  %v3869_v48 = vcombine.high %v3866_v54, %v3866_v54  ;;  %3868 = vst.msk [vmem:[#allocation2 + $0xb] sm:$0x1] %vm15893_vm11, %v3866_v54  ;;  %v3340_v19 = vadd.f32 %v18836_v37, %v15803_v45 }
 0x542   : > { %v3891_v42 = vrot.slane %v3888_v28, 1  ;;  %v3887_v55 = vadd.f32 %v15872_v12, %v3885_v47  ;;  %v3477_v27 = vpop.f32.mrf.mxu1  ;;  %3870 = vrot.lane.b32.xlu1 %v3869_v48, %s13880_s22  ;;  %v3506_v51 = vadd.f32 %v3474_v0, %v3340_v19  ;;  %v12853_v19 = vld [vmem:[%s18606_s5 + $0x618] ss:$20 sps:$4 sm:$0xff]  }
 0x543   : > { %v3507_v57 = vadd.f32 %v3477_v27, %v3341_v7  ;;  %v16170_v27 = vsub.s32 3, %v15877_v11 }
 0x544   : > { %v12595_v9 = vpop.f32.mrf.mxu1  ;;  %v3893_v31 = vmax.f32 %v3888_v28, %v3891_v42  ;;  %v3889_v60 = vmax.f32 %v3887_v55, 0.0  ;;  %v16167_v55 = vsub.s32 1, %v15877_v11  ;;  %v12918_v28 = vld [vmem:[%s18606_s5 + $0x98c] ss:$20 sps:$4 sm:$0xff]  }
 0x545   : > { %v3964_v36 = vrot.slane %v3507_v57, 6  ;;  %v16173_v57 = vsub.s32 0, %v15877_v11  ;;  %v16176_v9 = vsub.s32 2, %v15877_v11 }
 0x546   : > { %v3482_v20 = vpop.f32.mrf.mxu1  ;;  %v3902_v10 = vrot.slane %v3893_v31, %v15889_v33  ;;  %v3915_v13 = vcombine.high %v3893_v31, %v3893_v31  ;;  %v3938_v22 = vrot.slane %v3889_v60, 1  ;;  %3894 = vst.msk [vmem:[#allocation2 + $0xc] sm:$0x1] %vm15893_vm11, %v3893_v31  ;;  %v4077_v31 = vsub.s32 5, %v15877_v11 }
 0x547   : > { %v3969_v53 = vmax.f32 %v3505_v21, %v3964_v36  ;;  %v3508_v49 = vadd.f32 %v3482_v20, %v3342_v38 }
 0x548   : > { %v12598_v46 = vpop.f32.mrf.mxu1  ;;  %v3909_v30 = vrot.slane %v3902_v10, %v15889_v33  ;;  %v3922_v26 = vrot.slane %v3915_v13, %v15889_v33  ;;  %v3940_v1 = vmax.f32 %v3889_v60, %v3938_v22  ;;  %v4085_v60 = vsub.s32 7, %v15877_v11 }
 0x549   : > { %v3971_v59 = vadd.f32 %v15872_v12, %v3969_v53  ;;  %v3965_v63 = vrot.slane %v3508_v49, 6  ;;  %v12856_v46 = vld [vmem:[%s18606_s5 + $0x898] ss:$20 sps:$4 sm:$0xff]  }
 0x54a   : > { %v3485_v35 = vpop.f32.mrf.mxu1  ;;  %v3910_v39 = vcombine.high %v3909_v30, %v3909_v30  ;;  %v3929_v8 = vrot.slane %v3922_v26, %v15889_v33  ;;  %v3949_v6 = vrot.slane %v3940_v1, %v15889_v33  ;;  %3941 = vst.msk [vmem:[#allocation2 + $0xe] sm:$0x1] %vm15893_vm11, %v3940_v1  ;;  %v12861_v1 = vld [vmem:[%s18606_s5 + $0x5f4] ss:$20 sps:$4 sm:$0xff]  }
 0x54b   : > { %v3973_v45 = vmax.f32 %v3971_v59, 0.0  ;;  %v3966_v34 = vsel %vm3513_vm10, %v3964_v36, %v3965_v63  ;;  %v12864_v59 = vld [vmem:[%s18606_s5 + $0x874] ss:$20 sps:$4 sm:$0xff]  }
 0x54c   : > { %v3970_v2 = vmax.f32 %v3506_v51, %v3966_v34  ;;  %v12599_v41 = vpop.f32.mrf.mxu1  ;;  %3911 = vrot.lane.b32.xlu0 %v3910_v39, %s13880_s22  ;;  %v3932_v17 = vcombine.high %v3929_v8, %v3929_v8  ;;  %v3956_v62 = vrot.slane %v3949_v6, %v15889_v33  ;;  %3931 = vst.msk [vmem:[#allocation2 + $0xd] sm:$0x1] %vm15893_vm11, %v3929_v8  ;;  %v12859_v39 = vld [vmem:[%s18606_s5 + $0x5f0] ss:$20 sps:$4 sm:$0xff]   ;;  %v12870_v34 = vld [vmem:[%s18606_s5 + $0x84c] ss:$20 sps:$4 sm:$0xff]  }
 0x54d   : > { %v3976_v58 = vrot.slane %v3973_v45, 1  ;;  %v12862_v8 = vld [vmem:[%s18606_s5 + $0x870] ss:$20 sps:$4 sm:$0xff]   ;;  %v12868_v41 = vld [vmem:[%s18606_s5 + $0x848] ss:$20 sps:$4 sm:$0xff]  }
 0x54e   : > { %v3972_v3 = vadd.f32 %v15872_v12, %v3970_v2  ;;  %3933 = vrot.lane.b32.xlu1 %v3932_v17, %s13880_s22  ;;  %v3957_v5 = vcombine.high %v3956_v62, %v3956_v62  ;;  %v12865_v2 = vld [vmem:[%s18606_s5 + $0x5c8] ss:$20 sps:$4 sm:$0xff]   ;;  %v12873_v17 = vld [vmem:[%s18606_s5 + $0x5a4] ss:$20 sps:$4 sm:$0xff]  }
 0x54f   : > { %v3978_v15 = vmax.f32 %v3973_v45, %v3976_v58  ;;  %v12867_v45 = vld [vmem:[%s18606_s5 + $0x5cc] ss:$20 sps:$4 sm:$0xff]   ;;  %v12876_v62 = vld [vmem:[%s18606_s5 + $0x824] ss:$20 sps:$4 sm:$0xff]  }
 0x550   : > { %v3974_v43 = vmax.f32 %v3972_v3, 0.0  ;;  %3958 = vrot.lane.b32.xlu0 %v3957_v5, %s13880_s22  ;;  %v12871_v58 = vld [vmem:[%s18606_s5 + $0x5a0] ss:$20 sps:$4 sm:$0xff]   ;;  %v12879_v5 = vld [vmem:[%s18606_s5 + $0x57c] ss:$20 sps:$4 sm:$0xff]  }
 0x551   : > { %v3980_v21 = vcombine.high %v3978_v15, %v3978_v15  ;;  %v12874_v3 = vld [vmem:[%s18606_s5 + $0x820] ss:$20 sps:$4 sm:$0xff]   ;;  %v12882_v15 = vld [vmem:[%s18606_s5 + $0x7fc] ss:$20 sps:$4 sm:$0xff]  }
 0x552   : > { %v4003_v40 = vrot.slane %v3974_v43, 1 }
 0x553   : > { %v3987_v23 = vrot.slane %v3980_v21, %v15889_v33  ;;  %v12877_v21 = vld [vmem:[%s18606_s5 + $0x578] ss:$20 sps:$4 sm:$0xff]  }
 0x554   : > { %v4005_v14 = vmax.f32 %v3974_v43, %v4003_v40  ;;  %v12880_v40 = vld [vmem:[%s18606_s5 + $0x7f8] ss:$20 sps:$4 sm:$0xff]  }
 0x555   : > { %v3994_v18 = vrot.slane %v3987_v23, %v15889_v33 }
 0x556   : > { %v4014_v50 = vrot.slane %v4005_v14, %v15889_v33  ;;  %v4027_v25 = vcombine.high %v4005_v14, %v4005_v14  ;;  %4006 = vst.msk [vmem:[#allocation2 + $0x10] sm:$0x1] %vm15893_vm11, %v4005_v14  ;;  %v12885_v14 = vld [vmem:[%s18606_s5 + $0x554] ss:$20 sps:$4 sm:$0xff]  }
 0x557   : > { %v3997_v12 = vcombine.high %v3994_v18, %v3994_v18  ;;  %3996 = vst.msk [vmem:[#allocation2 + $0xf] sm:$0x1] %vm15893_vm11, %v3994_v18  ;;  %v12888_v18 = vld [vmem:[%s18606_s5 + $0x7d4] ss:$20 sps:$4 sm:$0xff]  }
 0x558   : > { %v4021_v24 = vrot.slane %v4014_v50, %v15889_v33  ;;  %v4034_v0 = vrot.slane %v4027_v25, %v15889_v33  ;;  %v12883_v25 = vld [vmem:[%s18606_s5 + $0x550] ss:$20 sps:$4 sm:$0xff]  }
 0x559   : > { %3998 = vrot.lane.b32.xlu1 %v3997_v12, %s13880_s22  ;;  %v12886_v12 = vld [vmem:[%s18606_s5 + $0x7d0] ss:$20 sps:$4 sm:$0xff]  }
 0x55a   : > { %v4022_v61 = vcombine.high %v4021_v24, %v4021_v24  ;;  %v4041_v54 = vrot.slane %v4034_v0, %v15889_v33  ;;  %v12891_v24 = vld [vmem:[%s18606_s5 + $0x52c] ss:$20 sps:$4 sm:$0xff]  }
 0x55b   : > { %v12894_v0 = vld [vmem:[%s18606_s5 + $0x7ac] ss:$20 sps:$4 sm:$0xff]  }
 0x55c   : > { %4023 = vrot.lane.b32.xlu0 %v4022_v61, %s13880_s22  ;;  %v4044_v44 = vcombine.high %v4041_v54, %v4041_v54  ;;  %4043 = vst.msk [vmem:[#allocation2 + $0x11] sm:$0x1] %vm15893_vm11, %v4041_v54  ;;  %v12889_v61 = vld [vmem:[%s18606_s5 + $0x528] ss:$20 sps:$4 sm:$0xff]  }
 0x55d   : > { %v12892_v54 = vld [vmem:[%s18606_s5 + $0x7a8] ss:$20 sps:$4 sm:$0xff]  }
 0x55e   : > { %4045 = vrot.lane.b32.xlu1 %v4044_v44, %s13880_s22  ;;  %v12897_v44 = vld [vmem:[%s18606_s5 + $0x504] ss:$20 sps:$4 sm:$0xff]   ;;  %s377_s22 = sand.u32 1, %s13866_s18  }
 0x55f   : > { %s378_s25 = scalar_lea.vmem [#allocation3], %s377_s22  ;;  %s10450_s14 = scalar_lea.sflag [#allocation4], %s377_s22 }
 0x560   : > { %s10462_s29 = sshll.u32 %s378_s25, 4  ;;  %s18562_s29 = int_to_ptr.vmem [resolvable:$true] %s10462_s29 }
 0x561   : > { %s13814_s15 = scalar_lea.vmem %s18562_s29, 16  ;;  %p13821_p0 = scmp.lt.s32.totalorder %s18562_s29, %s13819_s16 }
 0x562   : > { %p13815_p11 = scmp.ne.s32.totalorder %s18562_s29, %s13814_s15  ;;  %p13822_p1 = scmp.lt.s32.totalorder %s13820_s30, %s13814_s15 }
 0x564   : > { %p13816_p12 = pnand %p13815_p11, %p13980_p5  ;;  %p13823_p2 = por %p13822_p1, %p13821_p0 }
 0x566   : > { %p13817_p13 = pneg %p13816_p12 }
 0x568   : > { %p13824_p3 = pnand %p13823_p2, %p13817_p13 }
 0x586   : > { %v3559_v47 = vpop.permute.xlu0 %3558 }
 0x587   : > { %3564 = vst.msk [vmem:[#allocation2] sm:$0x1] %vm16144_vm14, %v3559_v47  ;;  %v12900_v47 = vld [vmem:[%s18606_s5 + $0x784] ss:$20 sps:$4 sm:$0xff]  }
 0x58a   : > { %v3584_v33 = vpop.permute.xlu0 %3583  ;;  %v3609_v16 = vpop.permute.xlu1 %3608 }
 0x58b   : > { %3586 = vst.msk [vmem:[#allocation2 + $0x1] sm:$0x1] %vm16144_vm14, %v3584_v33  ;;  %3611 = vst.msk [vmem:[#allocation2 + $0x2] sm:$0x1] %vm16144_vm14, %v3609_v16  ;;  %v12895_v16 = vld [vmem:[%s18606_s5 + $0x500] ss:$20 sps:$4 sm:$0xff]  }
 0x593   : > { %v3649_v56 = vpop.permute.xlu1 %3648 }
 0x594   : > { %3651 = vst.msk [vmem:[#allocation2 + $0x3] sm:$0x1] %vm16144_vm14, %v3649_v56  ;;  %v12898_v56 = vld [vmem:[%s18606_s5 + $0x780] ss:$20 sps:$4 sm:$0xff]  }
 0x596   : > { %v3674_v29 = vpop.permute.xlu0 %3673 }
 0x597   : > { %3676 = vst.msk [vmem:[#allocation2 + $0x4] sm:$0x1] %vm16144_vm14, %v3674_v29  ;;  %v12903_v29 = vld [vmem:[%s18606_s5 + $0x75c] ss:$20 sps:$4 sm:$0xff]  }
 0x598   : > { %v3696_v48 = vpop.permute.xlu1 %3695 }
 0x599   : > { %3698 = vst.msk [vmem:[#allocation2 + $0x5] sm:$0x1] %vm16144_vm14, %v3696_v48  ;;  %v12906_v48 = vld [vmem:[%s18606_s5 + $0x9dc] ss:$20 sps:$4 sm:$0xff]  }
 0x5a2   : > { %v3737_v32 = vpop.permute.xlu0 %3736 }
 0x5a3   : > { %3739 = vst.msk [vmem:[#allocation2 + $0x6] sm:$0x1] %vm16144_vm14, %v3737_v32 }
 0x5a4   : > { %v3759_v7 = vpop.permute.xlu1 %3758 }
 0x5a5   : > { %3761 = vst.msk [vmem:[#allocation2 + $0x7] sm:$0x1] %vm16144_vm14, %v3759_v7  ;;  %v12901_v7 = vld [vmem:[%s18606_s5 + $0x758] ss:$20 sps:$4 sm:$0xff]  }
 0x5a6   : > { %v3784_v42 = vpop.permute.xlu0 %3783 }
 0x5a7   : > { %3786 = vst.msk [vmem:[#allocation2 + $0x8] sm:$0x1] %vm16144_vm14, %v3784_v42  ;;  %v12904_v42 = vld [vmem:[%s18606_s5 + $0x9d8] ss:$20 sps:$4 sm:$0xff]  }
 0x5ac   : > { %v16180_v36 = vld [vmem:[#allocation2] sm:$0xff] }
 0x5ad   : > { %v4062_v4 = vrot.slane %v16180_v36, %v16167_v55  ;;  %v4070_v38 = vrot.slane %v16180_v36, %v16170_v27  ;;  %v4058_v20 = vrot.slane %v16180_v36, %v16173_v57  ;;  %v4066_v10 = vrot.slane %v16180_v36, %v16176_v9 }
 0x5ae   : > { %v4078_v13 = vrot.slane %v16180_v36, %v4077_v31  ;;  %v4086_v22 = vrot.slane %v16180_v36, %v4085_v60 }
 0x5af   : > { %v3824_v53 = vpop.permute.xlu1 %3823  ;;  %v16196_v49 = vpack.c.bf16 %v4062_v4, %v4062_v4  ;;  %v16198_v37 = vpack.c.bf16 %v4070_v38, %v4070_v38  ;;  %v16206_v30 = vpack.c.bf16 %v4058_v20, %v4058_v20  ;;  %v16208_v26 = vpack.c.bf16 %v4066_v10, %v4066_v10  ;;  %v12909_v38 = vld [vmem:[%s18606_s5 + $0x734] ss:$20 sps:$4 sm:$0xff]   ;;  %v12907_v10 = vld [vmem:[%s18606_s5 + $0x730] ss:$20 sps:$4 sm:$0xff]  }
 0x5b0   : > { %3826 = vst.msk [vmem:[#allocation2 + $0x9] sm:$0x1] %vm16144_vm14, %v3824_v53  ;;  %v16222_v51 = vpack.c.bf16 %v4078_v13, %v4078_v13  ;;  %v16224_v35 = vpack.c.bf16 %v4086_v22, %v4086_v22  ;;  %v12912_v20 = vld [vmem:[%s18606_s5 + $0x9b4] ss:$20 sps:$4 sm:$0xff]   ;;  %v12910_v13 = vld [vmem:[%s18606_s5 + $0x9b0] ss:$20 sps:$4 sm:$0xff]  }
 0x5b1   : > { %8830 = vmatprep.mubr.bf16.mxu0 %v16196_v49  ;;  %8871 = vmatprep.mubr.bf16.mxu1 %v16198_v37  ;;  %v12915_v53 = vld [vmem:[%s18606_s5 + $0x70c] ss:$20 sps:$4 sm:$0xff]  }
 0x5b2   : > { %8831 = vmatmul.mubr.bf16.vlgmr.msra.gmra.mxu0 %v16206_v30  ;;  %8872 = vmatmul.mubr.bf16.vlgmr.msra.gmra.mxu1 %v16208_v26  ;;  %v3849_v63 = vpop.permute.xlu0 %3848 }
 0x5b3   : > { %8881 = vmatpush1.bf16.msra.mxu0 %v12853_v19  ;;  %8922 = vmatpush1.bf16.msra.mxu1 %v12856_v46  ;;  %3851 = vst.msk [vmem:[#allocation2 + $0xa] sm:$0x1] %vm16144_vm14, %v3849_v63  ;;  %v4081_v19 = vsub.s32 6, %v15877_v11  ;;  %v12913_v63 = vld [vmem:[%s18606_s5 + $0x708] ss:$20 sps:$4 sm:$0xff]  }
 0x5b4   : > { %8912 = vmatprep.mubr.bf16.mxu0 %v16222_v51  ;;  %8953 = vmatprep.mubr.bf16.mxu1 %v16224_v35  ;;  %v3871_v6 = vpop.permute.xlu1 %3870 }
 0x5b5   : > { %3873 = vst.msk [vmem:[#allocation2 + $0xb] sm:$0x1] %vm16144_vm14, %v3871_v6  ;;  %8882 = vmatprep.subr.bf16.mxu0 %v12861_v1  ;;  %8923 = vmatprep.subr.bf16.mxu1 %v12864_v59  ;;  %v12922_v6 = vld [vmem:[%s18606_s5 + $0x960] ss:$20 sps:$4 sm:$0xff]  }
 0x5b7   : > { %8883 = vmatpush1.bf16.msra.mxu0 %v12859_v39  ;;  %8924 = vmatpush1.bf16.msra.mxu1 %v12862_v8  ;;  %v12916_v39 = vld [vmem:[%s18606_s5 + $0x988] ss:$20 sps:$4 sm:$0xff]   ;;  %v12919_v8 = vld [vmem:[%s18606_s5 + $0x6e0] ss:$20 sps:$4 sm:$0xff]  }
 0x5b8   : > { %8884 = vmatprep.subr.bf16.mxu0 %v12867_v45  ;;  %8925 = vmatprep.subr.bf16.mxu1 %v12870_v34  ;;  %v12927_v45 = vld [vmem:[%s18606_s5 + $0x6bc] ss:$20 sps:$4 sm:$0xff]  }
 0x5b9   : > { %v12930_v34 = vld [vmem:[%s18606_s5 + $0x93c] ss:$20 sps:$4 sm:$0xff]  }
 0x5bb   : > { %8885 = vmatpush1.bf16.msra.mxu0 %v12865_v2  ;;  %8926 = vmatpush1.bf16.msra.mxu1 %v12868_v41  ;;  %v12925_v2 = vld [vmem:[%s18606_s5 + $0x6b8] ss:$20 sps:$4 sm:$0xff]  }
 0x5bc   : > { %8886 = vmatprep.subr.bf16.mxu0 %v12873_v17  ;;  %8927 = vmatprep.subr.bf16.mxu1 %v12876_v62  ;;  %v12928_v41 = vld [vmem:[%s18606_s5 + $0x938] ss:$20 sps:$4 sm:$0xff]   ;;  %v12933_v17 = vld [vmem:[%s18606_s5 + $0x694] ss:$20 sps:$4 sm:$0xff]  }
 0x5bd   : > { %v12936_v62 = vld [vmem:[%s18606_s5 + $0x914] ss:$20 sps:$4 sm:$0xff]  }
 0x5be   : > { %v3912_v43 = vpop.permute.xlu0 %3911 }
 0x5bf   : > { %8887 = vmatpush1.bf16.msra.mxu0 %v12871_v58  ;;  %8928 = vmatpush1.bf16.msra.mxu1 %v12874_v3  ;;  %3914 = vst.msk [vmem:[#allocation2 + $0xc] sm:$0x1] %vm16144_vm14, %v3912_v43  ;;  %v12931_v58 = vld [vmem:[%s18606_s5 + $0x690] ss:$20 sps:$4 sm:$0xff]   ;;  %v12937_v43 = vld [vmem:[%s18606_s5 + $0x668] ss:$20 sps:$4 sm:$0xff]  }
 0x5c0   : > { %v3934_v23 = vpop.permute.xlu1 %3933  ;;  %8888 = vmatprep.subr.bf16.mxu0 %v12879_v5  ;;  %8929 = vmatprep.subr.bf16.mxu1 %v12882_v15  ;;  %v12934_v3 = vld [vmem:[%s18606_s5 + $0x910] ss:$20 sps:$4 sm:$0xff]   ;;  %v12939_v5 = vld [vmem:[%s18606_s5 + $0x66c] ss:$20 sps:$4 sm:$0xff]  }
 0x5c1   : > { %3936 = vst.msk [vmem:[#allocation2 + $0xd] sm:$0x1] %vm16144_vm14, %v3934_v23  ;;  %v12942_v15 = vld [vmem:[%s18606_s5 + $0x8ec] ss:$20 sps:$4 sm:$0xff]   ;;  %v12948_v23 = vld [vmem:[%s18606_s5 + $0x8c4] ss:$20 sps:$4 sm:$0xff]  }
 0x5c2   : > { %v3959_v50 = vpop.permute.xlu0 %3958 }
 0x5c3   : > { %8889 = vmatpush1.bf16.msra.mxu0 %v12877_v21  ;;  %8930 = vmatpush1.bf16.msra.mxu1 %v12880_v40  ;;  %3961 = vst.msk [vmem:[#allocation2 + $0xe] sm:$0x1] %vm16144_vm14, %v3959_v50  ;;  %v12940_v21 = vld [vmem:[%s18606_s5 + $0x8e8] ss:$20 sps:$4 sm:$0xff]   ;;  %v12945_v40 = vld [vmem:[%s18606_s5 + $0x644] ss:$20 sps:$4 sm:$0xff]  }
 0x5c4   : > { %8890 = vmatprep.subr.bf16.mxu0 %v12885_v14  ;;  %8931 = vmatprep.subr.bf16.mxu1 %v12888_v18  ;;  %v16429_v14 = vsub.s32 4, %v15877_v11  ;;  %v12943_v18 = vld [vmem:[%s18606_s5 + $0x640] ss:$20 sps:$4 sm:$0xff]   ;;  %v12951_v11 = vld [vmem:[%s18606_s5 + $0xb1c] ss:$20 sps:$4 sm:$0xff]  }
 0x5c5   : > { %v12946_v50 = vld [vmem:[%s18606_s5 + $0x8c0] ss:$20 sps:$4 sm:$0xff]  }
 0x5c7   : > { %8891 = vmatpush1.bf16.msra.mxu0 %v12883_v25  ;;  %8932 = vmatpush1.bf16.msra.mxu1 %v12886_v12  ;;  %v4074_v25 = vrot.slane %v16180_v36, %v16429_v14  ;;  %v4082_v12 = vrot.slane %v16180_v36, %v4081_v19  ;;  %v12949_v36 = vld [vmem:[%s18606_s5 + $0xb18] ss:$20 sps:$4 sm:$0xff]  }
 0x5c8   : > { %8892 = vmatprep.subr.bf16.mxu0 %v12891_v24  ;;  %8933 = vmatprep.subr.bf16.mxu1 %v12894_v0  ;;  %v12954_v24 = vld [vmem:[%s18606_s5 + $0xd9c] ss:$20 sps:$4 sm:$0xff]  }
 0x5cb   : > { %8893 = vmatpush1.bf16.msra.mxu0 %v12889_v61  ;;  %8934 = vmatpush1.bf16.msra.mxu1 %v12892_v54  ;;  %v3999_v33 = vpop.permute.xlu1 %3998  ;;  %v16453_v54 = vpack.c.bf16 %v4074_v25, %v4074_v25  ;;  %v13011_v25 = vld [vmem:[%s18606_s5 + $0xc0c] ss:$20 sps:$4 sm:$0xff]  }
 0x5cc   : > { %4001 = vst.msk [vmem:[#allocation2 + $0xf] sm:$0x1] %vm16144_vm14, %v3999_v33  ;;  %8894 = vmatprep.subr.bf16.mxu0 %v12897_v44  ;;  %8935 = vmatprep.subr.bf16.mxu1 %v12900_v47  ;;  %v16455_v44 = vpack.c.bf16 %v4082_v12, %v4082_v12  ;;  %v12952_v47 = vld [vmem:[%s18606_s5 + $0xd98] ss:$20 sps:$4 sm:$0xff]  }
 0x5cd   : > { %v13014_v12 = vld [vmem:[%s18606_s5 + $0xe8c] ss:$20 sps:$4 sm:$0xff]  }
 0x5ce   : > { %v4024_v32 = vpop.permute.xlu0 %4023 }
 0x5cf   : > { %8895 = vmatpush1.bf16.msra.mxu0 %v12895_v16  ;;  %8936 = vmatpush1.bf16.msra.mxu1 %v12898_v56  ;;  %4026 = vst.msk [vmem:[#allocation2 + $0x10] sm:$0x1] %vm16144_vm14, %v4024_v32  ;;  %v12957_v16 = vld [vmem:[%s18606_s5 + $0xaf4] ss:$20 sps:$4 sm:$0xff]   ;;  %v12958_v32 = vld [vmem:[%s18606_s5 + $0xd70] ss:$20 sps:$4 sm:$0xff]  }
 0x5d0   : > { %v4046_v4 = vpop.permute.xlu1 %4045  ;;  %8896 = vmatprep.subr.bf16.mxu0 %v12903_v29  ;;  %8937 = vmatprep.subr.bf16.mxu1 %v12906_v48  ;;  %v12960_v56 = vld [vmem:[%s18606_s5 + $0xd74] ss:$20 sps:$4 sm:$0xff]   ;;  %v12955_v48 = vld [vmem:[%s18606_s5 + $0xaf0] ss:$20 sps:$4 sm:$0xff]  }
 0x5d1   : > { %4048 = vst.msk [vmem:[#allocation2 + $0x11] sm:$0x1] %vm16144_vm14, %v4046_v4  ;;  %v12961_v4 = vld [vmem:[%s18606_s5 + $0xac8] ss:$20 sps:$4 sm:$0xff]  }
 0x5d3   : > { %8897 = vmatpush2.bf16.msra.mxu0 %v12901_v7  ;;  %8938 = vmatpush2.bf16.msra.mxu1 %v12904_v42  ;;  %v16346_v22 = vld [vmem:[#allocation2 + $0x8] sm:$0xff] }
 0x5d4   : > { %8898 = vmatprep.subr.bf16.mxu0 %v12909_v38  ;;  %8939 = vmatprep.subr.bf16.mxu1 %v12912_v20  ;;  %v16358_v46 = vrot.slane %v16346_v22, %v4077_v31  ;;  %v16363_v1 = vrot.slane %v16346_v22, %v4085_v60  ;;  %v16366_v59 = vrot.slane %v16346_v22, %v4081_v19  ;;  %v12921_v31 = vld [vmem:[%s18606_s5 + $0x6e4] ss:$20 sps:$4 sm:$0xff]   ;;  %v12963_v7 = vld [vmem:[%s18606_s5 + $0xacc] ss:$20 sps:$4 sm:$0xff]   ;;  %v12964_v38 = vld [vmem:[%s18606_s5 + $0xd48] ss:$20 sps:$4 sm:$0xff]  }
 0x5d5   : > { %v12924_v60 = vld [vmem:[%s18606_s5 + $0x964] ss:$20 sps:$4 sm:$0xff]   ;;  %v4094_v0 = vrot.slane %v16346_v22, %v16167_v55  ;;  %v4102_v61 = vrot.slane %v16346_v22, %v16170_v27  ;;  %v12966_v42 = vld [vmem:[%s18606_s5 + $0xd4c] ss:$20 sps:$4 sm:$0xff]   ;;  %v12978_v19 = vld [vmem:[%s18606_s5 + $0xcfc] ss:$20 sps:$4 sm:$0xff]  }
 0x5d6   : > { %v12969_v20 = vld [vmem:[%s18606_s5 + $0xaa4] ss:$20 sps:$4 sm:$0xff]  }
 0x5d7   : > { %8899 = vmatpush2.bf16.msra.mxu0 %v12907_v10  ;;  %8940 = vmatpush2.bf16.msra.mxu1 %v12910_v13  ;;  %v16460_v33 = vpack.c.bf16 %v4094_v0, %v4094_v0  ;;  %v16470_v29 = vpack.c.bf16 %v4102_v61, %v4102_v61  ;;  %v12972_v10 = vld [vmem:[%s18606_s5 + $0xd24] ss:$20 sps:$4 sm:$0xff]   ;;  %v12967_v13 = vld [vmem:[%s18606_s5 + $0xaa0] ss:$20 sps:$4 sm:$0xff]  }
 0x5d8   : > { %8900 = vmatprep.subr.bf16.mxu0 %v12915_v53  ;;  %8941 = vmatprep.subr.bf16.mxu1 %v12918_v28  ;;  %v12970_v53 = vld [vmem:[%s18606_s5 + $0xd20] ss:$20 sps:$4 sm:$0xff]   ;;  %v12975_v28 = vld [vmem:[%s18606_s5 + $0xa7c] ss:$20 sps:$4 sm:$0xff]   ;;  %v13017_v0 = vld [vmem:[%s18606_s5 + $0xbe4] ss:$20 sps:$4 sm:$0xff]  }
 0x5d9   : > { %v13020_v61 = vld [vmem:[%s18606_s5 + $0xe64] ss:$20 sps:$4 sm:$0xff]  }
 0x5db   : > { %8901 = vmatpush2.bf16.msra.mxu0 %v12913_v63  ;;  %8942 = vmatpush2.bf16.msra.mxu1 %v12916_v39  ;;  %v12973_v63 = vld [vmem:[%s18606_s5 + $0xa78] ss:$20 sps:$4 sm:$0xff]  }
 0x5dc   : > { %8902 = vmatprep.subr.bf16.mxu0 %v12921_v31  ;;  %8943 = vmatprep.subr.bf16.mxu1 %v12924_v60  ;;  %v12976_v39 = vld [vmem:[%s18606_s5 + $0xcf8] ss:$20 sps:$4 sm:$0xff]   ;;  %v12981_v31 = vld [vmem:[%s18606_s5 + $0xa54] ss:$20 sps:$4 sm:$0xff]  }
 0x5dd   : > { %v12984_v60 = vld [vmem:[%s18606_s5 + $0xcd4] ss:$20 sps:$4 sm:$0xff]  }
 0x5df   : > { %8903 = vmatpush2.bf16.msra.mxu0 %v12919_v8  ;;  %8944 = vmatpush2.bf16.msra.mxu1 %v12922_v6  ;;  %v12979_v8 = vld [vmem:[%s18606_s5 + $0xa50] ss:$20 sps:$4 sm:$0xff]  }
 0x5e0   : > { %8904 = vmatprep.subr.bf16.mxu0 %v12927_v45  ;;  %8945 = vmatprep.subr.bf16.mxu1 %v12930_v34  ;;  %v12982_v6 = vld [vmem:[%s18606_s5 + $0xcd0] ss:$20 sps:$4 sm:$0xff]   ;;  %v12987_v45 = vld [vmem:[%s18606_s5 + $0xa2c] ss:$20 sps:$4 sm:$0xff]  }
 0x5e1   : > { %v12990_v34 = vld [vmem:[%s18606_s5 + $0xcac] ss:$20 sps:$4 sm:$0xff]  }
 0x5e3   : > { %8905 = vmatpush2.bf16.msra.mxu0 %v12925_v2  ;;  %8946 = vmatpush2.bf16.msra.mxu1 %v12928_v41  ;;  %v12985_v2 = vld [vmem:[%s18606_s5 + $0xa28] ss:$20 sps:$4 sm:$0xff]  }
 0x5e4   : > { %8906 = vmatprep.subr.bf16.mxu0 %v12933_v17  ;;  %8947 = vmatprep.subr.bf16.mxu1 %v12936_v62  ;;  %v12988_v41 = vld [vmem:[%s18606_s5 + $0xca8] ss:$20 sps:$4 sm:$0xff]   ;;  %v12993_v17 = vld [vmem:[%s18606_s5 + $0xa04] ss:$20 sps:$4 sm:$0xff]  }
 0x5e5   : > { %v12996_v62 = vld [vmem:[%s18606_s5 + $0xc84] ss:$20 sps:$4 sm:$0xff]  }
 0x5e7   : > { %8907 = vmatpush2.bf16.msra.mxu0 %v12931_v58  ;;  %8948 = vmatpush2.bf16.msra.mxu1 %v12934_v3  ;;  %v12991_v58 = vld [vmem:[%s18606_s5 + $0xa00] ss:$20 sps:$4 sm:$0xff]  }
 0x5e8   : > { %8908 = vmatprep.subr.bf16.mxu0 %v12939_v5  ;;  %8949 = vmatprep.subr.bf16.mxu1 %v12942_v15  ;;  %v12994_v3 = vld [vmem:[%s18606_s5 + $0xc80] ss:$20 sps:$4 sm:$0xff]   ;;  %v12999_v5 = vld [vmem:[%s18606_s5 + $0xc5c] ss:$20 sps:$4 sm:$0xff]  }
 0x5e9   : > { %v13002_v15 = vld [vmem:[%s18606_s5 + $0xedc] ss:$20 sps:$4 sm:$0xff]  }
 0x5eb   : > { %8909 = vmatpush2.bf16.msra.mxu0 %v12937_v43  ;;  %8950 = vmatpush2.bf16.msra.mxu1 %v12940_v21  ;;  %v12997_v43 = vld [vmem:[%s18606_s5 + $0xc58] ss:$20 sps:$4 sm:$0xff]  }
 0x5ec   : > { %8910 = vmatprep.subr.bf16.mxu0 %v12945_v40  ;;  %8951 = vmatprep.subr.bf16.mxu1 %v12948_v23  ;;  %v13000_v21 = vld [vmem:[%s18606_s5 + $0xed8] ss:$20 sps:$4 sm:$0xff]   ;;  %v13005_v40 = vld [vmem:[%s18606_s5 + $0xc34] ss:$20 sps:$4 sm:$0xff]  }
 0x5ed   : > { %v13008_v23 = vld [vmem:[%s18606_s5 + $0xeb4] ss:$20 sps:$4 sm:$0xff]  }
 0x5ef   : > { %8911 = vmatpush2.bf16.msra.mxu0 %v12943_v18  ;;  %8952 = vmatpush2.bf16.msra.mxu1 %v12946_v50  ;;  %v13003_v18 = vld [vmem:[%s18606_s5 + $0xc30] ss:$20 sps:$4 sm:$0xff]  }
 0x5f0   : > { %8962 = vmatprep.subr.bf16.mxu0 %v12951_v11  ;;  %9003 = vmatprep.subr.bf16.mxu1 %v12954_v24  ;;  %v13006_v50 = vld [vmem:[%s18606_s5 + $0xeb0] ss:$20 sps:$4 sm:$0xff]   ;;  %v13009_v11 = vld [vmem:[%s18606_s5 + $0xc08] ss:$20 sps:$4 sm:$0xff]  }
 0x5f1   : > { %v13012_v24 = vld [vmem:[%s18606_s5 + $0xe88] ss:$20 sps:$4 sm:$0xff]  }
 0x5f2   : > { %8913 = vmatmul.mubr.bf16.vlgmr.msra.gmra.mxu0 %v16453_v54  ;;  %8954 = vmatmul.mubr.bf16.vlgmr.msra.gmra.mxu1 %v16455_v44 }
 0x5f3   : > { %8963 = vmatpush1.bf16.msra.mxu0 %v12949_v36  ;;  %8994 = vmatprep.mubr.bf16.mxu0 %v16460_v33  ;;  %v13015_v36 = vld [vmem:[%s18606_s5 + $0xbe0] ss:$20 sps:$4 sm:$0xff]  }
 0x5f4   : > { %9004 = vmatpush1.bf16.msra.mxu1 %v12952_v47  ;;  %9035 = vmatprep.mubr.bf16.mxu1 %v16470_v29  ;;  %v13018_v47 = vld [vmem:[%s18606_s5 + $0xe60] ss:$20 sps:$4 sm:$0xff]  }
 0x5f5   : > { %8964 = vmatprep.subr.bf16.mxu0 %v12957_v16  ;;  %9005 = vmatprep.subr.bf16.mxu1 %v12960_v56  ;;  %v13023_v16 = vld [vmem:[%s18606_s5 + $0xbbc] ss:$20 sps:$4 sm:$0xff]  }
 0x5f6   : > { %v13026_v56 = vld [vmem:[%s18606_s5 + $0xe3c] ss:$20 sps:$4 sm:$0xff]  }
 0x5f7   : > { %8965 = vmatpush1.bf16.msra.mxu0 %v12955_v48  ;;  %v13021_v48 = vld [vmem:[%s18606_s5 + $0xbb8] ss:$20 sps:$4 sm:$0xff]  }
 0x5f8   : > { %9006 = vmatpush1.bf16.msra.mxu1 %v12958_v32  ;;  %8966 = vmatprep.subr.bf16.mxu0 %v12963_v7  ;;  %v13024_v32 = vld [vmem:[%s18606_s5 + $0xe38] ss:$20 sps:$4 sm:$0xff]   ;;  %v13029_v7 = vld [vmem:[%s18606_s5 + $0xb94] ss:$20 sps:$4 sm:$0xff]  }
 0x5f9   : > { %9007 = vmatprep.subr.bf16.mxu1 %v12966_v42  ;;  %v13032_v42 = vld [vmem:[%s18606_s5 + $0xe14] ss:$20 sps:$4 sm:$0xff]  }
 0x5fb   : > { %8967 = vmatpush1.bf16.msra.mxu0 %v12961_v4  ;;  %v13027_v4 = vld [vmem:[%s18606_s5 + $0xb90] ss:$20 sps:$4 sm:$0xff]  }
 0x5fc   : > { %9008 = vmatpush1.bf16.msra.mxu1 %v12964_v38  ;;  %8968 = vmatprep.subr.bf16.mxu0 %v12969_v20  ;;  %v13030_v38 = vld [vmem:[%s18606_s5 + $0xe10] ss:$20 sps:$4 sm:$0xff]   ;;  %v13035_v20 = vld [vmem:[%s18606_s5 + $0xb6c] ss:$20 sps:$4 sm:$0xff]  }
 0x5fd   : > { %9009 = vmatprep.subr.bf16.mxu1 %v12972_v10  ;;  %v13038_v10 = vld [vmem:[%s18606_s5 + $0xdec] ss:$20 sps:$4 sm:$0xff]  }
 0x5ff   : > { %8969 = vmatpush1.bf16.msra.mxu0 %v12967_v13  ;;  %v13033_v13 = vld [vmem:[%s18606_s5 + $0xb68] ss:$20 sps:$4 sm:$0xff]  }
 0x600   : > { %9010 = vmatpush1.bf16.msra.mxu1 %v12970_v53  ;;  %8970 = vmatprep.subr.bf16.mxu0 %v12975_v28  ;;  %v13036_v53 = vld [vmem:[%s18606_s5 + $0xde8] ss:$20 sps:$4 sm:$0xff]   ;;  %v13041_v28 = vld [vmem:[%s18606_s5 + $0xb44] ss:$20 sps:$4 sm:$0xff]  }
 0x601   : > { %9011 = vmatprep.subr.bf16.mxu1 %v12978_v19  ;;  %v13044_v19 = vld [vmem:[%s18606_s5 + $0xdc4] ss:$20 sps:$4 sm:$0xff]  }
 0x603   : > { %8971 = vmatpush1.bf16.msra.mxu0 %v12973_v63  ;;  %v13039_v63 = vld [vmem:[%s18606_s5 + $0xb40] ss:$20 sps:$4 sm:$0xff]  }
 0x604   : > { %9012 = vmatpush1.bf16.msra.mxu1 %v12976_v39  ;;  %8972 = vmatprep.subr.bf16.mxu0 %v12981_v31  ;;  %v13042_v39 = vld [vmem:[%s18606_s5 + $0xdc0] ss:$20 sps:$4 sm:$0xff]   ;;  %v4090_v31 = vrot.slane %v16346_v22, %v16173_v57 }
 0x605   : > { %9013 = vmatprep.subr.bf16.mxu1 %v12984_v60  ;;  %v13047_v60 = vld [vmem:[%s18606_s5 + $0x101c] ss:$20 sps:$4 sm:$0xff]  }
 0x607   : > { %8973 = vmatpush1.bf16.msra.mxu0 %v12979_v8  ;;  %v4098_v8 = vrot.slane %v16346_v22, %v16176_v9 }
 0x608   : > { %9014 = vmatpush1.bf16.msra.mxu1 %v12982_v6  ;;  %8974 = vmatprep.subr.bf16.mxu0 %v12987_v45  ;;  %v13050_v6 = vld [vmem:[%s18606_s5 + $0x129c] ss:$20 sps:$4 sm:$0xff]   ;;  %v13045_v45 = vld [vmem:[%s18606_s5 + $0x1018] ss:$20 sps:$4 sm:$0xff]  }
 0x609   : > { %9015 = vmatprep.subr.bf16.mxu1 %v12990_v34  ;;  %v16661_v34 = vpack.c.bf16 %v4090_v31, %v4090_v31  ;;  %v13107_v31 = vld [vmem:[%s18606_s5 + $0x110c] ss:$20 sps:$4 sm:$0xff]  }
 0x60b   : > { %8975 = vmatpush1.bf16.msra.mxu0 %v12985_v2  ;;  %v13048_v2 = vld [vmem:[%s18606_s5 + $0x1298] ss:$20 sps:$4 sm:$0xff]  }
 0x60c   : > { %9016 = vmatpush1.bf16.msra.mxu1 %v12988_v41  ;;  %8976 = vmatprep.subr.bf16.mxu0 %v12993_v17  ;;  %v16666_v41 = vpack.c.bf16 %v4098_v8, %v4098_v8  ;;  %v13053_v17 = vld [vmem:[%s18606_s5 + $0xff4] ss:$20 sps:$4 sm:$0xff]  }
 0x60d   : > { %9017 = vmatprep.subr.bf16.mxu1 %v12996_v62  ;;  %v16674_v62 = vpack.c.bf16 %v16358_v46, %v16358_v46  ;;  %v13054_v46 = vld [vmem:[%s18606_s5 + $0x1270] ss:$20 sps:$4 sm:$0xff]   ;;  %v13105_v8 = vld [vmem:[%s18606_s5 + $0x1108] ss:$20 sps:$4 sm:$0xff]  }
 0x60f   : > { %8977 = vmatpush1.bf16.msra.mxu0 %v12991_v58  ;;  %v13056_v58 = vld [vmem:[%s18606_s5 + $0x1274] ss:$20 sps:$4 sm:$0xff]  }
 0x610   : > { %9018 = vmatpush1.bf16.msra.mxu1 %v12994_v3  ;;  %8978 = vmatprep.subr.bf16.mxu0 %v12999_v5  ;;  %v16682_v3 = vpack.c.bf16 %v16363_v1, %v16363_v1  ;;  %v13051_v5 = vld [vmem:[%s18606_s5 + $0xff0] ss:$20 sps:$4 sm:$0xff]   ;;  %v13062_v1 = vld [vmem:[%s18606_s5 + $0x124c] ss:$20 sps:$4 sm:$0xff]  }
 0x611   : > { %9019 = vmatprep.subr.bf16.mxu1 %v13002_v15  ;;  %v13059_v15 = vld [vmem:[%s18606_s5 + $0xfcc] ss:$20 sps:$4 sm:$0xff]  }
 0x613   : > { %8979 = vmatpush2.bf16.msra.mxu0 %v12997_v43  ;;  %v13057_v43 = vld [vmem:[%s18606_s5 + $0xfc8] ss:$20 sps:$4 sm:$0xff]  }
 0x614   : > { %9020 = vmatpush2.bf16.msra.mxu1 %v13000_v21  ;;  %8980 = vmatprep.subr.bf16.mxu0 %v13005_v40  ;;  %v13060_v21 = vld [vmem:[%s18606_s5 + $0x1248] ss:$20 sps:$4 sm:$0xff]   ;;  %v13065_v40 = vld [vmem:[%s18606_s5 + $0xfa4] ss:$20 sps:$4 sm:$0xff]  }
 0x615   : > { %9021 = vmatprep.subr.bf16.mxu1 %v13008_v23  ;;  %v13068_v23 = vld [vmem:[%s18606_s5 + $0x1224] ss:$20 sps:$4 sm:$0xff]  }
 0x617   : > { %8981 = vmatpush2.bf16.msra.mxu0 %v13003_v18  ;;  %v13063_v18 = vld [vmem:[%s18606_s5 + $0xfa0] ss:$20 sps:$4 sm:$0xff]  }
 0x618   : > { %9022 = vmatpush2.bf16.msra.mxu1 %v13006_v50  ;;  %8982 = vmatprep.subr.bf16.mxu0 %v13011_v25  ;;  %v13066_v50 = vld [vmem:[%s18606_s5 + $0x1220] ss:$20 sps:$4 sm:$0xff]   ;;  %v13071_v25 = vld [vmem:[%s18606_s5 + $0xf7c] ss:$20 sps:$4 sm:$0xff]  }
 0x619   : > { %9023 = vmatprep.subr.bf16.mxu1 %v13014_v12  ;;  %v13074_v12 = vld [vmem:[%s18606_s5 + $0x11fc] ss:$20 sps:$4 sm:$0xff]  }
 0x61b   : > { %8983 = vmatpush2.bf16.msra.mxu0 %v13009_v11  ;;  %v13069_v11 = vld [vmem:[%s18606_s5 + $0xf78] ss:$20 sps:$4 sm:$0xff]  }
 0x61c   : > { %9024 = vmatpush2.bf16.msra.mxu1 %v13012_v24  ;;  %8984 = vmatprep.subr.bf16.mxu0 %v13017_v0  ;;  %v13072_v24 = vld [vmem:[%s18606_s5 + $0x11f8] ss:$20 sps:$4 sm:$0xff]   ;;  %v13077_v0 = vld [vmem:[%s18606_s5 + $0xf54] ss:$20 sps:$4 sm:$0xff]  }
 0x61d   : > { %9025 = vmatprep.subr.bf16.mxu1 %v13020_v61  ;;  %v13080_v61 = vld [vmem:[%s18606_s5 + $0x11d4] ss:$20 sps:$4 sm:$0xff]  }
 0x61f   : > { %8985 = vmatpush2.bf16.msra.mxu0 %v13015_v36  ;;  %v13075_v36 = vld [vmem:[%s18606_s5 + $0xf50] ss:$20 sps:$4 sm:$0xff]  }
 0x620   : > { %9026 = vmatpush2.bf16.msra.mxu1 %v13018_v47  ;;  %8986 = vmatprep.subr.bf16.mxu0 %v13023_v16  ;;  %v13078_v47 = vld [vmem:[%s18606_s5 + $0x11d0] ss:$20 sps:$4 sm:$0xff]   ;;  %v13083_v16 = vld [vmem:[%s18606_s5 + $0xf2c] ss:$20 sps:$4 sm:$0xff]  }
 0x621   : > { %9027 = vmatprep.subr.bf16.mxu1 %v13026_v56  ;;  %v13086_v56 = vld [vmem:[%s18606_s5 + $0x11ac] ss:$20 sps:$4 sm:$0xff]  }
 0x623   : > { %8987 = vmatpush2.bf16.msra.mxu0 %v13021_v48  ;;  %v13081_v48 = vld [vmem:[%s18606_s5 + $0xf28] ss:$20 sps:$4 sm:$0xff]  }
 0x624   : > { %9028 = vmatpush2.bf16.msra.mxu1 %v13024_v32  ;;  %8988 = vmatprep.subr.bf16.mxu0 %v13029_v7  ;;  %v13084_v32 = vld [vmem:[%s18606_s5 + $0x11a8] ss:$20 sps:$4 sm:$0xff]   ;;  %v13089_v7 = vld [vmem:[%s18606_s5 + $0xf04] ss:$20 sps:$4 sm:$0xff]  }
 0x625   : > { %9029 = vmatprep.subr.bf16.mxu1 %v13032_v42  ;;  %v13092_v42 = vld [vmem:[%s18606_s5 + $0x1184] ss:$20 sps:$4 sm:$0xff]  }
 0x627   : > { %8989 = vmatpush2.bf16.msra.mxu0 %v13027_v4  ;;  %v13087_v4 = vld [vmem:[%s18606_s5 + $0xf00] ss:$20 sps:$4 sm:$0xff]  }
 0x628   : > { %9030 = vmatpush2.bf16.msra.mxu1 %v13030_v38  ;;  %8990 = vmatprep.subr.bf16.mxu0 %v13035_v20  ;;  %v13090_v38 = vld [vmem:[%s18606_s5 + $0x1180] ss:$20 sps:$4 sm:$0xff]   ;;  %v13095_v20 = vld [vmem:[%s18606_s5 + $0x115c] ss:$20 sps:$4 sm:$0xff]  }
 0x629   : > { %9031 = vmatprep.subr.bf16.mxu1 %v13038_v10  ;;  %v13098_v10 = vld [vmem:[%s18606_s5 + $0x13dc] ss:$20 sps:$4 sm:$0xff]  }
 0x62b   : > { %8991 = vmatpush2.bf16.msra.mxu0 %v13033_v13  ;;  %v13093_v13 = vld [vmem:[%s18606_s5 + $0x1158] ss:$20 sps:$4 sm:$0xff]  }
 0x62c   : > { %9032 = vmatpush2.bf16.msra.mxu1 %v13036_v53  ;;  %8992 = vmatprep.subr.bf16.mxu0 %v13041_v28  ;;  %v13096_v53 = vld [vmem:[%s18606_s5 + $0x13d8] ss:$20 sps:$4 sm:$0xff]   ;;  %v13101_v28 = vld [vmem:[%s18606_s5 + $0x1134] ss:$20 sps:$4 sm:$0xff]  }
 0x62d   : > { %9033 = vmatprep.subr.bf16.mxu1 %v13044_v19  ;;  %v13104_v19 = vld [vmem:[%s18606_s5 + $0x13b4] ss:$20 sps:$4 sm:$0xff]  }
 0x62f   : > { %8993 = vmatpush2.bf16.msra.mxu0 %v13039_v63  ;;  %v13099_v63 = vld [vmem:[%s18606_s5 + $0x1130] ss:$20 sps:$4 sm:$0xff]  }
 0x630   : > { %9034 = vmatpush2.bf16.msra.mxu1 %v13042_v39  ;;  %9044 = vmatprep.subr.bf16.mxu0 %v13047_v60  ;;  %v13102_v39 = vld [vmem:[%s18606_s5 + $0x13b0] ss:$20 sps:$4 sm:$0xff]   ;;  %v13110_v60 = vld [vmem:[%s18606_s5 + $0x138c] ss:$20 sps:$4 sm:$0xff]  }
 0x631   : > { %9085 = vmatprep.subr.bf16.mxu1 %v13050_v6  ;;  %v13108_v6 = vld [vmem:[%s18606_s5 + $0x1388] ss:$20 sps:$4 sm:$0xff]  }
 0x632   : > { %8995 = vmatmul.mubr.bf16.vlgmr.msra.gmra.mxu0 %v16661_v34 }
 0x633   : > { %9036 = vmatmul.mubr.bf16.vlgmr.msra.gmra.mxu1 %v16666_v41  ;;  %9045 = vmatpush1.bf16.msra.mxu0 %v13045_v45  ;;  %v13113_v45 = vld [vmem:[%s18606_s5 + $0x10e4] ss:$20 sps:$4 sm:$0xff]  }
 0x634   : > { %9076 = vmatprep.mubr.bf16.mxu0 %v16674_v62  ;;  %9086 = vmatpush1.bf16.msra.mxu1 %v13048_v2  ;;  %v13116_v2 = vld [vmem:[%s18606_s5 + $0x1364] ss:$20 sps:$4 sm:$0xff]  }
 0x635   : > { %9117 = vmatprep.mubr.bf16.mxu1 %v16682_v3  ;;  %9046 = vmatprep.subr.bf16.mxu0 %v13053_v17  ;;  %v13111_v17 = vld [vmem:[%s18606_s5 + $0x10e0] ss:$20 sps:$4 sm:$0xff]  }
 0x636   : > { %9087 = vmatprep.subr.bf16.mxu1 %v13056_v58  ;;  %v13114_v58 = vld [vmem:[%s18606_s5 + $0x1360] ss:$20 sps:$4 sm:$0xff]  }
 0x637   : > { %9047 = vmatpush1.bf16.msra.mxu0 %v13051_v5  ;;  %v13119_v5 = vld [vmem:[%s18606_s5 + $0x10bc] ss:$20 sps:$4 sm:$0xff]  }
 0x638   : > { %9088 = vmatpush1.bf16.msra.mxu1 %v13054_v46  ;;  %9048 = vmatprep.subr.bf16.mxu0 %v13059_v15  ;;  %v13122_v46 = vld [vmem:[%s18606_s5 + $0x133c] ss:$20 sps:$4 sm:$0xff]   ;;  %v13117_v15 = vld [vmem:[%s18606_s5 + $0x10b8] ss:$20 sps:$4 sm:$0xff]  }
 0x639   : > { %9089 = vmatprep.subr.bf16.mxu1 %v13062_v1  ;;  %v13120_v1 = vld [vmem:[%s18606_s5 + $0x1338] ss:$20 sps:$4 sm:$0xff]  }
 0x63b   : > { %9049 = vmatpush1.bf16.msra.mxu0 %v13057_v43  ;;  %v13125_v43 = vld [vmem:[%s18606_s5 + $0x1094] ss:$20 sps:$4 sm:$0xff]  }
 0x63c   : > { %9090 = vmatpush1.bf16.msra.mxu1 %v13060_v21  ;;  %9050 = vmatprep.subr.bf16.mxu0 %v13065_v40  ;;  %v13128_v21 = vld [vmem:[%s18606_s5 + $0x1314] ss:$20 sps:$4 sm:$0xff]   ;;  %v13123_v40 = vld [vmem:[%s18606_s5 + $0x1090] ss:$20 sps:$4 sm:$0xff]  }
 0x63d   : > { %9091 = vmatprep.subr.bf16.mxu1 %v13068_v23  ;;  %v13126_v23 = vld [vmem:[%s18606_s5 + $0x1310] ss:$20 sps:$4 sm:$0xff]  }
 0x63f   : > { %9051 = vmatpush1.bf16.msra.mxu0 %v13063_v18  ;;  %v13131_v18 = vld [vmem:[%s18606_s5 + $0x106c] ss:$20 sps:$4 sm:$0xff]  }
 0x640   : > { %9092 = vmatpush1.bf16.msra.mxu1 %v13066_v50  ;;  %9052 = vmatprep.subr.bf16.mxu0 %v13071_v25  ;;  %v13134_v50 = vld [vmem:[%s18606_s5 + $0x12ec] ss:$20 sps:$4 sm:$0xff]   ;;  %v13129_v25 = vld [vmem:[%s18606_s5 + $0x1068] ss:$20 sps:$4 sm:$0xff]  }
 0x641   : > { %9093 = vmatprep.subr.bf16.mxu1 %v13074_v12  ;;  %v13132_v12 = vld [vmem:[%s18606_s5 + $0x12e8] ss:$20 sps:$4 sm:$0xff]  }
 0x643   : > { %9053 = vmatpush1.bf16.msra.mxu0 %v13069_v11  ;;  %v13137_v11 = vld [vmem:[%s18606_s5 + $0x1044] ss:$20 sps:$4 sm:$0xff]  }
 0x644   : > { %9094 = vmatpush1.bf16.msra.mxu1 %v13072_v24  ;;  %9054 = vmatprep.subr.bf16.mxu0 %v13077_v0  ;;  %v13140_v24 = vld [vmem:[%s18606_s5 + $0x12c4] ss:$20 sps:$4 sm:$0xff]   ;;  %v13135_v0 = vld [vmem:[%s18606_s5 + $0x1040] ss:$20 sps:$4 sm:$0xff]  }
 0x645   : > { %9095 = vmatprep.subr.bf16.mxu1 %v13080_v61  ;;  %v16857_v61 = vld [vmem:[#allocation2 + $0x10] sm:$0x3] }
 0x647   : > { %9055 = vmatpush1.bf16.msra.mxu0 %v13075_v36  ;;  %v13138_v36 = vld [vmem:[%s18606_s5 + $0x12c0] ss:$20 sps:$4 sm:$0xff]  }
 0x648   : > { %9096 = vmatpush1.bf16.msra.mxu1 %v13078_v47  ;;  %9056 = vmatprep.subr.bf16.mxu0 %v13083_v16  ;;  %v4106_v47 = vrot.slane %v16346_v22, %v16429_v14  ;;  %v13143_v16 = vld [vmem:[%s18606_s5 + $0x151c] ss:$20 sps:$4 sm:$0xff]   ;;  %v13141_v22 = vld [vmem:[%s18606_s5 + $0x1518] ss:$20 sps:$4 sm:$0xff]  }
 0x649   : > { %9097 = vmatprep.subr.bf16.mxu1 %v13086_v56  ;;  %v5027_v56 = vld [vmem:[%s18607_s6] sm:$0x1f] }
 0x64b   : > { %9057 = vmatpush1.bf16.msra.mxu0 %v13081_v48  ;;  %v13146_v48 = vld [vmem:[%s18606_s5 + $0x124] ss:$20 sps:$4 sm:$0xff]  }
 0x64c   : > { %9098 = vmatpush1.bf16.msra.mxu1 %v13084_v32  ;;  %9058 = vmatprep.subr.bf16.mxu0 %v13089_v7  ;;  %v4126_v32 = vrot.slane %v16857_v61, %v16167_v55  ;;  %v8776_v7 = vrot.slane %v5027_v56, %v16173_v57 }
 0x64d   : > { %9099 = vmatprep.subr.bf16.mxu1 %v13092_v42  ;;  %v16879_v42 = vpack.c.bf16 %v4106_v47, %v4106_v47  ;;  %v13179_v47 = vld [vmem:[%s18606_s5 + $0x142c] ss:$20 sps:$4 sm:$0xff]  }
 0x64f   : > { %9059 = vmatpush1.bf16.msra.mxu0 %v13087_v4  ;;  %v13144_v4 = vld [vmem:[%s18606_s5 + $0x120] ss:$20 sps:$4 sm:$0xff]  }
 0x650   : > { %9100 = vmatpush1.bf16.msra.mxu1 %v13090_v38  ;;  %9060 = vmatprep.subr.bf16.mxu0 %v13095_v20  ;;  %v16886_v38 = vpack.c.bf16 %v16366_v59, %v16366_v59  ;;  %v8780_v20 = vrot.slane %v5027_v56, %v16167_v55  ;;  %v13147_v55 = vld [vmem:[%s18606_s5 + $0x14f0] ss:$20 sps:$4 sm:$0xff]   ;;  %v13177_v56 = vld [vmem:[%s18606_s5 + $0x1428] ss:$20 sps:$4 sm:$0xff]  }
 0x651   : > { %9101 = vmatprep.subr.bf16.mxu1 %v13098_v10  ;;  %v13149_v10 = vld [vmem:[%s18606_s5 + $0x14f4] ss:$20 sps:$4 sm:$0xff]  }
 0x653   : > { %9061 = vmatpush2.bf16.msra.mxu0 %v13093_v13 }
 0x654   : > { %9102 = vmatpush2.bf16.msra.mxu1 %v13096_v53  ;;  %9062 = vmatprep.subr.bf16.mxu0 %v13101_v28  ;;  %v16893_v28 = vpack.c.bf16 %v4126_v32, %v4126_v32  ;;  %v13185_v32 = vld [vmem:[%s18606_s5 + $0x1404] ss:$20 sps:$4 sm:$0xff]  }
 0x655   : > { %9103 = vmatprep.subr.bf16.mxu1 %v13104_v19  ;;  %v13152_v19 = vld [vmem:[%s18606_s5 + $0xfc] ss:$20 sps:$4 sm:$0xff]  }
 0x657   : > { %9063 = vmatpush2.bf16.msra.mxu0 %v13099_v63 }
 0x658   : > { %9104 = vmatpush2.bf16.msra.mxu1 %v13102_v39  ;;  %9064 = vmatprep.subr.bf16.mxu0 %v13107_v31  ;;  %v13150_v31 = vld [vmem:[%s18606_s5 + $0xf8] ss:$20 sps:$4 sm:$0xff]  }
 0x659   : > { %9105 = vmatprep.subr.bf16.mxu1 %v13110_v60  ;;  %v13155_v60 = vld [vmem:[%s18606_s5 + $0x14cc] ss:$20 sps:$4 sm:$0xff]  }
 0x65b   : > { %9065 = vmatpush2.bf16.msra.mxu0 %v13105_v8 }
 0x65c   : > { %9106 = vmatpush2.bf16.msra.mxu1 %v13108_v6  ;;  %9066 = vmatprep.subr.bf16.mxu0 %v13113_v45  ;;  %v13158_v45 = vld [vmem:[%s18606_s5 + $0xd4] ss:$20 sps:$4 sm:$0xff]  }
 0x65d   : > { %9107 = vmatprep.subr.bf16.mxu1 %v13116_v2 }
 0x65f   : > { %9067 = vmatpush2.bf16.msra.mxu0 %v13111_v17 }
 0x660   : > { %9108 = vmatpush2.bf16.msra.mxu1 %v13114_v58  ;;  %9068 = vmatprep.subr.bf16.mxu0 %v13119_v5  ;;  %v13153_v5 = vld [vmem:[%s18606_s5 + $0x14c8] ss:$20 sps:$4 sm:$0xff]  }
 0x661   : > { %9109 = vmatprep.subr.bf16.mxu1 %v13122_v46 }
 0x663   : > { %9069 = vmatpush2.bf16.msra.mxu0 %v13117_v15 }
 0x664   : > { %9110 = vmatpush2.bf16.msra.mxu1 %v13120_v1  ;;  %9070 = vmatprep.subr.bf16.mxu0 %v13125_v43  ;;  %v13156_v1 = vld [vmem:[%s18606_s5 + $0xd0] ss:$20 sps:$4 sm:$0xff]  }
 0x665   : > { %9111 = vmatprep.subr.bf16.mxu1 %v13128_v21  ;;  %v13161_v43 = vld [vmem:[%s18606_s5 + $0x14a4] ss:$20 sps:$4 sm:$0xff]   ;;  %v13164_v21 = vld [vmem:[%s18606_s5 + $0xac] ss:$20 sps:$4 sm:$0xff]  }
 0x667   : > { %9071 = vmatpush2.bf16.msra.mxu0 %v13123_v40  ;;  %v13159_v40 = vld [vmem:[%s18606_s5 + $0x14a0] ss:$20 sps:$4 sm:$0xff]  }
 0x668   : > { %9112 = vmatpush2.bf16.msra.mxu1 %v13126_v23  ;;  %9072 = vmatprep.subr.bf16.mxu0 %v13131_v18  ;;  %v13162_v23 = vld [vmem:[%s18606_s5 + $0xa8] ss:$20 sps:$4 sm:$0xff]  }
 0x669   : > { %9113 = vmatprep.subr.bf16.mxu1 %v13134_v50  ;;  %v13167_v18 = vld [vmem:[%s18606_s5 + $0x147c] ss:$20 sps:$4 sm:$0xff]   ;;  %v13170_v50 = vld [vmem:[%s18606_s5 + $0x84] ss:$20 sps:$4 sm:$0xff]  }
 0x66b   : > { %9073 = vmatpush2.bf16.msra.mxu0 %v13129_v25  ;;  %v13165_v25 = vld [vmem:[%s18606_s5 + $0x1478] ss:$20 sps:$4 sm:$0xff]  }
 0x66c   : > { %9114 = vmatpush2.bf16.msra.mxu1 %v13132_v12  ;;  %9074 = vmatprep.subr.bf16.mxu0 %v13137_v11  ;;  %v13168_v12 = vld [vmem:[%s18606_s5 + $0x80] ss:$20 sps:$4 sm:$0xff]  }
 0x66d   : > { %9115 = vmatprep.subr.bf16.mxu1 %v13140_v24  ;;  %v13173_v11 = vld [vmem:[%s18606_s5 + $0x1454] ss:$20 sps:$4 sm:$0xff]   ;;  %v13176_v24 = vld [vmem:[%s18606_s5 + $0x5c] ss:$20 sps:$4 sm:$0xff]  }
 0x66f   : > { %9075 = vmatpush2.bf16.msra.mxu0 %v13135_v0  ;;  %v13171_v0 = vld [vmem:[%s18606_s5 + $0x1450] ss:$20 sps:$4 sm:$0xff]  }
 0x670   : > { %9116 = vmatpush2.bf16.msra.mxu1 %v13138_v36  ;;  %9126 = vmatprep.subr.bf16.mxu0 %v13143_v16  ;;  %v13174_v36 = vld [vmem:[%s18606_s5 + $0x58] ss:$20 sps:$4 sm:$0xff]   ;;  %v13182_v16 = vld [vmem:[%s18606_s5 + $0x34] ss:$20 sps:$4 sm:$0xff]  }
 0x671   : > { %9167 = vmatprep.subr.bf16.mxu1 %v13146_v48  ;;  %v13180_v48 = vld [vmem:[%s18606_s5 + $0x30] ss:$20 sps:$4 sm:$0xff]  }
 0x672   : > { %9077 = vmatmul.mubr.bf16.vlgmr.msra.gmra.mxu0 %v16879_v42  ;;  %v8832_v13 = vpop.f32.mrf.mxu0  ;;  %v8873_v53 = vpop.f32.mrf.mxu1 }
 0x673   : > { %9118 = vmatmul.mubr.bf16.vlgmr.msra.gmra.mxu1 %v16886_v38  ;;  %v8833_v59 = vadd.f32 %v8832_v13, %v8776_v7  ;;  %9127 = vmatpush1.bf16.msra.mxu0 %v13141_v22  ;;  %v13188_v22 = vld [vmem:[%s18606_s5 + $0xc] ss:$20 sps:$4 sm:$0xff]  }
 0x674   : > { %9158 = vmatprep.mubr.bf16.mxu0 %v16893_v28  ;;  %9168 = vmatpush1.bf16.msra.mxu1 %v13144_v4  ;;  %v8834_v63 = vpop.f32.mrf.mxu0  ;;  %v8875_v39 = vpop.f32.mrf.mxu1  ;;  %v13183_v7 = vld [vmem:[%s18606_s5 + $0x1400] ss:$20 sps:$4 sm:$0xff]   ;;  %v13186_v4 = vld [vmem:[%s18606_s5 + $0x8] ss:$20 sps:$4 sm:$0xff]   ;;  %v13189_v13 = vld [vmem:[%s18606_s5 + $0x1658] ss:$20 sps:$4 sm:$0xff]  }
 0x675   : > { %v16909_v8 = vadd.f32 %v8873_v53, %v8833_v59  ;;  %9199 = vmatprep.mubr.bf16.mxu1 %v16196_v49  ;;  %v8835_v6 = vadd.f32 %v8834_v63, %v8780_v20  ;;  %9128 = vmatprep.subr.bf16.mxu0 %v13149_v10  ;;  %v13191_v20 = vld [vmem:[%s18606_s5 + $0x165c] ss:$20 sps:$4 sm:$0xff]   ;;  %v13194_v10 = vld [vmem:[%s18606_s5 + $0x264] ss:$20 sps:$4 sm:$0xff]   ;;  %v13192_v53 = vld [vmem:[%s18606_s5 + $0x260] ss:$20 sps:$4 sm:$0xff]  }
 0x676   : > { %9169 = vmatprep.subr.bf16.mxu1 %v13152_v19  ;;  %v8836_v2 = vpop.f32.mrf.mxu0  ;;  %v8877_v17 = vpop.f32.mrf.mxu1  ;;  %v13197_v19 = vld [vmem:[%s18606_s5 + $0x1634] ss:$20 sps:$4 sm:$0xff]   ;;  %v13200_v59 = vld [vmem:[%s18606_s5 + $0x23c] ss:$20 sps:$4 sm:$0xff]   ;;  %v13198_v63 = vld [vmem:[%s18606_s5 + $0x238] ss:$20 sps:$4 sm:$0xff]  }
 0x677   : > { %v16915_v58 = vadd.f32 %v8875_v39, %v8835_v6  ;;  %9129 = vmatpush1.bf16.msra.mxu0 %v13147_v55  ;;  %v13195_v55 = vld [vmem:[%s18606_s5 + $0x1630] ss:$20 sps:$4 sm:$0xff]   ;;  %v13203_v39 = vld [vmem:[%s18606_s5 + $0x160c] ss:$20 sps:$4 sm:$0xff]  }
 0x678   : > { %9170 = vmatpush1.bf16.msra.mxu1 %v13150_v31  ;;  %v8837_v46 = vpop.f32.mrf.mxu0  ;;  %v8878_v15 = vpop.f32.mrf.mxu1  ;;  %9130 = vmatprep.subr.bf16.mxu0 %v13155_v60  ;;  %v13206_v31 = vld [vmem:[%s18606_s5 + $0x214] ss:$20 sps:$4 sm:$0xff]   ;;  %v13204_v6 = vld [vmem:[%s18606_s5 + $0x210] ss:$20 sps:$4 sm:$0xff]   ;;  %v13212_v2 = vld [vmem:[%s18606_s5 + $0x1ec] ss:$20 sps:$4 sm:$0xff]  }
 0x679   : > { %9171 = vmatprep.subr.bf16.mxu1 %v13158_v45  ;;  %v13201_v60 = vld [vmem:[%s18606_s5 + $0x1608] ss:$20 sps:$4 sm:$0xff]   ;;  %v13209_v45 = vld [vmem:[%s18606_s5 + $0x15e4] ss:$20 sps:$4 sm:$0xff]   ;;  %v13207_v17 = vld [vmem:[%s18606_s5 + $0x15e0] ss:$20 sps:$4 sm:$0xff]  }
 0x67a   : > { %v13215_v46 = vld [vmem:[%s18606_s5 + $0x15bc] ss:$20 sps:$4 sm:$0xff]   ;;  %v13218_v15 = vld [vmem:[%s18606_s5 + $0x1c4] ss:$20 sps:$4 sm:$0xff]  }
 0x67b   : > { %9131 = vmatpush1.bf16.msra.mxu0 %v13153_v5  ;;  %v13210_v5 = vld [vmem:[%s18606_s5 + $0x1e8] ss:$20 sps:$4 sm:$0xff]  }
 0x67c   : > { %9172 = vmatpush1.bf16.msra.mxu1 %v13156_v1  ;;  %9132 = vmatprep.subr.bf16.mxu0 %v13161_v43  ;;  %v13213_v1 = vld [vmem:[%s18606_s5 + $0x15b8] ss:$20 sps:$4 sm:$0xff]   ;;  %v13216_v43 = vld [vmem:[%s18606_s5 + $0x1c0] ss:$20 sps:$4 sm:$0xff]  }
 0x67d   : > { %9173 = vmatprep.subr.bf16.mxu1 %v13164_v21  ;;  %v13221_v21 = vld [vmem:[%s18606_s5 + $0x1594] ss:$20 sps:$4 sm:$0xff]  }
 0x67f   : > { %9133 = vmatpush1.bf16.msra.mxu0 %v13159_v40  ;;  %v13224_v40 = vld [vmem:[%s18606_s5 + $0x19c] ss:$20 sps:$4 sm:$0xff]  }
 0x680   : > { %9174 = vmatpush1.bf16.msra.mxu1 %v13162_v23  ;;  %9134 = vmatprep.subr.bf16.mxu0 %v13167_v18  ;;  %v13219_v23 = vld [vmem:[%s18606_s5 + $0x1590] ss:$20 sps:$4 sm:$0xff]   ;;  %v13222_v18 = vld [vmem:[%s18606_s5 + $0x198] ss:$20 sps:$4 sm:$0xff]  }
 0x681   : > { %9175 = vmatprep.subr.bf16.mxu1 %v13170_v50  ;;  %v13227_v50 = vld [vmem:[%s18606_s5 + $0x156c] ss:$20 sps:$4 sm:$0xff]  }
 0x683   : > { %9135 = vmatpush1.bf16.msra.mxu0 %v13165_v25  ;;  %v13230_v25 = vld [vmem:[%s18606_s5 + $0x174] ss:$20 sps:$4 sm:$0xff]  }
 0x684   : > { %9176 = vmatpush1.bf16.msra.mxu1 %v13168_v12  ;;  %9136 = vmatprep.subr.bf16.mxu0 %v13173_v11  ;;  %v13225_v12 = vld [vmem:[%s18606_s5 + $0x1568] ss:$20 sps:$4 sm:$0xff]   ;;  %v13228_v11 = vld [vmem:[%s18606_s5 + $0x170] ss:$20 sps:$4 sm:$0xff]  }
 0x685   : > { %9177 = vmatprep.subr.bf16.mxu1 %v13176_v24  ;;  %v13233_v24 = vld [vmem:[%s18606_s5 + $0x1544] ss:$20 sps:$4 sm:$0xff]  }
 0x687   : > { %9137 = vmatpush1.bf16.msra.mxu0 %v13171_v0  ;;  %v13236_v0 = vld [vmem:[%s18606_s5 + $0x14c] ss:$20 sps:$4 sm:$0xff]  }
 0x688   : > { %9178 = vmatpush1.bf16.msra.mxu1 %v13174_v36  ;;  %9138 = vmatprep.subr.bf16.mxu0 %v13179_v47  ;;  %v13231_v36 = vld [vmem:[%s18606_s5 + $0x1540] ss:$20 sps:$4 sm:$0xff]   ;;  %v4122_v47 = vrot.slane %v16857_v61, %v16173_v57 }
 0x689   : > { %9179 = vmatprep.subr.bf16.mxu1 %v13182_v16  ;;  %v13234_v16 = vld [vmem:[%s18606_s5 + $0x148] ss:$20 sps:$4 sm:$0xff]   ;;  %v13237_v57 = vld [vmem:[%s18606_s5 + $0x3a0] ss:$20 sps:$4 sm:$0xff]  }
 0x68a   : > { %v17090_v61 = vpack.c.bf16 %v4122_v47, %v4122_v47  ;;  %v13281_v47 = vld [vmem:[%s18606_s5 + $0x28c] ss:$20 sps:$4 sm:$0xff]  }
 0x68b   : > { %9139 = vmatpush1.bf16.msra.mxu0 %v13177_v56  ;;  %v13239_v56 = vld [vmem:[%s18606_s5 + $0x3a4] ss:$20 sps:$4 sm:$0xff]  }
 0x68c   : > { %9180 = vmatpush1.bf16.msra.mxu1 %v13180_v48  ;;  %9140 = vmatprep.subr.bf16.mxu0 %v13185_v32  ;;  %v13242_v48 = vld [vmem:[%s18606_s5 + $0x624] ss:$20 sps:$4 sm:$0xff]   ;;  %v13240_v32 = vld [vmem:[%s18606_s5 + $0x620] ss:$20 sps:$4 sm:$0xff]  }
 0x68d   : > { %9181 = vmatprep.subr.bf16.mxu1 %v13188_v22  ;;  %v13245_v22 = vld [vmem:[%s18606_s5 + $0x37c] ss:$20 sps:$4 sm:$0xff]  }
 0x68f   : > { %9141 = vmatpush1.bf16.msra.mxu0 %v13183_v7 }
 0x690   : > { %9182 = vmatpush1.bf16.msra.mxu1 %v13186_v4  ;;  %9142 = vmatprep.subr.bf16.mxu0 %v13191_v20  ;;  %v13248_v20 = vld [vmem:[%s18606_s5 + $0x5fc] ss:$20 sps:$4 sm:$0xff]  }
 0x691   : > { %9183 = vmatprep.subr.bf16.mxu1 %v13194_v10 }
 0x693   : > { %9143 = vmatpush2.bf16.msra.mxu0 %v13189_v13  ;;  %v13243_v13 = vld [vmem:[%s18606_s5 + $0x378] ss:$20 sps:$4 sm:$0xff]  }
 0x694   : > { %9184 = vmatpush2.bf16.msra.mxu1 %v13192_v53  ;;  %9144 = vmatprep.subr.bf16.mxu0 %v13197_v19 }
 0x695   : > { %9185 = vmatprep.subr.bf16.mxu1 %v13200_v59  ;;  %v13246_v59 = vld [vmem:[%s18606_s5 + $0x5f8] ss:$20 sps:$4 sm:$0xff]  }
 0x697   : > { %9145 = vmatpush2.bf16.msra.mxu0 %v13195_v55 }
 0x698   : > { %9186 = vmatpush2.bf16.msra.mxu1 %v13198_v63  ;;  %9146 = vmatprep.subr.bf16.mxu0 %v13203_v39  ;;  %v13254_v39 = vld [vmem:[%s18606_s5 + $0x5d4] ss:$20 sps:$4 sm:$0xff]  }
 0x699   : > { %9187 = vmatprep.subr.bf16.mxu1 %v13206_v31 }
 0x69b   : > { %9147 = vmatpush2.bf16.msra.mxu0 %v13201_v60 }
 0x69c   : > { %9188 = vmatpush2.bf16.msra.mxu1 %v13204_v6  ;;  %9148 = vmatprep.subr.bf16.mxu0 %v13209_v45  ;;  %v13249_v45 = vld [vmem:[%s18606_s5 + $0x350] ss:$20 sps:$4 sm:$0xff]  }
 0x69d   : > { %9189 = vmatprep.subr.bf16.mxu1 %v13212_v2 }
 0x69f   : > { %9149 = vmatpush2.bf16.msra.mxu0 %v13207_v17 }
 0x6a0   : > { %9190 = vmatpush2.bf16.msra.mxu1 %v13210_v5  ;;  %9150 = vmatprep.subr.bf16.mxu0 %v13215_v46  ;;  %v13257_v5 = vld [vmem:[%s18606_s5 + $0x32c] ss:$20 sps:$4 sm:$0xff]  }
 0x6a1   : > { %9191 = vmatprep.subr.bf16.mxu1 %v13218_v15  ;;  %v13260_v46 = vld [vmem:[%s18606_s5 + $0x5ac] ss:$20 sps:$4 sm:$0xff]   ;;  %v13255_v15 = vld [vmem:[%s18606_s5 + $0x328] ss:$20 sps:$4 sm:$0xff]  }
 0x6a3   : > { %9151 = vmatpush2.bf16.msra.mxu0 %v13213_v1  ;;  %v13258_v1 = vld [vmem:[%s18606_s5 + $0x5a8] ss:$20 sps:$4 sm:$0xff]  }
 0x6a4   : > { %9192 = vmatpush2.bf16.msra.mxu1 %v13216_v43  ;;  %9152 = vmatprep.subr.bf16.mxu0 %v13221_v21  ;;  %v13263_v43 = vld [vmem:[%s18606_s5 + $0x304] ss:$20 sps:$4 sm:$0xff]  }
 0x6a5   : > { %9193 = vmatprep.subr.bf16.mxu1 %v13224_v40  ;;  %v13266_v21 = vld [vmem:[%s18606_s5 + $0x584] ss:$20 sps:$4 sm:$0xff]   ;;  %v13261_v40 = vld [vmem:[%s18606_s5 + $0x300] ss:$20 sps:$4 sm:$0xff]  }
 0x6a7   : > { %9153 = vmatpush2.bf16.msra.mxu0 %v13219_v23  ;;  %v13264_v23 = vld [vmem:[%s18606_s5 + $0x580] ss:$20 sps:$4 sm:$0xff]  }
 0x6a8   : > { %9194 = vmatpush2.bf16.msra.mxu1 %v13222_v18  ;;  %9154 = vmatprep.subr.bf16.mxu0 %v13227_v50  ;;  %v13269_v18 = vld [vmem:[%s18606_s5 + $0x2dc] ss:$20 sps:$4 sm:$0xff]  }
 0x6a9   : > { %9195 = vmatprep.subr.bf16.mxu1 %v13230_v25  ;;  %v13272_v50 = vld [vmem:[%s18606_s5 + $0x55c] ss:$20 sps:$4 sm:$0xff]   ;;  %v13267_v25 = vld [vmem:[%s18606_s5 + $0x2d8] ss:$20 sps:$4 sm:$0xff]  }
 0x6ab   : > { %9155 = vmatpush2.bf16.msra.mxu0 %v13225_v12  ;;  %v13270_v12 = vld [vmem:[%s18606_s5 + $0x558] ss:$20 sps:$4 sm:$0xff]  }
 0x6ac   : > { %9196 = vmatpush2.bf16.msra.mxu1 %v13228_v11  ;;  %9156 = vmatprep.subr.bf16.mxu0 %v13233_v24  ;;  %v13275_v11 = vld [vmem:[%s18606_s5 + $0x2b4] ss:$20 sps:$4 sm:$0xff]  }
 0x6ad   : > { %9197 = vmatprep.subr.bf16.mxu1 %v13236_v0  ;;  %v13278_v24 = vld [vmem:[%s18606_s5 + $0x534] ss:$20 sps:$4 sm:$0xff]   ;;  %v13273_v0 = vld [vmem:[%s18606_s5 + $0x2b0] ss:$20 sps:$4 sm:$0xff]  }
 0x6af   : > { %9157 = vmatpush2.bf16.msra.mxu0 %v13231_v36  ;;  %v13276_v36 = vld [vmem:[%s18606_s5 + $0x530] ss:$20 sps:$4 sm:$0xff]  }
 0x6b0   : > { %9198 = vmatpush2.bf16.msra.mxu1 %v13234_v16  ;;  %9208 = vmatprep.subr.bf16.mxu0 %v13239_v56  ;;  %v13284_v16 = vld [vmem:[%s18606_s5 + $0x50c] ss:$20 sps:$4 sm:$0xff]   ;;  %v13279_v56 = vld [vmem:[%s18606_s5 + $0x288] ss:$20 sps:$4 sm:$0xff]  }
 0x6b1   : > { %9249 = vmatprep.subr.bf16.mxu1 %v13242_v48  ;;  %v13282_v48 = vld [vmem:[%s18606_s5 + $0x508] ss:$20 sps:$4 sm:$0xff]  }
 0x6b2   : > { %v8914_v7 = vpop.f32.mrf.mxu0  ;;  %v8955_v4 = vpop.f32.mrf.mxu1  ;;  %9159 = vmatmul.mubr.bf16.vlgmr.msra.gmra.mxu0 %v17090_v61 }
 0x6b3   : > { %v8915_v10 = vadd.f32 %v8914_v7, %v16909_v8  ;;  %9200 = vmatmul.mubr.bf16.vlgmr.msra.gmra.mxu1 %v16206_v30  ;;  %9209 = vmatpush1.bf16.msra.mxu0 %v13237_v57  ;;  %v13251_v8 = vld [vmem:[%s18606_s5 + $0x354] ss:$20 sps:$4 sm:$0xff]   ;;  %v13287_v57 = vld [vmem:[%s18606_s5 + $0x4e4] ss:$20 sps:$4 sm:$0xff]  }
 0x6b4   : > { %9240 = vmatprep.mubr.bf16.mxu0 %v16198_v37  ;;  %9250 = vmatpush1.bf16.msra.mxu1 %v13240_v32  ;;  %v8916_v53 = vpop.f32.mrf.mxu0  ;;  %v8957_v19 = vpop.f32.mrf.mxu1  ;;  %v13290_v32 = vld [vmem:[%s18606_s5 + $0x764] ss:$20 sps:$4 sm:$0xff]   ;;  %v13288_v7 = vld [vmem:[%s18606_s5 + $0x760] ss:$20 sps:$4 sm:$0xff]  }
 0x6b5   : > { %v17114_v55 = vadd.f32 %v8955_v4, %v8915_v10  ;;  %9281 = vmatprep.mubr.bf16.mxu1 %v16222_v51  ;;  %v8917_v63 = vadd.f32 %v8916_v53, %v16915_v58  ;;  %9210 = vmatprep.subr.bf16.mxu0 %v13245_v22  ;;  %v13252_v58 = vld [vmem:[%s18606_s5 + $0x5d0] ss:$20 sps:$4 sm:$0xff]   ;;  %v13285_v22 = vld [vmem:[%s18606_s5 + $0x4e0] ss:$20 sps:$4 sm:$0xff]   ;;  %v13291_v10 = vld [vmem:[%s18606_s5 + $0x4b8] ss:$20 sps:$4 sm:$0xff]  }
 0x6b6   : > { %v8918_v31 = vpop.f32.mrf.mxu0  ;;  %v8959_v60 = vpop.f32.mrf.mxu1  ;;  %9251 = vmatprep.subr.bf16.mxu1 %v13248_v20  ;;  %v13293_v4 = vld [vmem:[%s18606_s5 + $0x4bc] ss:$20 sps:$4 sm:$0xff]   ;;  %v13299_v53 = vld [vmem:[%s18606_s5 + $0x494] ss:$20 sps:$4 sm:$0xff]  }
 0x6b7   : > { %v17121_v6 = vadd.f32 %v8957_v19, %v8917_v63  ;;  %9211 = vmatpush1.bf16.msra.mxu0 %v13243_v13  ;;  %v13296_v20 = vld [vmem:[%s18606_s5 + $0x73c] ss:$20 sps:$4 sm:$0xff]   ;;  %v13294_v13 = vld [vmem:[%s18606_s5 + $0x738] ss:$20 sps:$4 sm:$0xff]   ;;  %v13302_v19 = vld [vmem:[%s18606_s5 + $0x714] ss:$20 sps:$4 sm:$0xff]  }
 0x6b8   : > { %9252 = vmatpush1.bf16.msra.mxu1 %v13246_v59  ;;  %v8919_v2 = vpop.f32.mrf.mxu0  ;;  %v8960_v17 = vpop.f32.mrf.mxu1  ;;  %9212 = vmatprep.subr.bf16.mxu0 %v13251_v8  ;;  %v13297_v59 = vld [vmem:[%s18606_s5 + $0x490] ss:$20 sps:$4 sm:$0xff]   ;;  %v13305_v63 = vld [vmem:[%s18606_s5 + $0x46c] ss:$20 sps:$4 sm:$0xff]   ;;  %v13303_v31 = vld [vmem:[%s18606_s5 + $0x468] ss:$20 sps:$4 sm:$0xff]  }
 0x6b9   : > { %9253 = vmatprep.subr.bf16.mxu1 %v13254_v39  ;;  %v13300_v8 = vld [vmem:[%s18606_s5 + $0x710] ss:$20 sps:$4 sm:$0xff]   ;;  %v13308_v39 = vld [vmem:[%s18606_s5 + $0x6ec] ss:$20 sps:$4 sm:$0xff]   ;;  %v13306_v60 = vld [vmem:[%s18606_s5 + $0x6e8] ss:$20 sps:$4 sm:$0xff]  }
 0x6ba   : > { %v13314_v2 = vld [vmem:[%s18606_s5 + $0x6c4] ss:$20 sps:$4 sm:$0xff]   ;;  %v13309_v17 = vld [vmem:[%s18606_s5 + $0x440] ss:$20 sps:$4 sm:$0xff]  }
 0x6bb   : > { %9213 = vmatpush1.bf16.msra.mxu0 %v13249_v45  ;;  %v13311_v45 = vld [vmem:[%s18606_s5 + $0x444] ss:$20 sps:$4 sm:$0xff]  }
 0x6bc   : > { %9254 = vmatpush1.bf16.msra.mxu1 %v13252_v58  ;;  %9214 = vmatprep.subr.bf16.mxu0 %v13257_v5  ;;  %v13312_v58 = vld [vmem:[%s18606_s5 + $0x6c0] ss:$20 sps:$4 sm:$0xff]   ;;  %v13317_v5 = vld [vmem:[%s18606_s5 + $0x41c] ss:$20 sps:$4 sm:$0xff]  }
 0x6bd   : > { %9255 = vmatprep.subr.bf16.mxu1 %v13260_v46  ;;  %v13320_v46 = vld [vmem:[%s18606_s5 + $0x69c] ss:$20 sps:$4 sm:$0xff]  }
 0x6bf   : > { %9215 = vmatpush1.bf16.msra.mxu0 %v13255_v15  ;;  %v13315_v15 = vld [vmem:[%s18606_s5 + $0x418] ss:$20 sps:$4 sm:$0xff]  }
 0x6c0   : > { %9256 = vmatpush1.bf16.msra.mxu1 %v13258_v1  ;;  %9216 = vmatprep.subr.bf16.mxu0 %v13263_v43  ;;  %v13318_v1 = vld [vmem:[%s18606_s5 + $0x698] ss:$20 sps:$4 sm:$0xff]   ;;  %v13323_v43 = vld [vmem:[%s18606_s5 + $0x3f4] ss:$20 sps:$4 sm:$0xff]  }
 0x6c1   : > { %9257 = vmatprep.subr.bf16.mxu1 %v13266_v21  ;;  %v13326_v21 = vld [vmem:[%s18606_s5 + $0x674] ss:$20 sps:$4 sm:$0xff]  }
 0x6c3   : > { %9217 = vmatpush1.bf16.msra.mxu0 %v13261_v40  ;;  %v13321_v40 = vld [vmem:[%s18606_s5 + $0x3f0] ss:$20 sps:$4 sm:$0xff]  }
 0x6c4   : > { %9258 = vmatpush1.bf16.msra.mxu1 %v13264_v23  ;;  %9218 = vmatprep.subr.bf16.mxu0 %v13269_v18  ;;  %v13324_v23 = vld [vmem:[%s18606_s5 + $0x670] ss:$20 sps:$4 sm:$0xff]   ;;  %v13329_v18 = vld [vmem:[%s18606_s5 + $0x3cc] ss:$20 sps:$4 sm:$0xff]  }
 0x6c5   : > { %9259 = vmatprep.subr.bf16.mxu1 %v13272_v50  ;;  %v13332_v50 = vld [vmem:[%s18606_s5 + $0x64c] ss:$20 sps:$4 sm:$0xff]  }
 0x6c7   : > { %9219 = vmatpush1.bf16.msra.mxu0 %v13267_v25  ;;  %v13327_v25 = vld [vmem:[%s18606_s5 + $0x3c8] ss:$20 sps:$4 sm:$0xff]  }
 0x6c8   : > { %9260 = vmatpush1.bf16.msra.mxu1 %v13270_v12  ;;  %9220 = vmatprep.subr.bf16.mxu0 %v13275_v11  ;;  %v13330_v12 = vld [vmem:[%s18606_s5 + $0x648] ss:$20 sps:$4 sm:$0xff]   ;;  %v13335_v11 = vld [vmem:[%s18606_s5 + $0x8a4] ss:$20 sps:$4 sm:$0xff]  }
 0x6c9   : > { %9261 = vmatprep.subr.bf16.mxu1 %v13278_v24  ;;  %v13338_v24 = vld [vmem:[%s18606_s5 + $0xb24] ss:$20 sps:$4 sm:$0xff]  }
 0x6cb   : > { %9221 = vmatpush1.bf16.msra.mxu0 %v13273_v0  ;;  %v13333_v0 = vld [vmem:[%s18606_s5 + $0x8a0] ss:$20 sps:$4 sm:$0xff]  }
 0x6cc   : > { %9262 = vmatpush1.bf16.msra.mxu1 %v13276_v36  ;;  %9222 = vmatprep.subr.bf16.mxu0 %v13281_v47  ;;  %v13336_v36 = vld [vmem:[%s18606_s5 + $0xb20] ss:$20 sps:$4 sm:$0xff]   ;;  %v13341_v47 = vld [vmem:[%s18606_s5 + $0x87c] ss:$20 sps:$4 sm:$0xff]  }
 0x6cd   : > { %9263 = vmatprep.subr.bf16.mxu1 %v13284_v16 }
 0x6cf   : > { %9223 = vmatpush1.bf16.msra.mxu0 %v13279_v56  ;;  %v13344_v56 = vld [vmem:[%s18606_s5 + $0xafc] ss:$20 sps:$4 sm:$0xff]  }
 0x6d0   : > { %9264 = vmatpush1.bf16.msra.mxu1 %v13282_v48  ;;  %9224 = vmatprep.subr.bf16.mxu0 %v13287_v57 }
 0x6d1   : > { %9265 = vmatprep.subr.bf16.mxu1 %v13290_v32  ;;  %v13339_v32 = vld [vmem:[%s18606_s5 + $0x878] ss:$20 sps:$4 sm:$0xff]  }
 0x6d3   : > { %9225 = vmatpush2.bf16.msra.mxu0 %v13285_v22 }
 0x6d4   : > { %9266 = vmatpush2.bf16.msra.mxu1 %v13288_v7  ;;  %9226 = vmatprep.subr.bf16.mxu0 %v13293_v4  ;;  %v13342_v7 = vld [vmem:[%s18606_s5 + $0xaf8] ss:$20 sps:$4 sm:$0xff]  }
 0x6d5   : > { %9267 = vmatprep.subr.bf16.mxu1 %v13296_v20 }
 0x6d7   : > { %9227 = vmatpush2.bf16.msra.mxu0 %v13291_v10 }
 0x6d8   : > { %9268 = vmatpush2.bf16.msra.mxu1 %v13294_v13  ;;  %9228 = vmatprep.subr.bf16.mxu0 %v13299_v53  ;;  %v13350_v13 = vld [vmem:[%s18606_s5 + $0xad4] ss:$20 sps:$4 sm:$0xff]  }
 0x6d9   : > { %9269 = vmatprep.subr.bf16.mxu1 %v13302_v19 }
 0x6db   : > { %9229 = vmatpush2.bf16.msra.mxu0 %v13297_v59 }
 0x6dc   : > { %9270 = vmatpush2.bf16.msra.mxu1 %v13300_v8  ;;  %9230 = vmatprep.subr.bf16.mxu0 %v13305_v63  ;;  %v13345_v8 = vld [vmem:[%s18606_s5 + $0x850] ss:$20 sps:$4 sm:$0xff]  }
 0x6dd   : > { %9271 = vmatprep.subr.bf16.mxu1 %v13308_v39  ;;  %v13353_v39 = vld [vmem:[%s18606_s5 + $0x82c] ss:$20 sps:$4 sm:$0xff]  }
 0x6df   : > { %9231 = vmatpush2.bf16.msra.mxu0 %v13303_v31 }
 0x6e0   : > { %9272 = vmatpush2.bf16.msra.mxu1 %v13306_v60  ;;  %9232 = vmatprep.subr.bf16.mxu0 %v13311_v45  ;;  %v13356_v60 = vld [vmem:[%s18606_s5 + $0xaac] ss:$20 sps:$4 sm:$0xff]   ;;  %v13351_v45 = vld [vmem:[%s18606_s5 + $0x828] ss:$20 sps:$4 sm:$0xff]  }
 0x6e1   : > { %9273 = vmatprep.subr.bf16.mxu1 %v13314_v2  ;;  %v13354_v2 = vld [vmem:[%s18606_s5 + $0xaa8] ss:$20 sps:$4 sm:$0xff]  }
 0x6e3   : > { %9233 = vmatpush2.bf16.msra.mxu0 %v13309_v17  ;;  %v13359_v17 = vld [vmem:[%s18606_s5 + $0x804] ss:$20 sps:$4 sm:$0xff]  }
 0x6e4   : > { %9274 = vmatpush2.bf16.msra.mxu1 %v13312_v58  ;;  %9234 = vmatprep.subr.bf16.mxu0 %v13317_v5  ;;  %v13362_v58 = vld [vmem:[%s18606_s5 + $0xa84] ss:$20 sps:$4 sm:$0xff]   ;;  %v13357_v5 = vld [vmem:[%s18606_s5 + $0x800] ss:$20 sps:$4 sm:$0xff]  }
 0x6e5   : > { %9275 = vmatprep.subr.bf16.mxu1 %v13320_v46  ;;  %v13360_v46 = vld [vmem:[%s18606_s5 + $0xa80] ss:$20 sps:$4 sm:$0xff]  }
 0x6e7   : > { %9235 = vmatpush2.bf16.msra.mxu0 %v13315_v15  ;;  %v13365_v15 = vld [vmem:[%s18606_s5 + $0x7dc] ss:$20 sps:$4 sm:$0xff]  }
 0x6e8   : > { %9276 = vmatpush2.bf16.msra.mxu1 %v13318_v1  ;;  %9236 = vmatprep.subr.bf16.mxu0 %v13323_v43  ;;  %v13368_v1 = vld [vmem:[%s18606_s5 + $0xa5c] ss:$20 sps:$4 sm:$0xff]   ;;  %v13363_v43 = vld [vmem:[%s18606_s5 + $0x7d8] ss:$20 sps:$4 sm:$0xff]  }
 0x6e9   : > { %9277 = vmatprep.subr.bf16.mxu1 %v13326_v21  ;;  %v13366_v21 = vld [vmem:[%s18606_s5 + $0xa58] ss:$20 sps:$4 sm:$0xff]  }
 0x6eb   : > { %9237 = vmatpush2.bf16.msra.mxu0 %v13321_v40  ;;  %v13371_v40 = vld [vmem:[%s18606_s5 + $0x7b4] ss:$20 sps:$4 sm:$0xff]  }
 0x6ec   : > { %9278 = vmatpush2.bf16.msra.mxu1 %v13324_v23  ;;  %9238 = vmatprep.subr.bf16.mxu0 %v13329_v18  ;;  %v13374_v23 = vld [vmem:[%s18606_s5 + $0xa34] ss:$20 sps:$4 sm:$0xff]   ;;  %v13369_v18 = vld [vmem:[%s18606_s5 + $0x7b0] ss:$20 sps:$4 sm:$0xff]  }
 0x6ed   : > { %9279 = vmatprep.subr.bf16.mxu1 %v13332_v50  ;;  %v13372_v50 = vld [vmem:[%s18606_s5 + $0xa30] ss:$20 sps:$4 sm:$0xff]  }
 0x6ef   : > { %9239 = vmatpush2.bf16.msra.mxu0 %v13327_v25  ;;  %v13377_v25 = vld [vmem:[%s18606_s5 + $0x78c] ss:$20 sps:$4 sm:$0xff]  }
 0x6f0   : > { %9280 = vmatpush2.bf16.msra.mxu1 %v13330_v12  ;;  %9290 = vmatprep.subr.bf16.mxu0 %v13335_v11  ;;  %v13380_v12 = vld [vmem:[%s18606_s5 + $0xa0c] ss:$20 sps:$4 sm:$0xff]   ;;  %v13375_v11 = vld [vmem:[%s18606_s5 + $0x788] ss:$20 sps:$4 sm:$0xff]  }
 0x6f1   : > { %9331 = vmatprep.subr.bf16.mxu1 %v13338_v24  ;;  %v13378_v24 = vld [vmem:[%s18606_s5 + $0xa08] ss:$20 sps:$4 sm:$0xff]  }
 0x6f2   : > { %v8996_v16 = vpop.f32.mrf.mxu0  ;;  %9241 = vmatmul.mubr.bf16.vlgmr.msra.gmra.mxu0 %v16208_v26 }
 0x6f3   : > { %v8997_v48 = vadd.f32 %v8996_v16, %v17114_v55  ;;  %v9037_v57 = vpop.f32.mrf.mxu1  ;;  %9282 = vmatmul.mubr.bf16.vlgmr.msra.gmra.mxu1 %v16453_v54  ;;  %9291 = vmatpush1.bf16.msra.mxu0 %v13333_v0  ;;  %v13347_v55 = vld [vmem:[%s18606_s5 + $0x854] ss:$20 sps:$4 sm:$0xff]   ;;  %v13383_v0 = vld [vmem:[%s18606_s5 + $0x9e4] ss:$20 sps:$4 sm:$0xff]  }
 0x6f4   : > { %9322 = vmatprep.mubr.bf16.mxu0 %v16224_v35  ;;  %9332 = vmatpush1.bf16.msra.mxu1 %v13336_v36  ;;  %v8998_v22 = vpop.f32.mrf.mxu0  ;;  %v13386_v36 = vld [vmem:[%s18606_s5 + $0xc64] ss:$20 sps:$4 sm:$0xff]   ;;  %v13384_v16 = vld [vmem:[%s18606_s5 + $0xc60] ss:$20 sps:$4 sm:$0xff]  }
 0x6f5   : > { %v17316_v4 = vadd.f32 %v9037_v57, %v8997_v48  ;;  %9363 = vmatprep.mubr.bf16.mxu1 %v16460_v33  ;;  %v8999_v20 = vadd.f32 %v8998_v22, %v17121_v6  ;;  %v9039_v10 = vpop.f32.mrf.mxu1  ;;  %9292 = vmatprep.subr.bf16.mxu0 %v13341_v47  ;;  %v13348_v6 = vld [vmem:[%s18606_s5 + $0xad0] ss:$20 sps:$4 sm:$0xff]   ;;  %v13381_v47 = vld [vmem:[%s18606_s5 + $0x9e0] ss:$20 sps:$4 sm:$0xff]   ;;  %v13387_v57 = vld [vmem:[%s18606_s5 + $0x9b8] ss:$20 sps:$4 sm:$0xff]  }
 0x6f6   : > { %v9000_v53 = vpop.f32.mrf.mxu0  ;;  %9333 = vmatprep.subr.bf16.mxu1 %v13344_v56  ;;  %v13389_v56 = vld [vmem:[%s18606_s5 + $0x9bc] ss:$20 sps:$4 sm:$0xff]   ;;  %v13395_v22 = vld [vmem:[%s18606_s5 + $0x994] ss:$20 sps:$4 sm:$0xff]  }
 0x6f7   : > { %v17323_v19 = vadd.f32 %v9039_v10, %v8999_v20  ;;  %v9041_v59 = vpop.f32.mrf.mxu1  ;;  %9293 = vmatpush1.bf16.msra.mxu0 %v13339_v32  ;;  %v13392_v48 = vld [vmem:[%s18606_s5 + $0xc3c] ss:$20 sps:$4 sm:$0xff]   ;;  %v13390_v32 = vld [vmem:[%s18606_s5 + $0xc38] ss:$20 sps:$4 sm:$0xff]  }
 0x6f8   : > { %9334 = vmatpush1.bf16.msra.mxu1 %v13342_v7  ;;  %v9001_v63 = vpop.f32.mrf.mxu0  ;;  %9294 = vmatprep.subr.bf16.mxu0 %v13347_v55  ;;  %v13398_v7 = vld [vmem:[%s18606_s5 + $0xc14] ss:$20 sps:$4 sm:$0xff]   ;;  %v13393_v55 = vld [vmem:[%s18606_s5 + $0x990] ss:$20 sps:$4 sm:$0xff]   ;;  %v13401_v10 = vld [vmem:[%s18606_s5 + $0x96c] ss:$20 sps:$4 sm:$0xff]  }
 0x6f9   : > { %v9042_v31 = vpop.f32.mrf.mxu1  ;;  %9335 = vmatprep.subr.bf16.mxu1 %v13350_v13  ;;  %v13396_v20 = vld [vmem:[%s18606_s5 + $0xc10] ss:$20 sps:$4 sm:$0xff]   ;;  %v13404_v13 = vld [vmem:[%s18606_s5 + $0xbec] ss:$20 sps:$4 sm:$0xff]   ;;  %v13399_v53 = vld [vmem:[%s18606_s5 + $0x968] ss:$20 sps:$4 sm:$0xff]  }
 0x6fa   : > { %v13402_v59 = vld [vmem:[%s18606_s5 + $0xbe8] ss:$20 sps:$4 sm:$0xff]   ;;  %v13410_v63 = vld [vmem:[%s18606_s5 + $0xbc4] ss:$20 sps:$4 sm:$0xff]  }
 0x6fb   : > { %9295 = vmatpush1.bf16.msra.mxu0 %v13345_v8  ;;  %v13407_v8 = vld [vmem:[%s18606_s5 + $0x944] ss:$20 sps:$4 sm:$0xff]   ;;  %v13413_v31 = vld [vmem:[%s18606_s5 + $0x91c] ss:$20 sps:$4 sm:$0xff]  }
 0x6fc   : > { %9336 = vmatpush1.bf16.msra.mxu1 %v13348_v6  ;;  %9296 = vmatprep.subr.bf16.mxu0 %v13353_v39  ;;  %v13405_v6 = vld [vmem:[%s18606_s5 + $0x940] ss:$20 sps:$4 sm:$0xff]  }
 0x6fd   : > { %9337 = vmatprep.subr.bf16.mxu1 %v13356_v60  ;;  %v13408_v39 = vld [vmem:[%s18606_s5 + $0xbc0] ss:$20 sps:$4 sm:$0xff]   ;;  %v13416_v60 = vld [vmem:[%s18606_s5 + $0xb9c] ss:$20 sps:$4 sm:$0xff]  }
 0x6ff   : > { %9297 = vmatpush1.bf16.msra.mxu0 %v13351_v45  ;;  %v13411_v45 = vld [vmem:[%s18606_s5 + $0x918] ss:$20 sps:$4 sm:$0xff]  }
 0x700   : > { %9338 = vmatpush1.bf16.msra.mxu1 %v13354_v2  ;;  %9298 = vmatprep.subr.bf16.mxu0 %v13359_v17  ;;  %v13414_v2 = vld [vmem:[%s18606_s5 + $0xb98] ss:$20 sps:$4 sm:$0xff]   ;;  %v13419_v17 = vld [vmem:[%s18606_s5 + $0x8f4] ss:$20 sps:$4 sm:$0xff]  }
 0x701   : > { %9339 = vmatprep.subr.bf16.mxu1 %v13362_v58  ;;  %v13422_v58 = vld [vmem:[%s18606_s5 + $0xb74] ss:$20 sps:$4 sm:$0xff]  }
 0x703   : > { %9299 = vmatpush1.bf16.msra.mxu0 %v13357_v5  ;;  %v13417_v5 = vld [vmem:[%s18606_s5 + $0x8f0] ss:$20 sps:$4 sm:$0xff]  }
 0x704   : > { %9340 = vmatpush1.bf16.msra.mxu1 %v13360_v46  ;;  %9300 = vmatprep.subr.bf16.mxu0 %v13365_v15  ;;  %v13420_v46 = vld [vmem:[%s18606_s5 + $0xb70] ss:$20 sps:$4 sm:$0xff]   ;;  %v13425_v15 = vld [vmem:[%s18606_s5 + $0x8cc] ss:$20 sps:$4 sm:$0xff]  }
 0x705   : > { %9341 = vmatprep.subr.bf16.mxu1 %v13368_v1  ;;  %v13428_v1 = vld [vmem:[%s18606_s5 + $0xb4c] ss:$20 sps:$4 sm:$0xff]  }
 0x707   : > { %9301 = vmatpush1.bf16.msra.mxu0 %v13363_v43  ;;  %v13423_v43 = vld [vmem:[%s18606_s5 + $0x8c8] ss:$20 sps:$4 sm:$0xff]  }
 0x708   : > { %9342 = vmatpush1.bf16.msra.mxu1 %v13366_v21  ;;  %9302 = vmatprep.subr.bf16.mxu0 %v13371_v40  ;;  %v13426_v21 = vld [vmem:[%s18606_s5 + $0xb48] ss:$20 sps:$4 sm:$0xff]   ;;  %v13431_v40 = vld [vmem:[%s18606_s5 + $0xda4] ss:$20 sps:$4 sm:$0xff]  }
 0x709   : > { %9343 = vmatprep.subr.bf16.mxu1 %v13374_v23  ;;  %v13434_v23 = vld [vmem:[%s18606_s5 + $0x1024] ss:$20 sps:$4 sm:$0xff]  }
 0x70b   : > { %9303 = vmatpush1.bf16.msra.mxu0 %v13369_v18  ;;  %v13429_v18 = vld [vmem:[%s18606_s5 + $0xda0] ss:$20 sps:$4 sm:$0xff]  }
 0x70c   : > { %9344 = vmatpush1.bf16.msra.mxu1 %v13372_v50  ;;  %9304 = vmatprep.subr.bf16.mxu0 %v13377_v25  ;;  %v13432_v50 = vld [vmem:[%s18606_s5 + $0x1020] ss:$20 sps:$4 sm:$0xff]   ;;  %v13437_v25 = vld [vmem:[%s18606_s5 + $0xd7c] ss:$20 sps:$4 sm:$0xff]  }
 0x70d   : > { %9345 = vmatprep.subr.bf16.mxu1 %v13380_v12 }
 0x70f   : > { %9305 = vmatpush1.bf16.msra.mxu0 %v13375_v11  ;;  %v13440_v11 = vld [vmem:[%s18606_s5 + $0xffc] ss:$20 sps:$4 sm:$0xff]  }
 0x710   : > { %9346 = vmatpush1.bf16.msra.mxu1 %v13378_v24  ;;  %9306 = vmatprep.subr.bf16.mxu0 %v13383_v0 }
 0x711   : > { %9347 = vmatprep.subr.bf16.mxu1 %v13386_v36  ;;  %v13435_v36 = vld [vmem:[%s18606_s5 + $0xd78] ss:$20 sps:$4 sm:$0xff]  }
 0x713   : > { %9307 = vmatpush2.bf16.msra.mxu0 %v13381_v47 }
 0x714   : > { %9348 = vmatpush2.bf16.msra.mxu1 %v13384_v16  ;;  %9308 = vmatprep.subr.bf16.mxu0 %v13389_v56  ;;  %v13438_v16 = vld [vmem:[%s18606_s5 + $0xff8] ss:$20 sps:$4 sm:$0xff]  }
 0x715   : > { %9349 = vmatprep.subr.bf16.mxu1 %v13392_v48 }
 0x717   : > { %9309 = vmatpush2.bf16.msra.mxu0 %v13387_v57 }
 0x718   : > { %9350 = vmatpush2.bf16.msra.mxu1 %v13390_v32  ;;  %9310 = vmatprep.subr.bf16.mxu0 %v13395_v22  ;;  %v13446_v32 = vld [vmem:[%s18606_s5 + $0xfd4] ss:$20 sps:$4 sm:$0xff]  }
 0x719   : > { %9351 = vmatprep.subr.bf16.mxu1 %v13398_v7 }
 0x71b   : > { %9311 = vmatpush2.bf16.msra.mxu0 %v13393_v55 }
 0x71c   : > { %9352 = vmatpush2.bf16.msra.mxu1 %v13396_v20  ;;  %9312 = vmatprep.subr.bf16.mxu0 %v13401_v10  ;;  %v13441_v20 = vld [vmem:[%s18606_s5 + $0xd50] ss:$20 sps:$4 sm:$0xff]  }
 0x71d   : > { %9353 = vmatprep.subr.bf16.mxu1 %v13404_v13  ;;  %v13449_v13 = vld [vmem:[%s18606_s5 + $0xd2c] ss:$20 sps:$4 sm:$0xff]  }
 0x71f   : > { %9313 = vmatpush2.bf16.msra.mxu0 %v13399_v53 }
 0x720   : > { %9354 = vmatpush2.bf16.msra.mxu1 %v13402_v59  ;;  %9314 = vmatprep.subr.bf16.mxu0 %v13407_v8  ;;  %v13452_v59 = vld [vmem:[%s18606_s5 + $0xfac] ss:$20 sps:$4 sm:$0xff]   ;;  %v13447_v8 = vld [vmem:[%s18606_s5 + $0xd28] ss:$20 sps:$4 sm:$0xff]  }
 0x721   : > { %9355 = vmatprep.subr.bf16.mxu1 %v13410_v63  ;;  %v13450_v63 = vld [vmem:[%s18606_s5 + $0xfa8] ss:$20 sps:$4 sm:$0xff]  }
 0x723   : > { %9315 = vmatpush2.bf16.msra.mxu0 %v13405_v6  ;;  %v13455_v6 = vld [vmem:[%s18606_s5 + $0xd04] ss:$20 sps:$4 sm:$0xff]  }
 0x724   : > { %9356 = vmatpush2.bf16.msra.mxu1 %v13408_v39  ;;  %9316 = vmatprep.subr.bf16.mxu0 %v13413_v31  ;;  %v13458_v39 = vld [vmem:[%s18606_s5 + $0xf84] ss:$20 sps:$4 sm:$0xff]   ;;  %v13453_v31 = vld [vmem:[%s18606_s5 + $0xd00] ss:$20 sps:$4 sm:$0xff]  }
 0x725   : > { %9357 = vmatprep.subr.bf16.mxu1 %v13416_v60  ;;  %v13456_v60 = vld [vmem:[%s18606_s5 + $0xf80] ss:$20 sps:$4 sm:$0xff]  }
 0x727   : > { %9317 = vmatpush2.bf16.msra.mxu0 %v13411_v45  ;;  %v13461_v45 = vld [vmem:[%s18606_s5 + $0xcdc] ss:$20 sps:$4 sm:$0xff]  }
 0x728   : > { %9358 = vmatpush2.bf16.msra.mxu1 %v13414_v2  ;;  %9318 = vmatprep.subr.bf16.mxu0 %v13419_v17  ;;  %v13464_v2 = vld [vmem:[%s18606_s5 + $0xf5c] ss:$20 sps:$4 sm:$0xff]   ;;  %v13459_v17 = vld [vmem:[%s18606_s5 + $0xcd8] ss:$20 sps:$4 sm:$0xff]  }
 0x729   : > { %9359 = vmatprep.subr.bf16.mxu1 %v13422_v58  ;;  %v13462_v58 = vld [vmem:[%s18606_s5 + $0xf58] ss:$20 sps:$4 sm:$0xff]  }
 0x72b   : > { %9319 = vmatpush2.bf16.msra.mxu0 %v13417_v5  ;;  %v13467_v5 = vld [vmem:[%s18606_s5 + $0xcb4] ss:$20 sps:$4 sm:$0xff]  }
 0x72c   : > { %9360 = vmatpush2.bf16.msra.mxu1 %v13420_v46  ;;  %9320 = vmatprep.subr.bf16.mxu0 %v13425_v15  ;;  %v13470_v46 = vld [vmem:[%s18606_s5 + $0xf34] ss:$20 sps:$4 sm:$0xff]   ;;  %v13465_v15 = vld [vmem:[%s18606_s5 + $0xcb0] ss:$20 sps:$4 sm:$0xff]  }
 0x72d   : > { %9361 = vmatprep.subr.bf16.mxu1 %v13428_v1  ;;  %v13468_v1 = vld [vmem:[%s18606_s5 + $0xf30] ss:$20 sps:$4 sm:$0xff]  }
 0x72f   : > { %9321 = vmatpush2.bf16.msra.mxu0 %v13423_v43  ;;  %v13473_v43 = vld [vmem:[%s18606_s5 + $0xc8c] ss:$20 sps:$4 sm:$0xff]  }
 0x730   : > { %9362 = vmatpush2.bf16.msra.mxu1 %v13426_v21  ;;  %9372 = vmatprep.subr.bf16.mxu0 %v13431_v40  ;;  %v13476_v21 = vld [vmem:[%s18606_s5 + $0xf0c] ss:$20 sps:$4 sm:$0xff]   ;;  %v13471_v40 = vld [vmem:[%s18606_s5 + $0xc88] ss:$20 sps:$4 sm:$0xff]  }
 0x731   : > { %9413 = vmatprep.subr.bf16.mxu1 %v13434_v23  ;;  %v13474_v23 = vld [vmem:[%s18606_s5 + $0xf08] ss:$20 sps:$4 sm:$0xff]  }
 0x732   : > { %v9078_v12 = vpop.f32.mrf.mxu0  ;;  %9323 = vmatmul.mubr.bf16.vlgmr.msra.gmra.mxu0 %v16455_v44 }
 0x733   : > { %v9079_v24 = vadd.f32 %v9078_v12, %v17316_v4  ;;  %v9119_v0 = vpop.f32.mrf.mxu1  ;;  %9364 = vmatmul.mubr.bf16.vlgmr.msra.gmra.mxu1 %v16661_v34  ;;  %9373 = vmatpush1.bf16.msra.mxu0 %v13429_v18  ;;  %v13443_v4 = vld [vmem:[%s18606_s5 + $0xd54] ss:$20 sps:$4 sm:$0xff]   ;;  %v13479_v18 = vld [vmem:[%s18606_s5 + $0xee4] ss:$20 sps:$4 sm:$0xff]  }
 0x734   : > { %9404 = vmatprep.mubr.bf16.mxu0 %v16470_v29  ;;  %9414 = vmatpush1.bf16.msra.mxu1 %v13432_v50  ;;  %v9080_v47 = vpop.f32.mrf.mxu0  ;;  %v13482_v50 = vld [vmem:[%s18606_s5 + $0x1164] ss:$20 sps:$4 sm:$0xff]   ;;  %v13480_v12 = vld [vmem:[%s18606_s5 + $0x1160] ss:$20 sps:$4 sm:$0xff]  }
 0x735   : > { %v17518_v56 = vadd.f32 %v9119_v0, %v9079_v24  ;;  %9445 = vmatprep.mubr.bf16.mxu1 %v16674_v62  ;;  %v9081_v48 = vadd.f32 %v9080_v47, %v17323_v19  ;;  %v9121_v57 = vpop.f32.mrf.mxu1  ;;  %9374 = vmatprep.subr.bf16.mxu0 %v13437_v25  ;;  %v13444_v19 = vld [vmem:[%s18606_s5 + $0xfd0] ss:$20 sps:$4 sm:$0xff]   ;;  %v13477_v25 = vld [vmem:[%s18606_s5 + $0xee0] ss:$20 sps:$4 sm:$0xff]   ;;  %v13483_v0 = vld [vmem:[%s18606_s5 + $0xeb8] ss:$20 sps:$4 sm:$0xff]  }
 0x736   : > { %v9082_v22 = vpop.f32.mrf.mxu0  ;;  %9415 = vmatprep.subr.bf16.mxu1 %v13440_v11  ;;  %v13485_v11 = vld [vmem:[%s18606_s5 + $0xebc] ss:$20 sps:$4 sm:$0xff]   ;;  %v13491_v47 = vld [vmem:[%s18606_s5 + $0xe94] ss:$20 sps:$4 sm:$0xff]  }
 0x737   : > { %v17525_v7 = vadd.f32 %v9121_v57, %v9081_v48  ;;  %v9123_v55 = vpop.f32.mrf.mxu1  ;;  %9375 = vmatpush1.bf16.msra.mxu0 %v13435_v36  ;;  %v13488_v24 = vld [vmem:[%s18606_s5 + $0x113c] ss:$20 sps:$4 sm:$0xff]   ;;  %v13486_v36 = vld [vmem:[%s18606_s5 + $0x1138] ss:$20 sps:$4 sm:$0xff]  }
 0x738   : > { %9416 = vmatpush1.bf16.msra.mxu1 %v13438_v16  ;;  %v9083_v10 = vpop.f32.mrf.mxu0  ;;  %9376 = vmatprep.subr.bf16.mxu0 %v13443_v4  ;;  %v13494_v16 = vld [vmem:[%s18606_s5 + $0x1114] ss:$20 sps:$4 sm:$0xff]   ;;  %v13489_v4 = vld [vmem:[%s18606_s5 + $0xe90] ss:$20 sps:$4 sm:$0xff]   ;;  %v13497_v57 = vld [vmem:[%s18606_s5 + $0xe6c] ss:$20 sps:$4 sm:$0xff]  }
 0x739   : > { %v9124_v53 = vpop.f32.mrf.mxu1  ;;  %9417 = vmatprep.subr.bf16.mxu1 %v13446_v32  ;;  %v13492_v48 = vld [vmem:[%s18606_s5 + $0x1110] ss:$20 sps:$4 sm:$0xff]   ;;  %v13500_v32 = vld [vmem:[%s18606_s5 + $0x10ec] ss:$20 sps:$4 sm:$0xff]   ;;  %v13495_v22 = vld [vmem:[%s18606_s5 + $0xe68] ss:$20 sps:$4 sm:$0xff]  }
 0x73a   : > { %v13498_v55 = vld [vmem:[%s18606_s5 + $0x10e8] ss:$20 sps:$4 sm:$0xff]   ;;  %v13506_v10 = vld [vmem:[%s18606_s5 + $0x10c4] ss:$20 sps:$4 sm:$0xff]  }
 0x73b   : > { %9377 = vmatpush1.bf16.msra.mxu0 %v13441_v20  ;;  %v13503_v20 = vld [vmem:[%s18606_s5 + $0xe44] ss:$20 sps:$4 sm:$0xff]   ;;  %v13509_v53 = vld [vmem:[%s18606_s5 + $0xe1c] ss:$20 sps:$4 sm:$0xff]  }
 0x73c   : > { %9418 = vmatpush1.bf16.msra.mxu1 %v13444_v19  ;;  %9378 = vmatprep.subr.bf16.mxu0 %v13449_v13  ;;  %v13501_v19 = vld [vmem:[%s18606_s5 + $0xe40] ss:$20 sps:$4 sm:$0xff]  }
 0x73d   : > { %9419 = vmatprep.subr.bf16.mxu1 %v13452_v59  ;;  %v13504_v13 = vld [vmem:[%s18606_s5 + $0x10c0] ss:$20 sps:$4 sm:$0xff]   ;;  %v13512_v59 = vld [vmem:[%s18606_s5 + $0x109c] ss:$20 sps:$4 sm:$0xff]  }
 0x73f   : > { %9379 = vmatpush1.bf16.msra.mxu0 %v13447_v8  ;;  %v13507_v8 = vld [vmem:[%s18606_s5 + $0xe18] ss:$20 sps:$4 sm:$0xff]  }
 0x740   : > { %9420 = vmatpush1.bf16.msra.mxu1 %v13450_v63  ;;  %9380 = vmatprep.subr.bf16.mxu0 %v13455_v6  ;;  %v13510_v63 = vld [vmem:[%s18606_s5 + $0x1098] ss:$20 sps:$4 sm:$0xff]   ;;  %v13515_v6 = vld [vmem:[%s18606_s5 + $0xdf4] ss:$20 sps:$4 sm:$0xff]  }
 0x741   : > { %9421 = vmatprep.subr.bf16.mxu1 %v13458_v39  ;;  %v13518_v39 = vld [vmem:[%s18606_s5 + $0x1074] ss:$20 sps:$4 sm:$0xff]  }
 0x743   : > { %9381 = vmatpush1.bf16.msra.mxu0 %v13453_v31  ;;  %v13513_v31 = vld [vmem:[%s18606_s5 + $0xdf0] ss:$20 sps:$4 sm:$0xff]  }
 0x744   : > { %9422 = vmatpush1.bf16.msra.mxu1 %v13456_v60  ;;  %9382 = vmatprep.subr.bf16.mxu0 %v13461_v45  ;;  %v13516_v60 = vld [vmem:[%s18606_s5 + $0x1070] ss:$20 sps:$4 sm:$0xff]   ;;  %v13521_v45 = vld [vmem:[%s18606_s5 + $0xdcc] ss:$20 sps:$4 sm:$0xff]  }
 0x745   : > { %9423 = vmatprep.subr.bf16.mxu1 %v13464_v2  ;;  %v13524_v2 = vld [vmem:[%s18606_s5 + $0x104c] ss:$20 sps:$4 sm:$0xff]  }
 0x747   : > { %9383 = vmatpush1.bf16.msra.mxu0 %v13459_v17  ;;  %v13519_v17 = vld [vmem:[%s18606_s5 + $0xdc8] ss:$20 sps:$4 sm:$0xff]  }
 0x748   : > { %9424 = vmatpush1.bf16.msra.mxu1 %v13462_v58  ;;  %9384 = vmatprep.subr.bf16.mxu0 %v13467_v5  ;;  %v13522_v58 = vld [vmem:[%s18606_s5 + $0x1048] ss:$20 sps:$4 sm:$0xff]   ;;  %v13527_v5 = vld [vmem:[%s18606_s5 + $0x12a4] ss:$20 sps:$4 sm:$0xff]  }
 0x749   : > { %9425 = vmatprep.subr.bf16.mxu1 %v13470_v46  ;;  %v13530_v46 = vld [vmem:[%s18606_s5 + $0x1524] ss:$20 sps:$4 sm:$0xff]  }
 0x74b   : > { %9385 = vmatpush1.bf16.msra.mxu0 %v13465_v15  ;;  %v13525_v15 = vld [vmem:[%s18606_s5 + $0x12a0] ss:$20 sps:$4 sm:$0xff]  }
 0x74c   : > { %9426 = vmatpush1.bf16.msra.mxu1 %v13468_v1  ;;  %9386 = vmatprep.subr.bf16.mxu0 %v13473_v43  ;;  %v13528_v1 = vld [vmem:[%s18606_s5 + $0x1520] ss:$20 sps:$4 sm:$0xff]   ;;  %v13533_v43 = vld [vmem:[%s18606_s5 + $0x127c] ss:$20 sps:$4 sm:$0xff]  }
 0x74d   : > { %9427 = vmatprep.subr.bf16.mxu1 %v13476_v21 }
 0x74f   : > { %9387 = vmatpush1.bf16.msra.mxu0 %v13471_v40  ;;  %v13536_v40 = vld [vmem:[%s18606_s5 + $0x14fc] ss:$20 sps:$4 sm:$0xff]  }
 0x750   : > { %9428 = vmatpush1.bf16.msra.mxu1 %v13474_v23  ;;  %9388 = vmatprep.subr.bf16.mxu0 %v13479_v18 }
 0x751   : > { %9429 = vmatprep.subr.bf16.mxu1 %v13482_v50  ;;  %v13531_v50 = vld [vmem:[%s18606_s5 + $0x1278] ss:$20 sps:$4 sm:$0xff]  }
 0x753   : > { %9389 = vmatpush2.bf16.msra.mxu0 %v13477_v25 }
 0x754   : > { %9430 = vmatpush2.bf16.msra.mxu1 %v13480_v12  ;;  %9390 = vmatprep.subr.bf16.mxu0 %v13485_v11  ;;  %v13534_v12 = vld [vmem:[%s18606_s5 + $0x14f8] ss:$20 sps:$4 sm:$0xff]  }
 0x755   : > { %9431 = vmatprep.subr.bf16.mxu1 %v13488_v24 }
 0x757   : > { %9391 = vmatpush2.bf16.msra.mxu0 %v13483_v0  ;;  %v13542_v0 = vld [vmem:[%s18606_s5 + $0x14d4] ss:$20 sps:$4 sm:$0xff]  }
 0x758   : > { %9432 = vmatpush2.bf16.msra.mxu1 %v13486_v36  ;;  %9392 = vmatprep.subr.bf16.mxu0 %v13491_v47 }
 0x759   : > { %9433 = vmatprep.subr.bf16.mxu1 %v13494_v16  ;;  %v13537_v16 = vld [vmem:[%s18606_s5 + $0x1250] ss:$20 sps:$4 sm:$0xff]  }
 0x75b   : > { %9393 = vmatpush2.bf16.msra.mxu0 %v13489_v4 }
 0x75c   : > { %9434 = vmatpush2.bf16.msra.mxu1 %v13492_v48  ;;  %9394 = vmatprep.subr.bf16.mxu0 %v13497_v57  ;;  %v13545_v48 = vld [vmem:[%s18606_s5 + $0x122c] ss:$20 sps:$4 sm:$0xff]  }
 0x75d   : > { %9435 = vmatprep.subr.bf16.mxu1 %v13500_v32  ;;  %v13548_v32 = vld [vmem:[%s18606_s5 + $0x14ac] ss:$20 sps:$4 sm:$0xff]  }
 0x75f   : > { %9395 = vmatpush2.bf16.msra.mxu0 %v13495_v22  ;;  %v13543_v22 = vld [vmem:[%s18606_s5 + $0x1228] ss:$20 sps:$4 sm:$0xff]  }
 0x760   : > { %9436 = vmatpush2.bf16.msra.mxu1 %v13498_v55  ;;  %9396 = vmatprep.subr.bf16.mxu0 %v13503_v20  ;;  %v13546_v55 = vld [vmem:[%s18606_s5 + $0x14a8] ss:$20 sps:$4 sm:$0xff]   ;;  %v13551_v20 = vld [vmem:[%s18606_s5 + $0x1204] ss:$20 sps:$4 sm:$0xff]  }
 0x761   : > { %9437 = vmatprep.subr.bf16.mxu1 %v13506_v10  ;;  %v13554_v10 = vld [vmem:[%s18606_s5 + $0x1484] ss:$20 sps:$4 sm:$0xff]  }
 0x763   : > { %9397 = vmatpush2.bf16.msra.mxu0 %v13501_v19  ;;  %v13549_v19 = vld [vmem:[%s18606_s5 + $0x1200] ss:$20 sps:$4 sm:$0xff]  }
 0x764   : > { %9438 = vmatpush2.bf16.msra.mxu1 %v13504_v13  ;;  %9398 = vmatprep.subr.bf16.mxu0 %v13509_v53  ;;  %v13552_v13 = vld [vmem:[%s18606_s5 + $0x1480] ss:$20 sps:$4 sm:$0xff]   ;;  %v13557_v53 = vld [vmem:[%s18606_s5 + $0x11dc] ss:$20 sps:$4 sm:$0xff]  }
 0x765   : > { %9439 = vmatprep.subr.bf16.mxu1 %v13512_v59  ;;  %v13560_v59 = vld [vmem:[%s18606_s5 + $0x145c] ss:$20 sps:$4 sm:$0xff]  }
 0x767   : > { %9399 = vmatpush2.bf16.msra.mxu0 %v13507_v8  ;;  %v13555_v8 = vld [vmem:[%s18606_s5 + $0x11d8] ss:$20 sps:$4 sm:$0xff]  }
 0x768   : > { %9440 = vmatpush2.bf16.msra.mxu1 %v13510_v63  ;;  %9400 = vmatprep.subr.bf16.mxu0 %v13515_v6  ;;  %v13558_v63 = vld [vmem:[%s18606_s5 + $0x1458] ss:$20 sps:$4 sm:$0xff]   ;;  %v13563_v6 = vld [vmem:[%s18606_s5 + $0x11b4] ss:$20 sps:$4 sm:$0xff]  }
 0x769   : > { %9441 = vmatprep.subr.bf16.mxu1 %v13518_v39  ;;  %v13566_v39 = vld [vmem:[%s18606_s5 + $0x1434] ss:$20 sps:$4 sm:$0xff]  }
 0x76b   : > { %9401 = vmatpush2.bf16.msra.mxu0 %v13513_v31  ;;  %v13561_v31 = vld [vmem:[%s18606_s5 + $0x11b0] ss:$20 sps:$4 sm:$0xff]  }
 0x76c   : > { %9442 = vmatpush2.bf16.msra.mxu1 %v13516_v60  ;;  %9402 = vmatprep.subr.bf16.mxu0 %v13521_v45  ;;  %v13564_v60 = vld [vmem:[%s18606_s5 + $0x1430] ss:$20 sps:$4 sm:$0xff]   ;;  %v13569_v45 = vld [vmem:[%s18606_s5 + $0x118c] ss:$20 sps:$4 sm:$0xff]  }
 0x76d   : > { %9443 = vmatprep.subr.bf16.mxu1 %v13524_v2  ;;  %v13572_v2 = vld [vmem:[%s18606_s5 + $0x140c] ss:$20 sps:$4 sm:$0xff]  }
 0x76f   : > { %9403 = vmatpush2.bf16.msra.mxu0 %v13519_v17  ;;  %v13567_v17 = vld [vmem:[%s18606_s5 + $0x1188] ss:$20 sps:$4 sm:$0xff]  }
 0x770   : > { %9444 = vmatpush2.bf16.msra.mxu1 %v13522_v58  ;;  %9454 = vmatprep.subr.bf16.mxu0 %v13527_v5  ;;  %v13570_v58 = vld [vmem:[%s18606_s5 + $0x1408] ss:$20 sps:$4 sm:$0xff]   ;;  %v13575_v5 = vld [vmem:[%s18606_s5 + $0x13e4] ss:$20 sps:$4 sm:$0xff]  }
 0x771   : > { %9495 = vmatprep.subr.bf16.mxu1 %v13530_v46  ;;  %v13578_v46 = vld [vmem:[%s18606_s5 + $0x1664] ss:$20 sps:$4 sm:$0xff]  }
 0x772   : > { %v9160_v21 = vpop.f32.mrf.mxu0  ;;  %9405 = vmatmul.mubr.bf16.vlgmr.msra.gmra.mxu0 %v16666_v41 }
 0x773   : > { %v17709_v23 = vadd.f32 %v9160_v21, %v17518_v56  ;;  %v17711_v18 = vpop.f32.mrf.mxu1  ;;  %9446 = vmatmul.mubr.bf16.vlgmr.msra.gmra.mxu1 %v16879_v42  ;;  %9455 = vmatpush1.bf16.msra.mxu0 %v13525_v15  ;;  %v13539_v56 = vld [vmem:[%s18606_s5 + $0x1254] ss:$20 sps:$4 sm:$0xff]   ;;  %v13584_v21 = vld [vmem:[%s18606_s5 + $0x163c] ss:$20 sps:$4 sm:$0xff]  }
 0x774   : > { %9486 = vmatprep.mubr.bf16.mxu0 %v16682_v3  ;;  %9496 = vmatpush1.bf16.msra.mxu1 %v13528_v1  ;;  %v9162_v25 = vpop.f32.mrf.mxu0  ;;  %v13573_v15 = vld [vmem:[%s18606_s5 + $0x13e0] ss:$20 sps:$4 sm:$0xff]  }
 0x775   : > { %9527 = vmatprep.mubr.bf16.mxu1 %v16893_v28  ;;  %v17726_v11 = vadd.f32 %v9162_v25, %v17525_v7  ;;  %v17728_v24 = vpop.f32.mrf.mxu1  ;;  %9456 = vmatprep.subr.bf16.mxu0 %v13533_v43  ;;  %v13540_v7 = vld [vmem:[%s18606_s5 + $0x14d0] ss:$20 sps:$4 sm:$0xff]   ;;  %v13576_v1 = vld [vmem:[%s18606_s5 + $0x1660] ss:$20 sps:$4 sm:$0xff]  }
 0x776   : > { %v9164_v36 = vpop.f32.mrf.mxu0  ;;  %9497 = vmatprep.subr.bf16.mxu1 %v13536_v40  ;;  %v13581_v43 = vld [vmem:[%s18606_s5 + $0x13bc] ss:$20 sps:$4 sm:$0xff]   ;;  %v13579_v40 = vld [vmem:[%s18606_s5 + $0x13b8] ss:$20 sps:$4 sm:$0xff]   ;;  %v13587_v25 = vld [vmem:[%s18606_s5 + $0x1394] ss:$20 sps:$4 sm:$0xff]  }
 0x777   : > { %v9205_v47 = vpop.f32.mrf.mxu1  ;;  %9457 = vmatpush1.bf16.msra.mxu0 %v13531_v50  ;;  %v13582_v50 = vld [vmem:[%s18606_s5 + $0x1638] ss:$20 sps:$4 sm:$0xff]  }
 0x778   : > { %9498 = vmatpush1.bf16.msra.mxu1 %v13534_v12  ;;  %v9165_v4 = vpop.f32.mrf.mxu0  ;;  %9458 = vmatprep.subr.bf16.mxu0 %v13539_v56  ;;  %v13590_v12 = vld [vmem:[%s18606_s5 + $0x1614] ss:$20 sps:$4 sm:$0xff]   ;;  %v13585_v56 = vld [vmem:[%s18606_s5 + $0x1390] ss:$20 sps:$4 sm:$0xff]   ;;  %v13593_v36 = vld [vmem:[%s18606_s5 + $0x136c] ss:$20 sps:$4 sm:$0xff]  }
 0x779   : > { %v9206_v57 = vpop.f32.mrf.mxu1  ;;  %9499 = vmatprep.subr.bf16.mxu1 %v13542_v0  ;;  %v13588_v0 = vld [vmem:[%s18606_s5 + $0x1610] ss:$20 sps:$4 sm:$0xff]   ;;  %v13596_v47 = vld [vmem:[%s18606_s5 + $0x15ec] ss:$20 sps:$4 sm:$0xff]   ;;  %v13594_v4 = vld [vmem:[%s18606_s5 + $0x15e8] ss:$20 sps:$4 sm:$0xff]  }
 0x77a   : > { %v13597_v57 = vld [vmem:[%s18606_s5 + $0x1340] ss:$20 sps:$4 sm:$0xff]  }
 0x77b   : > { %9459 = vmatpush1.bf16.msra.mxu0 %v13537_v16  ;;  %v13591_v16 = vld [vmem:[%s18606_s5 + $0x1368] ss:$20 sps:$4 sm:$0xff]  }
 0x77c   : > { %9500 = vmatpush1.bf16.msra.mxu1 %v13540_v7  ;;  %9460 = vmatprep.subr.bf16.mxu0 %v13545_v48  ;;  %v13599_v7 = vld [vmem:[%s18606_s5 + $0x1344] ss:$20 sps:$4 sm:$0xff]  }
 0x77d   : > { %9501 = vmatprep.subr.bf16.mxu1 %v13548_v32  ;;  %v13602_v48 = vld [vmem:[%s18606_s5 + $0x15c4] ss:$20 sps:$4 sm:$0xff]   ;;  %v13600_v32 = vld [vmem:[%s18606_s5 + $0x15c0] ss:$20 sps:$4 sm:$0xff]  }
 0x77f   : > { %9461 = vmatpush1.bf16.msra.mxu0 %v13543_v22  ;;  %v13605_v22 = vld [vmem:[%s18606_s5 + $0x131c] ss:$20 sps:$4 sm:$0xff]  }
 0x780   : > { %9502 = vmatpush1.bf16.msra.mxu1 %v13546_v55  ;;  %9462 = vmatprep.subr.bf16.mxu0 %v13551_v20  ;;  %v13608_v55 = vld [vmem:[%s18606_s5 + $0x159c] ss:$20 sps:$4 sm:$0xff]   ;;  %v13603_v20 = vld [vmem:[%s18606_s5 + $0x1318] ss:$20 sps:$4 sm:$0xff]  }
 0x781   : > { %9503 = vmatprep.subr.bf16.mxu1 %v13554_v10  ;;  %v13606_v10 = vld [vmem:[%s18606_s5 + $0x1598] ss:$20 sps:$4 sm:$0xff]  }
 0x783   : > { %9463 = vmatpush1.bf16.msra.mxu0 %v13549_v19  ;;  %v13611_v19 = vld [vmem:[%s18606_s5 + $0x12f4] ss:$20 sps:$4 sm:$0xff]  }
 0x784   : > { %9504 = vmatpush1.bf16.msra.mxu1 %v13552_v13  ;;  %9464 = vmatprep.subr.bf16.mxu0 %v13557_v53  ;;  %v13614_v13 = vld [vmem:[%s18606_s5 + $0x1574] ss:$20 sps:$4 sm:$0xff]   ;;  %v13609_v53 = vld [vmem:[%s18606_s5 + $0x12f0] ss:$20 sps:$4 sm:$0xff]  }
 0x785   : > { %9505 = vmatprep.subr.bf16.mxu1 %v13560_v59  ;;  %v13612_v59 = vld [vmem:[%s18606_s5 + $0x1570] ss:$20 sps:$4 sm:$0xff]  }
 0x787   : > { %9465 = vmatpush1.bf16.msra.mxu0 %v13555_v8  ;;  %v13617_v8 = vld [vmem:[%s18606_s5 + $0x12cc] ss:$20 sps:$4 sm:$0xff]  }
 0x788   : > { %9506 = vmatpush1.bf16.msra.mxu1 %v13558_v63  ;;  %9466 = vmatprep.subr.bf16.mxu0 %v13563_v6  ;;  %v13620_v63 = vld [vmem:[%s18606_s5 + $0x154c] ss:$20 sps:$4 sm:$0xff]   ;;  %v13615_v6 = vld [vmem:[%s18606_s5 + $0x12c8] ss:$20 sps:$4 sm:$0xff]  }
 0x789   : > { %9507 = vmatprep.subr.bf16.mxu1 %v13566_v39  ;;  %v13618_v39 = vld [vmem:[%s18606_s5 + $0x1548] ss:$20 sps:$4 sm:$0xff]  }
 0x78b   : > { %9467 = vmatpush1.bf16.msra.mxu0 %v13561_v31  ;;  %v13621_v31 = vld [vmem:[%s18606_s5 + $0x268] ss:$20 sps:$4 sm:$0xff]  }
 0x78c   : > { %9508 = vmatpush1.bf16.msra.mxu1 %v13564_v60  ;;  %9468 = vmatprep.subr.bf16.mxu0 %v13569_v45  ;;  %v17901_v60 = vld [vmem:[%s18607_s6] sm:$0x1f] }
 0x78d   : > { %9509 = vmatprep.subr.bf16.mxu1 %v13572_v2  ;;  %v8784_v45 = vrot.slane %v17901_v60, %v16176_v9  ;;  %v13622_v2 = vld [vmem:[%s18606_s5 + $0x768] ss:$20 sps:$4 sm:$0xff]  }
 0x78f   : > { %9469 = vmatpush1.bf16.msra.mxu0 %v13567_v17  ;;  %v8788_v17 = vrot.slane %v17901_v60, %v16170_v27  ;;  %v9202_v9 = vadd.f32 %v17711_v18, %v8784_v45  ;;  %v13626_v27 = vld [vmem:[%s18606_s5 + $0x740] ss:$20 sps:$4 sm:$0xff]   ;;  %v13649_v45 = vld [vmem:[%s18606_s5 + $0x150] ss:$20 sps:$4 sm:$0xff]  }
 0x790   : > { %9510 = vmatpush1.bf16.msra.mxu1 %v13570_v58  ;;  %9470 = vmatprep.subr.bf16.mxu0 %v13575_v5  ;;  %v13623_v58 = vld [vmem:[%s18606_s5 + $0x128] ss:$20 sps:$4 sm:$0xff]   ;;  %v13627_v18 = vld [vmem:[%s18606_s5 + $0x100] ss:$20 sps:$4 sm:$0xff]  }
 0x791   : > { %9511 = vmatprep.subr.bf16.mxu1 %v13578_v46  ;;  %v13624_v5 = vld [vmem:[%s18606_s5 + $0x628] ss:$20 sps:$4 sm:$0xff]   ;;  %v13625_v46 = vld [vmem:[%s18606_s5 + $0x240] ss:$20 sps:$4 sm:$0xff]  }
 0x793   : > { %9471 = vmatpush2.bf16.msra.mxu0 %v13573_v15 }
 0x794   : > { %9512 = vmatpush2.bf16.msra.mxu1 %v13576_v1  ;;  %9472 = vmatprep.subr.bf16.mxu0 %v13581_v43  ;;  %v9204_v1 = vadd.f32 %v17728_v24, %v8788_v17  ;;  %v13629_v24 = vld [vmem:[%s18606_s5 + $0x218] ss:$20 sps:$4 sm:$0xff]   ;;  %v13651_v17 = vld [vmem:[%s18606_s5 + $0x10] ss:$20 sps:$4 sm:$0xff]  }
 0x795   : > { %9513 = vmatprep.subr.bf16.mxu1 %v13584_v21 }
 0x797   : > { %9473 = vmatpush2.bf16.msra.mxu0 %v13579_v40 }
 0x798   : > { %9514 = vmatpush2.bf16.msra.mxu1 %v13582_v50  ;;  %9474 = vmatprep.subr.bf16.mxu0 %v13587_v25  ;;  %v13628_v50 = vld [vmem:[%s18606_s5 + $0x600] ss:$20 sps:$4 sm:$0xff]  }
 0x799   : > { %9515 = vmatprep.subr.bf16.mxu1 %v13590_v12 }
 0x79b   : > { %9475 = vmatpush2.bf16.msra.mxu0 %v13585_v56 }
 0x79c   : > { %9516 = vmatpush2.bf16.msra.mxu1 %v13588_v0  ;;  %9476 = vmatprep.subr.bf16.mxu0 %v13593_v36 }
 0x79d   : > { %9517 = vmatprep.subr.bf16.mxu1 %v13596_v47 }
 0x79f   : > { %9477 = vmatpush2.bf16.msra.mxu0 %v13591_v16  ;;  %v13631_v16 = vld [vmem:[%s18606_s5 + $0xd8] ss:$20 sps:$4 sm:$0xff]  }
 0x7a0   : > { %9518 = vmatpush2.bf16.msra.mxu1 %v13594_v4  ;;  %9478 = vmatprep.subr.bf16.mxu0 %v13599_v7  ;;  %v13633_v7 = vld [vmem:[%s18606_s5 + $0x1f0] ss:$20 sps:$4 sm:$0xff]  }
 0x7a1   : > { %9519 = vmatprep.subr.bf16.mxu1 %v13602_v48 }
 0x7a3   : > { %9479 = vmatpush2.bf16.msra.mxu0 %v13597_v57  ;;  %v13634_v57 = vld [vmem:[%s18606_s5 + $0x6f0] ss:$20 sps:$4 sm:$0xff]  }
 0x7a4   : > { %9520 = vmatpush2.bf16.msra.mxu1 %v13600_v32  ;;  %9480 = vmatprep.subr.bf16.mxu0 %v13605_v22  ;;  %v13635_v32 = vld [vmem:[%s18606_s5 + $0xb0] ss:$20 sps:$4 sm:$0xff]  }
 0x7a5   : > { %9521 = vmatprep.subr.bf16.mxu1 %v13608_v55  ;;  %v13636_v22 = vld [vmem:[%s18606_s5 + $0x5b0] ss:$20 sps:$4 sm:$0xff]   ;;  %v13637_v55 = vld [vmem:[%s18606_s5 + $0x1c8] ss:$20 sps:$4 sm:$0xff]  }
 0x7a7   : > { %9481 = vmatpush2.bf16.msra.mxu0 %v13603_v20  ;;  %v13638_v20 = vld [vmem:[%s18606_s5 + $0x6c8] ss:$20 sps:$4 sm:$0xff]  }
 0x7a8   : > { %9522 = vmatpush2.bf16.msra.mxu1 %v13606_v10  ;;  %9482 = vmatprep.subr.bf16.mxu0 %v13611_v19  ;;  %v13639_v10 = vld [vmem:[%s18606_s5 + $0x88] ss:$20 sps:$4 sm:$0xff]  }
 0x7a9   : > { %9523 = vmatprep.subr.bf16.mxu1 %v13614_v13  ;;  %v13640_v19 = vld [vmem:[%s18606_s5 + $0x588] ss:$20 sps:$4 sm:$0xff]   ;;  %v13641_v13 = vld [vmem:[%s18606_s5 + $0x1a0] ss:$20 sps:$4 sm:$0xff]  }
 0x7ab   : > { %9483 = vmatpush2.bf16.msra.mxu0 %v13609_v53  ;;  %v13642_v53 = vld [vmem:[%s18606_s5 + $0x6a0] ss:$20 sps:$4 sm:$0xff]  }
 0x7ac   : > { %9524 = vmatpush2.bf16.msra.mxu1 %v13612_v59  ;;  %9484 = vmatprep.subr.bf16.mxu0 %v13617_v8  ;;  %v13643_v59 = vld [vmem:[%s18606_s5 + $0x60] ss:$20 sps:$4 sm:$0xff]  }
 0x7ad   : > { %9525 = vmatprep.subr.bf16.mxu1 %v13620_v63  ;;  %v13644_v8 = vld [vmem:[%s18606_s5 + $0x560] ss:$20 sps:$4 sm:$0xff]   ;;  %v13645_v63 = vld [vmem:[%s18606_s5 + $0x178] ss:$20 sps:$4 sm:$0xff]  }
 0x7af   : > { %9485 = vmatpush2.bf16.msra.mxu0 %v13615_v6  ;;  %v13646_v6 = vld [vmem:[%s18606_s5 + $0x678] ss:$20 sps:$4 sm:$0xff]  }
 0x7b0   : > { %9526 = vmatpush2.bf16.msra.mxu1 %v13618_v39  ;;  %11710 = vmatprep.subr.bf16.mxu0 %v13621_v31  ;;  %v13647_v39 = vld [vmem:[%s18606_s5 + $0x38] ss:$20 sps:$4 sm:$0xff]  }
 0x7b1   : > { %11754 = vmatprep.subr.bf16.mxu1 %v13622_v2  ;;  %v13648_v31 = vld [vmem:[%s18606_s5 + $0x538] ss:$20 sps:$4 sm:$0xff]   ;;  %v13650_v2 = vld [vmem:[%s18606_s5 + $0x650] ss:$20 sps:$4 sm:$0xff]  }
 0x7b2   : > { %v9242_v15 = vpop.f32.mrf.mxu0  ;;  %9487 = vmatmul.mubr.bf16.vlgmr.msra.gmra.mxu0 %v16886_v38 }
 0x7b3   : > { %v9243_v43 = vadd.f32 %v9242_v15, %v9202_v9  ;;  %v9283_v21 = vpop.f32.mrf.mxu1  ;;  %9528 = vmatmul.mubr.bf16.vlgmr.msra.gmra.mxu1 %v17090_v61  ;;  %11711 = vmatpush3.bf16.msra.mxu0 %v13623_v58  ;;  %v13652_v58 = vld [vmem:[%s18606_s5 + $0x510] ss:$20 sps:$4 sm:$0xff]   ;;  %v13654_v9 = vld [vmem:[%s18606_s5 + $0xc68] ss:$20 sps:$4 sm:$0xff]  }
 0x7b4   : > { %9568 = vmatprep.mubr.bf16.mxu0 %v16196_v49  ;;  %11755 = vmatpush3.bf16.msra.mxu1 %v13624_v5  ;;  %v9244_v40 = vpop.f32.mrf.mxu0  ;;  %v13630_v49 = vld [vmem:[%s18606_s5 + $0x718] ss:$20 sps:$4 sm:$0xff]   ;;  %v13653_v5 = vld [vmem:[%s18606_s5 + $0x4e8] ss:$20 sps:$4 sm:$0xff]  }
 0x7b5   : > { %v17936_v25 = vadd.f32 %v9283_v21, %v9243_v43  ;;  %9648 = vmatprep.mubr.bf16.mxu1 %v16222_v51  ;;  %v9245_v12 = vadd.f32 %v9244_v40, %v9204_v1  ;;  %v9285_v56 = vpop.f32.mrf.mxu1  ;;  %11712 = vmatprep.subr.bf16.mxu0 %v13625_v46  ;;  %v13632_v51 = vld [vmem:[%s18606_s5 + $0x5d8] ss:$20 sps:$4 sm:$0xff]   ;;  %v13655_v46 = vld [vmem:[%s18606_s5 + $0x3a8] ss:$20 sps:$4 sm:$0xff]   ;;  %v13658_v1 = vld [vmem:[%s18606_s5 + $0xc40] ss:$20 sps:$4 sm:$0xff]  }
 0x7b6   : > { %v9246_v0 = vpop.f32.mrf.mxu0  ;;  %11756 = vmatprep.subr.bf16.mxu1 %v13626_v27  ;;  %v13656_v15 = vld [vmem:[%s18606_s5 + $0xb28] ss:$20 sps:$4 sm:$0xff]   ;;  %v13657_v27 = vld [vmem:[%s18606_s5 + $0x4c0] ss:$20 sps:$4 sm:$0xff]   ;;  %v13666_v40 = vld [vmem:[%s18606_s5 + $0xbf0] ss:$20 sps:$4 sm:$0xff]  }
 0x7b7   : > { %v17942_v36 = vadd.f32 %v9285_v56, %v9245_v12  ;;  %v9287_v47 = vpop.f32.mrf.mxu1  ;;  %11713 = vmatpush3.bf16.msra.mxu0 %v13627_v18  ;;  %v13659_v43 = vld [vmem:[%s18606_s5 + $0x380] ss:$20 sps:$4 sm:$0xff]   ;;  %v13664_v18 = vld [vmem:[%s18606_s5 + $0xad8] ss:$20 sps:$4 sm:$0xff]   ;;  %v13669_v12 = vld [vmem:[%s18606_s5 + $0x448] ss:$20 sps:$4 sm:$0xff]  }
 0x7b8   : > { %11757 = vmatpush3.bf16.msra.mxu1 %v13628_v50  ;;  %v9247_v4 = vpop.f32.mrf.mxu0  ;;  %11714 = vmatprep.subr.bf16.mxu0 %v13629_v24  ;;  %v13660_v21 = vld [vmem:[%s18606_s5 + $0xb00] ss:$20 sps:$4 sm:$0xff]   ;;  %v13667_v50 = vld [vmem:[%s18606_s5 + $0x330] ss:$20 sps:$4 sm:$0xff]   ;;  %v13670_v56 = vld [vmem:[%s18606_s5 + $0xbc8] ss:$20 sps:$4 sm:$0xff]  }
 0x7b9   : > { %v9288_v48 = vpop.f32.mrf.mxu1  ;;  %11758 = vmatprep.subr.bf16.mxu1 %v13630_v49  ;;  %v13668_v24 = vld [vmem:[%s18606_s5 + $0xab0] ss:$20 sps:$4 sm:$0xff]   ;;  %v13671_v49 = vld [vmem:[%s18606_s5 + $0x308] ss:$20 sps:$4 sm:$0xff]   ;;  %v13673_v47 = vld [vmem:[%s18606_s5 + $0x420] ss:$20 sps:$4 sm:$0xff]  }
 0x7ba   : > { %v13672_v0 = vld [vmem:[%s18606_s5 + $0xa88] ss:$20 sps:$4 sm:$0xff]   ;;  %v13675_v4 = vld [vmem:[%s18606_s5 + $0x2e0] ss:$20 sps:$4 sm:$0xff]   ;;  %v13678_v48 = vld [vmem:[%s18606_s5 + $0xb78] ss:$20 sps:$4 sm:$0xff]  }
 0x7bb   : > { %11715 = vmatpush3.bf16.msra.mxu0 %v13631_v16  ;;  %v13674_v16 = vld [vmem:[%s18606_s5 + $0xba0] ss:$20 sps:$4 sm:$0xff]  }
 0x7bc   : > { %11759 = vmatpush3.bf16.msra.mxu1 %v13632_v51  ;;  %11716 = vmatprep.subr.bf16.mxu0 %v13633_v7  ;;  %v13676_v51 = vld [vmem:[%s18606_s5 + $0xa60] ss:$20 sps:$4 sm:$0xff]   ;;  %v13677_v7 = vld [vmem:[%s18606_s5 + $0x3f8] ss:$20 sps:$4 sm:$0xff]  }
 0x7bd   : > { %11760 = vmatprep.subr.bf16.mxu1 %v13634_v57  ;;  %v13679_v57 = vld [vmem:[%s18606_s5 + $0x2b8] ss:$20 sps:$4 sm:$0xff]  }
 0x7bf   : > { %11717 = vmatpush3.bf16.msra.mxu0 %v13635_v32  ;;  %v13680_v32 = vld [vmem:[%s18606_s5 + $0xa38] ss:$20 sps:$4 sm:$0xff]  }
 0x7c0   : > { %11761 = vmatpush3.bf16.msra.mxu1 %v13636_v22  ;;  %11718 = vmatprep.subr.bf16.mxu0 %v13637_v55  ;;  %v13681_v22 = vld [vmem:[%s18606_s5 + $0x3d0] ss:$20 sps:$4 sm:$0xff]  }
 0x7c1   : > { %11762 = vmatprep.subr.bf16.mxu1 %v13638_v20  ;;  %v13682_v55 = vld [vmem:[%s18606_s5 + $0xb50] ss:$20 sps:$4 sm:$0xff]  }
 0x7c2   : > { %v13683_v20 = vld [vmem:[%s18606_s5 + $0x290] ss:$20 sps:$4 sm:$0xff]  }
 0x7c3   : > { %11719 = vmatpush3.bf16.msra.mxu0 %v13639_v10  ;;  %v13684_v10 = vld [vmem:[%s18606_s5 + $0xa10] ss:$20 sps:$4 sm:$0xff]  }
 0x7c4   : > { %11763 = vmatpush3.bf16.msra.mxu1 %v13640_v19  ;;  %11720 = vmatprep.subr.bf16.mxu0 %v13641_v13  ;;  %v13685_v19 = vld [vmem:[%s18606_s5 + $0x9e8] ss:$20 sps:$4 sm:$0xff]  }
 0x7c5   : > { %11764 = vmatprep.subr.bf16.mxu1 %v13642_v53  ;;  %v13686_v13 = vld [vmem:[%s18606_s5 + $0x1168] ss:$20 sps:$4 sm:$0xff]  }
 0x7c6   : > { %v13687_v53 = vld [vmem:[%s18606_s5 + $0x8a8] ss:$20 sps:$4 sm:$0xff]  }
 0x7c7   : > { %11721 = vmatpush3.bf16.msra.mxu0 %v13643_v59  ;;  %v13688_v59 = vld [vmem:[%s18606_s5 + $0x1028] ss:$20 sps:$4 sm:$0xff]  }
 0x7c8   : > { %11765 = vmatpush3.bf16.msra.mxu1 %v13644_v8  ;;  %11722 = vmatprep.subr.bf16.mxu0 %v13645_v63  ;;  %v13689_v8 = vld [vmem:[%s18606_s5 + $0x9c0] ss:$20 sps:$4 sm:$0xff]  }
 0x7c9   : > { %11766 = vmatprep.subr.bf16.mxu1 %v13646_v6  ;;  %v13690_v6 = vld [vmem:[%s18606_s5 + $0x1140] ss:$20 sps:$4 sm:$0xff]  }
 0x7cb   : > { %11723 = vmatpush3.bf16.msra.mxu0 %v13647_v39 }
 0x7cc   : > { %11767 = vmatpush3.bf16.msra.mxu1 %v13648_v31  ;;  %11724 = vmatprep.subr.bf16.mxu0 %v13649_v45  ;;  %v13691_v45 = vld [vmem:[%s18606_s5 + $0x880] ss:$20 sps:$4 sm:$0xff]  }
 0x7cd   : > { %11768 = vmatprep.subr.bf16.mxu1 %v13650_v2 }
 0x7cf   : > { %11725 = vmatpush3.bf16.msra.mxu0 %v13651_v17 }
 0x7d0   : > { %11769 = vmatpush3.bf16.msra.mxu1 %v13652_v58  ;;  %11732 = vmatprep.subr.bf16.mxu0 %v13653_v5 }
 0x7d1   : > { %11798 = vmatprep.subr.bf16.mxu1 %v13654_v9 }
 0x7d2   : > { %9569 = vmatmul.mubr.bf16.vlgmr.msra.gmra.mxu0 %v16206_v30  ;;  %v13661_v30 = vld [vmem:[%s18606_s5 + $0x498] ss:$20 sps:$4 sm:$0xff]  }
 0x7d3   : > { %9649 = vmatmul.mubr.bf16.vlgmr.msra.gmra.mxu1 %v16453_v54  ;;  %11733 = vmatpush3.bf16.msra.mxu0 %v13655_v46  ;;  %v13662_v54 = vld [vmem:[%s18606_s5 + $0xc18] ss:$20 sps:$4 sm:$0xff]  }
 0x7d4   : > { %9608 = vmatprep.mubr.bf16.mxu0 %v16198_v37  ;;  %11799 = vmatpush3.bf16.msra.mxu1 %v13656_v15  ;;  %v13663_v37 = vld [vmem:[%s18606_s5 + $0x358] ss:$20 sps:$4 sm:$0xff]  }
 0x7d5   : > { %9728 = vmatprep.mubr.bf16.mxu1 %v16460_v33  ;;  %11734 = vmatprep.subr.bf16.mxu0 %v13657_v27  ;;  %v13665_v33 = vld [vmem:[%s18606_s5 + $0x470] ss:$20 sps:$4 sm:$0xff]   ;;  %v13695_v15 = vld [vmem:[%s18606_s5 + $0x858] ss:$20 sps:$4 sm:$0xff]  }
 0x7d6   : > { %11800 = vmatprep.subr.bf16.mxu1 %v13658_v1  ;;  %v13697_v27 = vld [vmem:[%s18606_s5 + $0x970] ss:$20 sps:$4 sm:$0xff]  }
 0x7d7   : > { %11735 = vmatpush3.bf16.msra.mxu0 %v13659_v43  ;;  %v13698_v43 = vld [vmem:[%s18606_s5 + $0x10f0] ss:$20 sps:$4 sm:$0xff]  }
 0x7d8   : > { %11801 = vmatpush3.bf16.msra.mxu1 %v13660_v21  ;;  %11736 = vmatprep.subr.bf16.mxu0 %v13661_v30  ;;  %v13699_v21 = vld [vmem:[%s18606_s5 + $0x830] ss:$20 sps:$4 sm:$0xff]  }
 0x7d9   : > { %11802 = vmatprep.subr.bf16.mxu1 %v13662_v54  ;;  %v13700_v30 = vld [vmem:[%s18606_s5 + $0xfb0] ss:$20 sps:$4 sm:$0xff]   ;;  %v13701_v54 = vld [vmem:[%s18606_s5 + $0x948] ss:$20 sps:$4 sm:$0xff]  }
 0x7db   : > { %11737 = vmatpush3.bf16.msra.mxu0 %v13663_v37  ;;  %v13702_v37 = vld [vmem:[%s18606_s5 + $0x10c8] ss:$20 sps:$4 sm:$0xff]  }
 0x7dc   : > { %11803 = vmatpush3.bf16.msra.mxu1 %v13664_v18  ;;  %11738 = vmatprep.subr.bf16.mxu0 %v13665_v33  ;;  %v13703_v18 = vld [vmem:[%s18606_s5 + $0x808] ss:$20 sps:$4 sm:$0xff]  }
 0x7dd   : > { %11804 = vmatprep.subr.bf16.mxu1 %v13666_v40  ;;  %v13704_v33 = vld [vmem:[%s18606_s5 + $0xf88] ss:$20 sps:$4 sm:$0xff]   ;;  %v13705_v40 = vld [vmem:[%s18606_s5 + $0x920] ss:$20 sps:$4 sm:$0xff]  }
 0x7df   : > { %11739 = vmatpush3.bf16.msra.mxu0 %v13667_v50  ;;  %v13706_v50 = vld [vmem:[%s18606_s5 + $0x10a0] ss:$20 sps:$4 sm:$0xff]  }
 0x7e0   : > { %11805 = vmatpush3.bf16.msra.mxu1 %v13668_v24  ;;  %11740 = vmatprep.subr.bf16.mxu0 %v13669_v12  ;;  %v13707_v24 = vld [vmem:[%s18606_s5 + $0x7e0] ss:$20 sps:$4 sm:$0xff]  }
 0x7e1   : > { %11806 = vmatprep.subr.bf16.mxu1 %v13670_v56  ;;  %v13708_v12 = vld [vmem:[%s18606_s5 + $0xf60] ss:$20 sps:$4 sm:$0xff]   ;;  %v13709_v56 = vld [vmem:[%s18606_s5 + $0x8f8] ss:$20 sps:$4 sm:$0xff]  }
 0x7e3   : > { %11741 = vmatpush3.bf16.msra.mxu0 %v13671_v49  ;;  %v13710_v49 = vld [vmem:[%s18606_s5 + $0x1078] ss:$20 sps:$4 sm:$0xff]  }
 0x7e4   : > { %11807 = vmatpush3.bf16.msra.mxu1 %v13672_v0  ;;  %11742 = vmatprep.subr.bf16.mxu0 %v13673_v47  ;;  %v13711_v0 = vld [vmem:[%s18606_s5 + $0x7b8] ss:$20 sps:$4 sm:$0xff]  }
 0x7e5   : > { %11808 = vmatprep.subr.bf16.mxu1 %v13674_v16  ;;  %v13712_v47 = vld [vmem:[%s18606_s5 + $0xf38] ss:$20 sps:$4 sm:$0xff]   ;;  %v13713_v16 = vld [vmem:[%s18606_s5 + $0x8d0] ss:$20 sps:$4 sm:$0xff]  }
 0x7e7   : > { %11743 = vmatpush3.bf16.msra.mxu0 %v13675_v4  ;;  %v13714_v4 = vld [vmem:[%s18606_s5 + $0x1050] ss:$20 sps:$4 sm:$0xff]  }
 0x7e8   : > { %11809 = vmatpush3.bf16.msra.mxu1 %v13676_v51  ;;  %11744 = vmatprep.subr.bf16.mxu0 %v13677_v7  ;;  %v13715_v51 = vld [vmem:[%s18606_s5 + $0x790] ss:$20 sps:$4 sm:$0xff]  }
 0x7e9   : > { %11810 = vmatprep.subr.bf16.mxu1 %v13678_v48  ;;  %v13716_v7 = vld [vmem:[%s18606_s5 + $0xf10] ss:$20 sps:$4 sm:$0xff]   ;;  %v13717_v48 = vld [vmem:[%s18606_s5 + $0xee8] ss:$20 sps:$4 sm:$0xff]  }
 0x7eb   : > { %11745 = vmatpush3.bf16.msra.mxu0 %v13679_v57  ;;  %v13718_v57 = vld [vmem:[%s18606_s5 + $0x1668] ss:$20 sps:$4 sm:$0xff]  }
 0x7ec   : > { %11811 = vmatpush3.bf16.msra.mxu1 %v13680_v32  ;;  %11746 = vmatprep.subr.bf16.mxu0 %v13681_v22  ;;  %v13719_v32 = vld [vmem:[%s18606_s5 + $0xda8] ss:$20 sps:$4 sm:$0xff]  }
 0x7ed   : > { %11812 = vmatprep.subr.bf16.mxu1 %v13682_v55  ;;  %v13720_v22 = vld [vmem:[%s18606_s5 + $0x1528] ss:$20 sps:$4 sm:$0xff]   ;;  %v13721_v55 = vld [vmem:[%s18606_s5 + $0xec0] ss:$20 sps:$4 sm:$0xff]  }
 0x7ef   : > { %11747 = vmatpush3.bf16.msra.mxu0 %v13683_v20  ;;  %v13722_v20 = vld [vmem:[%s18606_s5 + $0x1640] ss:$20 sps:$4 sm:$0xff]  }
 0x7f0   : > { %11813 = vmatpush3.bf16.msra.mxu1 %v13684_v10  ;;  %11776 = vmatprep.subr.bf16.mxu0 %v13685_v19  ;;  %v13723_v10 = vld [vmem:[%s18606_s5 + $0xd80] ss:$20 sps:$4 sm:$0xff]  }
 0x7f1   : > { %11842 = vmatprep.subr.bf16.mxu1 %v13686_v13  ;;  %v13724_v19 = vld [vmem:[%s18606_s5 + $0x1500] ss:$20 sps:$4 sm:$0xff]   ;;  %v13728_v13 = vld [vmem:[%s18606_s5 + $0x14d8] ss:$20 sps:$4 sm:$0xff]  }
 0x7f2   : > { %v9324_v63 = vpop.f32.mrf.mxu0  ;;  %9609 = vmatmul.mubr.bf16.vlgmr.msra.gmra.mxu0 %v16208_v26  ;;  %v13692_v26 = vld [vmem:[%s18606_s5 + $0x1000] ss:$20 sps:$4 sm:$0xff]  }
 0x7f3   : > { %v9325_v39 = vadd.f32 %v9324_v63, %v17936_v25  ;;  %v9365_v31 = vpop.f32.mrf.mxu1  ;;  %9729 = vmatmul.mubr.bf16.vlgmr.msra.gmra.mxu1 %v16661_v34  ;;  %11777 = vmatpush3.bf16.msra.mxu0 %v13687_v53  ;;  %v13693_v25 = vld [vmem:[%s18606_s5 + $0x998] ss:$20 sps:$4 sm:$0xff]   ;;  %v13730_v53 = vld [vmem:[%s18606_s5 + $0x15f0] ss:$20 sps:$4 sm:$0xff]   ;;  %v13733_v63 = vld [vmem:[%s18606_s5 + $0xe48] ss:$20 sps:$4 sm:$0xff]  }
 0x7f4   : > { %9688 = vmatprep.mubr.bf16.mxu0 %v16224_v35  ;;  %11843 = vmatpush3.bf16.msra.mxu1 %v13688_v59  ;;  %v9326_v2 = vpop.f32.mrf.mxu0  ;;  %v13694_v35 = vld [vmem:[%s18606_s5 + $0x1118] ss:$20 sps:$4 sm:$0xff]   ;;  %v13731_v59 = vld [vmem:[%s18606_s5 + $0xd30] ss:$20 sps:$4 sm:$0xff]  }
 0x7f5   : > { %v18141_v17 = vadd.f32 %v9365_v31, %v9325_v39  ;;  %9808 = vmatprep.mubr.bf16.mxu1 %v16674_v62  ;;  %v9327_v34 = vadd.f32 %v9326_v2, %v17942_v36  ;;  %v9367_v58 = vpop.f32.mrf.mxu1  ;;  %11778 = vmatprep.subr.bf16.mxu0 %v13689_v8  ;;  %v13696_v36 = vld [vmem:[%s18606_s5 + $0xfd8] ss:$20 sps:$4 sm:$0xff]   ;;  %v13732_v8 = vld [vmem:[%s18606_s5 + $0x14b0] ss:$20 sps:$4 sm:$0xff]   ;;  %v13735_v39 = vld [vmem:[%s18606_s5 + $0xd08] ss:$20 sps:$4 sm:$0xff]  }
 0x7f6   : > { %v9328_v5 = vpop.f32.mrf.mxu0  ;;  %11844 = vmatprep.subr.bf16.mxu1 %v13690_v6  ;;  %v13734_v6 = vld [vmem:[%s18606_s5 + $0x15c8] ss:$20 sps:$4 sm:$0xff]   ;;  %v13738_v2 = vld [vmem:[%s18606_s5 + $0x15a0] ss:$20 sps:$4 sm:$0xff]  }
 0x7f7   : > { %v18148_v9 = vadd.f32 %v9367_v58, %v9327_v34  ;;  %v9369_v46 = vpop.f32.mrf.mxu1  ;;  %11779 = vmatpush3.bf16.msra.mxu0 %v13691_v45  ;;  %v13736_v31 = vld [vmem:[%s18606_s5 + $0x1488] ss:$20 sps:$4 sm:$0xff]   ;;  %v13737_v45 = vld [vmem:[%s18606_s5 + $0xe20] ss:$20 sps:$4 sm:$0xff]   ;;  %v13741_v34 = vld [vmem:[%s18606_s5 + $0xdf8] ss:$20 sps:$4 sm:$0xff]  }
 0x7f8   : > { %11845 = vmatpush3.bf16.msra.mxu1 %v13692_v26  ;;  %v9329_v62 = vpop.f32.mrf.mxu0  ;;  %11780 = vmatprep.subr.bf16.mxu0 %v13693_v25  ;;  %v13739_v26 = vld [vmem:[%s18606_s5 + $0xce0] ss:$20 sps:$4 sm:$0xff]   ;;  %v13742_v58 = vld [vmem:[%s18606_s5 + $0x1578] ss:$20 sps:$4 sm:$0xff]   ;;  %v13745_v46 = vld [vmem:[%s18606_s5 + $0xdd0] ss:$20 sps:$4 sm:$0xff]  }
 0x7f9   : > { %v9370_v1 = vpop.f32.mrf.mxu1  ;;  %11846 = vmatprep.subr.bf16.mxu1 %v13694_v35  ;;  %v13740_v25 = vld [vmem:[%s18606_s5 + $0x1460] ss:$20 sps:$4 sm:$0xff]   ;;  %v13743_v35 = vld [vmem:[%s18606_s5 + $0xcb8] ss:$20 sps:$4 sm:$0xff]   ;;  %v13747_v62 = vld [vmem:[%s18606_s5 + $0xc90] ss:$20 sps:$4 sm:$0xff]  }
 0x7fa   : > { %v13744_v5 = vld [vmem:[%s18606_s5 + $0x1438] ss:$20 sps:$4 sm:$0xff]  }
 0x7fb   : > { %11781 = vmatpush3.bf16.msra.mxu0 %v13695_v15  ;;  %v13746_v15 = vld [vmem:[%s18606_s5 + $0x1550] ss:$20 sps:$4 sm:$0xff]   ;;  %v13771_v1 = vld [vmem:[%s18608_s7 + $0xf8] sm:$0xff]  }
 0x7fc   : > { %11847 = vmatpush3.bf16.msra.mxu1 %v13696_v36  ;;  %11782 = vmatprep.subr.bf16.mxu0 %v13697_v27  ;;  %v13748_v36 = vld [vmem:[%s18606_s5 + $0x1410] ss:$20 sps:$4 sm:$0xff]   ;;  %v13749_v27 = vld [vmem:[%s18606_s5 + $0x13e8] ss:$20 sps:$4 sm:$0xff]  }
 0x7fd   : > { %11848 = vmatprep.subr.bf16.mxu1 %v13698_v43  ;;  %v13750_v43 = vld [vmem:[%s18606_s5 + $0x12a8] ss:$20 sps:$4 sm:$0xff]  }
 0x7ff   : > { %11783 = vmatpush3.bf16.msra.mxu0 %v13699_v21  ;;  %v13751_v21 = vld [vmem:[%s18606_s5 + $0x13c0] ss:$20 sps:$4 sm:$0xff]  }
 0x800   : > { %11849 = vmatpush3.bf16.msra.mxu1 %v13700_v30  ;;  %11784 = vmatprep.subr.bf16.mxu0 %v13701_v54  ;;  %v13772_v30 = vld [vmem:[%s18608_s7 + $0xb8] sm:$0xff]  }
 0x801   : > { %11850 = vmatprep.subr.bf16.mxu1 %v13702_v37  ;;  %v13775_v37 = vld [vmem:[%s18608_s7 + $0xf0] sm:$0xff]  }
 0x803   : > { %11785 = vmatpush3.bf16.msra.mxu0 %v13703_v18 }
 0x804   : > { %11851 = vmatpush3.bf16.msra.mxu1 %v13704_v33  ;;  %11786 = vmatprep.subr.bf16.mxu0 %v13705_v40  ;;  %v13752_v40 = vld [vmem:[%s18606_s5 + $0x1280] ss:$20 sps:$4 sm:$0xff]  }
 0x805   : > { %11852 = vmatprep.subr.bf16.mxu1 %v13706_v50 }
 0x807   : > { %11787 = vmatpush3.bf16.msra.mxu0 %v13707_v24 }
 0x808   : > { %11853 = vmatpush3.bf16.msra.mxu1 %v13708_v12  ;;  %11788 = vmatprep.subr.bf16.mxu0 %v13709_v56 }
 0x809   : > { %11854 = vmatprep.subr.bf16.mxu1 %v13710_v49  ;;  %v13754_v49 = vld [vmem:[%s18606_s5 + $0x1258] ss:$20 sps:$4 sm:$0xff]  }
 0x80b   : > { %11789 = vmatpush3.bf16.msra.mxu0 %v13711_v0 }
 0x80c   : > { %11855 = vmatpush3.bf16.msra.mxu1 %v13712_v47  ;;  %11790 = vmatprep.subr.bf16.mxu0 %v13713_v16  ;;  %v13755_v47 = vld [vmem:[%s18606_s5 + $0x1370] ss:$20 sps:$4 sm:$0xff]  }
 0x80d   : > { %11856 = vmatprep.subr.bf16.mxu1 %v13714_v4  ;;  %v13780_v4 = vld [vmem:[%s18608_s7 + $0xa8] sm:$0xff]  }
 0x80f   : > { %11791 = vmatpush3.bf16.msra.mxu0 %v13715_v51  ;;  %v13783_v51 = vld [vmem:[%s18608_s7 + $0xe0] sm:$0xff]  }
 0x810   : > { %11857 = vmatpush3.bf16.msra.mxu1 %v13716_v7  ;;  %11820 = vmatprep.subr.bf16.mxu0 %v13717_v48  ;;  %v13756_v7 = vld [vmem:[%s18606_s5 + $0x1230] ss:$20 sps:$4 sm:$0xff]   ;;  %v13757_v48 = vld [vmem:[%s18606_s5 + $0x1348] ss:$20 sps:$4 sm:$0xff]  }
 0x811   : > { %11886 = vmatprep.subr.bf16.mxu1 %v13718_v57  ;;  %v13784_v57 = vld [vmem:[%s18608_s7 + $0xa0] sm:$0xff]  }
 0x812   : > { %9689 = vmatmul.mubr.bf16.vlgmr.msra.gmra.mxu0 %v16455_v44  ;;  %v13725_v44 = vld [vmem:[%s18606_s5 + $0xe98] ss:$20 sps:$4 sm:$0xff]  }
 0x813   : > { %9809 = vmatmul.mubr.bf16.vlgmr.msra.gmra.mxu1 %v16879_v42  ;;  %11821 = vmatpush3.bf16.msra.mxu0 %v13719_v32  ;;  %v13726_v42 = vld [vmem:[%s18606_s5 + $0x1618] ss:$20 sps:$4 sm:$0xff]  }
 0x814   : > { %9768 = vmatprep.mubr.bf16.mxu0 %v16470_v29  ;;  %11887 = vmatpush3.bf16.msra.mxu1 %v13720_v22  ;;  %v13727_v29 = vld [vmem:[%s18606_s5 + $0xd58] ss:$20 sps:$4 sm:$0xff]   ;;  %v13758_v22 = vld [vmem:[%s18606_s5 + $0x1208] ss:$20 sps:$4 sm:$0xff]  }
 0x815   : > { %9888 = vmatprep.mubr.bf16.mxu1 %v16893_v28  ;;  %11822 = vmatprep.subr.bf16.mxu0 %v13721_v55  ;;  %v13729_v28 = vld [vmem:[%s18606_s5 + $0xe70] ss:$20 sps:$4 sm:$0xff]   ;;  %v13787_v32 = vld [vmem:[%s18608_s7 + $0xd8] sm:$0xff]   ;;  %v13759_v55 = vld [vmem:[%s18606_s5 + $0x1320] ss:$20 sps:$4 sm:$0xff]  }
 0x816   : > { %11888 = vmatprep.subr.bf16.mxu1 %v13722_v20  ;;  %v13788_v20 = vld [vmem:[%s18608_s7 + $0x98] sm:$0xff]  }
 0x817   : > { %11823 = vmatpush3.bf16.msra.mxu0 %v13723_v10  ;;  %v13791_v10 = vld [vmem:[%s18608_s7 + $0xd0] sm:$0xff]  }
 0x818   : > { %11889 = vmatpush3.bf16.msra.mxu1 %v13724_v19  ;;  %11824 = vmatprep.subr.bf16.mxu0 %v13725_v44  ;;  %v13760_v19 = vld [vmem:[%s18606_s5 + $0x11e0] ss:$20 sps:$4 sm:$0xff]   ;;  %v13761_v44 = vld [vmem:[%s18606_s5 + $0x12f8] ss:$20 sps:$4 sm:$0xff]  }
 0x819   : > { %11890 = vmatprep.subr.bf16.mxu1 %v13726_v42  ;;  %v13792_v42 = vld [vmem:[%s18608_s7 + $0x90] sm:$0xff]  }
 0x81b   : > { %11825 = vmatpush3.bf16.msra.mxu0 %v13727_v29  ;;  %v13793_v29 = vld [vmem:[%s18608_s7 + $0xc8] sm:$0xff]  }
 0x81c   : > { %11891 = vmatpush3.bf16.msra.mxu1 %v13728_v13  ;;  %11826 = vmatprep.subr.bf16.mxu0 %v13729_v28  ;;  %v13762_v13 = vld [vmem:[%s18606_s5 + $0x11b8] ss:$20 sps:$4 sm:$0xff]   ;;  %v13763_v28 = vld [vmem:[%s18606_s5 + $0x12d0] ss:$20 sps:$4 sm:$0xff]  }
 0x81d   : > { %11892 = vmatprep.subr.bf16.mxu1 %v13730_v53  ;;  %v13794_v53 = vld [vmem:[%s18608_s7 + $0x88] sm:$0xff]  }
 0x81f   : > { %11827 = vmatpush3.bf16.msra.mxu0 %v13731_v59  ;;  %v13795_v59 = vld [vmem:[%s18608_s7 + $0xc0] sm:$0xff]  }
 0x820   : > { %11893 = vmatpush3.bf16.msra.mxu1 %v13732_v8  ;;  %11828 = vmatprep.subr.bf16.mxu0 %v13733_v63  ;;  %v13764_v8 = vld [vmem:[%s18606_s5 + $0x1190] ss:$20 sps:$4 sm:$0xff]   ;;  %v13765_v63 = vld [vmem:[%s18608_s7 + $0x78] sm:$0xff]  }
 0x821   : > { %11894 = vmatprep.subr.bf16.mxu1 %v13734_v6  ;;  %v13796_v6 = vld [vmem:[%s18608_s7 + $0x80] sm:$0xff]  }
 0x823   : > { %11829 = vmatpush3.bf16.msra.mxu0 %v13735_v39  ;;  %v13766_v39 = vld [vmem:[%s18608_s7 + $0x38] sm:$0xff]  }
 0x824   : > { %11895 = vmatpush3.bf16.msra.mxu1 %v13736_v31  ;;  %11830 = vmatprep.subr.bf16.mxu0 %v13737_v45  ;;  %v13767_v31 = vld [vmem:[%s18608_s7 + $0x70] sm:$0xff]   ;;  %v9897_v45 = vpack.c.bf16 %v17726_v11, %v17726_v11  ;;  %v13770_v11 = vld [vmem:[%s18608_s7 + $0x28] sm:$0xff]  }
 0x825   : > { %11896 = vmatprep.subr.bf16.mxu1 %v13738_v2  ;;  %v13768_v2 = vld [vmem:[%s18608_s7 + $0x30] sm:$0xff]  }
 0x827   : > { %11831 = vmatpush3.bf16.msra.mxu0 %v13739_v26  ;;  %v13769_v26 = vld [vmem:[%s18608_s7 + $0x68] sm:$0xff]  }
 0x828   : > { %11897 = vmatpush3.bf16.msra.mxu1 %v13740_v25  ;;  %11832 = vmatprep.subr.bf16.mxu0 %v13741_v34  ;;  %v13774_v25 = vld [vmem:[%s18608_s7 + $0x20] sm:$0xff]   ;;  %v13777_v34 = vld [vmem:[%s18608_s7 + $0x58] sm:$0xff]  }
 0x829   : > { %11898 = vmatprep.subr.bf16.mxu1 %v13742_v58  ;;  %v13778_v58 = vld [vmem:[%s18608_s7 + $0x18] sm:$0xff]  }
 0x82b   : > { %11833 = vmatpush3.bf16.msra.mxu0 %v13743_v35  ;;  %v13781_v35 = vld [vmem:[%s18608_s7 + $0x50] sm:$0xff]  }
 0x82c   : > { %11899 = vmatpush3.bf16.msra.mxu1 %v13744_v5  ;;  %11834 = vmatprep.subr.bf16.mxu0 %v13745_v46  ;;  %v13782_v5 = vld [vmem:[%s18608_s7 + $0x10] sm:$0xff]   ;;  %v13785_v46 = vld [vmem:[%s18608_s7 + $0x48] sm:$0xff]  }
 0x82d   : > { %11900 = vmatprep.subr.bf16.mxu1 %v13746_v15  ;;  %v13786_v15 = vld [vmem:[%s18608_s7 + $0x8] sm:$0xff]  }
 0x82f   : > { %11835 = vmatpush3.bf16.msra.mxu0 %v13747_v62  ;;  %v13789_v62 = vld [vmem:[%s18608_s7 + $0x40] sm:$0xff]  }
 0x830   : > { %11901 = vmatpush3.bf16.msra.mxu1 %v13748_v36  ;;  %11864 = vmatprep.subr.bf16.mxu0 %v13749_v27  ;;  %v13790_v36 = vld [vmem:[%s18608_s7] sm:$0xff]  }
 0x831   : > { %11930 = vmatprep.subr.bf16.mxu1 %v13771_v1  ;;  %v9896_v1 = vpack.c.bf16 %v17709_v23, %v17709_v23 }
 0x832   : > { %v9406_v54 = vpop.f32.mrf.mxu0  ;;  %9769 = vmatmul.mubr.bf16.vlgmr.msra.gmra.mxu0 %v16666_v41  ;;  %v13753_v41 = vld [vmem:[%s18606_s5 + $0x1398] ss:$20 sps:$4 sm:$0xff]  }
 0x833   : > { %v9407_v18 = vadd.f32 %v9406_v54, %v18141_v17  ;;  %v9447_v33 = vpop.f32.mrf.mxu1  ;;  %9889 = vmatmul.mubr.bf16.vlgmr.msra.gmra.mxu1 %v17090_v61  ;;  %11865 = vmatpush3.bf16.msra.mxu0 %v13750_v43  ;;  %v13776_v61 = vld [vmem:[%s18608_s7 + $0xb0] sm:$0xff]  }
 0x834   : > { %9848 = vmatprep.mubr.bf16.mxu0 %v16682_v3  ;;  %v18341_v50 = vpop.f32.mrf.mxu0  ;;  %11866 = vmatprep.subr.bf16.mxu0 %v13751_v21  ;;  %v13779_v3 = vld [vmem:[%s18608_s7 + $0xe8] sm:$0xff]  }
 0x835   : > { %v18346_v24 = vadd.f32 %v9447_v33, %v9407_v18  ;;  %v18348_v17 = vpop.f32.mrf.mxu1  ;;  %11931 = vmatpush3.bf16.msra.mxu1 %v13772_v30  ;;  %v9409_v27 = vadd.f32 %v18341_v50, %v18148_v9 }
 0x836   : > { %v9410_v12 = vpop.f32.mrf.mxu0  ;;  %11932 = vmatprep.subr.bf16.mxu1 %v13775_v37 }
 0x837   : > { %v9451_v56 = vpop.f32.mrf.mxu1  ;;  %11867 = vmatpush3.bf16.msra.mxu0 %v13752_v40  ;;  %v9450_v21 = vadd.f32 %v18348_v17, %v9409_v27  ;;  %v13797_v17 = vld [vmem:[%s18608_s7 + $0x138] sm:$0xff]  }
 0x838   : > { %v9411_v0 = vpop.f32.mrf.mxu0  ;;  %11868 = vmatprep.subr.bf16.mxu0 %v13753_v41  ;;  %v13799_v56 = vld [vmem:[%s18608_s7 + $0x128] sm:$0xff]  }
 0x839   : > { %v9452_v16 = vpop.f32.mrf.mxu1  ;;  %11933 = vmatpush3.bf16.msra.mxu1 %v13776_v61  ;;  %v13801_v0 = vld [vmem:[%s18608_s7 + $0x118] sm:$0xff]  }
 0x83a   : > { %11934 = vmatprep.subr.bf16.mxu1 %v13779_v3  ;;  %v13802_v16 = vld [vmem:[%s18608_s7 + $0x110] sm:$0xff]  }
 0x83b   : > { %11869 = vmatpush3.bf16.msra.mxu0 %v13754_v49  ;;  %v13800_v49 = vld [vmem:[%s18608_s7 + $0x120] sm:$0xff]  }
 0x83c   : > { %11870 = vmatprep.subr.bf16.mxu0 %v13755_v47 }
 0x83d   : > { %11935 = vmatpush3.bf16.msra.mxu1 %v13780_v4 }
 0x83e   : > { %11936 = vmatprep.subr.bf16.mxu1 %v13783_v51 }
 0x83f   : > { %11871 = vmatpush3.bf16.msra.mxu0 %v13756_v7 }
 0x840   : > { %11872 = vmatprep.subr.bf16.mxu0 %v13757_v48 }
 0x841   : > { %11937 = vmatpush3.bf16.msra.mxu1 %v13784_v57 }
 0x842   : > { %11938 = vmatprep.subr.bf16.mxu1 %v13787_v32 }
 0x843   : > { %11873 = vmatpush3.bf16.msra.mxu0 %v13758_v22 }
 0x844   : > { %11874 = vmatprep.subr.bf16.mxu0 %v13759_v55 }
 0x845   : > { %11939 = vmatpush3.bf16.msra.mxu1 %v13788_v20 }
 0x846   : > { %11940 = vmatprep.subr.bf16.mxu1 %v13791_v10  ;;  %v13803_v10 = vld [vmem:[%s18608_s7 + $0x108] sm:$0xff]  }
 0x847   : > { %11875 = vmatpush3.bf16.msra.mxu0 %v13760_v19  ;;  %v13804_v19 = vld [vmem:[%s18608_s7 + $0x100] sm:$0xff]  }
 0x848   : > { %11876 = vmatprep.subr.bf16.mxu0 %v13761_v44  ;;  %v8792_v44 = vrot.slane %v17901_v60, %v16429_v14  ;;  %v13806_v14 = vld [vmem:[%s18610_s9 + $0x30] sm:$0xff]   ;;  %v13807_v60 = vld [vmem:[%s18610_s9 + $0x28] sm:$0xff]  }
 0x849   : > { %11941 = vmatpush3.bf16.msra.mxu1 %v13792_v42 }
 0x84a   : > { %11942 = vmatprep.subr.bf16.mxu1 %v13793_v29 }
 0x84b   : > { %11877 = vmatpush3.bf16.msra.mxu0 %v13762_v13 }
 0x84c   : > { %11878 = vmatprep.subr.bf16.mxu0 %v13763_v28 }
 0x84d   : > { %11943 = vmatpush3.bf16.msra.mxu1 %v13794_v53 }
 0x84e   : > { %11944 = vmatprep.subr.bf16.mxu1 %v13795_v59 }
 0x84f   : > { %11879 = vmatpush3.bf16.msra.mxu0 %v13764_v8 }
 0x850   : > { %11908 = vmatprep.subr.bf16.mxu0 %v13765_v63 }
 0x851   : > { %11945 = vmatpush3.bf16.msra.mxu1 %v13796_v6 }
 0x852   : > { %9849 = vmatmul.mubr.bf16.vlgmr.msra.gmra.mxu0 %v16886_v38  ;;  %12620 = vmatprep.subr.bf16.mxu1 %v18665_v52  ;;  %v13773_v38 = vld [vmem:[%s18608_s7 + $0x60] sm:$0xff]  }
 0x853   : > { %11909 = vmatpush3.bf16.msra.mxu0 %v13766_v39  ;;  %10254 = vmatprep.mubr.bf16.mxu0 %v9897_v45 }
 0x854   : > { %11910 = vmatprep.subr.bf16.mxu0 %v13767_v31 }
 0x857   : > { %11911 = vmatpush3.bf16.msra.mxu0 %v13768_v2 }
 0x858   : > { %11912 = vmatprep.subr.bf16.mxu0 %v13769_v26  ;;  %v13805_v26 = vld [vmem:[%s18610_s9 + $0x38] sm:$0xff]  }
 0x85b   : > { %11913 = vmatpush3.bf16.msra.mxu0 %v13770_v11  ;;  %v13808_v11 = vld [vmem:[%s18610_s9 + $0x20] sm:$0xff]  }
 0x85c   : > { %11914 = vmatprep.subr.bf16.mxu0 %v13773_v38  ;;  %v13809_v38 = vld [vmem:[%s18610_s9 + $0x18] sm:$0xff]  }
 0x85f   : > { %11915 = vmatpush3.bf16.msra.mxu0 %v13774_v25 }
 0x860   : > { %11916 = vmatprep.subr.bf16.mxu0 %v13777_v34 }
 0x863   : > { %11917 = vmatpush3.bf16.msra.mxu0 %v13778_v58 }
 0x864   : > { %11918 = vmatprep.subr.bf16.mxu0 %v13781_v35  ;;  %v13810_v35 = vld [vmem:[%s18610_s9 + $0x10] sm:$0xff]  }
 0x867   : > { %11919 = vmatpush3.bf16.msra.mxu0 %v13782_v5 }
 0x868   : > { %11920 = vmatprep.subr.bf16.mxu0 %v13785_v46 }
 0x86b   : > { %11921 = vmatpush3.bf16.msra.mxu0 %v13786_v15 }
 0x86c   : > { %11922 = vmatprep.subr.bf16.mxu0 %v13789_v62 }
 0x86f   : > { %11923 = vmatpush3.bf16.msra.mxu0 %v13790_v36 }
 0x870   : > { %12600 = vmatprep.subr.bf16.mxu0 %v18665_v52 }
 0x872   : > { %v9488_v43 = vpop.f32.mrf.mxu0  ;;  %10255 = vmatmul.mubr.bf16.vlgmr.msra.gmra.mxu0 %v9896_v1  ;;  %v13811_v1 = vld [vmem:[%s18610_s9 + $0x8] sm:$0xff]  }
 0x873   : > { %v9489_v30 = vadd.f32 %v9488_v43, %v18346_v24  ;;  %v9529_v54 = vpop.f32.mrf.mxu1  ;;  %12616 = vmatprep.mubr.msk.bf16.mxu0 %vm13878_vm2, %v18665_v52  ;;  %12601 = vmatpush3.bf16.msra.mxu0 %v13797_v17  ;;  %v13798_v24 = vld [vmem:[%s18608_s7 + $0x130] sm:$0xff]  }
 0x874   : > { %v9490_v37 = vpop.f32.mrf.mxu0  ;;  %12602 = vmatprep.subr.bf16.mxu0 %v18665_v52 }
 0x875   : > { %v9491_v18 = vadd.f32 %v9490_v37, %v9450_v21  ;;  %v9531_v33 = vpop.f32.mrf.mxu1  ;;  %v9530_v9 = vadd.f32 %v9529_v54, %v9489_v30 }
 0x876   : > { %v9492_v40 = vpop.f32.mrf.mxu0 }
 0x877   : > { %v9532_v50 = vadd.f32 %v9531_v33, %v9491_v18  ;;  %v9533_v41 = vpop.f32.mrf.mxu1  ;;  %v9898_v3 = vpack.c.bf16 %v9530_v9, %v9530_v9  ;;  %12603 = vmatpush3.bf16.msra.mxu0 %v13798_v24 }
 0x878   : > { %v9493_v23 = vpop.f32.mrf.mxu0  ;;  %12604 = vmatprep.subr.bf16.mxu0 %v18665_v52 }
 0x879   : > { %v9899_v61 = vpack.c.bf16 %v9532_v50, %v9532_v50  ;;  %v9534_v12 = vpop.f32.mrf.mxu1 }
 0x87b   : > { %10294 = vmatprep.mubr.bf16.mxu1 %v9899_v61  ;;  %12605 = vmatpush3.bf16.msra.mxu0 %v13799_v56 }
 0x87c   : > { %10295 = vmatmul.mubr.bf16.vlgmr.msra.gmra.mxu1 %v9898_v3  ;;  %12606 = vmatprep.subr.bf16.mxu0 %v18665_v52 }
 0x87d   : > { %12636 = vmatprep.mubr.msk.bf16.mxu1 %vm13878_vm2, %v18665_v52  ;;  %12621 = vmatpush3.bf16.msra.mxu1 %v13805_v26 }
 0x87e   : > { %12622 = vmatprep.subr.bf16.mxu1 %v18665_v52 }
 0x87f   : > { %12607 = vmatpush3.bf16.msra.mxu0 %v13800_v49 }
 0x880   : > { %12608 = vmatprep.subr.bf16.mxu0 %v18665_v52 }
 0x881   : > { %12623 = vmatpush3.bf16.msra.mxu1 %v13806_v14 }
 0x882   : > { %12624 = vmatprep.subr.bf16.mxu1 %v18665_v52 }
 0x883   : > { %12609 = vmatpush3.bf16.msra.mxu0 %v13801_v0 }
 0x884   : > { %12610 = vmatprep.subr.bf16.mxu0 %v18665_v52 }
 0x885   : > { %12625 = vmatpush3.bf16.msra.mxu1 %v13807_v60 }
 0x886   : > { %12626 = vmatprep.subr.bf16.mxu1 %v18665_v52 }
 0x887   : > { %12611 = vmatpush3.bf16.msra.mxu0 %v13802_v16 }
 0x888   : > { %12612 = vmatprep.subr.bf16.mxu0 %v18665_v52 }
 0x889   : > { %12627 = vmatpush3.bf16.msra.mxu1 %v13808_v11 }
 0x88a   : > { %12628 = vmatprep.subr.bf16.mxu1 %v18665_v52 }
 0x88b   : > { %12613 = vmatpush3.bf16.msra.mxu0 %v13803_v10 }
 0x88c   : > { %12614 = vmatprep.subr.bf16.mxu0 %v18665_v52 }
 0x88d   : > { %12629 = vmatpush3.bf16.msra.mxu1 %v13809_v38 }
 0x88e   : > { %12630 = vmatprep.subr.bf16.mxu1 %v18665_v52 }
 0x88f   : > { %12615 = vmatpush3.bf16.msra.mxu0 %v13804_v19 }
 0x891   : > { %12631 = vmatpush3.bf16.msra.mxu1 %v13810_v35 }
 0x892   : > { %v11726_v47 = vpop.f32.mrf.mxu0  ;;  %12632 = vmatprep.subr.bf16.mxu1 %v18665_v52 }
 0x893   : > { %v11770_v4 = vpop.f32.mrf.mxu1 }
 0x894   : > { %v11727_v51 = vpop.f32.mrf.mxu0 }
 0x895   : > { %v11728_v7 = vadd.f32 %v11727_v51, %v11726_v47  ;;  %v11771_v48 = vpop.f32.mrf.mxu1  ;;  %12633 = vmatpush3.bf16.msra.mxu1 %v13811_v1 }
 0x896   : > { %v11772_v57 = vadd.f32 %v11771_v48, %v11770_v4  ;;  %v11729_v32 = vpop.f32.mrf.mxu0  ;;  %12634 = vmatprep.subr.bf16.mxu1 %v18665_v52 }
 0x897   : > { %v11773_v22 = vpop.f32.mrf.mxu1  ;;  %v9571_v28 = vadd.f32 %v11728_v7, %v8792_v44  ;;  %v9981_v32 = vld [vmem:[%s18609_s8] sm:$0x1] }
 0x898   : > { %v11730_v55 = vpop.f32.mrf.mxu0 }
 0x899   : > { %v11774_v20 = vpop.f32.mrf.mxu1 }
 0x8b2   : > { %v11748_v42 = vpop.f32.mrf.mxu0 }
 0x8b3   : > { %v11814_v29 = vpop.f32.mrf.mxu1 }
 0x8b4   : > { %v11749_v13 = vpop.f32.mrf.mxu0 }
 0x8b5   : > { %v11750_v53 = vadd.f32 %v11749_v13, %v11748_v42  ;;  %v11815_v59 = vpop.f32.mrf.mxu1 }
 0x8b6   : > { %v11816_v8 = vadd.f32 %v11815_v59, %v11814_v29  ;;  %v11751_v63 = vpop.f32.mrf.mxu0  ;;  %v13812_v29 = vld [vmem:[%s18610_s9] sm:$0xff]  }
 0x8b7   : > { %v9611_v6 = vadd.f32 %v11750_v53, %v9571_v28  ;;  %v11817_v39 = vpop.f32.mrf.mxu1  ;;  %12635 = vmatpush3.bf16.msra.mxu1 %v13812_v29 }
 0x8b8   : > { %v11752_v31 = vpop.f32.mrf.mxu0 }
 0x8b9   : > { %v11818_v45 = vpop.f32.mrf.mxu1  ;;  %v9651_v2 = vadd.f32 %v11772_v57, %v9611_v6  ;;  %v10359_v6 = vld [vmem:[%s18611_s10] sm:$0x1] }
 0x8d2   : > { %v11792_v25 = vpop.f32.mrf.mxu0 }
 0x8d3   : > { %v11858_v34 = vpop.f32.mrf.mxu1 }
 0x8d4   : > { %v11793_v58 = vpop.f32.mrf.mxu0 }
 0x8d5   : > { %v11794_v5 = vadd.f32 %v11793_v58, %v11792_v25  ;;  %v11859_v46 = vpop.f32.mrf.mxu1 }
 0x8d6   : > { %v11795_v15 = vpop.f32.mrf.mxu0  ;;  %v11860_v12 = vadd.f32 %v11859_v46, %v11858_v34 }
 0x8d7   : > { %v9691_v62 = vadd.f32 %v11794_v5, %v9651_v2  ;;  %v11861_v36 = vpop.f32.mrf.mxu1 }
 0x8d8   : > { %v11796_v27 = vpop.f32.mrf.mxu0 }
 0x8d9   : > { %v11862_v43 = vpop.f32.mrf.mxu1  ;;  %v9731_v21 = vadd.f32 %v11816_v8, %v9691_v62 }
 0x8f2   : > { %v11836_v30 = vpop.f32.mrf.mxu0 }
 0x8f3   : > { %v11902_v54 = vpop.f32.mrf.mxu1 }
 0x8f4   : > { %v11837_v37 = vpop.f32.mrf.mxu0 }
 0x8f5   : > { %v11903_v18 = vpop.f32.mrf.mxu1  ;;  %v11838_v41 = vadd.f32 %v11837_v37, %v11836_v30 }
 0x8f6   : > { %v11839_v33 = vpop.f32.mrf.mxu0  ;;  %v11904_v49 = vadd.f32 %v11903_v18, %v11902_v54 }
 0x8f7   : > { %v11905_v9 = vpop.f32.mrf.mxu1  ;;  %v9771_v23 = vadd.f32 %v11838_v41, %v9731_v21 }
 0x8f8   : > { %v11840_v40 = vpop.f32.mrf.mxu0 }
 0x8f9   : > { %v11906_v50 = vpop.f32.mrf.mxu1  ;;  %v9811_v3 = vadd.f32 %v11860_v12, %v9771_v23 }
 0x912   : > { %v11880_v61 = vpop.f32.mrf.mxu0 }
 0x914   : > { %v11881_v17 = vpop.f32.mrf.mxu0 }
 0x915   : > { %v11882_v24 = vadd.f32 %v11881_v17, %v11880_v61 }
 0x916   : > { %v11883_v56 = vpop.f32.mrf.mxu0 }
 0x917   : > { %v9851_v0 = vadd.f32 %v11882_v24, %v9811_v3 }
 0x918   : > { %v11884_v47 = vpop.f32.mrf.mxu0 }
 0x919   : > { %v9891_v52 = vadd.f32 %v11904_v49, %v9851_v0 }
 0x91b   : > { %v9900_v16 = vpack.c.bf16 %v9891_v52, %v9891_v52 }
 0x91d   : > { %12617 = vmatmul.mubr.bf16.vlgmr.msra.gmra.mxu0 %v9900_v16 }
 0x932   : > { %v11924_v4 = vpop.f32.mrf.mxu0 }
 0x934   : > { %v11925_v51 = vpop.f32.mrf.mxu0 }
 0x935   : > { %v11926_v7 = vadd.f32 %v11925_v51, %v11924_v4 }
 0x936   : > { %v11927_v48 = vpop.f32.mrf.mxu0 }
 0x937   : > { %v10257_v20 = vadd.f32 %v11926_v7, %v9981_v32 }
 0x938   : > { %v11928_v57 = vpop.f32.mrf.mxu0 }
 0x93c   : > { %v11946_v22 = vpop.f32.mrf.mxu1 }
 0x93e   : > { %v11947_v55 = vpop.f32.mrf.mxu1 }
 0x93f   : > { %v11948_v10 = vadd.f32 %v11947_v55, %v11946_v22 }
 0x940   : > { %v11949_v19 = vpop.f32.mrf.mxu1 }
 0x941   : > { %v10297_v44 = vadd.f32 %v11948_v10, %v10257_v20 }
 0x942   : > { %v11950_v42 = vpop.f32.mrf.mxu1 }
 0x9dd   : > { %v10336_v13 = vpop.f32.mrf.mxu0 }
 0x9de   : > { %v10337_v28 = vadd.f32 %v10336_v13, %v10297_v44 }
 0x9df   : > { %v12618_v53 = vpop.f32.mrf.mxu0 }
 0x9e0   : > { %v10342_v59 = vpack.c.bf16 %v10337_v28, %v10337_v28 }
 0x9e1   : > { %v10339_v8 = vpop.f32.mrf.mxu0 }
 0x9e2   : > { %12637 = vmatmul.mubr.bf16.vlgmr.msra.gmra.mxu1 %v10342_v59 }
 0x9e3   : > { %v12619_v63 = vpop.f32.mrf.mxu0 }
 0xaa2   : > { %v10442_v39 = vpop.f32.mrf.mxu1 }
 0xaa3   : > { %v10443_v31 = vadd.f32 %v10442_v39, %v10359_v6 }
 0xaa4   : > { %v12638_v45 = vpop.f32.mrf.mxu1 }
 0xaa5   : > { %10448 = vst [vmem:[%s378_s25] sm:$0x1] %v10443_v31 }
 0xaa6   : > { %v10445_v2 = vpop.f32.mrf.mxu1 }
 0xaa7   : > { %13827 = shalt.err (!%p13824_p3)
}
 0xaa8   : > { %s13828_s24 = scalar_lea.hbm %s18560_s13, 16  ;;  %s13832_s12 = scalar_lea.hbm %s18612_s11, 32 }
 0xaa9   : > { %p13829_p4 = scmp.ne.s32.totalorder %s18560_s13, %s13828_s24  ;;  %p13833_p9 = scmp.lt.s32.totalorder %s18560_s13, %s18612_s11 }
 0xaaa   : > { %p13834_p10 = scmp.lt.s32.totalorder %s13832_s12, %s13828_s24 }
 0xaab   : > { %p13830_p7 = pnand %p13829_p4, %p13980_p5 }
 0xaac   : > { %p13835_p11 = por %p13834_p10, %p13833_p9 }
 0xaad   : > { %p13831_p8 = pneg %p13830_p7 }
 0xaaf   : > { %p13836_p12 = pnand %p13835_p11, %p13831_p8 }
 0xab1   : > { %13839 = shalt.err (!%p13836_p12)
}
 0xab2   : > { %12645 = dma.vmem_to_hbm [thread:$0]  (%p13980_p5), %s18562_s29, 16, %s18560_s13, %s10450_s14   ;;  %v12639_v26 = vpop.f32.mrf.mxu1 }
 0xab3 PF: > { %p12651_p13 = scmp.ge.s32.totalorder %s13874_s20, 2  ;;  %s10474_s15 = sand.u32 1, %s13862_s17  }
 0xab4   : > { %s10475_s0 = scalar_lea.sflag [#allocation4], %s10474_s15 }
 0xab5   : > { %p12648_p0 = pnand %p12651_p13, %p13984_p6 }
 0xab7   : > { %p12649_p1 = pneg %p12648_p0 }
 0xab9   : > { %13857 = dma.done.wait (%p12649_p1), %s10475_s0, 16  }
 0xaba   : > { %13859 = vsyncadd (%p12649_p1), %s10475_s0, 4294967280  ;;  %p21_p2 = scmp.ge.s32.totalorder %s13967_s23, 4   ;;  %s18839_s17 = smov %s13866_s18 }
 0xabb   : > { %s18840_s18 = smov %s13870_s19  ;;  %s18841_s19 = smov %s13978_s26 }
 0xabc   : > { %s18842_s20 = smov %s13967_s23  ;;  %23 = sbr.rel (!%p21_p2) target bundleno = 5 (0x5), region = 107 }
 0xac1   :  { %10479 = vsyncpa [#allocation4], 1 }
 0xac2   :  { %10481 = vsyncpa [#allocation4 + $0x1], 1 }

</bundles_post_ra>
